<compile_context>
chip_gen: v7x
topology: tpu7x:2x2x1
jax: 0.10.0
libtpu: 0.0.40
codegen_flags: <defaults>
</compile_context>

<pallas_src>
import math

import jax
import jax.numpy as jnp
from jax import lax
from jax.experimental import pallas as pl
from jax.experimental.pallas import tpu as pltpu

# --- problem sizes (hard-coded inside the PyTorch module forward) ---
N = 5              # boxes / nodes
NFG = 1000         # node feature dim
NFR = 256          # relation feature dim
NG = 4             # number of graph groups
H1 = 100 * N       # 500   (fc hidden)
H2 = 10 * N        # 50    (top_layer hidden)
NUM_CLASSES = 10
LN_EPS = 1e-5
INV_SQRT_NFR = 1.0 / math.sqrt(NFR)

# lane-dense padded sizes
NFG_PAD = 1024
H1_PAD = 512
H2_PAD = 128
NC_PAD = 128

VMEM_LIMIT = 32 * 1024 * 1024   # safe on v5e/v6e (128 MiB) and v7x (64 MiB)


# ----------------------------------------------------------------------------
# Single fused kernel: grid = (NG,), one GCN group per step ("arbitrary",
# because the group sum is accumulated into h1_acc).  The MLP tail runs on
# the last grid step; all MLP weights are VMEM-resident (constant index_map).
# ----------------------------------------------------------------------------
def _fused_kernel(x_ref, wtp_ref, btp_ref, wg_ref, gamma_ref, beta_ref,
                  w1_ref, b1_ref, w2_ref, b2_ref, w3_ref, b3_ref,
                  w4_ref, b4_ref, w5_ref, b5_ref,
                  out_ref, rel_ref, h1_acc):
    g = pl.program_id(0)

    @pl.when(g == 0)
    def _():
        h1_acc[...] = jnp.zeros_like(h1_acc)

    x = x_ref[...]                                              # (N, NFG_PAD) f32
    x_bf = x.astype(jnp.bfloat16)

    # merged theta|phi projection: (N, NFG_PAD) @ (NFG_PAD, 2*NFR) -> (N, 2*NFR)
    tp = jnp.dot(x_bf, wtp_ref[0],
                 preferred_element_type=jnp.float32) + btp_ref[0]
    theta = tp[:, :NFR]                                         # (N, NFR)
    phi = tp[:, NFR:]                                           # (N, NFR)

    # similarity = theta @ phi.T / sqrt(NFR)
    sim = lax.dot_general(theta, phi, (((1,), (1,)), ((), ())),
                          preferred_element_type=jnp.float32) * INV_SQRT_NFR

    # softmax over the last axis (torch dim=2)
    sim_max = jnp.max(sim, axis=-1, keepdims=True)
    e = jnp.exp(sim - sim_max)
    rel = e / jnp.sum(e, axis=-1, keepdims=True)                # (N, N) f32

    # torch semantics: only the last group's relation graph is returned
    @pl.when(g == NG - 1)
    def _():
        rel_ref[...] = rel

    # aggregate + group linear (bias-free); bf16 MXU, f32 accumulation
    agg = jnp.dot(rel.astype(jnp.bfloat16), x_bf,
                  preferred_element_type=jnp.float32)           # (N, NFG_PAD)
    one = jnp.dot(agg.astype(jnp.bfloat16), wg_ref[0],
                  preferred_element_type=jnp.float32)           # (N, NFG_PAD)

    # LayerNorm over the true NFG=1000 features (padded lanes are exact zeros
    # because x and the wg columns are zero-padded; mask them out of the
    # variance anyway and let zero-padded gamma/beta kill them in the output).
    mean = jnp.sum(one, axis=-1, keepdims=True) * (1.0 / NFG)
    lane = lax.broadcasted_iota(jnp.int32, one.shape, 1)
    diff = jnp.where(lane < NFG, one - mean, 0.0)
    var = jnp.sum(diff * diff, axis=-1, keepdims=True) * (1.0 / NFG)
    feat = diff * lax.rsqrt(var + LN_EPS) * gamma_ref[0] + beta_ref[0]

    # fused first MLP layer: h1 += feat.view(1, N*NFG) @ w1
    # (w1 stored as (N, NFG_PAD, H1_PAD); contract each row against its chunk)
    feat_bf = feat.astype(jnp.bfloat16)
    contrib = jnp.zeros((1, H1_PAD), jnp.float32)
    for n in range(N):
        contrib = contrib + jnp.dot(feat_bf[n:n + 1, :], w1_ref[n],
                                    preferred_element_type=jnp.float32)
    h1_acc[...] += contrib

    # MLP tail (fc[1:] + top_layer) on the last group only
    @pl.when(g == NG - 1)
    def _():
        h = jnp.maximum(h1_acc[...] + b1_ref[...], 0.0)
        h = jnp.dot(h.astype(jnp.bfloat16), w2_ref[...],
                    preferred_element_type=jnp.float32) + b2_ref[...]
        h = jnp.maximum(h, 0.0)
        h = jnp.dot(h.astype(jnp.bfloat16), w3_ref[...],
                    preferred_element_type=jnp.float32) + b3_ref[...]
        h = jnp.maximum(h, 0.0)
        h = jnp.dot(h.astype(jnp.bfloat16), w4_ref[...],
                    preferred_element_type=jnp.float32) + b4_ref[...]
        h = jnp.maximum(h, 0.0)
        h = jnp.dot(h.astype(jnp.bfloat16), w5_ref[...],
                    preferred_element_type=jnp.float32) + b5_ref[...]
        out_ref[...] = 1.0 / (1.0 + jnp.exp(-h))


def fused_forward(x_pad, packed):
    (wtp, btp, wg, gamma, beta,
     w1r, b1, w2, b2, w3, b3, w4, b4, w5, b5) = packed
    out_pad, rel = pl.pallas_call(
        _fused_kernel,
        out_shape=(jax.ShapeDtypeStruct((1, NC_PAD), jnp.float32),
                   jax.ShapeDtypeStruct((N, N), jnp.float32)),
        grid_spec=pltpu.PrefetchScalarGridSpec(
            num_scalar_prefetch=0,
            grid=(NG,),
            in_specs=[
                pl.BlockSpec((N, NFG_PAD), lambda g: (0, 0)),              # x (shared)
                pl.BlockSpec((1, NFG_PAD, 2 * NFR), lambda g: (g, 0, 0)),  # W_theta|phi bf16
                pl.BlockSpec((1, 1, 2 * NFR), lambda g: (g, 0, 0)),        # b_theta|phi f32
                pl.BlockSpec((1, NFG_PAD, NFG_PAD), lambda g: (g, 0, 0)),  # W_gcn bf16
                pl.BlockSpec((1, 1, NFG_PAD), lambda g: (g, 0, 0)),        # LN gamma
                pl.BlockSpec((1, 1, NFG_PAD), lambda g: (g, 0, 0)),        # LN beta
                pl.BlockSpec((N, NFG_PAD, H1_PAD), lambda g: (0, 0, 0)),   # w1 (resident)
                pl.BlockSpec((1, H1_PAD), lambda g: (0, 0)),               # b1
                pl.BlockSpec((H1_PAD, H1_PAD), lambda g: (0, 0)),          # w2
                pl.BlockSpec((1, H1_PAD), lambda g: (0, 0)),               # b2
                pl.BlockSpec((H1_PAD, H1_PAD), lambda g: (0, 0)),          # w3
                pl.BlockSpec((1, H1_PAD), lambda g: (0, 0)),               # b3
                pl.BlockSpec((H1_PAD, H2_PAD), lambda g: (0, 0)),          # w4
                pl.BlockSpec((1, H2_PAD), lambda g: (0, 0)),               # b4
                pl.BlockSpec((H2_PAD, NC_PAD), lambda g: (0, 0)),          # w5
                pl.BlockSpec((1, NC_PAD), lambda g: (0, 0)),               # b5
            ],
            out_specs=(pl.BlockSpec((1, NC_PAD), lambda g: (0, 0)),
                       pl.BlockSpec((N, N), lambda g: (0, 0))),
            scratch_shapes=[pltpu.VMEM((1, H1_PAD), jnp.float32)],
        ),
        compiler_params=pltpu.CompilerParams(
            dimension_semantics=("arbitrary",),
            vmem_limit_bytes=VMEM_LIMIT),
    )(x_pad, wtp, btp, wg, gamma, beta,
      w1r, b1, w2, b2, w3, b3, w4, b4, w5, b5)
    return out_pad, rel


# ----------------------------------------------------------------------------
# Parameter init (PyTorch-Linear-style uniform) + packing into padded
# kernel-ready layout (bf16 weights, zero padding to lane-dense sizes).
# ----------------------------------------------------------------------------
def _linear_init(key, fan_in, fan_out, bias=True):
    bound = 1.0 / math.sqrt(fan_in)
    kw, kb = jax.random.split(key)
    w = jax.random.uniform(kw, (fan_in, fan_out), jnp.float32, -bound, bound)
    if not bias:
        return w, None
    b = jax.random.uniform(kb, (1, fan_out), jnp.float32, -bound, bound)
    return w, b


def init_params(key):
    keys = jax.random.split(key, 3 * NG + 5)
    wt, bt, wp, bp, wg = [], [], [], [], []
    for i in range(NG):
        w, b = _linear_init(keys[3 * i + 0], NFG, NFR)
        wt.append(w); bt.append(b)
        w, b = _linear_init(keys[3 * i + 1], NFG, NFR)
        wp.append(w); bp.append(b)
        w, _ = _linear_init(keys[3 * i + 2], NFG, NFG, bias=False)
        wg.append(w)
    gcn_params = (
        jnp.stack(wt),                          # (NG, NFG, NFR)
        jnp.stack(bt),                          # (NG, 1, NFR)
        jnp.stack(wp),
        jnp.stack(bp),
        jnp.stack(wg),                          # (NG, NFG, NFG)
        jnp.ones((NG, 1, NFG), jnp.float32),    # LayerNorm gamma
        jnp.zeros((NG, 1, NFG), jnp.float32),   # LayerNorm beta
    )
    k = 3 * NG
    w1, b1 = _linear_init(keys[k + 0], NFG * N, H1)
    w2, b2 = _linear_init(keys[k + 1], H1, H1)
    w3, b3 = _linear_init(keys[k + 2], H1, H1)
    w4, b4 = _linear_init(keys[k + 3], H1, H2)
    w5, b5 = _linear_init(keys[k + 4], H2, NUM_CLASSES)
    mlp_params = (w1, b1, w2, b2, w3, b3, w4, b4, w5, b5)
    return gcn_params, mlp_params


def _pad_to(a, shape):
    pads = [(0, t - s) for s, t in zip(a.shape, shape)]
    return jnp.pad(a, pads)


def pack_params(gcn_params, mlp_params):
    """f32 torch-layout params -> bf16-weight, zero-padded, kernel-ready."""
    wt, bt, wp, bp, wg, gamma, beta = gcn_params
    wtp = _pad_to(jnp.concatenate([wt, wp], axis=-1),
                  (NG, NFG_PAD, 2 * NFR)).astype(jnp.bfloat16)
    btp = jnp.concatenate([bt, bp], axis=-1)                   # (NG,1,512) f32
    wg_p = _pad_to(wg, (NG, NFG_PAD, NFG_PAD)).astype(jnp.bfloat16)
    gamma_p = _pad_to(gamma, (NG, 1, NFG_PAD))                 # zero pad kills pad lanes
    beta_p = _pad_to(beta, (NG, 1, NFG_PAD))

    w1, b1, w2, b2, w3, b3, w4, b4, w5, b5 = mlp_params
    w1r = _pad_to(w1.reshape(N, NFG, H1),
                  (N, NFG_PAD, H1_PAD)).astype(jnp.bfloat16)
    b1p = _pad_to(b1, (1, H1_PAD))
    w2p = _pad_to(w2, (H1_PAD, H1_PAD)).astype(jnp.bfloat16)
    b2p = _pad_to(b2, (1, H1_PAD))
    w3p = _pad_to(w3, (H1_PAD, H1_PAD)).astype(jnp.bfloat16)
    b3p = _pad_to(b3, (1, H1_PAD))
    w4p = _pad_to(w4, (H1_PAD, H2_PAD)).astype(jnp.bfloat16)
    b4p = _pad_to(b4, (1, H2_PAD))
    w5p = _pad_to(w5, (H2_PAD, NC_PAD)).astype(jnp.bfloat16)
    b5p = _pad_to(b5, (1, NC_PAD))
    return (wtp, btp, wg_p, gamma_p, beta_p,
            w1r, b1p, w2p, b2p, w3p, b3p, w4p, b4p, w5p, b5p)


# ----------------------------------------------------------------------------
# Full forward pass (thin glue in plain JAX, everything hot in one kernel)
# ----------------------------------------------------------------------------
def my_net_forward(x, packed):
    # x: (1, N, NFG)  ==  [B*T, N, NFG] with B*T == 1
    x2d = x.reshape(N, NFG)
    x_pad = jnp.pad(x2d, ((0, 0), (0, NFG_PAD - NFG)))
    out_pad, rel = fused_forward(x_pad, packed)
    return out_pad[:, :NUM_CLASSES], rel


# ----------------------------------------------------------------------------
# Pure-JAX reference (f32 math on the same bf16-rounded weights)
# ----------------------------------------------------------------------------
def reference_forward(x, packed):
    (wtp, btp, wg, gamma, beta,
     w1r, b1, w2, b2, w3, b3, w4, b4, w5, b5) = packed
    wtp_f = wtp[:, :NFG, :].astype(jnp.float32)
    wg_f = wg[:, :NFG, :NFG].astype(jnp.float32)
    gm = gamma[:, :, :NFG]
    bt_ = beta[:, :, :NFG]
    xf = x.reshape(N, NFG)
    acc = jnp.zeros((N, NFG), jnp.float32)
    rel = None
    for i in range(NG):
        tp = xf @ wtp_f[i] + btp[i]
        theta, phi = tp[:, :NFR], tp[:, NFR:]
        sim = (theta @ phi.T) * INV_SQRT_NFR
        rel = jax.nn.softmax(sim, axis=-1)
        one = (rel @ xf) @ wg_f[i]
        mean = one.mean(-1, keepdims=True)
        var = ((one - mean) ** 2).mean(-1, keepdims=True)
        one = (one - mean) / jnp.sqrt(var + LN_EPS) * gm[i] + bt_[i]
        acc = acc + one
    w1f = w1r[:, :NFG, :H1].astype(jnp.float32).reshape(N * NFG, H1)
    h = acc.reshape(1, N * NFG)
    h = jax.nn.relu(h @ w1f + b1[:, :H1])
    h = jax.nn.relu(h @ w2[:H1, :H1].astype(jnp.float32) + b2[:, :H1])
    h = h @ w3[:H1, :H1].astype(jnp.float32) + b3[:, :H1]
    h = jax.nn.relu(h)
    h = jax.nn.relu(h @ w4[:H1, :H2].astype(jnp.float32) + b4[:, :H2])
    h = jax.nn.sigmoid(h @ w5[:H2, :NUM_CLASSES].astype(jnp.float32)
                       + b5[:, :NUM_CLASSES])
    return h, rel


if __name__ == "__main__":
    key = jax.random.PRNGKey(0)
    k_param, k_x = jax.random.split(key)
    gcn_params, mlp_params = init_params(k_param)
    packed = pack_params(gcn_params, mlp_params)

    x = jax.random.normal(k_x, (1, N, NFG), dtype=jnp.float32)

    out, rel = my_net_forward(x, packed)
    out = jax.block_until_ready(out)
    rel = jax.block_until_ready(rel)

    assert out.shape == (1, NUM_CLASSES), out.shape
    assert rel.shape == (N, N), rel.shape
    assert bool(jnp.all(jnp.isfinite(out))) and bool(jnp.all(jnp.isfinite(rel)))

    ref_out, ref_rel = reference_forward(x, packed)
    assert jnp.allclose(out, ref_out, atol=5e-2, rtol=5e-2), (
        float(jnp.max(jnp.abs(out - ref_out))))
    assert jnp.allclose(rel, ref_rel, atol=5e-2, rtol=5e-2), (
        float(jnp.max(jnp.abs(rel - ref_rel))))

    print("KERNEL_OK")
</pallas_src>

<mosaic_0001>
module attributes {stable_mosaic.version = 11 : i64} {
  func.func @_fused_kernel(%arg0: i32, %arg1: memref<5x1024xf32, #tpu.memory_space<vmem>>, %arg2: memref<1x1024x512xbf16, #tpu.memory_space<vmem>>, %arg3: memref<1x1x512xf32, #tpu.memory_space<vmem>>, %arg4: memref<1x1024x1024xbf16, #tpu.memory_space<vmem>>, %arg5: memref<1x1x1024xf32, #tpu.memory_space<vmem>>, %arg6: memref<1x1x1024xf32, #tpu.memory_space<vmem>>, %arg7: memref<5x1024x512xbf16, #tpu.memory_space<vmem>>, %arg8: memref<1x512xf32, #tpu.memory_space<vmem>>, %arg9: memref<512x512xbf16, #tpu.memory_space<vmem>>, %arg10: memref<1x512xf32, #tpu.memory_space<vmem>>, %arg11: memref<512x512xbf16, #tpu.memory_space<vmem>>, %arg12: memref<1x512xf32, #tpu.memory_space<vmem>>, %arg13: memref<512x128xbf16, #tpu.memory_space<vmem>>, %arg14: memref<1x128xf32, #tpu.memory_space<vmem>>, %arg15: memref<128x128xbf16, #tpu.memory_space<vmem>>, %arg16: memref<1x128xf32, #tpu.memory_space<vmem>>, %arg17: memref<1x128xf32, #tpu.memory_space<vmem>>, %arg18: memref<5x5xf32, #tpu.memory_space<vmem>>, %arg19: memref<1x512xf32, #tpu.memory_space<vmem>>) attributes {dimension_semantics = [#tpu.dimension_semantics<arbitrary>], iteration_bounds = array<i64: 4>, scalar_prefetch = 0 : i64, scratch_operands = 1 : i64, tpu.core_type = #tpu.core_type<tc>, window_params = [{pipeline_mode = #tpu.pipeline_mode<synchronous>, transform_indices = @transform_0, window_bounds = array<i64: 5, 1024>}, {transform_indices = @transform_1, window_bounds = array<i64: 1, 1024, 512>}, {transform_indices = @transform_2, window_bounds = array<i64: 1, 1, 512>}, {transform_indices = @transform_3, window_bounds = array<i64: 1, 1024, 1024>}, {transform_indices = @transform_4, window_bounds = array<i64: 1, 1, 1024>}, {transform_indices = @transform_5, window_bounds = array<i64: 1, 1, 1024>}, {pipeline_mode = #tpu.pipeline_mode<synchronous>, transform_indices = @transform_6, window_bounds = array<i64: 5, 1024, 512>}, {pipeline_mode = #tpu.pipeline_mode<synchronous>, transform_indices = @transform_7, window_bounds = array<i64: 1, 512>}, {pipeline_mode = #tpu.pipeline_mode<synchronous>, transform_indices = @transform_8, window_bounds = array<i64: 512, 512>}, {pipeline_mode = #tpu.pipeline_mode<synchronous>, transform_indices = @transform_9, window_bounds = array<i64: 1, 512>}, {pipeline_mode = #tpu.pipeline_mode<synchronous>, transform_indices = @transform_10, window_bounds = array<i64: 512, 512>}, {pipeline_mode = #tpu.pipeline_mode<synchronous>, transform_indices = @transform_11, window_bounds = array<i64: 1, 512>}, {pipeline_mode = #tpu.pipeline_mode<synchronous>, transform_indices = @transform_12, window_bounds = array<i64: 512, 128>}, {pipeline_mode = #tpu.pipeline_mode<synchronous>, transform_indices = @transform_13, window_bounds = array<i64: 1, 128>}, {pipeline_mode = #tpu.pipeline_mode<synchronous>, transform_indices = @transform_14, window_bounds = array<i64: 128, 128>}, {pipeline_mode = #tpu.pipeline_mode<synchronous>, transform_indices = @transform_15, window_bounds = array<i64: 1, 128>}, {pipeline_mode = #tpu.pipeline_mode<synchronous>, transform_indices = @transform_16, window_bounds = array<i64: 1, 128>}, {pipeline_mode = #tpu.pipeline_mode<synchronous>, transform_indices = @transform_17, window_bounds = array<i64: 5, 5>}]} {
    %c0_i32 = arith.constant 0 : i32
    %0 = arith.cmpi eq, %arg0, %c0_i32 : i32
    %1 = arith.extui %0 : i1 to i32
    %c0_i32_0 = arith.constant 0 : i32
    %2 = arith.cmpi ne, %1, %c0_i32_0 : i32
    scf.if %2 {
      %cst_53 = arith.constant 0.000000e+00 : f32
      %97 = vector.broadcast %cst_53 : f32 to vector<1x512xf32>
      %c0_54 = arith.constant 0 : index
      %c0_55 = arith.constant 0 : index
      %98 = vector.load %arg19[%c0_54, %c0_55] : memref<1x512xf32, #tpu.memory_space<vmem>>, vector<1x512xf32>
      tpu.vector_store %arg19[%c0_54, %c0_55], %97 {strides = array<i32>} : memref<1x512xf32, #tpu.memory_space<vmem>>, vector<1x512xf32>,
    } else {
    }
    %c0 = arith.constant 0 : index
    %c0_1 = arith.constant 0 : index
    %3 = vector.load %arg1[%c0, %c0_1] : memref<5x1024xf32, #tpu.memory_space<vmem>>, vector<5x1024xf32>
    %4 = arith.truncf %3 : vector<5x1024xf32> to vector<5x1024xbf16>
    %c0_2 = arith.constant 0 : index
    %c0_3 = arith.constant 0 : index
    %c0_4 = arith.constant 0 : index
    %5 = vector.load %arg2[%c0_2, %c0_3, %c0_4] : memref<1x1024x512xbf16, #tpu.memory_space<vmem>>, vector<1x1024x512xbf16>
    %6 = vector.shape_cast %5 : vector<1x1024x512xbf16> to vector<1024x512xbf16>
    %cst = arith.constant dense<0.000000e+00> : vector<5x512xf32>
    %7 = tpu.matmul %4, %6, %cst {dimension_numbers = #tpu.dot_dimension_numbers<[1], [0], [0], [1], [0, 0, 1, 1], [], []>} : vector<5x1024xbf16>, vector<1024x512xbf16>, vector<5x512xf32> -> vector<5x512xf32>
    %c0_5 = arith.constant 0 : index
    %c0_6 = arith.constant 0 : index
    %c0_7 = arith.constant 0 : index
    %8 = vector.load %arg3[%c0_5, %c0_6, %c0_7] : memref<1x1x512xf32, #tpu.memory_space<vmem>>, vector<1x1x512xf32>
    %9 = vector.shape_cast %8 : vector<1x1x512xf32> to vector<1x512xf32>
    %10 = vector.broadcast %9 : vector<1x512xf32> to vector<5x512xf32>
    %11 = arith.addf %7, %10 : vector<5x512xf32>
    %12 = vector.extract_strided_slice %11 {offsets = [0, 0], sizes = [5, 256], strides = [1, 1]} : vector<5x512xf32> to vector<5x256xf32>
    %13 = vector.extract_strided_slice %11 {offsets = [0, 256], sizes = [5, 256], strides = [1, 1]} : vector<5x512xf32> to vector<5x256xf32>
    %cst_8 = arith.constant dense<0.000000e+00> : vector<5x5xf32>
    %14 = tpu.matmul %12, %13, %cst_8 {dimension_numbers = #tpu.dot_dimension_numbers<[1], [1], [0], [0], [0, 0, 1, 0], [], []>} : vector<5x256xf32>, vector<5x256xf32>, vector<5x5xf32> -> vector<5x5xf32>
    %cst_9 = arith.constant 6.250000e-02 : f32
    %15 = vector.broadcast %cst_9 : f32 to vector<5x5xf32>
    %16 = arith.mulf %14, %15 : vector<5x5xf32>
    %cst_10 = arith.constant dense<0xFF800000> : vector<5xf32>
    %17 = vector.multi_reduction <maximumf>, %16, %cst_10 [1] : vector<5x5xf32> to vector<5xf32>
    %18 = vector.shape_cast %17 : vector<5xf32> to vector<5x1xf32>
    %19 = vector.broadcast %18 : vector<5x1xf32> to vector<5x5xf32>
    %20 = arith.subf %16, %19 : vector<5x5xf32>
    %21 = math.exp %20 : vector<5x5xf32>
    %cst_11 = arith.constant dense<0.000000e+00> : vector<5xf32>
    %22 = vector.multi_reduction <add>, %21, %cst_11 [1] : vector<5x5xf32> to vector<5xf32>
    %23 = vector.shape_cast %22 : vector<5xf32> to vector<5x1xf32>
    %24 = vector.broadcast %23 : vector<5x1xf32> to vector<5x5xf32>
    %25 = arith.divf %21, %24 : vector<5x5xf32>
    %c3_i32 = arith.constant 3 : i32
    %26 = arith.cmpi eq, %arg0, %c3_i32 : i32
    %27 = arith.extui %26 : i1 to i32
    %c0_i32_12 = arith.constant 0 : i32
    %28 = arith.cmpi ne, %27, %c0_i32_12 : i32
    scf.if %28 {
      %c0_53 = arith.constant 0 : index
      %c0_54 = arith.constant 0 : index
      %97 = vector.load %arg18[%c0_53, %c0_54] : memref<5x5xf32, #tpu.memory_space<vmem>>, vector<5x5xf32>
      tpu.vector_store %arg18[%c0_53, %c0_54], %25 {strides = array<i32>} : memref<5x5xf32, #tpu.memory_space<vmem>>, vector<5x5xf32>,
    } else {
    }
    %29 = arith.truncf %25 : vector<5x5xf32> to vector<5x5xbf16>
    %cst_13 = arith.constant dense<0.000000e+00> : vector<5x1024xf32>
    %30 = tpu.matmul %29, %4, %cst_13 {dimension_numbers = #tpu.dot_dimension_numbers<[1], [0], [0], [1], [0, 0, 1, 1], [], []>} : vector<5x5xbf16>, vector<5x1024xbf16>, vector<5x1024xf32> -> vector<5x1024xf32>
    %31 = arith.truncf %30 : vector<5x1024xf32> to vector<5x1024xbf16>
    %c0_14 = arith.constant 0 : index
    %c0_15 = arith.constant 0 : index
    %c0_16 = arith.constant 0 : index
    %32 = vector.load %arg4[%c0_14, %c0_15, %c0_16] : memref<1x1024x1024xbf16, #tpu.memory_space<vmem>>, vector<1x1024x1024xbf16>
    %33 = vector.shape_cast %32 : vector<1x1024x1024xbf16> to vector<1024x1024xbf16>
    %cst_17 = arith.constant dense<0.000000e+00> : vector<5x1024xf32>
    %34 = tpu.matmul %31, %33, %cst_17 {dimension_numbers = #tpu.dot_dimension_numbers<[1], [0], [0], [1], [0, 0, 1, 1], [], []>} : vector<5x1024xbf16>, vector<1024x1024xbf16>, vector<5x1024xf32> -> vector<5x1024xf32>
    %cst_18 = arith.constant dense<0.000000e+00> : vector<5xf32>
    %35 = vector.multi_reduction <add>, %34, %cst_18 [1] : vector<5x1024xf32> to vector<5xf32>
    %36 = vector.shape_cast %35 : vector<5xf32> to vector<5x1xf32>
    %cst_19 = arith.constant 1.000000e-03 : f32
    %37 = vector.broadcast %cst_19 : f32 to vector<5x1xf32>
    %38 = arith.mulf %36, %37 : vector<5x1xf32>
    %39 = tpu.iota {dimensions = array<i32: 1>} : vector<5x1024xi32>
    %c1000_i32 = arith.constant 1000 : i32
    %40 = vector.broadcast %c1000_i32 : i32 to vector<5x1024xi32>
    %41 = arith.cmpi slt, %39, %40 : vector<5x1024xi32>
    %42 = vector.broadcast %38 : vector<5x1xf32> to vector<5x1024xf32>
    %43 = arith.subf %34, %42 : vector<5x1024xf32>
    %cst_20 = arith.constant 0.000000e+00 : f32
    %44 = vector.broadcast %cst_20 : f32 to vector<5x1024xf32>
    %45 = arith.select %41, %43, %44 : vector<5x1024xi1>, vector<5x1024xf32>
    %46 = arith.mulf %45, %45 : vector<5x1024xf32>
    %cst_21 = arith.constant dense<0.000000e+00> : vector<5xf32>
    %47 = vector.multi_reduction <add>, %46, %cst_21 [1] : vector<5x1024xf32> to vector<5xf32>
    %48 = vector.shape_cast %47 : vector<5xf32> to vector<5x1xf32>
    %cst_22 = arith.constant 1.000000e-03 : f32
    %49 = vector.broadcast %cst_22 : f32 to vector<5x1xf32>
    %50 = arith.mulf %48, %49 : vector<5x1xf32>
    %cst_23 = arith.constant 9.99999974E-6 : f32
    %51 = vector.broadcast %cst_23 : f32 to vector<5x1xf32>
    %52 = arith.addf %50, %51 : vector<5x1xf32>
    %53 = math.rsqrt %52 : vector<5x1xf32>
    %54 = vector.broadcast %53 : vector<5x1xf32> to vector<5x1024xf32>
    %55 = arith.mulf %45, %54 : vector<5x1024xf32>
    %c0_24 = arith.constant 0 : index
    %c0_25 = arith.constant 0 : index
    %c0_26 = arith.constant 0 : index
    %56 = vector.load %arg5[%c0_24, %c0_25, %c0_26] : memref<1x1x1024xf32, #tpu.memory_space<vmem>>, vector<1x1x1024xf32>
    %57 = vector.shape_cast %56 : vector<1x1x1024xf32> to vector<1x1024xf32>
    %58 = vector.broadcast %57 : vector<1x1024xf32> to vector<5x1024xf32>
    %59 = arith.mulf %55, %58 : vector<5x1024xf32>
    %c0_27 = arith.constant 0 : index
    %c0_28 = arith.constant 0 : index
    %c0_29 = arith.constant 0 : index
    %60 = vector.load %arg6[%c0_27, %c0_28, %c0_29] : memref<1x1x1024xf32, #tpu.memory_space<vmem>>, vector<1x1x1024xf32>
    %61 = vector.shape_cast %60 : vector<1x1x1024xf32> to vector<1x1024xf32>
    %62 = vector.broadcast %61 : vector<1x1024xf32> to vector<5x1024xf32>
    %63 = arith.addf %59, %62 : vector<5x1024xf32>
    %64 = arith.truncf %63 : vector<5x1024xf32> to vector<5x1024xbf16>
    %cst_30 = arith.constant 0.000000e+00 : f32
    %65 = vector.broadcast %cst_30 : f32 to vector<1x512xf32>
    %66 = vector.extract_strided_slice %64 {offsets = [0, 0], sizes = [1, 1024], strides = [1, 1]} : vector<5x1024xbf16> to vector<1x1024xbf16>
    %c0_31 = arith.constant 0 : index
    %c0_32 = arith.constant 0 : index
    %c0_33 = arith.constant 0 : index
    %67 = vector.load %arg7[%c0_31, %c0_32, %c0_33] : memref<5x1024x512xbf16, #tpu.memory_space<vmem>>, vector<1x1024x512xbf16>
    %68 = vector.shape_cast %67 : vector<1x1024x512xbf16> to vector<1024x512xbf16>
    %cst_34 = arith.constant dense<0.000000e+00> : vector<1x512xf32>
    %69 = tpu.matmul %66, %68, %cst_34 {dimension_numbers = #tpu.dot_dimension_numbers<[1], [0], [0], [1], [0, 0, 1, 1], [], []>} : vector<1x1024xbf16>, vector<1024x512xbf16>, vector<1x512xf32> -> vector<1x512xf32>
    %70 = arith.addf %65, %69 : vector<1x512xf32>
    %71 = vector.extract_strided_slice %64 {offsets = [1, 0], sizes = [1, 1024], strides = [1, 1]} : vector<5x1024xbf16> to vector<1x1024xbf16>
    %c1 = arith.constant 1 : index
    %c0_35 = arith.constant 0 : index
    %c0_36 = arith.constant 0 : index
    %72 = vector.load %arg7[%c1, %c0_35, %c0_36] : memref<5x1024x512xbf16, #tpu.memory_space<vmem>>, vector<1x1024x512xbf16>
    %73 = vector.shape_cast %72 : vector<1x1024x512xbf16> to vector<1024x512xbf16>
    %cst_37 = arith.constant dense<0.000000e+00> : vector<1x512xf32>
    %74 = tpu.matmul %71, %73, %cst_37 {dimension_numbers = #tpu.dot_dimension_numbers<[1], [0], [0], [1], [0, 0, 1, 1], [], []>} : vector<1x1024xbf16>, vector<1024x512xbf16>, vector<1x512xf32> -> vector<1x512xf32>
    %75 = arith.addf %70, %74 : vector<1x512xf32>
    %76 = vector.extract_strided_slice %64 {offsets = [2, 0], sizes = [1, 1024], strides = [1, 1]} : vector<5x1024xbf16> to vector<1x1024xbf16>
    %c2 = arith.constant 2 : index
    %c0_38 = arith.constant 0 : index
    %c0_39 = arith.constant 0 : index
    %77 = vector.load %arg7[%c2, %c0_38, %c0_39] : memref<5x1024x512xbf16, #tpu.memory_space<vmem>>, vector<1x1024x512xbf16>
    %78 = vector.shape_cast %77 : vector<1x1024x512xbf16> to vector<1024x512xbf16>
    %cst_40 = arith.constant dense<0.000000e+00> : vector<1x512xf32>
    %79 = tpu.matmul %76, %78, %cst_40 {dimension_numbers = #tpu.dot_dimension_numbers<[1], [0], [0], [1], [0, 0, 1, 1], [], []>} : vector<1x1024xbf16>, vector<1024x512xbf16>, vector<1x512xf32> -> vector<1x512xf32>
    %80 = arith.addf %75, %79 : vector<1x512xf32>
    %81 = vector.extract_strided_slice %64 {offsets = [3, 0], sizes = [1, 1024], strides = [1, 1]} : vector<5x1024xbf16> to vector<1x1024xbf16>
    %c3 = arith.constant 3 : index
    %c0_41 = arith.constant 0 : index
    %c0_42 = arith.constant 0 : index
    %82 = vector.load %arg7[%c3, %c0_41, %c0_42] : memref<5x1024x512xbf16, #tpu.memory_space<vmem>>, vector<1x1024x512xbf16>
    %83 = vector.shape_cast %82 : vector<1x1024x512xbf16> to vector<1024x512xbf16>
    %cst_43 = arith.constant dense<0.000000e+00> : vector<1x512xf32>
    %84 = tpu.matmul %81, %83, %cst_43 {dimension_numbers = #tpu.dot_dimension_numbers<[1], [0], [0], [1], [0, 0, 1, 1], [], []>} : vector<1x1024xbf16>, vector<1024x512xbf16>, vector<1x512xf32> -> vector<1x512xf32>
    %85 = arith.addf %80, %84 : vector<1x512xf32>
    %86 = vector.extract_strided_slice %64 {offsets = [4, 0], sizes = [1, 1024], strides = [1, 1]} : vector<5x1024xbf16> to vector<1x1024xbf16>
    %c4 = arith.constant 4 : index
    %c0_44 = arith.constant 0 : index
    %c0_45 = arith.constant 0 : index
    %87 = vector.load %arg7[%c4, %c0_44, %c0_45] : memref<5x1024x512xbf16, #tpu.memory_space<vmem>>, vector<1x1024x512xbf16>
    %88 = vector.shape_cast %87 : vector<1x1024x512xbf16> to vector<1024x512xbf16>
    %cst_46 = arith.constant dense<0.000000e+00> : vector<1x512xf32>
    %89 = tpu.matmul %86, %88, %cst_46 {dimension_numbers = #tpu.dot_dimension_numbers<[1], [0], [0], [1], [0, 0, 1, 1], [], []>} : vector<1x1024xbf16>, vector<1024x512xbf16>, vector<1x512xf32> -> vector<1x512xf32>
    %90 = arith.addf %85, %89 : vector<1x512xf32>
    %c0_47 = arith.constant 0 : index
    %c0_48 = arith.constant 0 : index
    %91 = vector.load %arg19[%c0_47, %c0_48] : memref<1x512xf32, #tpu.memory_space<vmem>>, vector<1x512xf32>
    %92 = arith.addf %91, %90 : vector<1x512xf32>
    %c0_49 = arith.constant 0 : index
    %c0_50 = arith.constant 0 : index
    %93 = vector.load %arg19[%c0_49, %c0_50] : memref<1x512xf32, #tpu.memory_space<vmem>>, vector<1x512xf32>
    tpu.vector_store %arg19[%c0_49, %c0_50], %92 {strides = array<i32>} : memref<1x512xf32, #tpu.memory_space<vmem>>, vector<1x512xf32>,
    %c3_i32_51 = arith.constant 3 : i32
    %94 = arith.cmpi eq, %arg0, %c3_i32_51 : i32
    %95 = arith.extui %94 : i1 to i32
    %c0_i32_52 = arith.constant 0 : i32
    %96 = arith.cmpi ne, %95, %c0_i32_52 : i32
    scf.if %96 {
      %c0_53 = arith.constant 0 : index
      %c0_54 = arith.constant 0 : index
      %97 = vector.load %arg19[%c0_53, %c0_54] : memref<1x512xf32, #tpu.memory_space<vmem>>, vector<1x512xf32>
      %c0_55 = arith.constant 0 : index
      %c0_56 = arith.constant 0 : index
      %98 = vector.load %arg8[%c0_55, %c0_56] : memref<1x512xf32, #tpu.memory_space<vmem>>, vector<1x512xf32>
      %99 = arith.addf %97, %98 : vector<1x512xf32>
      %cst_57 = arith.constant 0.000000e+00 : f32
      %100 = vector.broadcast %cst_57 : f32 to vector<1x512xf32>
      %101 = arith.maximumf %99, %100 : vector<1x512xf32>
      %102 = arith.truncf %101 : vector<1x512xf32> to vector<1x512xbf16>
      %c0_58 = arith.constant 0 : index
      %c0_59 = arith.constant 0 : index
      %103 = vector.load %arg9[%c0_58, %c0_59] : memref<512x512xbf16, #tpu.memory_space<vmem>>, vector<512x512xbf16>
      %cst_60 = arith.constant dense<0.000000e+00> : vector<1x512xf32>
      %104 = tpu.matmul %102, %103, %cst_60 {dimension_numbers = #tpu.dot_dimension_numbers<[1], [0], [0], [1], [0, 0, 1, 1], [], []>} : vector<1x512xbf16>, vector<512x512xbf16>, vector<1x512xf32> -> vector<1x512xf32>
      %c0_61 = arith.constant 0 : index
      %c0_62 = arith.constant 0 : index
      %105 = vector.load %arg10[%c0_61, %c0_62] : memref<1x512xf32, #tpu.memory_space<vmem>>, vector<1x512xf32>
      %106 = arith.addf %104, %105 : vector<1x512xf32>
      %cst_63 = arith.constant 0.000000e+00 : f32
      %107 = vector.broadcast %cst_63 : f32 to vector<1x512xf32>
      %108 = arith.maximumf %106, %107 : vector<1x512xf32>
      %109 = arith.truncf %108 : vector<1x512xf32> to vector<1x512xbf16>
      %c0_64 = arith.constant 0 : index
      %c0_65 = arith.constant 0 : index
      %110 = vector.load %arg11[%c0_64, %c0_65] : memref<512x512xbf16, #tpu.memory_space<vmem>>, vector<512x512xbf16>
      %cst_66 = arith.constant dense<0.000000e+00> : vector<1x512xf32>
      %111 = tpu.matmul %109, %110, %cst_66 {dimension_numbers = #tpu.dot_dimension_numbers<[1], [0], [0], [1], [0, 0, 1, 1], [], []>} : vector<1x512xbf16>, vector<512x512xbf16>, vector<1x512xf32> -> vector<1x512xf32>
      %c0_67 = arith.constant 0 : index
      %c0_68 = arith.constant 0 : index
      %112 = vector.load %arg12[%c0_67, %c0_68] : memref<1x512xf32, #tpu.memory_space<vmem>>, vector<1x512xf32>
      %113 = arith.addf %111, %112 : vector<1x512xf32>
      %cst_69 = arith.constant 0.000000e+00 : f32
      %114 = vector.broadcast %cst_69 : f32 to vector<1x512xf32>
      %115 = arith.maximumf %113, %114 : vector<1x512xf32>
      %116 = arith.truncf %115 : vector<1x512xf32> to vector<1x512xbf16>
      %c0_70 = arith.constant 0 : index
      %c0_71 = arith.constant 0 : index
      %117 = vector.load %arg13[%c0_70, %c0_71] : memref<512x128xbf16, #tpu.memory_space<vmem>>, vector<512x128xbf16>
      %cst_72 = arith.constant dense<0.000000e+00> : vector<1x128xf32>
      %118 = tpu.matmul %116, %117, %cst_72 {dimension_numbers = #tpu.dot_dimension_numbers<[1], [0], [0], [1], [0, 0, 1, 1], [], []>} : vector<1x512xbf16>, vector<512x128xbf16>, vector<1x128xf32> -> vector<1x128xf32>
      %c0_73 = arith.constant 0 : index
      %c0_74 = arith.constant 0 : index
      %119 = vector.load %arg14[%c0_73, %c0_74] : memref<1x128xf32, #tpu.memory_space<vmem>>, vector<1x128xf32>
      %120 = arith.addf %118, %119 : vector<1x128xf32>
      %cst_75 = arith.constant 0.000000e+00 : f32
      %121 = vector.broadcast %cst_75 : f32 to vector<1x128xf32>
      %122 = arith.maximumf %120, %121 : vector<1x128xf32>
      %123 = arith.truncf %122 : vector<1x128xf32> to vector<1x128xbf16>
      %c0_76 = arith.constant 0 : index
      %c0_77 = arith.constant 0 : index
      %124 = vector.load %arg15[%c0_76, %c0_77] : memref<128x128xbf16, #tpu.memory_space<vmem>>, vector<128x128xbf16>
      %cst_78 = arith.constant dense<0.000000e+00> : vector<1x128xf32>
      %125 = tpu.matmul %123, %124, %cst_78 {dimension_numbers = #tpu.dot_dimension_numbers<[1], [0], [0], [1], [0, 0, 1, 1], [], []>} : vector<1x128xbf16>, vector<128x128xbf16>, vector<1x128xf32> -> vector<1x128xf32>
      %c0_79 = arith.constant 0 : index
      %c0_80 = arith.constant 0 : index
      %126 = vector.load %arg16[%c0_79, %c0_80] : memref<1x128xf32, #tpu.memory_space<vmem>>, vector<1x128xf32>
      %127 = arith.addf %125, %126 : vector<1x128xf32>
      %cst_81 = arith.constant 0.000000e+00 : f32
      %128 = vector.broadcast %cst_81 : f32 to vector<1x128xf32>
      %129 = arith.subf %128, %127 : vector<1x128xf32>
      %130 = math.exp %129 : vector<1x128xf32>
      %cst_82 = arith.constant 1.000000e+00 : f32
      %131 = vector.broadcast %cst_82 : f32 to vector<1x128xf32>
      %132 = arith.addf %131, %130 : vector<1x128xf32>
      %cst_83 = arith.constant 1.000000e+00 : f32
      %133 = vector.broadcast %cst_83 : f32 to vector<1x128xf32>
      %134 = arith.divf %133, %132 : vector<1x128xf32>
      %c0_84 = arith.constant 0 : index
      %c0_85 = arith.constant 0 : index
      %135 = vector.load %arg17[%c0_84, %c0_85] : memref<1x128xf32, #tpu.memory_space<vmem>>, vector<1x128xf32>
      tpu.vector_store %arg17[%c0_84, %c0_85], %134 {strides = array<i32>} : memref<1x128xf32, #tpu.memory_space<vmem>>, vector<1x128xf32>,
    } else {
    }
    return
  }
  func.func @transform_0(%arg0: i32) -> (i32, i32) {
    %c0_i32 = arith.constant 0 : i32
    %c0_i32_0 = arith.constant 0 : i32
    %c0_i32_1 = arith.constant 0 : i32
    return %c0_i32, %c0_i32_0 : i32, i32
  }
  func.func @transform_1(%arg0: i32) -> (i32, i32, i32) {
    %c0_i32 = arith.constant 0 : i32
    %c0_i32_0 = arith.constant 0 : i32
    %c0_i32_1 = arith.constant 0 : i32
    return %arg0, %c0_i32, %c0_i32_0 : i32, i32, i32
  }
  func.func @transform_2(%arg0: i32) -> (i32, i32, i32) {
    %c0_i32 = arith.constant 0 : i32
    %c0_i32_0 = arith.constant 0 : i32
    %c0_i32_1 = arith.constant 0 : i32
    return %arg0, %c0_i32, %c0_i32_0 : i32, i32, i32
  }
  func.func @transform_3(%arg0: i32) -> (i32, i32, i32) {
    %c0_i32 = arith.constant 0 : i32
    %c0_i32_0 = arith.constant 0 : i32
    %c0_i32_1 = arith.constant 0 : i32
    return %arg0, %c0_i32, %c0_i32_0 : i32, i32, i32
  }
  func.func @transform_4(%arg0: i32) -> (i32, i32, i32) {
    %c0_i32 = arith.constant 0 : i32
    %c0_i32_0 = arith.constant 0 : i32
    %c0_i32_1 = arith.constant 0 : i32
    return %arg0, %c0_i32, %c0_i32_0 : i32, i32, i32
  }
  func.func @transform_5(%arg0: i32) -> (i32, i32, i32) {
    %c0_i32 = arith.constant 0 : i32
    %c0_i32_0 = arith.constant 0 : i32
    %c0_i32_1 = arith.constant 0 : i32
    return %arg0, %c0_i32, %c0_i32_0 : i32, i32, i32
  }
  func.func @transform_6(%arg0: i32) -> (i32, i32, i32) {
    %c0_i32 = arith.constant 0 : i32
    %c0_i32_0 = arith.constant 0 : i32
    %c0_i32_1 = arith.constant 0 : i32
    %c0_i32_2 = arith.constant 0 : i32
    return %c0_i32, %c0_i32_0, %c0_i32_1 : i32, i32, i32
  }
  func.func @transform_7(%arg0: i32) -> (i32, i32) {
    %c0_i32 = arith.constant 0 : i32
    %c0_i32_0 = arith.constant 0 : i32
    %c0_i32_1 = arith.constant 0 : i32
    return %c0_i32, %c0_i32_0 : i32, i32
  }
  func.func @transform_8(%arg0: i32) -> (i32, i32) {
    %c0_i32 = arith.constant 0 : i32
    %c0_i32_0 = arith.constant 0 : i32
    %c0_i32_1 = arith.constant 0 : i32
    return %c0_i32, %c0_i32_0 : i32, i32
  }
  func.func @transform_9(%arg0: i32) -> (i32, i32) {
    %c0_i32 = arith.constant 0 : i32
    %c0_i32_0 = arith.constant 0 : i32
    %c0_i32_1 = arith.constant 0 : i32
    return %c0_i32, %c0_i32_0 : i32, i32
  }
  func.func @transform_10(%arg0: i32) -> (i32, i32) {
    %c0_i32 = arith.constant 0 : i32
    %c0_i32_0 = arith.constant 0 : i32
    %c0_i32_1 = arith.constant 0 : i32
    return %c0_i32, %c0_i32_0 : i32, i32
  }
  func.func @transform_11(%arg0: i32) -> (i32, i32) {
    %c0_i32 = arith.constant 0 : i32
    %c0_i32_0 = arith.constant 0 : i32
    %c0_i32_1 = arith.constant 0 : i32
    return %c0_i32, %c0_i32_0 : i32, i32
  }
  func.func @transform_12(%arg0: i32) -> (i32, i32) {
    %c0_i32 = arith.constant 0 : i32
    %c0_i32_0 = arith.constant 0 : i32
    %c0_i32_1 = arith.constant 0 : i32
    return %c0_i32, %c0_i32_0 : i32, i32
  }
  func.func @transform_13(%arg0: i32) -> (i32, i32) {
    %c0_i32 = arith.constant 0 : i32
    %c0_i32_0 = arith.constant 0 : i32
    %c0_i32_1 = arith.constant 0 : i32
    return %c0_i32, %c0_i32_0 : i32, i32
  }
  func.func @transform_14(%arg0: i32) -> (i32, i32) {
    %c0_i32 = arith.constant 0 : i32
    %c0_i32_0 = arith.constant 0 : i32
    %c0_i32_1 = arith.constant 0 : i32
    return %c0_i32, %c0_i32_0 : i32, i32
  }
  func.func @transform_15(%arg0: i32) -> (i32, i32) {
    %c0_i32 = arith.constant 0 : i32
    %c0_i32_0 = arith.constant 0 : i32
    %c0_i32_1 = arith.constant 0 : i32
    return %c0_i32, %c0_i32_0 : i32, i32
  }
  func.func @transform_16(%arg0: i32) -> (i32, i32) {
    %c0_i32 = arith.constant 0 : i32
    %c0_i32_0 = arith.constant 0 : i32
    %c0_i32_1 = arith.constant 0 : i32
    return %c0_i32, %c0_i32_0 : i32, i32
  }
  func.func @transform_17(%arg0: i32) -> (i32, i32) {
    %c0_i32 = arith.constant 0 : i32
    %c0_i32_0 = arith.constant 0 : i32
    %c0_i32_1 = arith.constant 0 : i32
    return %c0_i32, %c0_i32_0 : i32, i32
  }
}

</mosaic_0001>

<bundles_post_ra>
// kernel: tpu_custom_call.1
= control target key start
LH: loop header
LB: loop body
LE: loop exit
PB: predicated region body
PF: predicated region fallthrough
CT: control target
= control target key end

     0   :  { %s27232_s0 = inlined_call_operand.hbm [shape: f32[5,1024], index: 0, kind: input, shape index: {}]   ;;  %s27233_s1 = inlined_call_operand.hbm [shape: bf16[4,1024,512], index: 1, kind: input, shape index: {}]   ;;  %s27234_s2 = inlined_call_operand.hbm [shape: f32[4,1,512], index: 2, kind: input, shape index: {}]   ;;  %s27235_s3 = inlined_call_operand.hbm [shape: bf16[4,1024,1024], index: 3, kind: input, shape index: {}]   ;;  %s27236_s4 = inlined_call_operand.hbm [shape: f32[4,1,1024], index: 4, kind: input, shape index: {}]   ;;  %s27237_s5 = inlined_call_operand.hbm [shape: f32[4,1,1024], index: 5, kind: input, shape index: {}]   ;;  %s27238_s6 = inlined_call_operand.hbm [shape: bf16[5,1024,512], index: 6, kind: input, shape index: {}]   ;;  %s27239_s7 = inlined_call_operand.hbm [shape: f32[1,512], index: 7, kind: input, shape index: {}]   ;;  %s27240_s8 = inlined_call_operand.hbm [shape: bf16[512,512], index: 8, kind: input, shape index: {}]   ;;  %s27241_s9 = inlined_call_operand.hbm [shape: f32[1,512], index: 9, kind: input, shape index: {}]   ;;  %s27242_s10 = inlined_call_operand.hbm [shape: bf16[512,512], index: 10, kind: input, shape index: {}]   ;;  %s27243_s11 = inlined_call_operand.hbm [shape: f32[1,512], index: 11, kind: input, shape index: {}]   ;;  %s27244_s12 = inlined_call_operand.hbm [shape: bf16[512,128], index: 12, kind: input, shape index: {}]   ;;  %s27245_s13 = inlined_call_operand.hbm [shape: f32[1,128], index: 13, kind: input, shape index: {}]   ;;  %s27246_s14 = inlined_call_operand.hbm [shape: bf16[128,128], index: 14, kind: input, shape index: {}]   ;;  %s27247_s15 = inlined_call_operand.hbm [shape: f32[1,128], index: 15, kind: input, shape index: {}]   ;;  %s27248_s16 = inlined_call_operand.hbm [shape: f32[1,128], index: 16, kind: output, shape index: {0}]   ;;  %s27249_s17 = inlined_call_operand.hbm [shape: f32[5,5], index: 17, kind: output, shape index: {1}]  }
   0x1   :  { %27282 = sst [smem:[#allocation50_spill]] %s27232_s0 }
   0x2   :  { %27283 = sst [smem:[#allocation51_spill]] %s27233_s1 }
   0x3   :  { %27284 = sst [smem:[#allocation52_spill]] %s27234_s2 }
   0x4   :  { %27285 = sst [smem:[#allocation53_spill]] %s27235_s3 }
   0x5   :  { %27286 = sst [smem:[#allocation54_spill]] %s27236_s4 }
   0x6   :  { %27287 = sst [smem:[#allocation55_spill]] %s27237_s5 }
   0x7   :  { %27288 = sst [smem:[#allocation56_spill]] %s27238_s6 }
   0x8   :  { %27289 = sst [smem:[#allocation57_spill]] %s27239_s7 }
   0x9   :  { %27290 = sst [smem:[#allocation58_spill]] %s27241_s9 }
   0xa   :  { %27291 = sst [smem:[#allocation59_spill]] %s27243_s11 }
   0xb   :  { %27292 = sst [smem:[#allocation60_spill]] %s27245_s13 }
   0xc   :  { %27293 = sst [smem:[#allocation61_spill]] %s27247_s15 }
   0xd   :  { %27294 = sst [smem:[#allocation62_spill]] %s27248_s16 }
   0xe   :  { %27295 = sst [smem:[#allocation63_spill]] %s27249_s17 }
   0xf   :  { %23 = vsyncpa [#allocation4], 0 }
  0x10   :  { %24 = vsyncpa [#allocation7], 0 }
  0x11   :  { %26 = vsyncpa [#allocation7 + $0x1], 0 }
  0x12   :  { %27 = vsyncpa [#allocation10], 0 }
  0x13   :  { %29 = vsyncpa [#allocation10 + $0x1], 0 }
  0x14   :  { %30 = vsyncpa [#allocation13], 0 }
  0x15   :  { %32 = vsyncpa [#allocation13 + $0x1], 0 }
  0x16   :  { %33 = vsyncpa [#allocation16], 0 }
  0x17   :  { %34 = vsyncpa [#allocation19], 0 }
  0x18   :  { %35 = vsyncpa [#allocation22], 0 }
  0x19   :  { %36 = vsyncpa [#allocation25], 0 }
  0x1a   :  { %37 = vsyncpa [#allocation28], 0 }
  0x1b   :  { %38 = vsyncpa [#allocation5], 0 }
  0x1c   :  { %39 = vsyncpa [#allocation31], 0  ;;  %s25495_s24 = smov 0   ;;  %s25497_s25 = smov 0  }
  0x1d   :  { %s25499_s26 = smov 0   ;;  %s25501_s27 = smov 0  }
  0x1e LB: > { %27296 = sst [smem:[#allocation44_spill]] %s25365_s25  ;;  %s25375_s28 = smov [#allocation14]   ;;  %s25373_s27 = sphi %s25501_s27, %s27355_s27   ;;  %s25369_s26 = sphi %s25499_s26, %s27358_s26   ;;  %s25365_s25 = sphi %s25497_s25, %s27357_s25   ;;  %s25361_s24 = sphi %s25495_s24, %s27356_s24  }
  0x1f   : > { %27297 = sst [smem:[#allocation45_spill]] %s25369_s26  ;;  %s476_s29 = sshll.u32 %s25375_s28, 4  ;;  %s25522_s29 = int_to_ptr.vmem [resolvable:$true] %s476_s29 }
  0x20   : > { %s25516_s0 = sadd.s32 4294967295, %s25373_s27   ;;  %p19119_p0 = scmp.ge.s32.totalorder %s25373_s27, 1 }
  0x21   : > { %p27261_p1 = scmp.eq.s32.totalorder %s25516_s0, 0  ;;  %p453_p2 = scmp.lt.s32.totalorder %s25373_s27, 5 }
  0x22   : > { %s25376_s18 = smov [#allocation15]   ;;  %s25377_s20 = smov [#allocation18]  }
  0x23   : > { %p25524_p4 = pnand %p19119_p0, %p453_p2  ;;  %s490_s19 = sshll.u32 %s25376_s18, 4  ;;  %s25536_s19 = int_to_ptr.vmem [resolvable:$true] %s490_s19 }
  0x24   : > { %s514_s21 = sshll.u32 %s25377_s20, 4  ;;  %s27301_s6 = sld [smem:[#allocation56_spill]]  ;;  %s25538_s21 = int_to_ptr.vmem [resolvable:$true] %s514_s21 }
  0x25   : > { %s27298_s30 = scalar_select %p25524_p4, 1, 0 }
  0x26   : > { %p21913_p5 = pneg %p25524_p4 }
  0x27   : > { %27299 = sst [smem:[#allocation46_spill]] %s27298_s30 }
  0x28   : > { %p25532_p6 = pnand %p21913_p5, %p27261_p1 }
  0x2a   : > { %s27300_s1 = scalar_select %p25532_p6, 1, 0 }
  0x2b   : > { %s24785_s28 = scalar_lea.hbm %s27301_s6, 163840  ;;  %p25548_p8 = pneg %p25532_p6 }
  0x2c   : > { %p24786_p7 = scmp.ne.s32.totalorder %s27301_s6, %s24785_s28  ;;  %p24792_p11 = scmp.lt.u32.totalorder %s24785_s28, %s27301_s6 }
  0x2d   : > { %s27302_s18 = scalar_select %p25548_p8, 1, 0 }
  0x2e   : > { %p24788_p9 = pnand %p25548_p8, %p24786_p7 }
  0x30   : > { %p24789_p10 = pneg %p24788_p9 }
  0x32   : > { %p24794_p12 = pnand %p24792_p11, %p24789_p10 }
  0x34   : > { %24797 = shalt.err (!%p24794_p12)
}
  0x35   : > { %s24798_s16 = scalar_lea.vmem %s25522_s29, 163840  ;;  %p24806_p5 = scmp.lt.s32.totalorder %s25522_s29, %s25522_s29 }
  0x36   : > { %p24799_p13 = scmp.ne.s32.totalorder %s25522_s29, %s24798_s16  ;;  %p24807_p3 = scmp.lt.s32.totalorder %s24798_s16, %s24798_s16 }
  0x38   : > { %p24801_p0 = pnand %p24799_p13, %p25548_p8  ;;  %p24808_p7 = por %p24807_p3, %p24806_p5 }
  0x3a   : > { %p24802_p2 = pneg %p24801_p0 }
  0x3c   : > { %p24809_p9 = pnand %p24808_p7, %p24802_p2 }
  0x3e   : > { %24812 = shalt.err (!%p24809_p9)
}
  0x3f   : > { %s27259_s17 = smov 256   ;;  %s27263_s30 = smov 16  }
  0x40   : > { %21919 = dma.hbm_to_vmem [thread:$0]  (!%p25532_p6), %s27301_s6, 163840, %s25522_s29, [#allocation13], %s27259_s17, %s27259_s17, %s27263_s30  }
  0x41   : > { %s27303_s7 = sld [smem:[#allocation57_spill]] }
  0x47   : > { %s24813_s16 = scalar_lea.hbm %s27303_s7, 64 }
  0x48   : > { %p24814_p3 = scmp.ne.s32.totalorder %s27303_s7, %s24813_s16  ;;  %p24820_p12 = scmp.lt.u32.totalorder %s24813_s16, %s27303_s7 }
  0x4a   : > { %p24816_p10 = pnand %p24814_p3, %p25548_p8 }
  0x4c   : > { %p24817_p11 = pneg %p24816_p10 }
  0x4e   : > { %p24822_p13 = pnand %p24820_p12, %p24817_p11 }
  0x50   : > { %24825 = shalt.err (!%p24822_p13)
}
  0x51   : > { %s24826_s29 = scalar_lea.vmem %s25536_s19, 64  ;;  %p24834_p7 = scmp.lt.s32.totalorder %s25536_s19, %s25536_s19 }
  0x52   : > { %p24827_p0 = scmp.ne.s32.totalorder %s25536_s19, %s24826_s29  ;;  %p24835_p9 = scmp.lt.s32.totalorder %s24826_s29, %s24826_s29 }
  0x54   : > { %p24829_p2 = pnand %p24827_p0, %p25548_p8  ;;  %p24836_p3 = por %p24835_p9, %p24834_p7 }
  0x56   : > { %p24830_p5 = pneg %p24829_p2 }
  0x58   : > { %p24837_p10 = pnand %p24836_p3, %p24830_p5 }
  0x5a   : > { %24840 = shalt.err (!%p24837_p10)
}
  0x5b   : > { %21922 = dma.hbm_to_vmem [thread:$0]  (!%p25532_p6), %s27303_s7, 64, %s25536_s19, [#allocation16]  }
  0x5c   : > { %s27304_s9 = sld [smem:[#allocation58_spill]] }
  0x62   : > { %s24841_s22 = scalar_lea.hbm %s27304_s9, 64 }
  0x63   : > { %p24842_p11 = scmp.ne.s32.totalorder %s27304_s9, %s24841_s22  ;;  %p24848_p0 = scmp.lt.u32.totalorder %s24841_s22, %s27304_s9 }
  0x65   : > { %p24844_p12 = pnand %p24842_p11, %p25548_p8 }
  0x67   : > { %p24845_p13 = pneg %p24844_p12 }
  0x69   : > { %p24850_p2 = pnand %p24848_p0, %p24845_p13 }
  0x6b   : > { %24853 = shalt.err (!%p24850_p2)
}
  0x6c   : > { %s24854_s19 = scalar_lea.vmem %s25538_s21, 64  ;;  %p24862_p3 = scmp.lt.s32.totalorder %s25538_s21, %s25538_s21 }
  0x6d   : > { %p24855_p5 = scmp.ne.s32.totalorder %s25538_s21, %s24854_s19  ;;  %p24863_p10 = scmp.lt.s32.totalorder %s24854_s19, %s24854_s19 }
  0x6f   : > { %p24857_p7 = pnand %p24855_p5, %p25548_p8  ;;  %p24864_p11 = por %p24863_p10, %p24862_p3 }
  0x71   : > { %p24858_p9 = pneg %p24857_p7 }
  0x73   : > { %p24865_p12 = pnand %p24864_p11, %p24858_p9 }
  0x75   : > { %24868 = shalt.err (!%p24865_p12)
}
  0x76   : > { %21928 = dma.hbm_to_vmem [thread:$0]  (!%p25532_p6), %s27304_s9, 64, %s25538_s21, [#allocation19]  }
  0x77   : > { %s25380_s4 = smov [#allocation21]   ;;  %s25381_s15 = smov [#allocation24]  }
  0x78   : > { %s538_s5 = sshll.u32 %s25380_s4, 4  ;;  %s562_s22 = sshll.u32 %s25381_s15, 4  ;;  %s539_s5 = int_to_ptr.vmem [resolvable:$true] %s538_s5  ;;  %s563_s22 = int_to_ptr.vmem [resolvable:$true] %s562_s22 }
  0x79   : > { %s27305_s11 = sld [smem:[#allocation59_spill]] }
  0x7f   : > { %s24869_s20 = scalar_lea.hbm %s27305_s11, 64 }
  0x80   : > { %p24870_p13 = scmp.ne.s32.totalorder %s27305_s11, %s24869_s20  ;;  %p24876_p5 = scmp.lt.u32.totalorder %s24869_s20, %s27305_s11 }
  0x82   : > { %p24872_p0 = pnand %p24870_p13, %p25548_p8 }
  0x84   : > { %p24873_p2 = pneg %p24872_p0 }
  0x86   : > { %p24878_p7 = pnand %p24876_p5, %p24873_p2 }
  0x88   : > { %24881 = shalt.err (!%p24878_p7)
}
  0x89   : > { %s24882_s21 = scalar_lea.vmem %s539_s5, 64  ;;  %p24890_p11 = scmp.lt.s32.totalorder %s539_s5, %s539_s5 }
  0x8a   : > { %p24883_p9 = scmp.ne.s32.totalorder %s539_s5, %s24882_s21  ;;  %p24891_p12 = scmp.lt.s32.totalorder %s24882_s21, %s24882_s21 }
  0x8c   : > { %p24885_p3 = pnand %p24883_p9, %p25548_p8  ;;  %p24892_p1 = por %p24891_p12, %p24890_p11 }
  0x8e   : > { %p24886_p10 = pneg %p24885_p3 }
  0x90   : > { %p24893_p4 = pnand %p24892_p1, %p24886_p10 }
  0x92   : > { %24896 = shalt.err (!%p24893_p4)
}
  0x93   : > { %21934 = dma.hbm_to_vmem [thread:$0]  (!%p25532_p6), %s27305_s11, 64, %s539_s5, [#allocation22]  }
  0x94   : > { %s27306_s13 = sld [smem:[#allocation60_spill]] }
  0x9a   : > { %s24897_s23 = scalar_lea.hbm %s27306_s13, 16 }
  0x9b   : > { %p24898_p13 = scmp.ne.s32.totalorder %s27306_s13, %s24897_s23  ;;  %p24904_p4 = scmp.lt.u32.totalorder %s24897_s23, %s27306_s13 }
  0x9d   : > { %p24900_p0 = pnand %p24898_p13, %p25548_p8 }
  0x9f   : > { %p24901_p1 = pneg %p24900_p0 }
  0xa1   : > { %p24906_p2 = pnand %p24904_p4, %p24901_p1 }
  0xa3   : > { %24909 = shalt.err (!%p24906_p2)
}
  0xa4   : > { %s24910_s29 = scalar_lea.vmem %s563_s22, 16  ;;  %s24917_s5 = scalar_lea.vmem %s563_s22, 32 }
  0xa5   : > { %p24911_p5 = scmp.ne.s32.totalorder %s563_s22, %s24910_s29  ;;  %p24918_p3 = scmp.lt.s32.totalorder %s563_s22, %s563_s22 }
  0xa6   : > { %p24919_p10 = scmp.lt.s32.totalorder %s24917_s5, %s24910_s29 }
  0xa7   : > { %p24913_p7 = pnand %p24911_p5, %p25548_p8 }
  0xa8   : > { %p24920_p11 = por %p24919_p10, %p24918_p3 }
  0xa9   : > { %p24914_p9 = pneg %p24913_p7 }
  0xab   : > { %p24921_p12 = pnand %p24920_p11, %p24914_p9 }
  0xad   : > { %24924 = shalt.err (!%p24921_p12)
}
  0xae   : > { %21940 = dma.hbm_to_vmem [thread:$0]  (!%p25532_p6), %s27306_s13, 16, %s563_s22, [#allocation25]  }
  0xaf   : > { %s25655_s4 = sadd.s32 1, %s25373_s27   ;;  %s73_s15 = sadd.s32 1, %s25369_s26 }
  0xb0   : > { %27307 = sst [smem:[#allocation47_spill]] %s25655_s4  ;;  %s70_s17 = ssub.s32 %s25373_s27, %s25655_s4 }
  0xb1   : > { %p71_p13 = scmp.eq.s32.totalorder %s70_s17, 0  ;;  %p80_p0 = scmp.ne.s32.totalorder %s25369_s26, %s25365_s25 }
  0xb2   : > { %p81_p1 = scmp.eq.s32.totalorder %s25373_s27, 0  ;;  %p86_p4 = scmp.ne.s32.totalorder %s25365_s25, %s25361_s24 }
  0xb3   : > { %s25666_s23 = scalar_select %p71_p13, %s25369_s26, %s73_s15  }
  0xb4   : > { %p82_p2 = por %p81_p1, %p80_p0  ;;  %p27309_p5 = scmp.eq.s32.totalorder %s25516_s0, 0 }
  0xb5   : > { %27308 = sst [smem:[#allocation48_spill]] %s25666_s23  ;;  %p21974_p9 = scmp.lt.s32.totalorder %s25373_s27, 4 }
  0xb6   : > { %p25670_p7 = por %p27309_p5, %p86_p4  ;;  %s25676_s20 = sand.u32 1, %s25373_s27  }
  0xb7   : > { %s25679_s22 = sand.u32 1, %s25369_s26   ;;  %s21521_s19 = sshll.u32 %s25373_s27, 15 }
  0xb8   : > { %s27310_s28 = scalar_select %p25670_p7, 1, 0 }
  0xb9   : > { %s19132_s16 = sshll.u32 %s25679_s22, 11  ;;  %s27312_s5 = sld [smem:[#allocation51_spill]] }
  0xba   : > { %27311 = sst [smem:[#allocation49_spill]] %s27310_s28  ;;  %s601_s2 = scalar_lea.vmem [#allocation6], %s19132_s16 }
  0xbb   : > { %s608_s17 = sshll.u32 %s601_s2, 4  ;;  %p25688_p3 = pnand %p21974_p9, %p82_p2  ;;  %s25692_s17 = int_to_ptr.vmem [resolvable:$true] %s608_s17 }
  0xbc   : > { %s27271_s6 = scalar_lea.sflag [#allocation7], %s25676_s20 }
  0xbd   : > { %s27313_s15 = scalar_select %p25688_p3, 1, 0 }
  0xbe   : > { %p25700_p11 = pneg %p25688_p3 }
  0xbf   : > { %s25686_s21 = scalar_lea.hbm %s27312_s5, %s21521_s19  ;;  %s24930_s24 = scalar_lea.hbm %s27312_s5, 131072 }
  0xc0   : > { %s24925_s7 = scalar_lea.hbm %s25686_s21, 32768  ;;  %p24931_p0 = scmp.lt.u32.totalorder %s25686_s21, %s27312_s5 }
  0xc1   : > { %p24926_p10 = scmp.ne.s32.totalorder %s25686_s21, %s24925_s7  ;;  %p24932_p1 = scmp.lt.u32.totalorder %s24930_s24, %s24925_s7 }
  0xc2   : > { %s27314_s19 = scalar_select %p25700_p11, 1, 0 }
  0xc3   : > { %p24928_p12 = pnand %p25700_p11, %p24926_p10  ;;  %p24933_p4 = por %p24932_p1, %p24931_p0 }
  0xc4   : > { %p24934_p2 = scmp.lt.u32.totalorder %s24925_s7, %s25686_s21 }
  0xc5   : > { %p24929_p13 = pneg %p24928_p12 }
  0xc6   : > { %p24935_p5 = por %p24934_p2, %p24933_p4 }
  0xc8   : > { %p24936_p9 = pnand %p24935_p5, %p24929_p13 }
  0xca   : > { %24939 = shalt.err (!%p24936_p9)
}
  0xcb   : > { %s24940_s30 = scalar_lea.vmem %s25692_s17, 32768  ;;  %s25382_s16 = smov [#allocation6]  }
  0xcc   : > { %p24941_p10 = scmp.ne.s32.totalorder %s25692_s17, %s24940_s30  ;;  %s24945_s29 = sshll.u32 %s25382_s16, 4  ;;  %s24946_s29 = int_to_ptr.vmem [resolvable:$false] %s24945_s29 }
  0xcd   : > { %s24947_s9 = scalar_lea.vmem %s24946_s29, 65536  ;;  %p24948_p6 = scmp.lt.s32.totalorder %s25692_s17, %s24946_s29 }
  0xce   : > { %p24943_p12 = pnand %p24941_p10, %p25700_p11  ;;  %p24949_p8 = scmp.lt.s32.totalorder %s24947_s9, %s24940_s30 }
  0xd0   : > { %p24944_p7 = pneg %p24943_p12  ;;  %p24950_p0 = por %p24949_p8, %p24948_p6 }
  0xd2   : > { %p24951_p1 = pnand %p24950_p0, %p24944_p7 }
  0xd4   : > { %24954 = shalt.err (!%p24951_p1)
}
  0xd5   : > { %s27315_s7 = smov 16   ;;  %s27316_s24 = smov 256  }
  0xd6   : > { %21950 = dma.hbm_to_vmem [thread:$0]  (!%p25688_p3), %s25686_s21, 32768, %s25692_s17, %s27271_s6, %s27316_s24, %s27316_s24, %s27315_s7  }
  0xd7   : > { %s21523_s2 = sshll.u32 %s25373_s27, 16  ;;  %s27317_s3 = sld [smem:[#allocation53_spill]] }
  0xd8   : > { %s27318_s9 = sshll.u32 %s25679_s22, 12  ;;  %s638_s13 = scalar_lea.sflag [#allocation10], %s25676_s20 }
  0xd9   : > { %s641_s5 = scalar_lea.vmem [#allocation9], %s27318_s9 }
  0xda   : > { %s648_s11 = sshll.u32 %s641_s5, 4  ;;  %s25736_s11 = int_to_ptr.vmem [resolvable:$true] %s648_s11 }
  0xdd   : > { %s25732_s29 = scalar_lea.hbm %s27317_s3, %s21523_s2  ;;  %s24960_s2 = scalar_lea.hbm %s27317_s3, 262144 }
  0xde   : > { %s24955_s23 = scalar_lea.hbm %s25732_s29, 65536  ;;  %p24961_p13 = scmp.lt.u32.totalorder %s25732_s29, %s27317_s3 }
  0xdf   : > { %p24956_p6 = scmp.ne.s32.totalorder %s25732_s29, %s24955_s23  ;;  %p24962_p4 = scmp.lt.u32.totalorder %s24960_s2, %s24955_s23 }
  0xe0   : > { %p24964_p5 = scmp.lt.u32.totalorder %s24955_s23, %s25732_s29 }
  0xe1   : > { %p24958_p8 = pnand %p24956_p6, %p25700_p11  ;;  %p24963_p2 = por %p24962_p4, %p24961_p13 }
  0xe3   : > { %p24959_p7 = pneg %p24958_p8  ;;  %p24965_p9 = por %p24964_p5, %p24963_p2 }
  0xe5   : > { %p24966_p10 = pnand %p24965_p9, %p24959_p7 }
  0xe7   : > { %24969 = shalt.err (!%p24966_p10)
}
  0xe8   : > { %s24970_s5 = scalar_lea.vmem %s25736_s11, 65536  ;;  %s25383_s9 = smov [#allocation9]  }
  0xe9   : > { %p24971_p12 = scmp.ne.s32.totalorder %s25736_s11, %s24970_s5  ;;  %s24975_s21 = sshll.u32 %s25383_s9, 4  ;;  %s24976_s21 = int_to_ptr.vmem [resolvable:$false] %s24975_s21 }
  0xea   : > { %s24977_s17 = scalar_lea.vmem %s24976_s21, 131072  ;;  %p24978_p6 = scmp.lt.s32.totalorder %s25736_s11, %s24976_s21 }
  0xeb   : > { %p24973_p0 = pnand %p24971_p12, %p25700_p11  ;;  %p24979_p8 = scmp.lt.s32.totalorder %s24977_s17, %s24970_s5 }
  0xed   : > { %p24974_p1 = pneg %p24973_p0  ;;  %p24980_p13 = por %p24979_p8, %p24978_p6 }
  0xef   : > { %p24981_p4 = pnand %p24980_p13, %p24974_p1 }
  0xf1   : > { %24984 = shalt.err (!%p24981_p4)
}
  0xf2   : > { %s25384_s23 = smov 512   ;;  %s25385_s2 = smov 32  }
  0xf3   : > { %21956 = dma.hbm_to_vmem [thread:$0]  (!%p25688_p3), %s25732_s29, 65536, %s25736_s11, %s638_s13, %s25384_s23, %s25384_s23, %s25385_s2  }
  0xf4   : > { %s25386_s16 = smov [#allocation3]   ;;  %s25387_s9 = smov [#allocation17]  }
  0xf5   : > { %s466_s30 = sshll.u32 %s25386_s16, 4  ;;  %s500_s6 = sshll.u32 %s25387_s9, 4  ;;  %s467_s30 = int_to_ptr.vmem [resolvable:$true] %s466_s30  ;;  %s501_s6 = int_to_ptr.vmem [resolvable:$true] %s500_s6 }
  0xf6   : > { %s27319_s17 = sld [smem:[#allocation50_spill]]  ;;  %p27320_p2 = scmp.ne.s32.totalorder %s27302_s18, 0 }
  0xfc   : > { %s24985_s3 = scalar_lea.hbm %s27319_s17, 1024 }
  0xfd   : > { %p24986_p7 = scmp.ne.s32.totalorder %s27319_s17, %s24985_s3  ;;  %p24992_p10 = scmp.lt.u32.totalorder %s24985_s3, %s27319_s17 }
  0xff   : > { %p24988_p5 = pnand %p24986_p7, %p27320_p2 }
 0x101   : > { %p24989_p9 = pneg %p24988_p5 }
 0x103   : > { %p24994_p12 = pnand %p24992_p10, %p24989_p9 }
 0x105   : > { %24997 = shalt.err (!%p24994_p12)
}
 0x106   : > { %s24998_s11 = scalar_lea.vmem %s467_s30, 1024  ;;  %p25006_p8 = scmp.lt.s32.totalorder %s467_s30, %s467_s30 }
 0x107   : > { %p24999_p0 = scmp.ne.s32.totalorder %s467_s30, %s24998_s11  ;;  %p25007_p13 = scmp.lt.s32.totalorder %s24998_s11, %s24998_s11 }
 0x109   : > { %p25001_p1 = pnand %p24999_p0, %p27320_p2  ;;  %p25008_p4 = por %p25007_p13, %p25006_p8 }
 0x10b   : > { %p25002_p6 = pneg %p25001_p1 }
 0x10d   : > { %p25009_p3 = pnand %p25008_p4, %p25002_p6 }
 0x10f   : > { %25012 = shalt.err (!%p25009_p3)
}
 0x110   : > { %p27321_p7 = scmp.ne.s32.totalorder %s27300_s1, 0  ;;  %s25013_s28 = scalar_lea.hbm %s27240_s8, 16384 }
 0x111   : > { %p25014_p5 = scmp.ne.s32.totalorder %s27240_s8, %s25013_s28  ;;  %p25020_p3 = scmp.lt.u32.totalorder %s25013_s28, %s27240_s8 }
 0x112   : > { %21916 = dma.hbm_to_vmem [thread:$0]  (!%p27321_p7), %s27319_s17, 1024, %s467_s30, [#allocation4]  }
 0x113   : > { %p25016_p9 = pnand %p25014_p5, %p27320_p2 }
 0x115   : > { %p25017_p10 = pneg %p25016_p9 }
 0x117   : > { %p25022_p12 = pnand %p25020_p3, %p25017_p10 }
 0x119   : > { %25025 = shalt.err (!%p25022_p12)
}
 0x11a   : > { %s25026_s9 = scalar_lea.vmem %s501_s6, 16384  ;;  %p25034_p8 = scmp.lt.s32.totalorder %s501_s6, %s501_s6 }
 0x11b   : > { %p25027_p0 = scmp.ne.s32.totalorder %s501_s6, %s25026_s9  ;;  %p25035_p13 = scmp.lt.s32.totalorder %s25026_s9, %s25026_s9 }
 0x11d   : > { %p25029_p1 = pnand %p25027_p0, %p27320_p2  ;;  %p25036_p4 = por %p25035_p13, %p25034_p8 }
 0x11f   : > { %p25030_p6 = pneg %p25029_p1 }
 0x121   : > { %p25037_p11 = pnand %p25036_p4, %p25030_p6 }
 0x123   : > { %25040 = shalt.err (!%p25037_p11)
}
 0x124   : > { %21925 = dma.hbm_to_vmem [thread:$0]  (!%p27321_p7), %s27240_s8, 16384, %s501_s6, [#allocation16], %s27316_s24, %s27316_s24, %s27315_s7  }
 0x125   : > { %s25388_s5 = smov [#allocation20]   ;;  %s25389_s26 = smov [#allocation23]  }
 0x126   : > { %s524_s11 = sshll.u32 %s25388_s5, 4  ;;  %s548_s4 = sshll.u32 %s25389_s26, 4  ;;  %s525_s11 = int_to_ptr.vmem [resolvable:$true] %s524_s11  ;;  %s549_s4 = int_to_ptr.vmem [resolvable:$true] %s548_s4 }
 0x127   : > { %s25041_s28 = scalar_lea.hbm %s27242_s10, 16384 }
 0x128   : > { %p25042_p11 = scmp.ne.s32.totalorder %s27242_s10, %s25041_s28  ;;  %p25048_p10 = scmp.lt.u32.totalorder %s25041_s28, %s27242_s10 }
 0x12a   : > { %p25044_p5 = pnand %p25042_p11, %p27320_p2 }
 0x12c   : > { %p25045_p9 = pneg %p25044_p5 }
 0x12e   : > { %p25050_p3 = pnand %p25048_p10, %p25045_p9 }
 0x130   : > { %25053 = shalt.err (!%p25050_p3)
}
 0x131   : > { %s25054_s6 = scalar_lea.vmem %s525_s11, 16384  ;;  %p25062_p6 = scmp.lt.s32.totalorder %s525_s11, %s525_s11 }
 0x132   : > { %p25055_p12 = scmp.ne.s32.totalorder %s525_s11, %s25054_s6  ;;  %p25063_p8 = scmp.lt.s32.totalorder %s25054_s6, %s25054_s6 }
 0x134   : > { %p25057_p0 = pnand %p25055_p12, %p27320_p2  ;;  %p25064_p13 = por %p25063_p8, %p25062_p6 }
 0x136   : > { %p25058_p1 = pneg %p25057_p0 }
 0x138   : > { %p25065_p4 = pnand %p25064_p13, %p25058_p1 }
 0x13a   : > { %25068 = shalt.err (!%p25065_p4)
}
 0x13b   : > { %21931 = dma.hbm_to_vmem [thread:$0]  (!%p27321_p7), %s27242_s10, 16384, %s525_s11, [#allocation19], %s27316_s24, %s27316_s24, %s27315_s7  }
 0x13c   : > { %s25069_s26 = scalar_lea.hbm %s27244_s12, 4096 }
 0x13d   : > { %p25070_p11 = scmp.ne.s32.totalorder %s27244_s12, %s25069_s26  ;;  %p25076_p10 = scmp.lt.u32.totalorder %s25069_s26, %s27244_s12 }
 0x13f   : > { %p25072_p5 = pnand %p25070_p11, %p27320_p2 }
 0x141   : > { %p25073_p9 = pneg %p25072_p5 }
 0x143   : > { %p25078_p3 = pnand %p25076_p10, %p25073_p9 }
 0x145   : > { %25081 = shalt.err (!%p25078_p3)
}
 0x146   : > { %s25082_s23 = scalar_lea.vmem %s549_s4, 4096  ;;  %p25090_p6 = scmp.lt.s32.totalorder %s549_s4, %s549_s4 }
 0x147   : > { %p25083_p12 = scmp.ne.s32.totalorder %s549_s4, %s25082_s23  ;;  %p25091_p8 = scmp.lt.s32.totalorder %s25082_s23, %s25082_s23 }
 0x149   : > { %p25085_p0 = pnand %p25083_p12, %p27320_p2  ;;  %p25092_p13 = por %p25091_p8, %p25090_p6 }
 0x14b   : > { %p25086_p1 = pneg %p25085_p0 }
 0x14d   : > { %p25093_p4 = pnand %p25092_p13, %p25086_p1 }
 0x14f   : > { %25096 = shalt.err (!%p25093_p4)
}
 0x150   : > { %s25390_s7 = smov 64   ;;  %s25391_s24 = smov 4  }
 0x151   : > { %21937 = dma.hbm_to_vmem [thread:$0]  (!%p27321_p7), %s27244_s12, 4096, %s549_s4, [#allocation22], %s25390_s7, %s25390_s7, %s25391_s24  }
 0x152   : > { %s25392_s16 = smov [#allocation26]   ;;  %s25393_s9 = smov [#allocation27]  }
 0x153   : > { %s572_s6 = sshll.u32 %s25392_s16, 4  ;;  %s586_s30 = sshll.u32 %s25393_s9, 4  ;;  %s573_s6 = int_to_ptr.vmem [resolvable:$true] %s572_s6  ;;  %s587_s30 = int_to_ptr.vmem [resolvable:$true] %s586_s30 }
 0x154   : > { %s25097_s26 = scalar_lea.hbm %s27246_s14, 1024 }
 0x155   : > { %p25098_p11 = scmp.ne.s32.totalorder %s27246_s14, %s25097_s26  ;;  %p25104_p10 = scmp.lt.u32.totalorder %s25097_s26, %s27246_s14 }
 0x157   : > { %p25100_p5 = pnand %p25098_p11, %p27320_p2 }
 0x159   : > { %p25101_p9 = pneg %p25100_p5 }
 0x15b   : > { %p25106_p3 = pnand %p25104_p10, %p25101_p9 }
 0x15d   : > { %25109 = shalt.err (!%p25106_p3)
}
 0x15e   : > { %s25110_s4 = scalar_lea.vmem %s573_s6, 1024  ;;  %p25118_p6 = scmp.lt.s32.totalorder %s573_s6, %s573_s6 }
 0x15f   : > { %p25111_p12 = scmp.ne.s32.totalorder %s573_s6, %s25110_s4  ;;  %p25119_p8 = scmp.lt.s32.totalorder %s25110_s4, %s25110_s4 }
 0x161   : > { %p25113_p0 = pnand %p25111_p12, %p27320_p2  ;;  %p25120_p13 = por %p25119_p8, %p25118_p6 }
 0x163   : > { %p25114_p1 = pneg %p25113_p0 }
 0x165   : > { %p25121_p4 = pnand %p25120_p13, %p25114_p1 }
 0x167   : > { %25124 = shalt.err (!%p25121_p4)
}
 0x168   : > { %21943 = dma.hbm_to_vmem [thread:$0]  (!%p27321_p7), %s27246_s14, 1024, %s573_s6, [#allocation25], %s25390_s7, %s25390_s7, %s25391_s24  }
 0x169   : > { %s19135_s2 = sshll.u32 %s25679_s22, 2  ;;  %s27322_s21 = sld [smem:[#allocation61_spill]] }
 0x16f   : > { %s25125_s5 = scalar_lea.hbm %s27322_s21, 16 }
 0x170   : > { %p25126_p11 = scmp.ne.s32.totalorder %s27322_s21, %s25125_s5  ;;  %p25132_p10 = scmp.lt.u32.totalorder %s25125_s5, %s27322_s21 }
 0x172   : > { %p25128_p5 = pnand %p25126_p11, %p27320_p2 }
 0x174   : > { %p25129_p9 = pneg %p25128_p5 }
 0x176   : > { %p25134_p3 = pnand %p25132_p10, %p25129_p9 }
 0x178   : > { %25137 = shalt.err (!%p25134_p3)
}
 0x179   : > { %s25138_s7 = scalar_lea.vmem %s587_s30, 16  ;;  %s25145_s24 = scalar_lea.vmem %s587_s30, 32 }
 0x17a   : > { %p25139_p12 = scmp.ne.s32.totalorder %s587_s30, %s25138_s7  ;;  %p25146_p6 = scmp.lt.s32.totalorder %s587_s30, %s587_s30 }
 0x17b   : > { %p25147_p8 = scmp.lt.s32.totalorder %s25145_s24, %s25138_s7 }
 0x17c   : > { %p25141_p0 = pnand %p25139_p12, %p27320_p2 }
 0x17d   : > { %p25148_p13 = por %p25147_p8, %p25146_p6 }
 0x17e   : > { %p25142_p1 = pneg %p25141_p0 }
 0x180   : > { %p25149_p4 = pnand %p25148_p13, %p25142_p1 }
 0x182   : > { %25152 = shalt.err (!%p25149_p4)
}
 0x183   : > { %21946 = dma.hbm_to_vmem [thread:$0]  (!%p27321_p7), %s27322_s21, 16, %s587_s30, [#allocation28]  }
 0x184   : > { %s21522_s4 = sshll.u32 %s25373_s27, 6  ;;  %s27323_s11 = sld [smem:[#allocation52_spill]] }
 0x185   : > { %s622_s9 = scalar_lea.vmem [#allocation8], %s19135_s2  ;;  %s19141_s1 = sshll.u32 %s25679_s22, 3 }
 0x186   : > { %s630_s5 = sshll.u32 %s622_s9, 4  ;;  %p27324_p11 = scmp.ne.s32.totalorder %s27314_s19, 0  ;;  %s631_s5 = int_to_ptr.vmem [resolvable:$true] %s630_s5 }
 0x18a   : > { %s25881_s16 = scalar_lea.hbm %s27323_s11, %s21522_s4  ;;  %s25158_s25 = scalar_lea.hbm %s27323_s11, 256 }
 0x18b   : > { %s25153_s26 = scalar_lea.hbm %s25881_s16, 64  ;;  %p25159_p7 = scmp.lt.u32.totalorder %s25881_s16, %s27323_s11 }
 0x18c   : > { %p25154_p2 = scmp.ne.s32.totalorder %s25881_s16, %s25153_s26  ;;  %p25160_p10 = scmp.lt.u32.totalorder %s25158_s25, %s25153_s26 }
 0x18d   : > { %p25162_p12 = scmp.lt.u32.totalorder %s25153_s26, %s25881_s16 }
 0x18e   : > { %p25156_p5 = pnand %p25154_p2, %p27324_p11  ;;  %p25161_p3 = por %p25160_p10, %p25159_p7 }
 0x190   : > { %p25157_p9 = pneg %p25156_p5  ;;  %p25163_p0 = por %p25162_p12, %p25161_p3 }
 0x192   : > { %p25164_p1 = pnand %p25163_p0, %p25157_p9 }
 0x194   : > { %25167 = shalt.err (!%p25164_p1)
}
 0x195   : > { %s25168_s2 = scalar_lea.vmem %s631_s5, 64  ;;  %s25394_s24 = smov [#allocation8]  }
 0x196   : > { %p25169_p6 = scmp.ne.s32.totalorder %s631_s5, %s25168_s2  ;;  %s25173_s6 = sshll.u32 %s25394_s24, 4  ;;  %s25174_s6 = int_to_ptr.vmem [resolvable:$false] %s25173_s6 }
 0x197   : > { %s25175_s29 = scalar_lea.vmem %s25174_s6, 128  ;;  %p25176_p4 = scmp.lt.s32.totalorder %s631_s5, %s25174_s6 }
 0x198   : > { %p25171_p8 = pnand %p25169_p6, %p27324_p11  ;;  %p25177_p2 = scmp.lt.s32.totalorder %s25175_s29, %s25168_s2 }
 0x19a   : > { %p25172_p13 = pneg %p25171_p8  ;;  %p25178_p5 = por %p25177_p2, %p25176_p4 }
 0x19c   : > { %p25179_p7 = pnand %p25178_p5, %p25172_p13 }
 0x19e   : > { %25182 = shalt.err (!%p25179_p7)
}
 0x19f   : > { %p27325_p10 = scmp.ne.s32.totalorder %s27313_s15, 0  ;;  %s27326_s4 = scalar_lea.sflag [#allocation7], %s25676_s20 }
 0x1a0   : > { %s21524_s23 = sshll.u32 %s25373_s27, 7  ;;  %s27327_s26 = sld [smem:[#allocation54_spill]] }
 0x1a1   : > { %21953 = dma.hbm_to_vmem [thread:$0]  (!%p27325_p10), %s25881_s16, 64, %s631_s5, %s27326_s4  }
 0x1a2   : > { %s662_s25 = scalar_lea.vmem [#allocation11], %s19141_s1 }
 0x1a3   : > { %s670_s28 = sshll.u32 %s662_s25, 4  ;;  %s671_s28 = int_to_ptr.vmem [resolvable:$true] %s670_s28 }
 0x1a6   : > { %s27328_s30 = smov %s27327_s26  ;;  %s25909_s3 = scalar_lea.hbm %s27327_s26, %s21524_s23 }
 0x1a7   : > { %s25183_s7 = scalar_lea.hbm %s25909_s3, 128  ;;  %s25188_s2 = scalar_lea.hbm %s27328_s30, 512 }
 0x1a8   : > { %p25184_p9 = scmp.ne.s32.totalorder %s25909_s3, %s25183_s7  ;;  %p25189_p0 = scmp.lt.u32.totalorder %s25909_s3, %s27328_s30 }
 0x1a9   : > { %p25190_p1 = scmp.lt.u32.totalorder %s25188_s2, %s25183_s7  ;;  %p25192_p8 = scmp.lt.u32.totalorder %s25183_s7, %s25909_s3 }
 0x1aa   : > { %p25186_p3 = pnand %p25184_p9, %p27324_p11 }
 0x1ab   : > { %p25191_p6 = por %p25190_p1, %p25189_p0 }
 0x1ac   : > { %p25187_p12 = pneg %p25186_p3 }
 0x1ad   : > { %p25193_p13 = por %p25192_p8, %p25191_p6 }
 0x1af   : > { %p25194_p4 = pnand %p25193_p13, %p25187_p12 }
 0x1b1   : > { %25197 = shalt.err (!%p25194_p4)
}
 0x1b2   : > { %s25198_s29 = scalar_lea.vmem %s671_s28, 128  ;;  %s25395_s4 = smov [#allocation11]  }
 0x1b3   : > { %p25199_p2 = scmp.ne.s32.totalorder %s671_s28, %s25198_s29  ;;  %s25203_s18 = sshll.u32 %s25395_s4, 4  ;;  %s25204_s18 = int_to_ptr.vmem [resolvable:$false] %s25203_s18 }
 0x1b4   : > { %s25205_s9 = scalar_lea.vmem %s25204_s18, 256  ;;  %p25206_p9 = scmp.lt.s32.totalorder %s671_s28, %s25204_s18 }
 0x1b5   : > { %p25201_p5 = pnand %p25199_p2, %p27324_p11  ;;  %p25207_p3 = scmp.lt.s32.totalorder %s25205_s9, %s25198_s29 }
 0x1b7   : > { %p25202_p7 = pneg %p25201_p5  ;;  %p25208_p10 = por %p25207_p3, %p25206_p9 }
 0x1b9   : > { %p25209_p0 = pnand %p25208_p10, %p25202_p7 }
 0x1bb   : > { %25212 = shalt.err (!%p25209_p0)
}
 0x1bc   : > { %p27329_p1 = scmp.ne.s32.totalorder %s27313_s15, 0  ;;  %s27330_s7 = sld [smem:[#allocation55_spill]] }
 0x1bd   : > { %s681_s5 = scalar_lea.vmem [#allocation12], %s19141_s1  ;;  %s678_s24 = scalar_lea.sflag [#allocation13], %s25676_s20 }
 0x1be   : > { %21959 = dma.hbm_to_vmem [thread:$0]  (!%p27329_p1), %s25909_s3, 128, %s671_s28, %s638_s13  }
 0x1bf   : > { %s689_s2 = sshll.u32 %s681_s5, 4  ;;  %s690_s2 = int_to_ptr.vmem [resolvable:$true] %s689_s2 }
 0x1c2   : > { %s25937_s16 = scalar_lea.hbm %s27330_s7, %s21524_s23  ;;  %s25218_s3 = scalar_lea.hbm %s27330_s7, 512 }
 0x1c3   : > { %s25213_s6 = scalar_lea.hbm %s25937_s16, 128  ;;  %p25219_p8 = scmp.lt.u32.totalorder %s25937_s16, %s27330_s7 }
 0x1c4   : > { %p25214_p10 = scmp.ne.s32.totalorder %s25937_s16, %s25213_s6  ;;  %p25220_p13 = scmp.lt.u32.totalorder %s25218_s3, %s25213_s6 }
 0x1c5   : > { %p25222_p2 = scmp.lt.u32.totalorder %s25213_s6, %s25937_s16 }
 0x1c6   : > { %p25216_p12 = pnand %p25214_p10, %p27324_p11  ;;  %p25221_p4 = por %p25220_p13, %p25219_p8 }
 0x1c8   : > { %p25217_p6 = pneg %p25216_p12  ;;  %p25223_p5 = por %p25222_p2, %p25221_p4 }
 0x1ca   : > { %p25224_p7 = pnand %p25223_p5, %p25217_p6 }
 0x1cc   : > { %25227 = shalt.err (!%p25224_p7)
}
 0x1cd   : > { %s25228_s20 = scalar_lea.vmem %s690_s2, 128  ;;  %s25396_s22 = smov [#allocation12]  }
 0x1ce   : > { %p25229_p9 = scmp.ne.s32.totalorder %s690_s2, %s25228_s20  ;;  %s25233_s1 = sshll.u32 %s25396_s22, 4  ;;  %s25234_s1 = int_to_ptr.vmem [resolvable:$false] %s25233_s1 }
 0x1cf   : > { %s25235_s29 = scalar_lea.vmem %s25234_s1, 256  ;;  %p25236_p10 = scmp.lt.s32.totalorder %s690_s2, %s25234_s1 }
 0x1d0   : > { %p25231_p3 = pnand %p25229_p9, %p27324_p11  ;;  %p25237_p12 = scmp.lt.s32.totalorder %s25235_s29, %s25228_s20 }
 0x1d2   : > { %p25232_p0 = pneg %p25231_p3  ;;  %p25238_p1 = por %p25237_p12, %p25236_p10 }
 0x1d4   : > { %p25239_p8 = pnand %p25238_p1, %p25232_p0 }
 0x1d6   : > { %25242 = shalt.err (!%p25239_p8)
}
 0x1d7   : > { %p27331_p13 = scmp.ne.s32.totalorder %s27313_s15, 0  ;;  %s27332_s4 = sld [smem:[#allocation46_spill]] }
 0x1d9   : > { %21962 = dma.hbm_to_vmem [thread:$0]  (!%p27331_p13), %s25937_s16, 128, %s690_s2, %s678_s24  }
 0x1dd   : > { %p27333_p6 = scmp.ne.s32.totalorder %s27332_s4, 0 }
 0x1de   : > { %p27334_p4 = scmp.eq.s32.totalorder (!%p27333_p6), %s25516_s0, 0 }
 0x1df   : > { %698 = sbr.rel (%p27333_p6) target bundleno = 5313 (0x14c1), region = 84 }
 0x1e6   : > { %25312 = dma.done.wait (%p27334_p4), [#allocation4], 1024   ;;  %p27335_p11 = pmov %p27334_p4 }
 0x1e7   : > { %s27336_s19 = sld [smem:[#allocation44_spill]]  ;;  %s27337_s18 = sld [smem:[#allocation49_spill]] }
 0x1e8   : > { %25314 = vsyncadd (%p27335_p11), [#allocation4], 4294966272  ;;  %s704_s9 = sand.u32 1, %s25516_s0  }
 0x1e9   : > { %s705_s5 = scalar_lea.sflag [#allocation7], %s704_s9 }
 0x1ed   : > { %s706_s26 = sand.u32 1, %s27336_s19   ;;  %p27338_p1 = scmp.ne.s32.totalorder %s27337_s18, 0 }
 0x1ee   : > { %s19149_s25 = sshll.u32 %s706_s26, 11 }
 0x1ef   : > { %s25967_s6 = scalar_lea.vmem [#allocation6], %s19149_s25 }
 0x1f0   : > { %25316 = dma.done.wait (%p27338_p1), %s705_s5, 32832  }
 0x1f1   : > { %25318 = vsyncadd (%p27338_p1), %s705_s5, 4294934464  ;;  %s19150_s15 = sshll.u32 %s706_s26, 2  ;;  %s19151_s16 = sshll.u32 %s706_s26, 12 }
 0x1f2   : > { %s25973_s2 = scalar_lea.vmem [#allocation8], %s19150_s15  ;;  %s723_s24 = scalar_lea.sflag [#allocation10], %s704_s9 }
 0x1f3   : > { %s25975_s13 = scalar_lea.vmem [#allocation9], %s19151_s16 }
 0x1f4   : > { %25320 = dma.done.wait (%p27338_p1), %s723_s24, 65664  }
 0x1f5   : > { %25322 = vsyncadd (%p27338_p1), %s723_s24, 4294901632  ;;  %s19152_s27 = sshll.u32 %s706_s26, 3  ;;  %s741_s23 = scalar_lea.sflag [#allocation13], %s704_s9 }
 0x1f6   : > { %s25981_s3 = scalar_lea.vmem [#allocation11], %s19152_s27  ;;  %s25983_s28 = scalar_lea.vmem [#allocation12], %s19152_s27 }
 0x1f7   : > { %25324 = dma.done.wait (%p27338_p1), %s741_s23, 128  }
 0x1f8   : > { %25326 = vsyncadd (%p27338_p1), %s741_s23, 4294967168  ;;  %p27339_p2 = pmov %p27334_p4 }
 0x1fa   : > { %25328 = dma.done.wait (%p27339_p2), [#allocation13], 163840   ;;  %p27340_p5 = pmov %p27339_p2 }
 0x1fb   : > { %p27341_p7 = pmov %p27339_p2 }
 0x1fc   : > { %25330 = vsyncadd (%p27340_p5), [#allocation13], 4294803456 }
 0x1fd   : > { %25332 = dma.done.wait (%p27341_p7), [#allocation16], 16448   ;;  %p27342_p9 = pmov %p27339_p2 }
 0x1fe   : > { %p27343_p3 = pmov %p27339_p2 }
 0x1ff   : > { %25334 = vsyncadd (%p27342_p9), [#allocation16], 4294950848 }
 0x200   : > { %25336 = dma.done.wait (%p27343_p3), [#allocation19], 16448   ;;  %p27344_p0 = pmov %p27339_p2 }
 0x202   : > { %25338 = vsyncadd (%p27344_p0), [#allocation19], 4294950848  ;;  %p27345_p10 = pmov %p27344_p0 }
 0x203   : > { %p27346_p12 = pmov %p27344_p0 }
 0x204   : > { %25340 = dma.done.wait (%p27345_p10), [#allocation22], 4160  }
 0x205   : > { %25342 = vsyncadd (%p27346_p12), [#allocation22], 4294963136  ;;  %p27347_p8 = pmov %p27344_p0 }
 0x206   : > { %p27348_p13 = pmov %p27344_p0 }
 0x207   : > { %25344 = dma.done.wait (%p27347_p8), [#allocation25], 1040  }
 0x208   : > { %25346 = vsyncadd (%p27348_p13), [#allocation25], 4294966256  ;;  %p27349_p6 = pmov %p27344_p0 }
 0x209   : > { %p27350_p4 = pmov %p27344_p0 }
 0x20a   : > { %25348 = dma.done.wait (%p27349_p6), [#allocation28], 16  }
 0x20b   : > { %25350 = vsyncadd (%p27350_p4), [#allocation28], 4294967280  ;;  %p27351_p11 = scmp.ne.s32.totalorder %s25516_s0, 0 }
 0x20c   : > { %v855_v0 = vlaneseq (!%p27351_p11)  ;;  %v25397_v1 = vmov (!%p27351_p11), 0.0  }
 0x20d   : > { %854 = sbr.rel (%p27351_p11) target bundleno = 532 (0x214), region = 152 }
 0x20e   : > { %vm857_vm0 = vcmp.lt.s32.totalorder (!%p27351_p11), %v855_v0, 512 }
 0x20f   : > { %859 = vst.msk [vmem:[#allocation2] sm:$0xf] (!%p27351_p11), %vm857_vm0, %v25397_v1 }
 0x214 PF: > { %v22047_v2 = vld [vmem:[%s25967_s6 + $0x4] ss:$16 sps:$4 sm:$0xff]   ;;  %v22049_v3 = vld [vmem:[%s25967_s6 + $0xc] ss:$16 sps:$4 sm:$0xff]   ;;  %v22051_v4 = vld [vmem:[%s25967_s6] ss:$16 sps:$4 sm:$0xff]  }
 0x215   : > { %2434 = vmatprep.subr.bf16.mxu0 %v22047_v2  ;;  %v22052_v5 = vld [vmem:[%s25967_s6 + $0x8] ss:$16 sps:$4 sm:$0xff]   ;;  %2598 = vmatprep.subr.bf16.mxu1 %v22049_v3  ;;  %v22053_v6 = vld [vmem:[%s25967_s6 + $0x24] ss:$16 sps:$4 sm:$0xff]   ;;  %v22055_v7 = vld [vmem:[%s25967_s6 + $0x2c] ss:$16 sps:$4 sm:$0xff]  }
 0x216   : > { %2435 = vmatpush1.bf16.msra.mxu0 %v22051_v4  ;;  %2599 = vmatpush1.bf16.msra.mxu1 %v22052_v5  ;;  %v22057_v8 = vld [vmem:[%s25967_s6 + $0x20] ss:$16 sps:$4 sm:$0xff]   ;;  %v22058_v9 = vld [vmem:[%s25967_s6 + $0x28] ss:$16 sps:$4 sm:$0xff]   ;;  %v22059_v10 = vld [vmem:[%s25967_s6 + $0x44] ss:$16 sps:$4 sm:$0xff]  }
 0x217   : > { %2436 = vmatprep.subr.bf16.mxu0 %v22053_v6  ;;  %2600 = vmatprep.subr.bf16.mxu1 %v22055_v7  ;;  %v22061_v11 = vld [vmem:[%s25967_s6 + $0x4c] ss:$16 sps:$4 sm:$0xff]   ;;  %v22063_v12 = vld [vmem:[%s25967_s6 + $0x40] ss:$16 sps:$4 sm:$0xff]   ;;  %v22064_v13 = vld [vmem:[%s25967_s6 + $0x48] ss:$16 sps:$4 sm:$0xff]  }
 0x218   : > { %v22065_v14 = vld [vmem:[%s25967_s6 + $0x64] ss:$16 sps:$4 sm:$0xff]   ;;  %v22067_v15 = vld [vmem:[%s25967_s6 + $0x6c] ss:$16 sps:$4 sm:$0xff]   ;;  %v22069_v16 = vld [vmem:[%s25967_s6 + $0x60] ss:$16 sps:$4 sm:$0xff]  }
 0x219   : > { %v22070_v17 = vld [vmem:[%s25967_s6 + $0x68] ss:$16 sps:$4 sm:$0xff]   ;;  %v22071_v18 = vld [vmem:[%s25967_s6 + $0x84] ss:$16 sps:$4 sm:$0xff]   ;;  %v22073_v19 = vld [vmem:[%s25967_s6 + $0x8c] ss:$16 sps:$4 sm:$0xff]  }
 0x21a   : > { %2437 = vmatpush1.bf16.msra.mxu0 %v22057_v8  ;;  %2601 = vmatpush1.bf16.msra.mxu1 %v22058_v9  ;;  %v22075_v20 = vld [vmem:[%s25967_s6 + $0x80] ss:$16 sps:$4 sm:$0xff]   ;;  %v22076_v21 = vld [vmem:[%s25967_s6 + $0x88] ss:$16 sps:$4 sm:$0xff]   ;;  %v22077_v22 = vld [vmem:[%s25967_s6 + $0xa4] ss:$16 sps:$4 sm:$0xff]  }
 0x21b   : > { %2438 = vmatprep.subr.bf16.mxu0 %v22059_v10  ;;  %2602 = vmatprep.subr.bf16.mxu1 %v22061_v11  ;;  %v22079_v23 = vld [vmem:[%s25967_s6 + $0xac] ss:$16 sps:$4 sm:$0xff]   ;;  %v22081_v24 = vld [vmem:[%s25967_s6 + $0xa0] ss:$16 sps:$4 sm:$0xff]   ;;  %v22082_v25 = vld [vmem:[%s25967_s6 + $0xa8] ss:$16 sps:$4 sm:$0xff]  }
 0x21c   : > { %v22083_v26 = vld [vmem:[%s25967_s6 + $0xc4] ss:$16 sps:$4 sm:$0xff]   ;;  %v22085_v27 = vld [vmem:[%s25967_s6 + $0xcc] ss:$16 sps:$4 sm:$0xff]   ;;  %v22087_v28 = vld [vmem:[%s25967_s6 + $0xc0] ss:$16 sps:$4 sm:$0xff]  }
 0x21d   : > { %v22088_v29 = vld [vmem:[%s25967_s6 + $0xc8] ss:$16 sps:$4 sm:$0xff]   ;;  %v22089_v30 = vld [vmem:[%s25967_s6 + $0xe4] ss:$16 sps:$4 sm:$0xff]   ;;  %v22091_v31 = vld [vmem:[%s25967_s6 + $0xec] ss:$16 sps:$4 sm:$0xff]  }
 0x21e   : > { %2439 = vmatpush1.bf16.msra.mxu0 %v22063_v12  ;;  %2603 = vmatpush1.bf16.msra.mxu1 %v22064_v13  ;;  %v22093_v32 = vld [vmem:[%s25967_s6 + $0xe0] ss:$16 sps:$4 sm:$0xff]   ;;  %v22094_v33 = vld [vmem:[%s25967_s6 + $0xe8] ss:$16 sps:$4 sm:$0xff]   ;;  %v22095_v34 = vld [vmem:[%s25967_s6 + $0x104] ss:$16 sps:$4 sm:$0xff]  }
 0x21f   : > { %2440 = vmatprep.subr.bf16.mxu0 %v22065_v14  ;;  %2604 = vmatprep.subr.bf16.mxu1 %v22067_v15  ;;  %v22097_v35 = vld [vmem:[%s25967_s6 + $0x10c] ss:$16 sps:$4 sm:$0xff]   ;;  %v22099_v36 = vld [vmem:[%s25967_s6 + $0x100] ss:$16 sps:$4 sm:$0xff]   ;;  %v22100_v37 = vld [vmem:[%s25967_s6 + $0x108] ss:$16 sps:$4 sm:$0xff]  }
 0x220   : > { %v22101_v38 = vld [vmem:[%s25967_s6 + $0x124] ss:$16 sps:$4 sm:$0xff]   ;;  %v22103_v39 = vld [vmem:[%s25967_s6 + $0x12c] ss:$16 sps:$4 sm:$0xff]   ;;  %v22105_v40 = vld [vmem:[%s25967_s6 + $0x120] ss:$16 sps:$4 sm:$0xff]  }
 0x221   : > { %v22106_v41 = vld [vmem:[%s25967_s6 + $0x128] ss:$16 sps:$4 sm:$0xff]   ;;  %v22107_v42 = vld [vmem:[%s25967_s6 + $0x144] ss:$16 sps:$4 sm:$0xff]   ;;  %v22109_v43 = vld [vmem:[%s25967_s6 + $0x14c] ss:$16 sps:$4 sm:$0xff]  }
 0x222   : > { %2441 = vmatpush1.bf16.msra.mxu0 %v22069_v16  ;;  %2605 = vmatpush1.bf16.msra.mxu1 %v22070_v17  ;;  %v22111_v44 = vld [vmem:[%s25967_s6 + $0x140] ss:$16 sps:$4 sm:$0xff]   ;;  %v22112_v45 = vld [vmem:[%s25967_s6 + $0x148] ss:$16 sps:$4 sm:$0xff]   ;;  %v22113_v46 = vld [vmem:[%s25967_s6 + $0x164] ss:$16 sps:$4 sm:$0xff]  }
 0x223   : > { %2442 = vmatprep.subr.bf16.mxu0 %v22071_v18  ;;  %2606 = vmatprep.subr.bf16.mxu1 %v22073_v19  ;;  %v22115_v47 = vld [vmem:[%s25967_s6 + $0x16c] ss:$16 sps:$4 sm:$0xff]   ;;  %v22117_v49 = vld [vmem:[%s25967_s6 + $0x160] ss:$16 sps:$4 sm:$0xff]   ;;  %v22118_v51 = vld [vmem:[%s25967_s6 + $0x168] ss:$16 sps:$4 sm:$0xff]  }
 0x224   : > { %v861_v48 = vld [vmem:[#allocation3 + $0x8] sm:$0x1f]  ;;  %v22119_v52 = vld [vmem:[%s25967_s6 + $0x184] ss:$16 sps:$4 sm:$0xff]   ;;  %v22123_v54 = vld [vmem:[%s25967_s6 + $0x180] ss:$16 sps:$4 sm:$0xff]  }
 0x225   : > { %v26062_v50 = vpack.c.bf16 %v861_v48, %v861_v48  ;;  %v22121_v53 = vld [vmem:[%s25967_s6 + $0x18c] ss:$16 sps:$4 sm:$0xff]   ;;  %v22124_v55 = vld [vmem:[%s25967_s6 + $0x188] ss:$16 sps:$4 sm:$0xff]   ;;  %v22125_v56 = vld [vmem:[%s25967_s6 + $0x1a4] ss:$16 sps:$4 sm:$0xff]  }
 0x226   : > { %2443 = vmatpush1.bf16.msra.mxu0 %v22075_v20  ;;  %2607 = vmatpush1.bf16.msra.mxu1 %v22076_v21  ;;  %v22127_v57 = vld [vmem:[%s25967_s6 + $0x1ac] ss:$16 sps:$4 sm:$0xff]   ;;  %v22129_v58 = vld [vmem:[%s25967_s6 + $0x1a0] ss:$16 sps:$4 sm:$0xff]   ;;  %v22130_v59 = vld [vmem:[%s25967_s6 + $0x1a8] ss:$16 sps:$4 sm:$0xff]  }
 0x227   : > { %2444 = vmatprep.subr.bf16.mxu0 %v22077_v22  ;;  %2608 = vmatprep.subr.bf16.mxu1 %v22079_v23  ;;  %v22131_v60 = vld [vmem:[%s25967_s6 + $0x1c4] ss:$16 sps:$4 sm:$0xff]   ;;  %v22133_v61 = vld [vmem:[%s25967_s6 + $0x1cc] ss:$16 sps:$4 sm:$0xff]   ;;  %v22135_v62 = vld [vmem:[%s25967_s6 + $0x1c0] ss:$16 sps:$4 sm:$0xff]  }
 0x228   : > { %2466 = vmatprep.mubr.bf16.mxu0 %v26062_v50  ;;  %2630 = vmatprep.mubr.bf16.mxu1 %v26062_v50  ;;  %v22136_v63 = vld [vmem:[%s25967_s6 + $0x1c8] ss:$16 sps:$4 sm:$0xff]   ;;  %v22137_v0 = vld [vmem:[%s25967_s6 + $0x1e4] ss:$16 sps:$4 sm:$0xff]   ;;  %v22139_v1 = vld [vmem:[%s25967_s6 + $0x1ec] ss:$16 sps:$4 sm:$0xff]  }
 0x229   : > { %v22141_v2 = vld [vmem:[%s25967_s6 + $0x1e0] ss:$16 sps:$4 sm:$0xff]   ;;  %v22142_v3 = vld [vmem:[%s25967_s6 + $0x1e8] ss:$16 sps:$4 sm:$0xff]   ;;  %v22145_v5 = vld [vmem:[%s25967_s6 + $0x204] ss:$16 sps:$4 sm:$0xff]  }
 0x22a   : > { %2445 = vmatpush1.bf16.msra.mxu0 %v22081_v24  ;;  %2609 = vmatpush1.bf16.msra.mxu1 %v22082_v25  ;;  %v860_v4 = vld [vmem:[#allocation3] sm:$0x1f]  ;;  %v22148_v6 = vld [vmem:[%s25967_s6 + $0x20c] ss:$16 sps:$4 sm:$0xff]   ;;  %v22146_v9 = vld [vmem:[%s25967_s6 + $0x208] ss:$16 sps:$4 sm:$0xff]  }
 0x22b   : > { %2446 = vmatprep.subr.bf16.mxu0 %v22083_v26  ;;  %2610 = vmatprep.subr.bf16.mxu1 %v22085_v27  ;;  %v26085_v7 = vpack.c.bf16 %v860_v4, %v860_v4  ;;  %v22143_v8 = vld [vmem:[%s25967_s6 + $0x200] ss:$16 sps:$4 sm:$0xff]   ;;  %v22151_v10 = vld [vmem:[%s25967_s6 + $0x224] ss:$16 sps:$4 sm:$0xff]   ;;  %v22154_v11 = vld [vmem:[%s25967_s6 + $0x22c] ss:$16 sps:$4 sm:$0xff]  }
 0x22c   : > { %v22149_v12 = vld [vmem:[%s25967_s6 + $0x220] ss:$16 sps:$4 sm:$0xff]   ;;  %v22152_v13 = vld [vmem:[%s25967_s6 + $0x228] ss:$16 sps:$4 sm:$0xff]   ;;  %v22157_v14 = vld [vmem:[%s25967_s6 + $0x244] ss:$16 sps:$4 sm:$0xff]  }
 0x22d   : > { %v22160_v15 = vld [vmem:[%s25967_s6 + $0x24c] ss:$16 sps:$4 sm:$0xff]   ;;  %v22155_v16 = vld [vmem:[%s25967_s6 + $0x240] ss:$16 sps:$4 sm:$0xff]   ;;  %v22158_v17 = vld [vmem:[%s25967_s6 + $0x248] ss:$16 sps:$4 sm:$0xff]  }
 0x22e   : > { %2447 = vmatpush1.bf16.msra.mxu0 %v22087_v28  ;;  %2611 = vmatpush1.bf16.msra.mxu1 %v22088_v29  ;;  %v22163_v18 = vld [vmem:[%s25967_s6 + $0x264] ss:$16 sps:$4 sm:$0xff]   ;;  %v22166_v19 = vld [vmem:[%s25967_s6 + $0x26c] ss:$16 sps:$4 sm:$0xff]   ;;  %v22161_v20 = vld [vmem:[%s25967_s6 + $0x260] ss:$16 sps:$4 sm:$0xff]  }
 0x22f   : > { %2448 = vmatprep.subr.bf16.mxu0 %v22089_v30  ;;  %2612 = vmatprep.subr.bf16.mxu1 %v22091_v31  ;;  %v22164_v21 = vld [vmem:[%s25967_s6 + $0x268] ss:$16 sps:$4 sm:$0xff]   ;;  %v22169_v22 = vld [vmem:[%s25967_s6 + $0x284] ss:$16 sps:$4 sm:$0xff]   ;;  %v22172_v23 = vld [vmem:[%s25967_s6 + $0x28c] ss:$16 sps:$4 sm:$0xff]  }
 0x230   : > { %v22167_v24 = vld [vmem:[%s25967_s6 + $0x280] ss:$16 sps:$4 sm:$0xff]   ;;  %v22170_v25 = vld [vmem:[%s25967_s6 + $0x288] ss:$16 sps:$4 sm:$0xff]   ;;  %v22175_v26 = vld [vmem:[%s25967_s6 + $0x2a4] ss:$16 sps:$4 sm:$0xff]  }
 0x231   : > { %v22178_v27 = vld [vmem:[%s25967_s6 + $0x2ac] ss:$16 sps:$4 sm:$0xff]   ;;  %v22173_v28 = vld [vmem:[%s25967_s6 + $0x2a0] ss:$16 sps:$4 sm:$0xff]   ;;  %v22176_v29 = vld [vmem:[%s25967_s6 + $0x2a8] ss:$16 sps:$4 sm:$0xff]  }
 0x232   : > { %2449 = vmatpush1.bf16.msra.mxu0 %v22093_v32  ;;  %2613 = vmatpush1.bf16.msra.mxu1 %v22094_v33  ;;  %v22181_v30 = vld [vmem:[%s25967_s6 + $0x2c4] ss:$16 sps:$4 sm:$0xff]   ;;  %v22184_v31 = vld [vmem:[%s25967_s6 + $0x2cc] ss:$16 sps:$4 sm:$0xff]   ;;  %v22179_v33 = vld [vmem:[%s25967_s6 + $0x2c0] ss:$16 sps:$4 sm:$0xff]  }
 0x233   : > { %2450 = vmatprep.subr.bf16.mxu0 %v22095_v34  ;;  %2614 = vmatprep.subr.bf16.mxu1 %v22097_v35  ;;  %v863_v32 = vld [vmem:[#allocation3 + $0x18] sm:$0x1f]  ;;  %v22205_v48 = vld [vmem:[%s25967_s6 + $0x344] ss:$16 sps:$4 sm:$0xff]   ;;  %vm2833_vm1 = vcmask 36864   ;;  %p19421_p1 = scmp.ne.s32.totalorder %s25516_s0, 3 }
 0x234   : > { %v26114_v34 = vpack.c.bf16 %v863_v32, %v863_v32  ;;  %v22182_v35 = vld [vmem:[%s25967_s6 + $0x2c8] ss:$16 sps:$4 sm:$0xff]   ;;  %v22263_v32 = vld [vmem:[%s25967_s6 + $0x480] ss:$16 sps:$4 sm:$0xff]  }
 0x235   : > { %v22230_v4 = vld [vmem:[%s25967_s6 + $0x3c8] ss:$16 sps:$4 sm:$0xff]  }
 0x236   : > { %2451 = vmatpush1.bf16.msra.mxu0 %v22099_v36  ;;  %2615 = vmatpush1.bf16.msra.mxu1 %v22100_v37  ;;  %v22187_v36 = vld [vmem:[%s25967_s6 + $0x2e4] ss:$16 sps:$4 sm:$0xff]   ;;  %v22190_v37 = vld [vmem:[%s25967_s6 + $0x2ec] ss:$16 sps:$4 sm:$0xff]  }
 0x237   : > { %2452 = vmatprep.subr.bf16.mxu0 %v22101_v38  ;;  %2616 = vmatprep.subr.bf16.mxu1 %v22103_v39  ;;  %v22185_v38 = vld [vmem:[%s25967_s6 + $0x2e0] ss:$16 sps:$4 sm:$0xff]   ;;  %v22188_v39 = vld [vmem:[%s25967_s6 + $0x2e8] ss:$16 sps:$4 sm:$0xff]  }
 0x23a   : > { %2453 = vmatpush1.bf16.msra.mxu0 %v22105_v40  ;;  %2617 = vmatpush1.bf16.msra.mxu1 %v22106_v41  ;;  %v22193_v40 = vld [vmem:[%s25967_s6 + $0x304] ss:$16 sps:$4 sm:$0xff]   ;;  %v22196_v41 = vld [vmem:[%s25967_s6 + $0x30c] ss:$16 sps:$4 sm:$0xff]  }
 0x23b   : > { %2454 = vmatprep.subr.bf16.mxu0 %v22107_v42  ;;  %2618 = vmatprep.subr.bf16.mxu1 %v22109_v43  ;;  %v22191_v42 = vld [vmem:[%s25967_s6 + $0x300] ss:$16 sps:$4 sm:$0xff]   ;;  %v22194_v43 = vld [vmem:[%s25967_s6 + $0x308] ss:$16 sps:$4 sm:$0xff]  }
 0x23e   : > { %2455 = vmatpush1.bf16.msra.mxu0 %v22111_v44  ;;  %2619 = vmatpush1.bf16.msra.mxu1 %v22112_v45  ;;  %v22199_v44 = vld [vmem:[%s25967_s6 + $0x324] ss:$16 sps:$4 sm:$0xff]   ;;  %v22202_v45 = vld [vmem:[%s25967_s6 + $0x32c] ss:$16 sps:$4 sm:$0xff]  }
 0x23f   : > { %2456 = vmatprep.subr.bf16.mxu0 %v22113_v46  ;;  %2620 = vmatprep.subr.bf16.mxu1 %v22115_v47  ;;  %v22197_v46 = vld [vmem:[%s25967_s6 + $0x320] ss:$16 sps:$4 sm:$0xff]   ;;  %v22200_v47 = vld [vmem:[%s25967_s6 + $0x328] ss:$16 sps:$4 sm:$0xff]  }
 0x242   : > { %2457 = vmatpush1.bf16.msra.mxu0 %v22117_v49  ;;  %2621 = vmatpush1.bf16.msra.mxu1 %v22118_v51  ;;  %v22208_v49 = vld [vmem:[%s25967_s6 + $0x34c] ss:$16 sps:$4 sm:$0xff]   ;;  %v22203_v51 = vld [vmem:[%s25967_s6 + $0x340] ss:$16 sps:$4 sm:$0xff]  }
 0x243   : > { %2458 = vmatprep.subr.bf16.mxu0 %v22119_v52  ;;  %2622 = vmatprep.subr.bf16.mxu1 %v22121_v53  ;;  %v22206_v52 = vld [vmem:[%s25967_s6 + $0x348] ss:$16 sps:$4 sm:$0xff]   ;;  %v22211_v53 = vld [vmem:[%s25967_s6 + $0x364] ss:$16 sps:$4 sm:$0xff]  }
 0x246   : > { %2459 = vmatpush1.bf16.msra.mxu0 %v22123_v54  ;;  %2623 = vmatpush1.bf16.msra.mxu1 %v22124_v55  ;;  %v22214_v54 = vld [vmem:[%s25967_s6 + $0x36c] ss:$16 sps:$4 sm:$0xff]   ;;  %v22209_v55 = vld [vmem:[%s25967_s6 + $0x360] ss:$16 sps:$4 sm:$0xff]  }
 0x247   : > { %2460 = vmatprep.subr.bf16.mxu0 %v22125_v56  ;;  %2624 = vmatprep.subr.bf16.mxu1 %v22127_v57  ;;  %v22212_v56 = vld [vmem:[%s25967_s6 + $0x368] ss:$16 sps:$4 sm:$0xff]   ;;  %v22217_v57 = vld [vmem:[%s25967_s6 + $0x384] ss:$16 sps:$4 sm:$0xff]  }
 0x24a   : > { %2461 = vmatpush1.bf16.msra.mxu0 %v22129_v58  ;;  %2625 = vmatpush1.bf16.msra.mxu1 %v22130_v59  ;;  %v22220_v58 = vld [vmem:[%s25967_s6 + $0x38c] ss:$16 sps:$4 sm:$0xff]   ;;  %v22215_v59 = vld [vmem:[%s25967_s6 + $0x380] ss:$16 sps:$4 sm:$0xff]  }
 0x24b   : > { %2462 = vmatprep.subr.bf16.mxu0 %v22131_v60  ;;  %2626 = vmatprep.subr.bf16.mxu1 %v22133_v61  ;;  %v22218_v60 = vld [vmem:[%s25967_s6 + $0x388] ss:$16 sps:$4 sm:$0xff]   ;;  %v22223_v61 = vld [vmem:[%s25967_s6 + $0x3a4] ss:$16 sps:$4 sm:$0xff]  }
 0x24e   : > { %2463 = vmatpush1.bf16.msra.mxu0 %v22135_v62  ;;  %2627 = vmatpush1.bf16.msra.mxu1 %v22136_v63  ;;  %v22226_v62 = vld [vmem:[%s25967_s6 + $0x3ac] ss:$16 sps:$4 sm:$0xff]   ;;  %v22221_v63 = vld [vmem:[%s25967_s6 + $0x3a0] ss:$16 sps:$4 sm:$0xff]  }
 0x24f   : > { %2464 = vmatprep.subr.bf16.mxu0 %v22137_v0  ;;  %2628 = vmatprep.subr.bf16.mxu1 %v22139_v1  ;;  %v22224_v0 = vld [vmem:[%s25967_s6 + $0x3a8] ss:$16 sps:$4 sm:$0xff]   ;;  %v22229_v1 = vld [vmem:[%s25967_s6 + $0x3c4] ss:$16 sps:$4 sm:$0xff]  }
 0x252   : > { %2465 = vmatpush1.bf16.msra.mxu0 %v22141_v2  ;;  %2629 = vmatpush1.bf16.msra.mxu1 %v22142_v3  ;;  %v22232_v2 = vld [vmem:[%s25967_s6 + $0x3cc] ss:$16 sps:$4 sm:$0xff]   ;;  %v22227_v3 = vld [vmem:[%s25967_s6 + $0x3c0] ss:$16 sps:$4 sm:$0xff]  }
 0x253   : > { %2475 = vmatprep.subr.bf16.mxu0 %v22145_v5  ;;  %2639 = vmatprep.subr.bf16.mxu1 %v22148_v6  ;;  %v22235_v5 = vld [vmem:[%s25967_s6 + $0x3e4] ss:$16 sps:$4 sm:$0xff]   ;;  %v22238_v6 = vld [vmem:[%s25967_s6 + $0x3ec] ss:$16 sps:$4 sm:$0xff]  }
 0x255   : > { %2467 = vmatmul.mubr.bf16.vlgmr.msra.gmra.mrb[0].mxu0 %v26085_v7  ;;  %2631 = vmatmul.mubr.bf16.vlgmr.msra.gmra.mrb[0].mxu1 %v26085_v7 }
 0x256   : > { %2476 = vmatpush1.bf16.msra.mxu0 %v22143_v8  ;;  %2640 = vmatpush1.bf16.msra.mxu1 %v22146_v9  ;;  %v22233_v8 = vld [vmem:[%s25967_s6 + $0x3e0] ss:$16 sps:$4 sm:$0xff]   ;;  %v22236_v9 = vld [vmem:[%s25967_s6 + $0x3e8] ss:$16 sps:$4 sm:$0xff]  }
 0x257   : > { %2477 = vmatprep.subr.bf16.mxu0 %v22151_v10  ;;  %2641 = vmatprep.subr.bf16.mxu1 %v22154_v11  ;;  %v22241_v10 = vld [vmem:[%s25967_s6 + $0x404] ss:$16 sps:$4 sm:$0xff]  }
 0x258   : > { %2507 = vmatprep.mubr.bf16.mxu0 %v26114_v34  ;;  %2671 = vmatprep.mubr.bf16.mxu1 %v26114_v34  ;;  %v862_v11 = vld [vmem:[#allocation3 + $0x10] sm:$0x1f] }
 0x25a   : > { %2478 = vmatpush1.bf16.msra.mxu0 %v22149_v12  ;;  %2642 = vmatpush1.bf16.msra.mxu1 %v22152_v13  ;;  %v22244_v12 = vld [vmem:[%s25967_s6 + $0x40c] ss:$16 sps:$4 sm:$0xff]   ;;  %v22239_v13 = vld [vmem:[%s25967_s6 + $0x400] ss:$16 sps:$4 sm:$0xff]  }
 0x25b   : > { %2479 = vmatprep.subr.bf16.mxu0 %v22157_v14  ;;  %2643 = vmatprep.subr.bf16.mxu1 %v22160_v15  ;;  %v22242_v14 = vld [vmem:[%s25967_s6 + $0x408] ss:$16 sps:$4 sm:$0xff]   ;;  %v26159_v15 = vpack.c.bf16 %v862_v11, %v862_v11  ;;  %v22323_v11 = vld [vmem:[%s25967_s6 + $0x5c0] ss:$16 sps:$4 sm:$0xff]  }
 0x25e   : > { %2480 = vmatpush1.bf16.msra.mxu0 %v22155_v16  ;;  %2644 = vmatpush1.bf16.msra.mxu1 %v22158_v17  ;;  %v22247_v16 = vld [vmem:[%s25967_s6 + $0x424] ss:$16 sps:$4 sm:$0xff]   ;;  %v22250_v17 = vld [vmem:[%s25967_s6 + $0x42c] ss:$16 sps:$4 sm:$0xff]  }
 0x25f   : > { %2481 = vmatprep.subr.bf16.mxu0 %v22163_v18  ;;  %2645 = vmatprep.subr.bf16.mxu1 %v22166_v19  ;;  %v865_v18 = vld [vmem:[#allocation3 + $0x28] sm:$0x1f] }
 0x260   : > { %v26163_v19 = vpack.c.bf16 %v865_v18, %v865_v18  ;;  %v864_v18 = vld [vmem:[#allocation3 + $0x20] sm:$0x1f] }
 0x262   : > { %2482 = vmatpush1.bf16.msra.mxu0 %v22161_v20  ;;  %2646 = vmatpush1.bf16.msra.mxu1 %v22164_v21  ;;  %v22245_v20 = vld [vmem:[%s25967_s6 + $0x420] ss:$16 sps:$4 sm:$0xff]   ;;  %v22248_v21 = vld [vmem:[%s25967_s6 + $0x428] ss:$16 sps:$4 sm:$0xff]  }
 0x263   : > { %2483 = vmatprep.subr.bf16.mxu0 %v22169_v22  ;;  %2647 = vmatprep.subr.bf16.mxu1 %v22172_v23  ;;  %v22253_v22 = vld [vmem:[%s25967_s6 + $0x444] ss:$16 sps:$4 sm:$0xff]   ;;  %v22256_v23 = vld [vmem:[%s25967_s6 + $0x44c] ss:$16 sps:$4 sm:$0xff]  }
 0x266   : > { %2484 = vmatpush1.bf16.msra.mxu0 %v22167_v24  ;;  %2648 = vmatpush1.bf16.msra.mxu1 %v22170_v25  ;;  %v22251_v24 = vld [vmem:[%s25967_s6 + $0x440] ss:$16 sps:$4 sm:$0xff]   ;;  %v22254_v25 = vld [vmem:[%s25967_s6 + $0x448] ss:$16 sps:$4 sm:$0xff]  }
 0x267   : > { %2485 = vmatprep.subr.bf16.mxu0 %v22175_v26  ;;  %2649 = vmatprep.subr.bf16.mxu1 %v22178_v27  ;;  %v22259_v26 = vld [vmem:[%s25967_s6 + $0x464] ss:$16 sps:$4 sm:$0xff]   ;;  %v22262_v27 = vld [vmem:[%s25967_s6 + $0x46c] ss:$16 sps:$4 sm:$0xff]  }
 0x26a   : > { %2486 = vmatpush1.bf16.msra.mxu0 %v22173_v28  ;;  %2650 = vmatpush1.bf16.msra.mxu1 %v22176_v29  ;;  %v22257_v28 = vld [vmem:[%s25967_s6 + $0x460] ss:$16 sps:$4 sm:$0xff]   ;;  %v22260_v29 = vld [vmem:[%s25967_s6 + $0x468] ss:$16 sps:$4 sm:$0xff]  }
 0x26b   : > { %2487 = vmatprep.subr.bf16.mxu0 %v22181_v30  ;;  %2651 = vmatprep.subr.bf16.mxu1 %v22184_v31  ;;  %v22265_v30 = vld [vmem:[%s25967_s6 + $0x484] ss:$16 sps:$4 sm:$0xff]   ;;  %v22268_v31 = vld [vmem:[%s25967_s6 + $0x48c] ss:$16 sps:$4 sm:$0xff]  }
 0x26e   : > { %2488 = vmatpush1.bf16.msra.mxu0 %v22179_v33  ;;  %2652 = vmatpush1.bf16.msra.mxu1 %v22182_v35  ;;  %v22266_v33 = vld [vmem:[%s25967_s6 + $0x488] ss:$16 sps:$4 sm:$0xff]   ;;  %v22271_v35 = vld [vmem:[%s25967_s6 + $0x4a4] ss:$16 sps:$4 sm:$0xff]  }
 0x26f   : > { %2489 = vmatprep.subr.bf16.mxu0 %v22187_v36  ;;  %2653 = vmatprep.subr.bf16.mxu1 %v22190_v37  ;;  %v22274_v36 = vld [vmem:[%s25967_s6 + $0x4ac] ss:$16 sps:$4 sm:$0xff]   ;;  %v22269_v37 = vld [vmem:[%s25967_s6 + $0x4a0] ss:$16 sps:$4 sm:$0xff]  }
 0x272   : > { %2490 = vmatpush1.bf16.msra.mxu0 %v22185_v38  ;;  %2654 = vmatpush1.bf16.msra.mxu1 %v22188_v39  ;;  %v22272_v38 = vld [vmem:[%s25967_s6 + $0x4a8] ss:$16 sps:$4 sm:$0xff]   ;;  %v22277_v39 = vld [vmem:[%s25967_s6 + $0x4c4] ss:$16 sps:$4 sm:$0xff]  }
 0x273   : > { %2491 = vmatprep.subr.bf16.mxu0 %v22193_v40  ;;  %2655 = vmatprep.subr.bf16.mxu1 %v22196_v41  ;;  %v22280_v40 = vld [vmem:[%s25967_s6 + $0x4cc] ss:$16 sps:$4 sm:$0xff]   ;;  %v22275_v41 = vld [vmem:[%s25967_s6 + $0x4c0] ss:$16 sps:$4 sm:$0xff]  }
 0x276   : > { %2492 = vmatpush1.bf16.msra.mxu0 %v22191_v42  ;;  %2656 = vmatpush1.bf16.msra.mxu1 %v22194_v43  ;;  %v22278_v42 = vld [vmem:[%s25967_s6 + $0x4c8] ss:$16 sps:$4 sm:$0xff]   ;;  %v22283_v43 = vld [vmem:[%s25967_s6 + $0x4e4] ss:$16 sps:$4 sm:$0xff]  }
 0x277   : > { %2493 = vmatprep.subr.bf16.mxu0 %v22199_v44  ;;  %2657 = vmatprep.subr.bf16.mxu1 %v22202_v45  ;;  %v22286_v44 = vld [vmem:[%s25967_s6 + $0x4ec] ss:$16 sps:$4 sm:$0xff]   ;;  %v22281_v45 = vld [vmem:[%s25967_s6 + $0x4e0] ss:$16 sps:$4 sm:$0xff]  }
 0x27a   : > { %2494 = vmatpush1.bf16.msra.mxu0 %v22197_v46  ;;  %2658 = vmatpush1.bf16.msra.mxu1 %v22200_v47  ;;  %v22284_v46 = vld [vmem:[%s25967_s6 + $0x4e8] ss:$16 sps:$4 sm:$0xff]   ;;  %v22289_v47 = vld [vmem:[%s25967_s6 + $0x504] ss:$16 sps:$4 sm:$0xff]  }
 0x27b   : > { %2495 = vmatprep.subr.bf16.mxu0 %v22205_v48  ;;  %2659 = vmatprep.subr.bf16.mxu1 %v22208_v49  ;;  %v22292_v48 = vld [vmem:[%s25967_s6 + $0x50c] ss:$16 sps:$4 sm:$0xff]   ;;  %v22287_v49 = vld [vmem:[%s25967_s6 + $0x500] ss:$16 sps:$4 sm:$0xff]  }
 0x27e   : > { %2496 = vmatpush1.bf16.msra.mxu0 %v22203_v51  ;;  %2660 = vmatpush1.bf16.msra.mxu1 %v22206_v52  ;;  %v22290_v51 = vld [vmem:[%s25967_s6 + $0x508] ss:$16 sps:$4 sm:$0xff]   ;;  %v22295_v52 = vld [vmem:[%s25967_s6 + $0x524] ss:$16 sps:$4 sm:$0xff]  }
 0x27f   : > { %2497 = vmatprep.subr.bf16.mxu0 %v22211_v53  ;;  %2661 = vmatprep.subr.bf16.mxu1 %v22214_v54  ;;  %v22298_v53 = vld [vmem:[%s25967_s6 + $0x52c] ss:$16 sps:$4 sm:$0xff]   ;;  %v22293_v54 = vld [vmem:[%s25967_s6 + $0x520] ss:$16 sps:$4 sm:$0xff]  }
 0x282   : > { %2498 = vmatpush1.bf16.msra.mxu0 %v22209_v55  ;;  %2662 = vmatpush1.bf16.msra.mxu1 %v22212_v56  ;;  %v22296_v55 = vld [vmem:[%s25967_s6 + $0x528] ss:$16 sps:$4 sm:$0xff]   ;;  %v22301_v56 = vld [vmem:[%s25967_s6 + $0x544] ss:$16 sps:$4 sm:$0xff]  }
 0x283   : > { %2499 = vmatprep.subr.bf16.mxu0 %v22217_v57  ;;  %2663 = vmatprep.subr.bf16.mxu1 %v22220_v58  ;;  %v22304_v57 = vld [vmem:[%s25967_s6 + $0x54c] ss:$16 sps:$4 sm:$0xff]   ;;  %v22299_v58 = vld [vmem:[%s25967_s6 + $0x540] ss:$16 sps:$4 sm:$0xff]  }
 0x286   : > { %2500 = vmatpush1.bf16.msra.mxu0 %v22215_v59  ;;  %2664 = vmatpush1.bf16.msra.mxu1 %v22218_v60  ;;  %v22302_v59 = vld [vmem:[%s25967_s6 + $0x548] ss:$16 sps:$4 sm:$0xff]   ;;  %v22307_v60 = vld [vmem:[%s25967_s6 + $0x564] ss:$16 sps:$4 sm:$0xff]  }
 0x287   : > { %2501 = vmatprep.subr.bf16.mxu0 %v22223_v61  ;;  %2665 = vmatprep.subr.bf16.mxu1 %v22226_v62  ;;  %v22310_v61 = vld [vmem:[%s25967_s6 + $0x56c] ss:$16 sps:$4 sm:$0xff]   ;;  %v22305_v62 = vld [vmem:[%s25967_s6 + $0x560] ss:$16 sps:$4 sm:$0xff]  }
 0x28a   : > { %2502 = vmatpush1.bf16.msra.mxu0 %v22221_v63  ;;  %2666 = vmatpush1.bf16.msra.mxu1 %v22224_v0  ;;  %v22308_v63 = vld [vmem:[%s25967_s6 + $0x568] ss:$16 sps:$4 sm:$0xff]   ;;  %v22313_v0 = vld [vmem:[%s25967_s6 + $0x584] ss:$16 sps:$4 sm:$0xff]  }
 0x28b   : > { %2503 = vmatprep.subr.bf16.mxu0 %v22229_v1  ;;  %2667 = vmatprep.subr.bf16.mxu1 %v22232_v2  ;;  %v22316_v1 = vld [vmem:[%s25967_s6 + $0x58c] ss:$16 sps:$4 sm:$0xff]   ;;  %v22311_v2 = vld [vmem:[%s25967_s6 + $0x580] ss:$16 sps:$4 sm:$0xff]  }
 0x28e   : > { %2504 = vmatpush1.bf16.msra.mxu0 %v22227_v3  ;;  %2668 = vmatpush1.bf16.msra.mxu1 %v22230_v4  ;;  %v22314_v3 = vld [vmem:[%s25967_s6 + $0x588] ss:$16 sps:$4 sm:$0xff]   ;;  %v22319_v4 = vld [vmem:[%s25967_s6 + $0x5a4] ss:$16 sps:$4 sm:$0xff]  }
 0x28f   : > { %2505 = vmatprep.subr.bf16.mxu0 %v22235_v5  ;;  %2669 = vmatprep.subr.bf16.mxu1 %v22238_v6  ;;  %v22322_v5 = vld [vmem:[%s25967_s6 + $0x5ac] ss:$16 sps:$4 sm:$0xff]   ;;  %v22317_v6 = vld [vmem:[%s25967_s6 + $0x5a0] ss:$16 sps:$4 sm:$0xff]  }
 0x292   : > { %2506 = vmatpush1.bf16.msra.mxu0 %v22233_v8  ;;  %2670 = vmatpush1.bf16.msra.mxu1 %v22236_v9  ;;  %v22320_v8 = vld [vmem:[%s25967_s6 + $0x5a8] ss:$16 sps:$4 sm:$0xff]   ;;  %v22325_v9 = vld [vmem:[%s25967_s6 + $0x5c4] ss:$16 sps:$4 sm:$0xff]  }
 0x293   : > { %2516 = vmatprep.subr.bf16.mxu0 %v22241_v10  ;;  %2680 = vmatprep.subr.bf16.mxu1 %v22244_v12  ;;  %v22328_v10 = vld [vmem:[%s25967_s6 + $0x5cc] ss:$16 sps:$4 sm:$0xff]   ;;  %v22326_v12 = vld [vmem:[%s25967_s6 + $0x5c8] ss:$16 sps:$4 sm:$0xff]  }
 0x295   : > { %2508 = vmatmul.mubr.bf16.vlgmr.msra.gmra.mrb[0].mxu0 %v26159_v15  ;;  %2672 = vmatmul.mubr.bf16.vlgmr.msra.gmra.mrb[0].mxu1 %v26159_v15 }
 0x296   : > { %2517 = vmatpush1.bf16.msra.mxu0 %v22239_v13  ;;  %2681 = vmatpush1.bf16.msra.mxu1 %v22242_v14  ;;  %v22331_v13 = vld [vmem:[%s25967_s6 + $0x5e4] ss:$16 sps:$4 sm:$0xff]   ;;  %v22334_v14 = vld [vmem:[%s25967_s6 + $0x5ec] ss:$16 sps:$4 sm:$0xff]  }
 0x297   : > { %2518 = vmatprep.subr.bf16.mxu0 %v22247_v16  ;;  %2682 = vmatprep.subr.bf16.mxu1 %v22250_v17  ;;  %v22329_v16 = vld [vmem:[%s25967_s6 + $0x5e0] ss:$16 sps:$4 sm:$0xff]   ;;  %v22332_v17 = vld [vmem:[%s25967_s6 + $0x5e8] ss:$16 sps:$4 sm:$0xff]  }
 0x298   : > { %2548 = vmatprep.mubr.bf16.mxu0 %v26163_v19  ;;  %2712 = vmatprep.mubr.bf16.mxu1 %v26163_v19 }
 0x29a   : > { %2519 = vmatpush1.bf16.msra.mxu0 %v22245_v20  ;;  %2683 = vmatpush1.bf16.msra.mxu1 %v22248_v21  ;;  %v22337_v20 = vld [vmem:[%s25967_s6 + $0x604] ss:$16 sps:$4 sm:$0xff]   ;;  %v22340_v21 = vld [vmem:[%s25967_s6 + $0x60c] ss:$16 sps:$4 sm:$0xff]  }
 0x29b   : > { %2520 = vmatprep.subr.bf16.mxu0 %v22253_v22  ;;  %2684 = vmatprep.subr.bf16.mxu1 %v22256_v23  ;;  %v26229_v22 = vpack.c.bf16 %v864_v18, %v864_v18  ;;  %v867_v23 = vld [vmem:[#allocation3 + $0x38] sm:$0x1f] }
 0x29c   : > { %v22416_v18 = vld [vmem:[%s25967_s6 + $0x7a8] ss:$16 sps:$4 sm:$0xff]  }
 0x29e   : > { %2521 = vmatpush1.bf16.msra.mxu0 %v22251_v24  ;;  %2685 = vmatpush1.bf16.msra.mxu1 %v22254_v25  ;;  %v22335_v24 = vld [vmem:[%s25967_s6 + $0x600] ss:$16 sps:$4 sm:$0xff]   ;;  %v22338_v25 = vld [vmem:[%s25967_s6 + $0x608] ss:$16 sps:$4 sm:$0xff]  }
 0x29f   : > { %2522 = vmatprep.subr.bf16.mxu0 %v22259_v26  ;;  %2686 = vmatprep.subr.bf16.mxu1 %v22262_v27  ;;  %v22343_v26 = vld [vmem:[%s25967_s6 + $0x624] ss:$16 sps:$4 sm:$0xff]   ;;  %v22346_v27 = vld [vmem:[%s25967_s6 + $0x62c] ss:$16 sps:$4 sm:$0xff]  }
 0x2a2   : > { %2523 = vmatpush1.bf16.msra.mxu0 %v22257_v28  ;;  %2687 = vmatpush1.bf16.msra.mxu1 %v22260_v29  ;;  %v26235_v28 = vpack.c.bf16 %v867_v23, %v867_v23  ;;  %v22341_v29 = vld [vmem:[%s25967_s6 + $0x620] ss:$16 sps:$4 sm:$0xff]  }
 0x2a3   : > { %2524 = vmatprep.subr.bf16.mxu0 %v22265_v30  ;;  %2688 = vmatprep.subr.bf16.mxu1 %v22268_v31  ;;  %v22344_v30 = vld [vmem:[%s25967_s6 + $0x628] ss:$16 sps:$4 sm:$0xff]   ;;  %v22349_v31 = vld [vmem:[%s25967_s6 + $0x644] ss:$16 sps:$4 sm:$0xff]   ;;  %v22419_v23 = vld [vmem:[%s25967_s6 + $0x7c0] ss:$16 sps:$4 sm:$0xff]  }
 0x2a6   : > { %2525 = vmatpush1.bf16.msra.mxu0 %v22263_v32  ;;  %2689 = vmatpush1.bf16.msra.mxu1 %v22266_v33  ;;  %v22352_v32 = vld [vmem:[%s25967_s6 + $0x64c] ss:$16 sps:$4 sm:$0xff]   ;;  %v22347_v33 = vld [vmem:[%s25967_s6 + $0x640] ss:$16 sps:$4 sm:$0xff]  }
 0x2a7   : > { %2526 = vmatprep.subr.bf16.mxu0 %v22271_v35  ;;  %2690 = vmatprep.subr.bf16.mxu1 %v22274_v36  ;;  %v22350_v35 = vld [vmem:[%s25967_s6 + $0x648] ss:$16 sps:$4 sm:$0xff]   ;;  %v22355_v36 = vld [vmem:[%s25967_s6 + $0x664] ss:$16 sps:$4 sm:$0xff]  }
 0x2aa   : > { %2527 = vmatpush1.bf16.msra.mxu0 %v22269_v37  ;;  %2691 = vmatpush1.bf16.msra.mxu1 %v22272_v38  ;;  %v22358_v37 = vld [vmem:[%s25967_s6 + $0x66c] ss:$16 sps:$4 sm:$0xff]   ;;  %v22353_v38 = vld [vmem:[%s25967_s6 + $0x660] ss:$16 sps:$4 sm:$0xff]  }
 0x2ab   : > { %2528 = vmatprep.subr.bf16.mxu0 %v22277_v39  ;;  %2692 = vmatprep.subr.bf16.mxu1 %v22280_v40  ;;  %v22356_v39 = vld [vmem:[%s25967_s6 + $0x668] ss:$16 sps:$4 sm:$0xff]   ;;  %v22361_v40 = vld [vmem:[%s25967_s6 + $0x684] ss:$16 sps:$4 sm:$0xff]  }
 0x2ae   : > { %2529 = vmatpush1.bf16.msra.mxu0 %v22275_v41  ;;  %2693 = vmatpush1.bf16.msra.mxu1 %v22278_v42  ;;  %v22364_v41 = vld [vmem:[%s25967_s6 + $0x68c] ss:$16 sps:$4 sm:$0xff]   ;;  %v22359_v42 = vld [vmem:[%s25967_s6 + $0x680] ss:$16 sps:$4 sm:$0xff]  }
 0x2af   : > { %2530 = vmatprep.subr.bf16.mxu0 %v22283_v43  ;;  %2694 = vmatprep.subr.bf16.mxu1 %v22286_v44  ;;  %v22362_v43 = vld [vmem:[%s25967_s6 + $0x688] ss:$16 sps:$4 sm:$0xff]   ;;  %v22367_v44 = vld [vmem:[%s25967_s6 + $0x6a4] ss:$16 sps:$4 sm:$0xff]  }
 0x2b2   : > { %2531 = vmatpush1.bf16.msra.mxu0 %v22281_v45  ;;  %2695 = vmatpush1.bf16.msra.mxu1 %v22284_v46  ;;  %v22370_v45 = vld [vmem:[%s25967_s6 + $0x6ac] ss:$16 sps:$4 sm:$0xff]   ;;  %v22365_v46 = vld [vmem:[%s25967_s6 + $0x6a0] ss:$16 sps:$4 sm:$0xff]  }
 0x2b3   : > { %2532 = vmatprep.subr.bf16.mxu0 %v22289_v47  ;;  %2696 = vmatprep.subr.bf16.mxu1 %v22292_v48  ;;  %v22368_v47 = vld [vmem:[%s25967_s6 + $0x6a8] ss:$16 sps:$4 sm:$0xff]   ;;  %v22373_v48 = vld [vmem:[%s25967_s6 + $0x6c4] ss:$16 sps:$4 sm:$0xff]  }
 0x2b6   : > { %2533 = vmatpush1.bf16.msra.mxu0 %v22287_v49  ;;  %2697 = vmatpush1.bf16.msra.mxu1 %v22290_v51  ;;  %v22376_v49 = vld [vmem:[%s25967_s6 + $0x6cc] ss:$16 sps:$4 sm:$0xff]   ;;  %v22371_v51 = vld [vmem:[%s25967_s6 + $0x6c0] ss:$16 sps:$4 sm:$0xff]  }
 0x2b7   : > { %2534 = vmatprep.subr.bf16.mxu0 %v22295_v52  ;;  %2698 = vmatprep.subr.bf16.mxu1 %v22298_v53  ;;  %v22374_v52 = vld [vmem:[%s25967_s6 + $0x6c8] ss:$16 sps:$4 sm:$0xff]   ;;  %v22379_v53 = vld [vmem:[%s25967_s6 + $0x6e4] ss:$16 sps:$4 sm:$0xff]  }
 0x2ba   : > { %2535 = vmatpush1.bf16.msra.mxu0 %v22293_v54  ;;  %2699 = vmatpush1.bf16.msra.mxu1 %v22296_v55  ;;  %v22382_v54 = vld [vmem:[%s25967_s6 + $0x6ec] ss:$16 sps:$4 sm:$0xff]   ;;  %v22377_v55 = vld [vmem:[%s25967_s6 + $0x6e0] ss:$16 sps:$4 sm:$0xff]  }
 0x2bb   : > { %2536 = vmatprep.subr.bf16.mxu0 %v22301_v56  ;;  %2700 = vmatprep.subr.bf16.mxu1 %v22304_v57  ;;  %v22380_v56 = vld [vmem:[%s25967_s6 + $0x6e8] ss:$16 sps:$4 sm:$0xff]   ;;  %v22385_v57 = vld [vmem:[%s25967_s6 + $0x704] ss:$16 sps:$4 sm:$0xff]  }
 0x2be   : > { %2537 = vmatpush1.bf16.msra.mxu0 %v22299_v58  ;;  %2701 = vmatpush1.bf16.msra.mxu1 %v22302_v59  ;;  %v22388_v58 = vld [vmem:[%s25967_s6 + $0x70c] ss:$16 sps:$4 sm:$0xff]   ;;  %v22383_v59 = vld [vmem:[%s25967_s6 + $0x700] ss:$16 sps:$4 sm:$0xff]  }
 0x2bf   : > { %2538 = vmatprep.subr.bf16.mxu0 %v22307_v60  ;;  %2702 = vmatprep.subr.bf16.mxu1 %v22310_v61  ;;  %v22386_v60 = vld [vmem:[%s25967_s6 + $0x708] ss:$16 sps:$4 sm:$0xff]   ;;  %v22391_v61 = vld [vmem:[%s25967_s6 + $0x724] ss:$16 sps:$4 sm:$0xff]  }
 0x2c2   : > { %2539 = vmatpush1.bf16.msra.mxu0 %v22305_v62  ;;  %2703 = vmatpush1.bf16.msra.mxu1 %v22308_v63  ;;  %v22394_v62 = vld [vmem:[%s25967_s6 + $0x72c] ss:$16 sps:$4 sm:$0xff]   ;;  %v22389_v63 = vld [vmem:[%s25967_s6 + $0x720] ss:$16 sps:$4 sm:$0xff]  }
 0x2c3   : > { %2540 = vmatprep.subr.bf16.mxu0 %v22313_v0  ;;  %2704 = vmatprep.subr.bf16.mxu1 %v22316_v1  ;;  %v22392_v0 = vld [vmem:[%s25967_s6 + $0x728] ss:$16 sps:$4 sm:$0xff]   ;;  %v22397_v1 = vld [vmem:[%s25967_s6 + $0x744] ss:$16 sps:$4 sm:$0xff]  }
 0x2c6   : > { %2541 = vmatpush1.bf16.msra.mxu0 %v22311_v2  ;;  %2705 = vmatpush1.bf16.msra.mxu1 %v22314_v3  ;;  %v22400_v2 = vld [vmem:[%s25967_s6 + $0x74c] ss:$16 sps:$4 sm:$0xff]   ;;  %v22395_v3 = vld [vmem:[%s25967_s6 + $0x740] ss:$16 sps:$4 sm:$0xff]  }
 0x2c7   : > { %2542 = vmatprep.subr.bf16.mxu0 %v22319_v4  ;;  %2706 = vmatprep.subr.bf16.mxu1 %v22322_v5  ;;  %v22398_v4 = vld [vmem:[%s25967_s6 + $0x748] ss:$16 sps:$4 sm:$0xff]   ;;  %v22403_v5 = vld [vmem:[%s25967_s6 + $0x764] ss:$16 sps:$4 sm:$0xff]  }
 0x2ca   : > { %2543 = vmatpush1.bf16.msra.mxu0 %v22317_v6  ;;  %2707 = vmatpush1.bf16.msra.mxu1 %v22320_v8  ;;  %v22406_v6 = vld [vmem:[%s25967_s6 + $0x76c] ss:$16 sps:$4 sm:$0xff]   ;;  %v22401_v8 = vld [vmem:[%s25967_s6 + $0x760] ss:$16 sps:$4 sm:$0xff]  }
 0x2cb   : > { %2544 = vmatprep.subr.bf16.mxu0 %v22325_v9  ;;  %2708 = vmatprep.subr.bf16.mxu1 %v22328_v10  ;;  %v22404_v9 = vld [vmem:[%s25967_s6 + $0x768] ss:$16 sps:$4 sm:$0xff]   ;;  %v22409_v10 = vld [vmem:[%s25967_s6 + $0x784] ss:$16 sps:$4 sm:$0xff]  }
 0x2ce   : > { %2545 = vmatpush1.bf16.msra.mxu0 %v22323_v11  ;;  %2709 = vmatpush1.bf16.msra.mxu1 %v22326_v12  ;;  %v22412_v11 = vld [vmem:[%s25967_s6 + $0x78c] ss:$16 sps:$4 sm:$0xff]   ;;  %v22407_v12 = vld [vmem:[%s25967_s6 + $0x780] ss:$16 sps:$4 sm:$0xff]  }
 0x2cf   : > { %2546 = vmatprep.subr.bf16.mxu0 %v22331_v13  ;;  %2710 = vmatprep.subr.bf16.mxu1 %v22334_v14  ;;  %v22410_v13 = vld [vmem:[%s25967_s6 + $0x788] ss:$16 sps:$4 sm:$0xff]   ;;  %v22415_v14 = vld [vmem:[%s25967_s6 + $0x7a4] ss:$16 sps:$4 sm:$0xff]  }
 0x2d2   : > { %2547 = vmatpush1.bf16.msra.mxu0 %v22329_v16  ;;  %2711 = vmatpush1.bf16.msra.mxu1 %v22332_v17  ;;  %v22418_v16 = vld [vmem:[%s25967_s6 + $0x7ac] ss:$16 sps:$4 sm:$0xff]   ;;  %v22413_v17 = vld [vmem:[%s25967_s6 + $0x7a0] ss:$16 sps:$4 sm:$0xff]  }
 0x2d3   : > { %2557 = vmatprep.subr.bf16.mxu0 %v22337_v20  ;;  %2721 = vmatprep.subr.bf16.mxu1 %v22340_v21  ;;  %v22421_v20 = vld [vmem:[%s25967_s6 + $0x7c4] ss:$16 sps:$4 sm:$0xff]   ;;  %v22424_v21 = vld [vmem:[%s25967_s6 + $0x7cc] ss:$16 sps:$4 sm:$0xff]  }
 0x2d5   : > { %2549 = vmatmul.mubr.bf16.vlgmr.msra.gmra.mrb[0].mxu0 %v26229_v22  ;;  %2713 = vmatmul.mubr.bf16.vlgmr.msra.gmra.mrb[0].mxu1 %v26229_v22 }
 0x2d6   : > { %2558 = vmatpush1.bf16.msra.mxu0 %v22335_v24  ;;  %2722 = vmatpush1.bf16.msra.mxu1 %v22338_v25  ;;  %v22422_v24 = vld [vmem:[%s25967_s6 + $0x7c8] ss:$16 sps:$4 sm:$0xff]   ;;  %v22427_v25 = vld [vmem:[%s25967_s6 + $0x7e4] ss:$16 sps:$4 sm:$0xff]  }
 0x2d7   : > { %2559 = vmatprep.subr.bf16.mxu0 %v22343_v26  ;;  %2723 = vmatprep.subr.bf16.mxu1 %v22346_v27  ;;  %v22430_v26 = vld [vmem:[%s25967_s6 + $0x7ec] ss:$16 sps:$4 sm:$0xff]   ;;  %v22425_v27 = vld [vmem:[%s25967_s6 + $0x7e0] ss:$16 sps:$4 sm:$0xff]  }
 0x2d8   : > { %2589 = vmatprep.mubr.bf16.mxu0 %v26235_v28  ;;  %2753 = vmatprep.mubr.bf16.mxu1 %v26235_v28 }
 0x2da   : > { %2560 = vmatpush1.bf16.msra.mxu0 %v22341_v29  ;;  %2724 = vmatpush1.bf16.msra.mxu1 %v22344_v30  ;;  %v22428_v29 = vld [vmem:[%s25967_s6 + $0x7e8] ss:$16 sps:$4 sm:$0xff]   ;;  %v866_v30 = vld [vmem:[#allocation3 + $0x30] sm:$0x1f] }
 0x2db   : > { %2561 = vmatprep.subr.bf16.mxu0 %v22349_v31  ;;  %2725 = vmatprep.subr.bf16.mxu1 %v22352_v32  ;;  %v26299_v31 = vpack.c.bf16 %v866_v30, %v866_v30  ;;  %v1134_v32 = vlaneseq }
 0x2de   : > { %2562 = vmatpush1.bf16.msra.mxu0 %v22347_v33  ;;  %2726 = vmatpush1.bf16.msra.mxu1 %v22350_v35  ;;  %v26304_v33 = vshrl.u32 %v1134_v32, 7 }
 0x2df   : > { %2563 = vmatprep.subr.bf16.mxu0 %v22355_v36  ;;  %2727 = vmatprep.subr.bf16.mxu1 %v22358_v37  ;;  %v1132_v37 = vld [vmem:[%s25973_s2] sm:$0xf] }
 0x2e0   : > { %v26307_v35 = vsub.s32 1, %v26304_v33  ;;  %v26310_v36 = vsub.s32 3, %v26304_v33 }
 0x2e2   : > { %2564 = vmatpush1.bf16.msra.mxu0 %v22353_v38  ;;  %2728 = vmatpush1.bf16.msra.mxu1 %v22356_v39  ;;  %v26314_v38 = vsub.s32 2, %v26304_v33  ;;  %v26317_v39 = vsub.s32 0, %v26304_v33 }
 0x2e3   : > { %2565 = vmatprep.subr.bf16.mxu0 %v22361_v40  ;;  %2729 = vmatprep.subr.bf16.mxu1 %v22364_v41  ;;  %v1141_v40 = vrot.slane %v1132_v37, %v26307_v35  ;;  %v1149_v41 = vrot.slane %v1132_v37, %v26310_v36 }
 0x2e6   : > { %2566 = vmatpush1.bf16.msra.mxu0 %v22359_v42  ;;  %2730 = vmatpush1.bf16.msra.mxu1 %v22362_v43  ;;  %v1145_v42 = vrot.slane %v1132_v37, %v26314_v38 }
 0x2e7   : > { %2567 = vmatprep.subr.bf16.mxu0 %v22367_v44  ;;  %2731 = vmatprep.subr.bf16.mxu1 %v22370_v45 }
 0x2ea   : > { %2568 = vmatpush1.bf16.msra.mxu0 %v22365_v46  ;;  %2732 = vmatpush1.bf16.msra.mxu1 %v22368_v47  ;;  %v1137_v47 = vrot.slane %v1132_v37, %v26317_v39 }
 0x2eb   : > { %2569 = vmatprep.subr.bf16.mxu0 %v22373_v48  ;;  %2733 = vmatprep.subr.bf16.mxu1 %v22376_v49 }
 0x2ee   : > { %2570 = vmatpush1.bf16.msra.mxu0 %v22371_v51  ;;  %2734 = vmatpush1.bf16.msra.mxu1 %v22374_v52 }
 0x2ef   : > { %2571 = vmatprep.subr.bf16.mxu0 %v22379_v53  ;;  %2735 = vmatprep.subr.bf16.mxu1 %v22382_v54 }
 0x2f2   : > { %2572 = vmatpush1.bf16.msra.mxu0 %v22377_v55  ;;  %2736 = vmatpush1.bf16.msra.mxu1 %v22380_v56 }
 0x2f3   : > { %2573 = vmatprep.subr.bf16.mxu0 %v22385_v57  ;;  %2737 = vmatprep.subr.bf16.mxu1 %v22388_v58 }
 0x2f6   : > { %2574 = vmatpush1.bf16.msra.mxu0 %v22383_v59  ;;  %2738 = vmatpush1.bf16.msra.mxu1 %v22386_v60 }
 0x2f7   : > { %2575 = vmatprep.subr.bf16.mxu0 %v22391_v61  ;;  %2739 = vmatprep.subr.bf16.mxu1 %v22394_v62 }
 0x2fa   : > { %2576 = vmatpush1.bf16.msra.mxu0 %v22389_v63  ;;  %2740 = vmatpush1.bf16.msra.mxu1 %v22392_v0 }
 0x2fb   : > { %2577 = vmatprep.subr.bf16.mxu0 %v22397_v1  ;;  %2741 = vmatprep.subr.bf16.mxu1 %v22400_v2 }
 0x2fe   : > { %2578 = vmatpush1.bf16.msra.mxu0 %v22395_v3  ;;  %2742 = vmatpush1.bf16.msra.mxu1 %v22398_v4 }
 0x2ff   : > { %2579 = vmatprep.subr.bf16.mxu0 %v22403_v5  ;;  %2743 = vmatprep.subr.bf16.mxu1 %v22406_v6 }
 0x302   : > { %2580 = vmatpush1.bf16.msra.mxu0 %v22401_v8  ;;  %2744 = vmatpush1.bf16.msra.mxu1 %v22404_v9 }
 0x303   : > { %2581 = vmatprep.subr.bf16.mxu0 %v22409_v10  ;;  %2745 = vmatprep.subr.bf16.mxu1 %v22412_v11 }
 0x306   : > { %2582 = vmatpush1.bf16.msra.mxu0 %v22407_v12  ;;  %2746 = vmatpush1.bf16.msra.mxu1 %v22410_v13 }
 0x307   : > { %2583 = vmatprep.subr.bf16.mxu0 %v22415_v14  ;;  %2747 = vmatprep.subr.bf16.mxu1 %v22418_v16 }
 0x30a   : > { %2584 = vmatpush1.bf16.msra.mxu0 %v22413_v17  ;;  %2748 = vmatpush1.bf16.msra.mxu1 %v22416_v18 }
 0x30b   : > { %2585 = vmatprep.subr.bf16.mxu0 %v22421_v20  ;;  %2749 = vmatprep.subr.bf16.mxu1 %v22424_v21 }
 0x30e   : > { %2586 = vmatpush1.bf16.msra.mxu0 %v22419_v23  ;;  %2750 = vmatpush1.bf16.msra.mxu1 %v22422_v24 }
 0x30f   : > { %2587 = vmatprep.subr.bf16.mxu0 %v22427_v25  ;;  %2751 = vmatprep.subr.bf16.mxu1 %v22430_v26 }
 0x312   : > { %2588 = vmatpush1.bf16.msra.mxu0 %v22425_v27  ;;  %2752 = vmatpush1.bf16.msra.mxu1 %v22428_v29 }
 0x315   : > { %2590 = vmatmul.mubr.bf16.vlgmr.msra.gmra.mrb[0].mxu0 %v26299_v31  ;;  %2754 = vmatmul.mubr.bf16.vlgmr.msra.gmra.mrb[0].mxu1 %v26299_v31 }
 0x3e8   : > { %v2591_v43 = vpop.f32.mrb[0].mxu0  ;;  %v2755_v44 = vpop.f32.mrb[0].mxu1 }
 0x3e9   : > { %v2593_v45 = vpop.f32.mrb[1].mxu0  ;;  %v2757_v46 = vpop.f32.mrb[1].mxu1  ;;  %v21601_v53 = vadd.f32 %v2755_v44, %v1145_v42  ;;  %v21599_v56 = vadd.f32 %v2591_v43, %v1137_v47 }
 0x3ea   : > { %v21600_v48 = vadd.f32 %v2593_v45, %v1141_v40  ;;  %v21602_v49 = vadd.f32 %v2757_v46, %v1149_v41  ;;  %v2595_v51 = vpop.f32.mrb[2].mxu0  ;;  %v2759_v52 = vpop.f32.mrb[2].mxu1 }
 0x3eb   : > { %v2596_v54 = vpop.f32.mrb[3].mxu0  ;;  %v2760_v55 = vpop.f32.mrb[3].mxu1 }
 0x3ec   : > { %2762 = vmatprep.subr.mxu0 %v21602_v49  ;;  %2826 = vmatprep.mubr.f32.mxu0 %v21600_v48 }
 0x3ed   : > { %2763 = vmatpush1.xpose.msra.mxu0 %v21601_v53 }
 0x3f0   : > { %2827 = vmatmul.mubr.f32.vlgmr.msra.gmra.mrb[4].mxu0 %v21599_v56 }
 0x4c3   : > { %v2828_v57 = vpop.f32.mrb[4].mxu0 }
 0x4c4   : > { %v2832_v58 = vmul.f32 0.0625, %v2828_v57  ;;  %v2830_v59 = vpop.f32.mrb[5].mxu0 }
 0x4c6   : > { %v2834_v60 = vsel %vm2833_vm1, %v2832_v58, -inf }
 0x4c7   : > { %2835 = vmax.xlane.f32.xlu0 %v2834_v60 }
 0x554   : > { %v2836_v61 = vpop.xlane.xlu0 %2835 }
 0x555   : > { %v2837_v62 = vsub.f32 %v2832_v58, %v2836_v61 }
 0x557   : > { %v2838_v63 = vmul.f32 1.442695, %v2837_v62 }
 0x559   : > { %22431 = vpow2.f32 %v2838_v63 }
 0x563   : > { %v22432_v0 = vpop.eup %22431 }
 0x564   : > { %v2840_v1 = vsel %vm2833_vm1, %v22432_v0, 0.0 }
 0x565   : > { %2841 = vadd.xlane.f32.xlu0 %v2840_v1 }
 0x5f2   : > { %v2842_v2 = vpop.xlane.xlu0 %2841 }
 0x5f3   : > { %22433 = vrcp.f32 %v2842_v2 }
 0x5f8   : > { %2848 = sbr.rel (%p19421_p1) target bundleno = 1537 (0x601), region = 156 }
 0x5fd   : > { %v22434_v3 = vpop.eup %22433 }
 0x5fe   : > { %v2844_v4 = vmul.f32 %v22434_v3, %v22432_v0 }
 0x600   : > { %2849 = vst.msk [vmem:[#allocation30] sm:$0x1f] %vm2833_vm1, %v2844_v4 }
 0x601 PF: > { %vm2855_vm2 = vcmask 1041408   ;;  %vm2856_vm3 = vcmask 1042432   ;;  %v25398_v5 = vmov 65535   ;;  %v25399_v8 = vmov 0   ;;  %v3055_v17 = vld [vmem:[%s25975_s13] sm:$0xff]  ;;  %v3056_v21 = vld [vmem:[%s25975_s13 + $0x8] sm:$0xff] }
 0x602   : > { %v2857_v6 = vsel %vm2855_vm2, 4294967295, %v25398_v5  ;;  %2915 = vmatprep.mubr.bf16.mxu1 %v25399_v8  ;;  %2956 = vmatprep.mubr.bf16.mxu0 %v25399_v8  ;;  %v2850_v18 = vpack.c.bf16 %v2844_v4, %v2844_v4  ;;  %v3059_v20 = vld [vmem:[%s25975_s13 + $0x20] sm:$0xff]  ;;  %v3060_v23 = vld [vmem:[%s25975_s13 + $0x28] sm:$0xff]  ;;  %vm2851_vm4 = vcmask 39936   ;;  %vm6783_vm5 = vcmask 1044480  }
 0x603   : > { %v2858_v9 = vsel %vm2856_vm3, %v2857_v6, 0  ;;  %v3068_v24 = vld [vmem:[%s25975_s13 + $0x68] sm:$0xff]  ;;  %v19426_v25 = vcombine.low %v3055_v17, %v3059_v20  ;;  %v19428_v26 = vcombine.low %v3056_v21, %v3060_v23  ;;  %v3071_v30 = vld [vmem:[%s25975_s13 + $0x80] sm:$0xff]  ;;  %vm16436_vm7 = vcmp.lt.s32.totalorder %v1134_v32, 512 }
 0x604   : > { %v2863_v10 = vand.u32 %v2858_v9, %v26062_v50  ;;  %v2860_v11 = vand.u32 %v2858_v9, %v26085_v7  ;;  %v2869_v12 = vand.u32 %v2858_v9, %v26114_v34  ;;  %v2866_v13 = vand.u32 %v2858_v9, %v26159_v15  ;;  %v3072_v37 = vld [vmem:[%s25975_s13 + $0x88] sm:$0xff]  ;;  %v3079_v45 = vld [vmem:[%s25975_s13 + $0xc0] sm:$0xff] }
 0x605   : > { %v2875_v14 = vand.u32 %v2858_v9, %v26163_v19  ;;  %v2881_v16 = vand.u32 %v2858_v9, %v26235_v28  ;;  %v2872_v50 = vand.u32 %v2858_v9, %v26229_v22  ;;  %v2878_v7 = vand.u32 %v2858_v9, %v26299_v31  ;;  %v3063_v19 = vld [vmem:[%s25975_s13 + $0x40] sm:$0xff]  ;;  %v3064_v28 = vld [vmem:[%s25975_s13 + $0x48] sm:$0xff] }
 0x606   : > { %2883 = vmatprep.subr.bf16.mxu1 %v2863_v10  ;;  %2924 = vmatprep.subr.bf16.mxu0 %v2869_v12  ;;  %v19427_v34 = vcombine.high %v3055_v17, %v3059_v20  ;;  %v19429_v15 = vcombine.high %v3056_v21, %v3060_v23  ;;  %v3067_v22 = vld [vmem:[%s25975_s13 + $0x60] sm:$0xff]  ;;  %v19437_v29 = vcombine.high %v3064_v28, %v3068_v24  ;;  %v3076_v40 = vld [vmem:[%s25975_s13 + $0xa8] sm:$0xff]  ;;  %vm25402_vm8 = vmmov (!%p19421_p1), 0  }
 0x607   : > { %2884 = vmatpush1.bf16.msra.mxu1 %v2860_v11  ;;  %2925 = vmatpush1.bf16.msra.mxu0 %v2866_v13  ;;  %v19435_v27 = vcombine.high %v3063_v19, %v3067_v22  ;;  %v3075_v31 = vld [vmem:[%s25975_s13 + $0xa0] sm:$0xff]  ;;  %v19434_v41 = vcombine.low %v3063_v19, %v3067_v22  ;;  %v19436_v42 = vcombine.low %v3064_v28, %v3068_v24  ;;  %v3080_v47 = vld [vmem:[%s25975_s13 + $0xc8] sm:$0xff] }
 0x608   : > { %2965 = vmatprep.subr.bf16.mxu1 %v2875_v14  ;;  %3006 = vmatprep.subr.bf16.mxu0 %v2881_v16  ;;  %v19443_v43 = vcombine.high %v3071_v30, %v3075_v31  ;;  %v19445_v44 = vcombine.high %v3072_v37, %v3076_v40  ;;  %v3083_v46 = vld [vmem:[%s25975_s13 + $0xe0] sm:$0xff]  ;;  %v3084_v48 = vld [vmem:[%s25975_s13 + $0xe8] sm:$0xff]  ;;  %v19442_v49 = vcombine.low %v3071_v30, %v3075_v31 }
 0x609   : > { %v19444_v51 = vcombine.low %v3072_v37, %v3076_v40  ;;  %v3087_v52 = vld [vmem:[%s25975_s13 + $0x100] sm:$0xff]  ;;  %v3088_v54 = vld [vmem:[%s25975_s13 + $0x108] sm:$0xff]  ;;  %v19451_v56 = vcombine.high %v3079_v45, %v3083_v46  ;;  %v19453_v57 = vcombine.high %v3080_v47, %v3084_v48  ;;  %v19450_v58 = vcombine.low %v3079_v45, %v3083_v46 }
 0x60a   : > { %19422 = vmatmul.mubr.msk.bf16.vlgmr.msra.gmra.mrb[4].mxu1 %vm2851_vm4, %v2850_v18  ;;  %19423 = vmatmul.mubr.msk.bf16.vlgmr.msra.gmra.mrb[8].mxu0 %vm2851_vm4, %v2850_v18  ;;  %v3091_v53 = vld [vmem:[%s25975_s13 + $0x120] sm:$0xff]  ;;  %v3092_v55 = vld [vmem:[%s25975_s13 + $0x128] sm:$0xff]  ;;  %v19452_v59 = vcombine.low %v3080_v47, %v3084_v48 }
 0x60b   : > { %2966 = vmatpush1.bf16.msra.mxu1 %v2872_v50  ;;  %2997 = vmatprep.mubr.bf16.mxu1 %v25399_v8  ;;  %v3095_v60 = vld [vmem:[%s25975_s13 + $0x140] sm:$0xff]  ;;  %v3096_v62 = vld [vmem:[%s25975_s13 + $0x148] sm:$0xff]  ;;  %v19459_v0 = vcombine.high %v3087_v52, %v3091_v53  ;;  %v19461_v1 = vcombine.high %v3088_v54, %v3092_v55  ;;  %v19458_v2 = vcombine.low %v3087_v52, %v3091_v53 }
 0x60c   : > { %3007 = vmatpush1.bf16.msra.mxu0 %v2878_v7  ;;  %3038 = vmatprep.mubr.bf16.mxu0 %v25399_v8  ;;  %v3099_v61 = vld [vmem:[%s25975_s13 + $0x160] sm:$0xff]  ;;  %v3100_v63 = vld [vmem:[%s25975_s13 + $0x168] sm:$0xff]  ;;  %v19460_v3 = vcombine.low %v3088_v54, %v3092_v55 }
 0x60d   : > { %6127 = vmatprep.subr.bf16.mxu1 %v19427_v34  ;;  %6291 = vmatprep.subr.bf16.mxu0 %v19429_v15  ;;  %v3103_v4 = vld [vmem:[%s25975_s13 + $0x180] sm:$0xff]  ;;  %v3104_v6 = vld [vmem:[%s25975_s13 + $0x188] sm:$0xff]  ;;  %v19467_v9 = vcombine.high %v3095_v60, %v3099_v61  ;;  %v19469_v10 = vcombine.high %v3096_v62, %v3100_v63  ;;  %v19466_v11 = vcombine.low %v3095_v60, %v3099_v61 }
 0x60e   : > { %v3107_v5 = vld [vmem:[%s25975_s13 + $0x1a0] sm:$0xff]  ;;  %v3108_v8 = vld [vmem:[%s25975_s13 + $0x1a8] sm:$0xff]  ;;  %v19468_v12 = vcombine.low %v3096_v62, %v3100_v63 }
 0x60f   : > { %v3111_v13 = vld [vmem:[%s25975_s13 + $0x1c0] sm:$0xff]  ;;  %v3112_v16 = vld [vmem:[%s25975_s13 + $0x1c8] sm:$0xff]  ;;  %v19477_v20 = vcombine.high %v3104_v6, %v3108_v8  ;;  %v19474_v21 = vcombine.low %v3103_v4, %v3107_v5  ;;  %v19476_v23 = vcombine.low %v3104_v6, %v3108_v8 }
 0x610   : > { %v3115_v14 = vld [vmem:[%s25975_s13 + $0x1e0] sm:$0xff]  ;;  %v3116_v17 = vld [vmem:[%s25975_s13 + $0x1e8] sm:$0xff] }
 0x611   : > { %v3119_v50 = vld [vmem:[%s25975_s13 + $0x200] sm:$0xff]  ;;  %v3120_v34 = vld [vmem:[%s25975_s13 + $0x208] sm:$0xff]  ;;  %v19483_v19 = vcombine.high %v3111_v13, %v3115_v14  ;;  %v19485_v22 = vcombine.high %v3112_v16, %v3116_v17  ;;  %v19482_v28 = vcombine.low %v3111_v13, %v3115_v14  ;;  %v19484_v24 = vcombine.low %v3112_v16, %v3116_v17 }
 0x612   : > { %19424 = vmatmul.mubr.msk.bf16.vlgmr.msra.gmra.mrb[8].mxu1 %vm2851_vm4, %v2850_v18  ;;  %19425 = vmatmul.mubr.msk.bf16.vlgmr.msra.gmra.mrb[12].mxu0 %vm2851_vm4, %v2850_v18  ;;  %v19475_v18 = vcombine.high %v3103_v4, %v3107_v5  ;;  %v3123_v7 = vld [vmem:[%s25975_s13 + $0x220] sm:$0xff]  ;;  %v3124_v15 = vld [vmem:[%s25975_s13 + $0x228] sm:$0xff] }
 0x613   : > { %6128 = vmatpush1.bf16.msra.mxu1 %v19426_v25  ;;  %6292 = vmatpush1.bf16.msra.mxu0 %v19428_v26  ;;  %v3127_v25 = vld [vmem:[%s25975_s13 + $0x240] sm:$0xff]  ;;  %v19491_v30 = vcombine.high %v3119_v50, %v3123_v7  ;;  %v19493_v31 = vcombine.high %v3120_v34, %v3124_v15  ;;  %v19490_v37 = vcombine.low %v3119_v50, %v3123_v7  ;;  %v3144_v52 = vld [vmem:[%s25975_s13 + $0x2c8] sm:$0xff] }
 0x614   : > { %6129 = vmatprep.subr.bf16.mxu1 %v19435_v27  ;;  %6293 = vmatprep.subr.bf16.mxu0 %v19437_v29  ;;  %v3131_v26 = vld [vmem:[%s25975_s13 + $0x260] sm:$0xff]  ;;  %v3128_v27 = vld [vmem:[%s25975_s13 + $0x248] sm:$0xff]  ;;  %v19492_v40 = vcombine.low %v3120_v34, %v3124_v15 }
 0x615   : > { %v3132_v29 = vld [vmem:[%s25975_s13 + $0x268] sm:$0xff]  ;;  %v19499_v45 = vcombine.high %v3127_v25, %v3131_v26  ;;  %v19498_v47 = vcombine.low %v3127_v25, %v3131_v26  ;;  %v3175_v34 = vld [vmem:[%s25975_s13 + $0x3c0] sm:$0xff] }
 0x616   : > { %v19501_v46 = vcombine.high %v3128_v27, %v3132_v29  ;;  %v19500_v48 = vcombine.low %v3128_v27, %v3132_v29  ;;  %v3148_v53 = vld [vmem:[%s25975_s13 + $0x2e8] sm:$0xff]  ;;  %v3179_v15 = vld [vmem:[%s25975_s13 + $0x3e0] sm:$0xff] }
 0x617   : > { %6130 = vmatpush1.bf16.msra.mxu1 %v19434_v41  ;;  %6294 = vmatpush1.bf16.msra.mxu0 %v19436_v42  ;;  %v3135_v41 = vld [vmem:[%s25975_s13 + $0x280] sm:$0xff]  ;;  %v3152_v60 = vld [vmem:[%s25975_s13 + $0x308] sm:$0xff]  ;;  %v19517_v63 = vcombine.high %v3144_v52, %v3148_v53 }
 0x618   : > { %6131 = vmatprep.subr.bf16.mxu1 %v19443_v43  ;;  %6295 = vmatprep.subr.bf16.mxu0 %v19445_v44  ;;  %v3139_v42 = vld [vmem:[%s25975_s13 + $0x2a0] sm:$0xff]  ;;  %v3136_v43 = vld [vmem:[%s25975_s13 + $0x288] sm:$0xff] }
 0x619   : > { %v3140_v44 = vld [vmem:[%s25975_s13 + $0x2a8] sm:$0xff]  ;;  %v19507_v54 = vcombine.high %v3135_v41, %v3139_v42  ;;  %v3183_v27 = vld [vmem:[%s25975_s13 + $0x400] sm:$0xff] }
 0x61a   : > { %v19509_v55 = vcombine.high %v3136_v43, %v3140_v44  ;;  %v3156_v61 = vld [vmem:[%s25975_s13 + $0x328] sm:$0xff]  ;;  %v3187_v29 = vld [vmem:[%s25975_s13 + $0x420] sm:$0xff] }
 0x61b   : > { %6132 = vmatpush1.bf16.msra.mxu1 %v19442_v49  ;;  %6296 = vmatpush1.bf16.msra.mxu0 %v19444_v51  ;;  %v3143_v49 = vld [vmem:[%s25975_s13 + $0x2c0] sm:$0xff]  ;;  %v3160_v4 = vld [vmem:[%s25975_s13 + $0x348] sm:$0xff]  ;;  %v19525_v8 = vcombine.high %v3152_v60, %v3156_v61 }
 0x61c   : > { %6133 = vmatprep.subr.bf16.mxu1 %v19451_v56  ;;  %6297 = vmatprep.subr.bf16.mxu0 %v19453_v57  ;;  %v3147_v51 = vld [vmem:[%s25975_s13 + $0x2e0] sm:$0xff]  ;;  %v19506_v56 = vcombine.low %v3135_v41, %v3139_v42  ;;  %v19508_v57 = vcombine.low %v3136_v43, %v3140_v44  ;;  %v3164_v5 = vld [vmem:[%s25975_s13 + $0x368] sm:$0xff] }
 0x61d   : > { %v19515_v62 = vcombine.high %v3143_v49, %v3147_v51  ;;  %v3168_v13 = vld [vmem:[%s25975_s13 + $0x388] sm:$0xff]  ;;  %v19533_v17 = vcombine.high %v3160_v4, %v3164_v5  ;;  %v3191_v43 = vld [vmem:[%s25975_s13 + $0x440] sm:$0xff] }
 0x61e   : > { %v3172_v14 = vld [vmem:[%s25975_s13 + $0x3a8] sm:$0xff]  ;;  %v3195_v44 = vld [vmem:[%s25975_s13 + $0x460] sm:$0xff] }
 0x61f   : > { %6134 = vmatpush1.bf16.msra.mxu1 %v19450_v58  ;;  %6298 = vmatpush1.bf16.msra.mxu0 %v19452_v59  ;;  %v3151_v58 = vld [vmem:[%s25975_s13 + $0x300] sm:$0xff]  ;;  %v19540_v7 = vcombine.low %v3168_v13, %v3172_v14 }
 0x620   : > { %6135 = vmatprep.subr.bf16.mxu1 %v19459_v0  ;;  %6299 = vmatprep.subr.bf16.mxu0 %v19461_v1  ;;  %v3155_v59 = vld [vmem:[%s25975_s13 + $0x320] sm:$0xff]  ;;  %v19514_v0 = vcombine.low %v3143_v49, %v3147_v51  ;;  %v19516_v1 = vcombine.low %v3144_v52, %v3148_v53 }
 0x621   : > { %v19523_v6 = vcombine.high %v3151_v58, %v3155_v59 }
 0x623   : > { %6136 = vmatpush1.bf16.msra.mxu1 %v19458_v2  ;;  %6300 = vmatpush1.bf16.msra.mxu0 %v19460_v3  ;;  %v3159_v2 = vld [vmem:[%s25975_s13 + $0x340] sm:$0xff] }
 0x624   : > { %6137 = vmatprep.subr.bf16.mxu1 %v19467_v9  ;;  %6301 = vmatprep.subr.bf16.mxu0 %v19469_v10  ;;  %v3163_v3 = vld [vmem:[%s25975_s13 + $0x360] sm:$0xff]  ;;  %v19522_v9 = vcombine.low %v3151_v58, %v3155_v59  ;;  %v19524_v10 = vcombine.low %v3152_v60, %v3156_v61  ;;  %v19563_v60 = vcombine.high %v3191_v43, %v3195_v44 }
 0x625   : > { %v19531_v16 = vcombine.high %v3159_v2, %v3163_v3 }
 0x627   : > { %6138 = vmatpush1.bf16.msra.mxu1 %v19466_v11  ;;  %6302 = vmatpush1.bf16.msra.mxu0 %v19468_v12  ;;  %v3167_v11 = vld [vmem:[%s25975_s13 + $0x380] sm:$0xff] }
 0x628   : > { %6139 = vmatprep.subr.bf16.mxu1 %v19475_v18  ;;  %6303 = vmatprep.subr.bf16.mxu0 %v19477_v20  ;;  %v3171_v12 = vld [vmem:[%s25975_s13 + $0x3a0] sm:$0xff]  ;;  %v19530_v18 = vcombine.low %v3159_v2, %v3163_v3  ;;  %v19532_v20 = vcombine.low %v3160_v4, %v3164_v5  ;;  %v3208_v5 = vld [vmem:[%s25975_s13 + $0x4c8] sm:$0xff] }
 0x629   : > { %v19538_v50 = vcombine.low %v3167_v11, %v3171_v12  ;;  %v3207_v3 = vld [vmem:[%s25975_s13 + $0x4c0] sm:$0xff] }
 0x62a   : > { %v3211_v4 = vld [vmem:[%s25975_s13 + $0x4e0] sm:$0xff] }
 0x62b   : > { %6140 = vmatpush1.bf16.msra.mxu1 %v19474_v21  ;;  %6304 = vmatpush1.bf16.msra.mxu0 %v19476_v23  ;;  %v19539_v21 = vcombine.high %v3167_v11, %v3171_v12  ;;  %v19541_v23 = vcombine.high %v3168_v13, %v3172_v14  ;;  %v3215_v14 = vld [vmem:[%s25975_s13 + $0x500] sm:$0xff] }
 0x62c   : > { %6141 = vmatprep.subr.bf16.mxu1 %v19483_v19  ;;  %6305 = vmatprep.subr.bf16.mxu0 %v19485_v22  ;;  %v3176_v19 = vld [vmem:[%s25975_s13 + $0x3c8] sm:$0xff]  ;;  %v19547_v22 = vcombine.high %v3175_v34, %v3179_v15 }
 0x62f   : > { %6142 = vmatpush1.bf16.msra.mxu1 %v19482_v28  ;;  %6306 = vmatpush1.bf16.msra.mxu0 %v19484_v24  ;;  %v3180_v28 = vld [vmem:[%s25975_s13 + $0x3e8] sm:$0xff]  ;;  %v19546_v24 = vcombine.low %v3175_v34, %v3179_v15  ;;  %v3223_v15 = vld [vmem:[%s25975_s13 + $0x540] sm:$0xff] }
 0x630   : > { %6143 = vmatprep.subr.bf16.mxu1 %v19491_v30  ;;  %6307 = vmatprep.subr.bf16.mxu0 %v19493_v31  ;;  %v19548_v25 = vcombine.low %v3176_v19, %v3180_v28  ;;  %v19549_v26 = vcombine.high %v3176_v19, %v3180_v28  ;;  %v3184_v30 = vld [vmem:[%s25975_s13 + $0x408] sm:$0xff]  ;;  %v19555_v31 = vcombine.high %v3183_v27, %v3187_v29  ;;  %v3227_v19 = vld [vmem:[%s25975_s13 + $0x560] sm:$0xff] }
 0x633   : > { %6144 = vmatpush1.bf16.msra.mxu1 %v19490_v37  ;;  %6308 = vmatpush1.bf16.msra.mxu0 %v19492_v40  ;;  %v3188_v37 = vld [vmem:[%s25975_s13 + $0x428] sm:$0xff]  ;;  %v19554_v40 = vcombine.low %v3183_v27, %v3187_v29  ;;  %v3231_v29 = vld [vmem:[%s25975_s13 + $0x580] sm:$0xff] }
 0x634   : > { %6145 = vmatprep.subr.bf16.mxu1 %v19499_v45  ;;  %6309 = vmatprep.subr.bf16.mxu0 %v19501_v46  ;;  %v19556_v41 = vcombine.low %v3184_v30, %v3188_v37  ;;  %v19557_v42 = vcombine.high %v3184_v30, %v3188_v37  ;;  %v3192_v45 = vld [vmem:[%s25975_s13 + $0x448] sm:$0xff]  ;;  %v3235_v30 = vld [vmem:[%s25975_s13 + $0x5a0] sm:$0xff]  ;;  %v19595_v37 = vcombine.high %v3223_v15, %v3227_v19 }
 0x635   : > { %v3196_v46 = vld [vmem:[%s25975_s13 + $0x468] sm:$0xff] }
 0x636   : > { %v19565_v61 = vcombine.high %v3192_v45, %v3196_v46  ;;  %v19564_v2 = vcombine.low %v3192_v45, %v3196_v46  ;;  %v3243_v45 = vld [vmem:[%s25975_s13 + $0x5e0] sm:$0xff]  ;;  %v3240_v46 = vld [vmem:[%s25975_s13 + $0x5c8] sm:$0xff] }
 0x637   : > { %6146 = vmatpush1.bf16.msra.mxu1 %v19498_v47  ;;  %6310 = vmatpush1.bf16.msra.mxu0 %v19500_v48 }
 0x638   : > { %6147 = vmatprep.subr.bf16.mxu1 %v19507_v54  ;;  %6311 = vmatprep.subr.bf16.mxu0 %v19509_v55  ;;  %v3199_v54 = vld [vmem:[%s25975_s13 + $0x480] sm:$0xff] }
 0x639   : > { %v3203_v55 = vld [vmem:[%s25975_s13 + $0x4a0] sm:$0xff] }
 0x63a   : > { %v19570_v12 = vcombine.low %v3199_v54, %v3203_v55 }
 0x63b   : > { %6148 = vmatpush1.bf16.msra.mxu1 %v19506_v56  ;;  %6312 = vmatpush1.bf16.msra.mxu0 %v19508_v57  ;;  %v3200_v56 = vld [vmem:[%s25975_s13 + $0x488] sm:$0xff] }
 0x63c   : > { %6149 = vmatprep.subr.bf16.mxu1 %v19515_v62  ;;  %6313 = vmatprep.subr.bf16.mxu0 %v19517_v63  ;;  %v3204_v62 = vld [vmem:[%s25975_s13 + $0x4a8] sm:$0xff] }
 0x63d   : > { %v19572_v13 = vcombine.low %v3200_v56, %v3204_v62 }
 0x63f   : > { %6150 = vmatpush1.bf16.msra.mxu1 %v19514_v0  ;;  %6314 = vmatpush1.bf16.msra.mxu0 %v19516_v1  ;;  %v19562_v1 = vcombine.low %v3191_v43, %v3195_v44  ;;  %v3239_v44 = vld [vmem:[%s25975_s13 + $0x5c0] sm:$0xff] }
 0x640   : > { %6151 = vmatprep.subr.bf16.mxu1 %v19523_v6  ;;  %6315 = vmatprep.subr.bf16.mxu0 %v19525_v8  ;;  %v19571_v6 = vcombine.high %v3199_v54, %v3203_v55  ;;  %v19573_v8 = vcombine.high %v3200_v56, %v3204_v62  ;;  %v19602_v54 = vcombine.low %v3231_v29, %v3235_v30  ;;  %v3247_v56 = vld [vmem:[%s25975_s13 + $0x600] sm:$0xff] }
 0x643   : > { %6152 = vmatpush1.bf16.msra.mxu1 %v19522_v9  ;;  %6316 = vmatpush1.bf16.msra.mxu0 %v19524_v10  ;;  %v3212_v9 = vld [vmem:[%s25975_s13 + $0x4e8] sm:$0xff] }
 0x644   : > { %6153 = vmatprep.subr.bf16.mxu1 %v19531_v16  ;;  %6317 = vmatprep.subr.bf16.mxu0 %v19533_v17  ;;  %v3219_v16 = vld [vmem:[%s25975_s13 + $0x520] sm:$0xff]  ;;  %v3216_v17 = vld [vmem:[%s25975_s13 + $0x508] sm:$0xff]  ;;  %v19580_v34 = vcombine.low %v3208_v5, %v3212_v9 }
 0x645   : > { %v19587_v28 = vcombine.high %v3215_v14, %v3219_v16 }
 0x647   : > { %6154 = vmatpush1.bf16.msra.mxu1 %v19530_v18  ;;  %6318 = vmatpush1.bf16.msra.mxu0 %v19532_v20  ;;  %v19579_v20 = vcombine.high %v3207_v3, %v3211_v4 }
 0x648   : > { %6155 = vmatprep.subr.bf16.mxu1 %v19539_v21  ;;  %6319 = vmatprep.subr.bf16.mxu0 %v19541_v23  ;;  %v19581_v21 = vcombine.high %v3208_v5, %v3212_v9  ;;  %v3220_v23 = vld [vmem:[%s25975_s13 + $0x528] sm:$0xff]  ;;  %v3255_v5 = vld [vmem:[%s25975_s13 + $0x640] sm:$0xff] }
 0x649   : > { %v19588_v27 = vcombine.low %v3216_v17, %v3220_v23 }
 0x64b   : > { %6156 = vmatpush1.bf16.msra.mxu1 %v19538_v50  ;;  %6320 = vmatpush1.bf16.msra.mxu0 %v19540_v7  ;;  %v19578_v7 = vcombine.low %v3207_v3, %v3211_v4  ;;  %v19610_v3 = vcombine.low %v3239_v44, %v3243_v45 }
 0x64c   : > { %6157 = vmatprep.subr.bf16.mxu1 %v19547_v22  ;;  %6321 = vmatprep.subr.bf16.mxu0 %v19549_v26  ;;  %v3224_v22 = vld [vmem:[%s25975_s13 + $0x548] sm:$0xff]  ;;  %v19586_v26 = vcombine.low %v3215_v14, %v3219_v16 }
 0x64f   : > { %6158 = vmatpush1.bf16.msra.mxu1 %v19546_v24  ;;  %6322 = vmatpush1.bf16.msra.mxu0 %v19548_v25  ;;  %v19589_v24 = vcombine.high %v3216_v17, %v3220_v23  ;;  %v3228_v25 = vld [vmem:[%s25975_s13 + $0x568] sm:$0xff]  ;;  %v3263_v17 = vld [vmem:[%s25975_s13 + $0x680] sm:$0xff] }
 0x650   : > { %6168 = vmatprep.subr.bf16.mxu1 %v19555_v31  ;;  %6332 = vmatprep.subr.bf16.mxu0 %v19557_v42  ;;  %v3232_v31 = vld [vmem:[%s25975_s13 + $0x588] sm:$0xff]  ;;  %v19594_v42 = vcombine.low %v3223_v15, %v3227_v19  ;;  %v19596_v43 = vcombine.low %v3224_v22, %v3228_v25  ;;  %v3271_v15 = vld [vmem:[%s25975_s13 + $0x6c0] sm:$0xff] }
 0x651   : > { %v3275_v19 = vld [vmem:[%s25975_s13 + $0x6e0] sm:$0xff] }
 0x6dd   : > { %v2917_v47 = vpop.f32.mrb[4].mxu1  ;;  %v26413_v48 = vpop.f32.mrb[8].mxu0 }
 0x6de   : > { %v2919_v49 = vpop.f32.mrb[5].mxu1  ;;  %v2960_v51 = vpop.f32.mrb[9].mxu0  ;;  %v26420_v58 = vpack.c.bf16 %v2917_v47, %v2917_v47  ;;  %v19603_v47 = vcombine.high %v3231_v29, %v3235_v30  ;;  %v3279_v29 = vld [vmem:[%s25975_s13 + $0x700] sm:$0xff] }
 0x6df   : > { %v26415_v52 = vpack.c.bf16 %v2919_v49, %v2919_v49  ;;  %v2921_v53 = vpop.f32.mrb[6].mxu1  ;;  %v2962_v57 = vpop.f32.mrb[10].mxu0  ;;  %v26425_v0 = vpack.c.bf16 %v2960_v51, %v2960_v51  ;;  %v3244_v51 = vld [vmem:[%s25975_s13 + $0x5e8] sm:$0xff]  ;;  %v3283_v30 = vld [vmem:[%s25975_s13 + $0x720] sm:$0xff] }
 0x6e0   : > { %v2922_v59 = vpop.f32.mrb[7].mxu1  ;;  %v2963_v63 = vpop.f32.mrb[11].mxu0  ;;  %v3251_v57 = vld [vmem:[%s25975_s13 + $0x620] sm:$0xff]  ;;  %v19613_v62 = vcombine.high %v3240_v46, %v3244_v51  ;;  %v19612_v4 = vcombine.low %v3240_v46, %v3244_v51  ;;  %v3288_v46 = vld [vmem:[%s25975_s13 + $0x748] sm:$0xff] }
 0x6e1   : > { %6159 = vmatprep.mubr.bf16.mxu1 %v26415_v52  ;;  %6323 = vmatprep.mubr.bf16.mxu0 %v26415_v52  ;;  %v3248_v59 = vld [vmem:[%s25975_s13 + $0x608] sm:$0xff]  ;;  %v19619_v9 = vcombine.high %v3247_v56, %v3251_v57  ;;  %v19618_v14 = vcombine.low %v3247_v56, %v3251_v57  ;;  %v3295_v56 = vld [vmem:[%s25975_s13 + $0x780] sm:$0xff] }
 0x6e2   : > { %6160 = vmatmul.mubr.bf16.vlgmr.msra.gmra.mrb[12].mxu1 %v26420_v58  ;;  %6324 = vmatmul.mubr.bf16.vlgmr.msra.gmra.mrb[16].mxu0 %v26420_v58  ;;  %v3252_v63 = vld [vmem:[%s25975_s13 + $0x628] sm:$0xff]  ;;  %v3299_v57 = vld [vmem:[%s25975_s13 + $0x7a0] sm:$0xff] }
 0x6e3   : > { %6169 = vmatpush1.bf16.msra.mxu1 %v19554_v40  ;;  %6333 = vmatpush1.bf16.msra.mxu0 %v19556_v41  ;;  %v19597_v40 = vcombine.high %v3224_v22, %v3228_v25  ;;  %v3236_v41 = vld [vmem:[%s25975_s13 + $0x5a8] sm:$0xff]  ;;  %v19620_v16 = vcombine.low %v3248_v59, %v3252_v63 }
 0x6e4   : > { %6170 = vmatprep.subr.bf16.mxu1 %v19563_v60  ;;  %6334 = vmatprep.subr.bf16.mxu0 %v19565_v61  ;;  %v19605_v49 = vcombine.high %v3232_v31, %v3236_v41  ;;  %v19604_v55 = vcombine.low %v3232_v31, %v3236_v41  ;;  %v19611_v61 = vcombine.high %v3239_v44, %v3243_v45  ;;  %v3272_v22 = vld [vmem:[%s25975_s13 + $0x6c8] sm:$0xff]  ;;  %v3287_v44 = vld [vmem:[%s25975_s13 + $0x740] sm:$0xff] }
 0x6e5   : > { %6200 = vmatprep.mubr.bf16.mxu1 %v26425_v0  ;;  %6364 = vmatprep.mubr.bf16.mxu0 %v26425_v0  ;;  %v26435_v10 = vpop.f32.mrb[8].mxu1  ;;  %v26455_v53 = vpop.f32.mrb[12].mxu0  ;;  %v3276_v25 = vld [vmem:[%s25975_s13 + $0x6e8] sm:$0xff]  ;;  %v3291_v45 = vld [vmem:[%s25975_s13 + $0x760] sm:$0xff] }
 0x6e6   : > { %v26437_v11 = vpop.f32.mrb[9].mxu1  ;;  %v26460_v60 = vpop.f32.mrb[13].mxu0  ;;  %v3280_v31 = vld [vmem:[%s25975_s13 + $0x708] sm:$0xff] }
 0x6e7   : > { %6171 = vmatpush1.bf16.msra.mxu1 %v19562_v1  ;;  %6335 = vmatpush1.bf16.msra.mxu0 %v19564_v2  ;;  %v3003_v18 = vpop.f32.mrb[10].mxu1  ;;  %v3044_v1 = vpop.f32.mrb[14].mxu0  ;;  %v3284_v41 = vld [vmem:[%s25975_s13 + $0x728] sm:$0xff] }
 0x6e8   : > { %6172 = vmatprep.subr.bf16.mxu1 %v19571_v6  ;;  %6336 = vmatprep.subr.bf16.mxu0 %v19573_v8  ;;  %v3004_v50 = vpop.f32.mrb[11].mxu1  ;;  %v3045_v2 = vpop.f32.mrb[15].mxu0  ;;  %v3259_v6 = vld [vmem:[%s25975_s13 + $0x660] sm:$0xff]  ;;  %v3256_v8 = vld [vmem:[%s25975_s13 + $0x648] sm:$0xff]  ;;  %v19658_v1 = vcombine.low %v3287_v44, %v3291_v45 }
 0x6e9   : > { %v3267_v18 = vld [vmem:[%s25975_s13 + $0x6a0] sm:$0xff]  ;;  %v3268_v50 = vld [vmem:[%s25975_s13 + $0x6a8] sm:$0xff] }
 0x6ea   : > { %v3292_v51 = vld [vmem:[%s25975_s13 + $0x768] sm:$0xff] }
 0x6eb   : > { %6173 = vmatpush1.bf16.msra.mxu1 %v19570_v12  ;;  %6337 = vmatpush1.bf16.msra.mxu0 %v19572_v13  ;;  %v19621_v12 = vcombine.high %v3248_v59, %v3252_v63  ;;  %v3260_v13 = vld [vmem:[%s25975_s13 + $0x668] sm:$0xff]  ;;  %v19660_v2 = vcombine.low %v3288_v46, %v3292_v51 }
 0x6ec   : > { %6174 = vmatprep.subr.bf16.mxu1 %v19579_v20  ;;  %6338 = vmatprep.subr.bf16.mxu0 %v19581_v21  ;;  %v3264_v20 = vld [vmem:[%s25975_s13 + $0x688] sm:$0xff]  ;;  %v19627_v21 = vcombine.high %v3255_v5, %v3259_v6  ;;  %v19629_v23 = vcombine.high %v3256_v8, %v3260_v13 }
 0x6ed   : > { %v3296_v59 = vld [vmem:[%s25975_s13 + $0x788] sm:$0xff] }
 0x6ee   : > { %v3300_v63 = vld [vmem:[%s25975_s13 + $0x7a8] sm:$0xff] }
 0x6ef   : > { %6175 = vmatpush1.bf16.msra.mxu1 %v19578_v7  ;;  %6339 = vmatpush1.bf16.msra.mxu0 %v19580_v34  ;;  %v19626_v7 = vcombine.low %v3255_v5, %v3259_v6  ;;  %v19628_v34 = vcombine.low %v3256_v8, %v3260_v13  ;;  %v3304_v5 = vld [vmem:[%s25975_s13 + $0x7c8] sm:$0xff]  ;;  %v19667_v6 = vcombine.high %v3295_v56, %v3299_v57 }
 0x6f0   : > { %6176 = vmatprep.subr.bf16.mxu1 %v19587_v28  ;;  %6340 = vmatprep.subr.bf16.mxu0 %v19589_v24  ;;  %v19635_v28 = vcombine.high %v3263_v17, %v3267_v18  ;;  %v19637_v24 = vcombine.high %v3264_v20, %v3268_v50  ;;  %v19669_v8 = vcombine.high %v3296_v59, %v3300_v63 }
 0x6f1   : > { %v19668_v13 = vcombine.low %v3296_v59, %v3300_v63  ;;  %v3344_v59 = vld [vmem:[%s25975_s13 + $0x908] sm:$0xff] }
 0x6f3   : > { %6177 = vmatpush1.bf16.msra.mxu1 %v19586_v26  ;;  %6341 = vmatpush1.bf16.msra.mxu0 %v19588_v27  ;;  %v19634_v26 = vcombine.low %v3263_v17, %v3267_v18  ;;  %v19636_v27 = vcombine.low %v3264_v20, %v3268_v50  ;;  %v3312_v17 = vld [vmem:[%s25975_s13 + $0x808] sm:$0xff] }
 0x6f4   : > { %6178 = vmatprep.subr.bf16.mxu1 %v19595_v37  ;;  %6342 = vmatprep.subr.bf16.mxu0 %v19597_v40  ;;  %v19643_v37 = vcombine.high %v3271_v15, %v3275_v19  ;;  %v19645_v40 = vcombine.high %v3272_v22, %v3276_v25 }
 0x6f7   : > { %6179 = vmatpush1.bf16.msra.mxu1 %v19594_v42  ;;  %6343 = vmatpush1.bf16.msra.mxu0 %v19596_v43  ;;  %v19642_v42 = vcombine.low %v3271_v15, %v3275_v19  ;;  %v19644_v43 = vcombine.low %v3272_v22, %v3276_v25  ;;  %v3320_v15 = vld [vmem:[%s25975_s13 + $0x848] sm:$0xff] }
 0x6f8   : > { %6180 = vmatprep.subr.bf16.mxu1 %v19603_v47  ;;  %6344 = vmatprep.subr.bf16.mxu0 %v19605_v49  ;;  %v19651_v47 = vcombine.high %v3279_v29, %v3283_v30  ;;  %v19653_v49 = vcombine.high %v3280_v31, %v3284_v41 }
 0x6fb   : > { %6181 = vmatpush1.bf16.msra.mxu1 %v19602_v54  ;;  %6345 = vmatpush1.bf16.msra.mxu0 %v19604_v55  ;;  %v19650_v54 = vcombine.low %v3279_v29, %v3283_v30  ;;  %v19652_v55 = vcombine.low %v3280_v31, %v3284_v41  ;;  %v3331_v29 = vld [vmem:[%s25975_s13 + $0x8a0] sm:$0xff]  ;;  %v3328_v30 = vld [vmem:[%s25975_s13 + $0x888] sm:$0xff] }
 0x6fc   : > { %6182 = vmatprep.subr.bf16.mxu1 %v19611_v61  ;;  %6346 = vmatprep.subr.bf16.mxu0 %v19613_v62  ;;  %v19659_v61 = vcombine.high %v3287_v44, %v3291_v45  ;;  %v19661_v62 = vcombine.high %v3288_v46, %v3292_v51  ;;  %v3335_v45 = vld [vmem:[%s25975_s13 + $0x8c0] sm:$0xff] }
 0x6fd   : > { %v3339_v46 = vld [vmem:[%s25975_s13 + $0x8e0] sm:$0xff] }
 0x6ff   : > { %6183 = vmatpush1.bf16.msra.mxu1 %v19610_v3  ;;  %6347 = vmatpush1.bf16.msra.mxu0 %v19612_v4  ;;  %v3303_v3 = vld [vmem:[%s25975_s13 + $0x7c0] sm:$0xff] }
 0x700   : > { %6184 = vmatprep.subr.bf16.mxu1 %v19619_v9  ;;  %6348 = vmatprep.subr.bf16.mxu0 %v19621_v12  ;;  %v3307_v4 = vld [vmem:[%s25975_s13 + $0x7e0] sm:$0xff]  ;;  %v3308_v9 = vld [vmem:[%s25975_s13 + $0x7e8] sm:$0xff]  ;;  %v19666_v12 = vcombine.low %v3295_v56, %v3299_v57 }
 0x701   : > { %v19675_v18 = vcombine.high %v3303_v3, %v3307_v4  ;;  %v19677_v20 = vcombine.high %v3304_v5, %v3308_v9  ;;  %v19676_v50 = vcombine.low %v3304_v5, %v3308_v9  ;;  %v3343_v56 = vld [vmem:[%s25975_s13 + $0x900] sm:$0xff]  ;;  %v3352_v5 = vld [vmem:[%s25975_s13 + $0x948] sm:$0xff] }
 0x702   : > { %v3347_v57 = vld [vmem:[%s25975_s13 + $0x920] sm:$0xff] }
 0x703   : > { %6185 = vmatpush1.bf16.msra.mxu1 %v19618_v14  ;;  %6349 = vmatpush1.bf16.msra.mxu0 %v19620_v16  ;;  %v3311_v14 = vld [vmem:[%s25975_s13 + $0x800] sm:$0xff] }
 0x704   : > { %6186 = vmatprep.subr.bf16.mxu1 %v19627_v21  ;;  %6350 = vmatprep.subr.bf16.mxu0 %v19629_v23  ;;  %v3315_v16 = vld [vmem:[%s25975_s13 + $0x820] sm:$0xff]  ;;  %v3316_v21 = vld [vmem:[%s25975_s13 + $0x828] sm:$0xff]  ;;  %v19674_v23 = vcombine.low %v3303_v3, %v3307_v4 }
 0x705   : > { %v19683_v19 = vcombine.high %v3311_v14, %v3315_v16  ;;  %v19685_v22 = vcombine.high %v3312_v17, %v3316_v21  ;;  %v19682_v25 = vcombine.low %v3311_v14, %v3315_v16  ;;  %v3351_v3 = vld [vmem:[%s25975_s13 + $0x940] sm:$0xff] }
 0x706   : > { %v3355_v4 = vld [vmem:[%s25975_s13 + $0x960] sm:$0xff] }
 0x707   : > { %6187 = vmatpush1.bf16.msra.mxu1 %v19626_v7  ;;  %6351 = vmatpush1.bf16.msra.mxu0 %v19628_v34  ;;  %v3319_v7 = vld [vmem:[%s25975_s13 + $0x840] sm:$0xff] }
 0x708   : > { %6188 = vmatprep.subr.bf16.mxu1 %v19635_v28  ;;  %6352 = vmatprep.subr.bf16.mxu0 %v19637_v24  ;;  %v3323_v34 = vld [vmem:[%s25975_s13 + $0x860] sm:$0xff]  ;;  %v3324_v28 = vld [vmem:[%s25975_s13 + $0x868] sm:$0xff]  ;;  %v26501_v24 = vpack.c.bf16 %v26413_v48, %v26413_v48  ;;  %v26509_v48 = vpack.c.bf16 %v26437_v11, %v26437_v11 }
 0x709   : > { %v19691_v31 = vcombine.high %v3319_v7, %v3323_v34  ;;  %v19690_v41 = vcombine.low %v3319_v7, %v3323_v34  ;;  %v3336_v11 = vld [vmem:[%s25975_s13 + $0x8c8] sm:$0xff]  ;;  %v3359_v14 = vld [vmem:[%s25975_s13 + $0x980] sm:$0xff] }
 0x70a   : > { %v3363_v16 = vld [vmem:[%s25975_s13 + $0x9a0] sm:$0xff] }
 0x70b   : > { %6189 = vmatpush1.bf16.msra.mxu1 %v19634_v26  ;;  %6353 = vmatpush1.bf16.msra.mxu0 %v19636_v27  ;;  %v19684_v26 = vcombine.low %v3312_v17, %v3316_v21  ;;  %v3327_v27 = vld [vmem:[%s25975_s13 + $0x880] sm:$0xff]  ;;  %v3360_v17 = vld [vmem:[%s25975_s13 + $0x988] sm:$0xff] }
 0x70c   : > { %6190 = vmatprep.subr.bf16.mxu1 %v19643_v37  ;;  %6354 = vmatprep.subr.bf16.mxu0 %v19645_v40  ;;  %v19693_v37 = vcombine.high %v3320_v15, %v3324_v28  ;;  %v3332_v40 = vld [vmem:[%s25975_s13 + $0x8a8] sm:$0xff]  ;;  %v3367_v7 = vld [vmem:[%s25975_s13 + $0x9c0] sm:$0xff] }
 0x70d   : > { %v19701_v44 = vcombine.high %v3328_v30, %v3332_v40  ;;  %v19700_v51 = vcombine.low %v3328_v30, %v3332_v40  ;;  %v3371_v34 = vld [vmem:[%s25975_s13 + $0x9e0] sm:$0xff]  ;;  %v3376_v30 = vld [vmem:[%s25975_s13 + $0xa08] sm:$0xff] }
 0x70f   : > { %6191 = vmatpush1.bf16.msra.mxu1 %v19642_v42  ;;  %6355 = vmatpush1.bf16.msra.mxu0 %v19644_v43  ;;  %v19692_v42 = vcombine.low %v3320_v15, %v3324_v28  ;;  %v19699_v43 = vcombine.high %v3327_v27, %v3331_v29  ;;  %v3368_v15 = vld [vmem:[%s25975_s13 + $0x9c8] sm:$0xff] }
 0x710   : > { %6192 = vmatprep.subr.bf16.mxu1 %v19651_v47  ;;  %6356 = vmatprep.subr.bf16.mxu0 %v19653_v49  ;;  %v3340_v47 = vld [vmem:[%s25975_s13 + $0x8e8] sm:$0xff]  ;;  %v19698_v49 = vcombine.low %v3327_v27, %v3331_v29  ;;  %v3375_v27 = vld [vmem:[%s25975_s13 + $0xa00] sm:$0xff] }
 0x711   : > { %v19708_v63 = vcombine.low %v3336_v11, %v3340_v47  ;;  %v3379_v29 = vld [vmem:[%s25975_s13 + $0xa20] sm:$0xff] }
 0x713   : > { %6193 = vmatpush1.bf16.msra.mxu1 %v19650_v54  ;;  %6357 = vmatpush1.bf16.msra.mxu0 %v19652_v55  ;;  %v19707_v54 = vcombine.high %v3335_v45, %v3339_v46  ;;  %v19709_v55 = vcombine.high %v3336_v11, %v3340_v47  ;;  %v19746_v11 = vcombine.low %v3375_v27, %v3379_v29 }
 0x714   : > { %6194 = vmatprep.subr.bf16.mxu1 %v19659_v61  ;;  %6358 = vmatprep.subr.bf16.mxu0 %v19661_v62  ;;  %v3348_v61 = vld [vmem:[%s25975_s13 + $0x928] sm:$0xff]  ;;  %v19706_v62 = vcombine.low %v3335_v45, %v3339_v46 }
 0x715   : > { %v19716_v9 = vcombine.low %v3344_v59, %v3348_v61  ;;  %v3384_v45 = vld [vmem:[%s25975_s13 + $0xa48] sm:$0xff] }
 0x716   : > { %v3388_v46 = vld [vmem:[%s25975_s13 + $0xa68] sm:$0xff] }
 0x717   : > { %6195 = vmatpush1.bf16.msra.mxu1 %v19658_v1  ;;  %6359 = vmatpush1.bf16.msra.mxu0 %v19660_v2  ;;  %v19715_v1 = vcombine.high %v3343_v56, %v3347_v57  ;;  %v19717_v2 = vcombine.high %v3344_v59, %v3348_v61  ;;  %v19756_v61 = vcombine.low %v3384_v45, %v3388_v46 }
 0x718   : > { %6196 = vmatprep.subr.bf16.mxu1 %v19667_v6  ;;  %6360 = vmatprep.subr.bf16.mxu0 %v19669_v8  ;;  %v3356_v6 = vld [vmem:[%s25975_s13 + $0x968] sm:$0xff]  ;;  %v19714_v8 = vcombine.low %v3343_v56, %v3347_v57 }
 0x719   : > { %v19724_v21 = vcombine.low %v3352_v5, %v3356_v6  ;;  %v3392_v56 = vld [vmem:[%s25975_s13 + $0xa88] sm:$0xff] }
 0x71a   : > { %v3396_v57 = vld [vmem:[%s25975_s13 + $0xaa8] sm:$0xff] }
 0x71b   : > { %6197 = vmatpush1.bf16.msra.mxu1 %v19666_v12  ;;  %6361 = vmatpush1.bf16.msra.mxu0 %v19668_v13  ;;  %v19723_v12 = vcombine.high %v3351_v3, %v3355_v4  ;;  %v19725_v13 = vcombine.high %v3352_v5, %v3356_v6  ;;  %v19764_v6 = vcombine.low %v3392_v56, %v3396_v57 }
 0x71c   : > { %6198 = vmatprep.subr.bf16.mxu1 %v19675_v18  ;;  %6362 = vmatprep.subr.bf16.mxu0 %v19677_v20  ;;  %v3364_v18 = vld [vmem:[%s25975_s13 + $0x9a8] sm:$0xff]  ;;  %v19722_v20 = vcombine.low %v3351_v3, %v3355_v4 }
 0x71d   : > { %v19732_v28 = vcombine.low %v3360_v17, %v3364_v18  ;;  %v3400_v3 = vld [vmem:[%s25975_s13 + $0xac8] sm:$0xff] }
 0x71e   : > { %v3404_v4 = vld [vmem:[%s25975_s13 + $0xae8] sm:$0xff] }
 0x71f   : > { %6199 = vmatpush1.bf16.msra.mxu1 %v19674_v23  ;;  %6363 = vmatpush1.bf16.msra.mxu0 %v19676_v50  ;;  %v19731_v23 = vcombine.high %v3359_v14, %v3363_v16  ;;  %v19733_v50 = vcombine.high %v3360_v17, %v3364_v18  ;;  %v19772_v18 = vcombine.low %v3400_v3, %v3404_v4 }
 0x720   : > { %6209 = vmatprep.subr.bf16.mxu1 %v19683_v19  ;;  %6373 = vmatprep.subr.bf16.mxu0 %v19685_v22  ;;  %v3372_v19 = vld [vmem:[%s25975_s13 + $0x9e8] sm:$0xff]  ;;  %v19730_v22 = vcombine.low %v3359_v14, %v3363_v16 }
 0x721   : > { %v19740_v40 = vcombine.low %v3368_v15, %v3372_v19  ;;  %v3408_v14 = vld [vmem:[%s25975_s13 + $0xb08] sm:$0xff] }
 0x722   : > { %6201 = vmatmul.mubr.bf16.vlgmr.msra.gmra.mrb[12].mxu1 %v26501_v24  ;;  %6365 = vmatmul.mubr.bf16.vlgmr.msra.gmra.mrb[16].mxu0 %v26501_v24  ;;  %v3412_v16 = vld [vmem:[%s25975_s13 + $0xb28] sm:$0xff] }
 0x723   : > { %6210 = vmatpush1.bf16.msra.mxu1 %v19682_v25  ;;  %6374 = vmatpush1.bf16.msra.mxu0 %v19684_v26  ;;  %v19739_v25 = vcombine.high %v3367_v7, %v3371_v34  ;;  %v19741_v26 = vcombine.high %v3368_v15, %v3372_v19  ;;  %v19780_v19 = vcombine.low %v3408_v14, %v3412_v16 }
 0x724   : > { %6211 = vmatprep.subr.bf16.mxu1 %v19691_v31  ;;  %6375 = vmatprep.subr.bf16.mxu0 %v19693_v37  ;;  %v3380_v31 = vld [vmem:[%s25975_s13 + $0xa28] sm:$0xff]  ;;  %v19738_v37 = vcombine.low %v3367_v7, %v3371_v34 }
 0x725   : > { %6241 = vmatprep.mubr.bf16.mxu1 %v26509_v48  ;;  %6405 = vmatprep.mubr.bf16.mxu0 %v26509_v48  ;;  %v19748_v47 = vcombine.low %v3376_v30, %v3380_v31  ;;  %v3416_v7 = vld [vmem:[%s25975_s13 + $0xb48] sm:$0xff] }
 0x726   : > { %v3420_v34 = vld [vmem:[%s25975_s13 + $0xb68] sm:$0xff] }
 0x727   : > { %6212 = vmatpush1.bf16.msra.mxu1 %v19690_v41  ;;  %6376 = vmatpush1.bf16.msra.mxu0 %v19692_v42  ;;  %v19747_v41 = vcombine.high %v3375_v27, %v3379_v29  ;;  %v19749_v42 = vcombine.high %v3376_v30, %v3380_v31  ;;  %v3424_v27 = vld [vmem:[%s25975_s13 + $0xb88] sm:$0xff]  ;;  %v19788_v31 = vcombine.low %v3416_v7, %v3420_v34 }
 0x728   : > { %6213 = vmatprep.subr.bf16.mxu1 %v19699_v43  ;;  %6377 = vmatprep.subr.bf16.mxu0 %v19701_v44  ;;  %v3383_v43 = vld [vmem:[%s25975_s13 + $0xa40] sm:$0xff]  ;;  %v3428_v29 = vld [vmem:[%s25975_s13 + $0xba8] sm:$0xff] }
 0x729   : > { %v3387_v44 = vld [vmem:[%s25975_s13 + $0xa60] sm:$0xff] }
 0x72a   : > { %v19754_v59 = vcombine.low %v3383_v43, %v3387_v44 }
 0x72b   : > { %6214 = vmatpush1.bf16.msra.mxu1 %v19698_v49  ;;  %6378 = vmatpush1.bf16.msra.mxu0 %v19700_v51  ;;  %v19755_v49 = vcombine.high %v3383_v43, %v3387_v44  ;;  %v19757_v51 = vcombine.high %v3384_v45, %v3388_v46  ;;  %v3432_v43 = vld [vmem:[%s25975_s13 + $0xbc8] sm:$0xff]  ;;  %v19796_v46 = vcombine.low %v3424_v27, %v3428_v29 }
 0x72c   : > { %6215 = vmatprep.subr.bf16.mxu1 %v19707_v54  ;;  %6379 = vmatprep.subr.bf16.mxu0 %v19709_v55  ;;  %v3391_v54 = vld [vmem:[%s25975_s13 + $0xa80] sm:$0xff]  ;;  %v3436_v44 = vld [vmem:[%s25975_s13 + $0xbe8] sm:$0xff] }
 0x72d   : > { %v3395_v55 = vld [vmem:[%s25975_s13 + $0xaa0] sm:$0xff] }
 0x72e   : > { %v19762_v5 = vcombine.low %v3391_v54, %v3395_v55 }
 0x72f   : > { %6216 = vmatpush1.bf16.msra.mxu1 %v19706_v62  ;;  %6380 = vmatpush1.bf16.msra.mxu0 %v19708_v63  ;;  %v19763_v62 = vcombine.high %v3391_v54, %v3395_v55  ;;  %v19765_v63 = vcombine.high %v3392_v56, %v3396_v57  ;;  %v3440_v54 = vld [vmem:[%s25975_s13 + $0xc08] sm:$0xff]  ;;  %v19804_v57 = vcombine.low %v3432_v43, %v3436_v44 }
 0x730   : > { %6217 = vmatprep.subr.bf16.mxu1 %v19715_v1  ;;  %6381 = vmatprep.subr.bf16.mxu0 %v19717_v2  ;;  %v3399_v1 = vld [vmem:[%s25975_s13 + $0xac0] sm:$0xff]  ;;  %v3444_v55 = vld [vmem:[%s25975_s13 + $0xc28] sm:$0xff] }
 0x731   : > { %v3403_v2 = vld [vmem:[%s25975_s13 + $0xae0] sm:$0xff] }
 0x732   : > { %v19770_v17 = vcombine.low %v3399_v1, %v3403_v2 }
 0x733   : > { %6218 = vmatpush1.bf16.msra.mxu1 %v19714_v8  ;;  %6382 = vmatpush1.bf16.msra.mxu0 %v19716_v9  ;;  %v19771_v8 = vcombine.high %v3399_v1, %v3403_v2  ;;  %v19773_v9 = vcombine.high %v3400_v3, %v3404_v4  ;;  %v3448_v1 = vld [vmem:[%s25975_s13 + $0xc48] sm:$0xff]  ;;  %v26577_v3 = vpack.c.bf16 %v26435_v10, %v26435_v10 }
 0x734   : > { %6219 = vmatprep.subr.bf16.mxu1 %v19723_v12  ;;  %6383 = vmatprep.subr.bf16.mxu0 %v19725_v13  ;;  %v3407_v12 = vld [vmem:[%s25975_s13 + $0xb00] sm:$0xff]  ;;  %v3452_v2 = vld [vmem:[%s25975_s13 + $0xc68] sm:$0xff]  ;;  %v26585_v10 = vpack.c.bf16 %v26460_v60, %v26460_v60 }
 0x735   : > { %v3411_v13 = vld [vmem:[%s25975_s13 + $0xb20] sm:$0xff]  ;;  %v3464_v60 = vld [vmem:[%s25975_s13 + $0xcc8] sm:$0xff] }
 0x736   : > { %v19778_v15 = vcombine.low %v3407_v12, %v3411_v13 }
 0x737   : > { %6220 = vmatpush1.bf16.msra.mxu1 %v19722_v20  ;;  %6384 = vmatpush1.bf16.msra.mxu0 %v19724_v21  ;;  %v19779_v20 = vcombine.high %v3407_v12, %v3411_v13  ;;  %v19781_v21 = vcombine.high %v3408_v14, %v3412_v16  ;;  %v3459_v12 = vld [vmem:[%s25975_s13 + $0xca0] sm:$0xff]  ;;  %v3456_v13 = vld [vmem:[%s25975_s13 + $0xc88] sm:$0xff] }
 0x738   : > { %6221 = vmatprep.subr.bf16.mxu1 %v19731_v23  ;;  %6385 = vmatprep.subr.bf16.mxu0 %v19733_v50  ;;  %v3415_v23 = vld [vmem:[%s25975_s13 + $0xb40] sm:$0xff]  ;;  %v3460_v14 = vld [vmem:[%s25975_s13 + $0xca8] sm:$0xff] }
 0x739   : > { %v3419_v50 = vld [vmem:[%s25975_s13 + $0xb60] sm:$0xff] }
 0x73a   : > { %v19786_v30 = vcombine.low %v3415_v23, %v3419_v50 }
 0x73b   : > { %6222 = vmatpush1.bf16.msra.mxu1 %v19730_v22  ;;  %6386 = vmatpush1.bf16.msra.mxu0 %v19732_v28  ;;  %v19787_v22 = vcombine.high %v3415_v23, %v3419_v50  ;;  %v19789_v28 = vcombine.high %v3416_v7, %v3420_v34  ;;  %v3467_v23 = vld [vmem:[%s25975_s13 + $0xce0] sm:$0xff]  ;;  %v3468_v50 = vld [vmem:[%s25975_s13 + $0xce8] sm:$0xff]  ;;  %v19828_v34 = vcombine.low %v3456_v13, %v3460_v14 }
 0x73c   : > { %6223 = vmatprep.subr.bf16.mxu1 %v19739_v25  ;;  %6387 = vmatprep.subr.bf16.mxu0 %v19741_v26  ;;  %v3423_v25 = vld [vmem:[%s25975_s13 + $0xb80] sm:$0xff] }
 0x73d   : > { %v3427_v26 = vld [vmem:[%s25975_s13 + $0xba0] sm:$0xff] }
 0x73e   : > { %v19794_v45 = vcombine.low %v3423_v25, %v3427_v26 }
 0x73f   : > { %6224 = vmatpush1.bf16.msra.mxu1 %v19738_v37  ;;  %6388 = vmatpush1.bf16.msra.mxu0 %v19740_v40  ;;  %v19795_v37 = vcombine.high %v3423_v25, %v3427_v26  ;;  %v19797_v40 = vcombine.high %v3424_v27, %v3428_v29  ;;  %v3472_v25 = vld [vmem:[%s25975_s13 + $0xd08] sm:$0xff]  ;;  %v19836_v29 = vcombine.low %v3464_v60, %v3468_v50 }
 0x740   : > { %6225 = vmatprep.subr.bf16.mxu1 %v19747_v41  ;;  %6389 = vmatprep.subr.bf16.mxu0 %v19749_v42  ;;  %v3431_v41 = vld [vmem:[%s25975_s13 + $0xbc0] sm:$0xff]  ;;  %v3476_v26 = vld [vmem:[%s25975_s13 + $0xd28] sm:$0xff] }
 0x741   : > { %v3435_v42 = vld [vmem:[%s25975_s13 + $0xbe0] sm:$0xff] }
 0x742   : > { %v19802_v56 = vcombine.low %v3431_v41, %v3435_v42 }
 0x743   : > { %6226 = vmatpush1.bf16.msra.mxu1 %v19746_v11  ;;  %6390 = vmatpush1.bf16.msra.mxu0 %v19748_v47  ;;  %v19803_v11 = vcombine.high %v3431_v41, %v3435_v42  ;;  %v19805_v47 = vcombine.high %v3432_v43, %v3436_v44  ;;  %v3480_v41 = vld [vmem:[%s25975_s13 + $0xd48] sm:$0xff]  ;;  %v19844_v44 = vcombine.low %v3472_v25, %v3476_v26 }
 0x744   : > { %6227 = vmatprep.subr.bf16.mxu1 %v19755_v49  ;;  %6391 = vmatprep.subr.bf16.mxu0 %v19757_v51  ;;  %v3439_v49 = vld [vmem:[%s25975_s13 + $0xc00] sm:$0xff]  ;;  %v3484_v42 = vld [vmem:[%s25975_s13 + $0xd68] sm:$0xff] }
 0x745   : > { %v3443_v51 = vld [vmem:[%s25975_s13 + $0xc20] sm:$0xff] }
 0x746   : > { %v19810_v4 = vcombine.low %v3439_v49, %v3443_v51 }
 0x747   : > { %6228 = vmatpush1.bf16.msra.mxu1 %v19754_v59  ;;  %6392 = vmatpush1.bf16.msra.mxu0 %v19756_v61  ;;  %v19811_v59 = vcombine.high %v3439_v49, %v3443_v51  ;;  %v19813_v61 = vcombine.high %v3440_v54, %v3444_v55  ;;  %v3488_v49 = vld [vmem:[%s25975_s13 + $0xd88] sm:$0xff] }
 0x748   : > { %6229 = vmatprep.subr.bf16.mxu1 %v19763_v62  ;;  %6393 = vmatprep.subr.bf16.mxu0 %v19765_v63  ;;  %v3447_v62 = vld [vmem:[%s25975_s13 + $0xc40] sm:$0xff]  ;;  %v3492_v51 = vld [vmem:[%s25975_s13 + $0xda8] sm:$0xff] }
 0x749   : > { %v3451_v63 = vld [vmem:[%s25975_s13 + $0xc60] sm:$0xff] }
 0x74a   : > { %v19818_v16 = vcombine.low %v3447_v62, %v3451_v63 }
 0x74b   : > { %6230 = vmatpush1.bf16.msra.mxu1 %v19762_v5  ;;  %6394 = vmatpush1.bf16.msra.mxu0 %v19764_v6  ;;  %v19812_v5 = vcombine.low %v3440_v54, %v3444_v55  ;;  %v19819_v6 = vcombine.high %v3447_v62, %v3451_v63  ;;  %v19852_v55 = vcombine.low %v3480_v41, %v3484_v42  ;;  %v3496_v62 = vld [vmem:[%s25975_s13 + $0xdc8] sm:$0xff] }
 0x74c   : > { %6231 = vmatprep.subr.bf16.mxu1 %v19771_v8  ;;  %6395 = vmatprep.subr.bf16.mxu0 %v19773_v9  ;;  %v19821_v8 = vcombine.high %v3448_v1, %v3452_v2  ;;  %v3455_v9 = vld [vmem:[%s25975_s13 + $0xc80] sm:$0xff]  ;;  %v3500_v63 = vld [vmem:[%s25975_s13 + $0xde8] sm:$0xff] }
 0x74d   : > { %v19826_v7 = vcombine.low %v3455_v9, %v3459_v12 }
 0x74f   : > { %6232 = vmatpush1.bf16.msra.mxu1 %v19770_v17  ;;  %6396 = vmatpush1.bf16.msra.mxu0 %v19772_v18  ;;  %v19820_v17 = vcombine.low %v3448_v1, %v3452_v2  ;;  %v3463_v18 = vld [vmem:[%s25975_s13 + $0xcc0] sm:$0xff]  ;;  %v19860_v2 = vcombine.low %v3488_v49, %v3492_v51 }
 0x750   : > { %6233 = vmatprep.subr.bf16.mxu1 %v19779_v20  ;;  %6397 = vmatprep.subr.bf16.mxu0 %v19781_v21  ;;  %v19827_v20 = vcombine.high %v3455_v9, %v3459_v12  ;;  %v19829_v21 = vcombine.high %v3456_v13, %v3460_v14  ;;  %v19834_v27 = vcombine.low %v3463_v18, %v3467_v23  ;;  %v3504_v9 = vld [vmem:[%s25975_s13 + $0xe08] sm:$0xff] }
 0x751   : > { %v3508_v12 = vld [vmem:[%s25975_s13 + $0xe28] sm:$0xff]  ;;  %v19868_v14 = vcombine.low %v3496_v62, %v3500_v63 }
 0x753   : > { %6234 = vmatpush1.bf16.msra.mxu1 %v19778_v15  ;;  %6398 = vmatpush1.bf16.msra.mxu0 %v19780_v19  ;;  %v19835_v15 = vcombine.high %v3463_v18, %v3467_v23  ;;  %v19837_v19 = vcombine.high %v3464_v60, %v3468_v50  ;;  %v3511_v18 = vld [vmem:[%s25975_s13 + $0xe40] sm:$0xff]  ;;  %v3516_v23 = vld [vmem:[%s25975_s13 + $0xe68] sm:$0xff]  ;;  %v19876_v50 = vcombine.low %v3504_v9, %v3508_v12 }
 0x754   : > { %6235 = vmatprep.subr.bf16.mxu1 %v19787_v22  ;;  %6399 = vmatprep.subr.bf16.mxu0 %v19789_v28  ;;  %v3471_v22 = vld [vmem:[%s25975_s13 + $0xd00] sm:$0xff] }
 0x755   : > { %v3475_v28 = vld [vmem:[%s25975_s13 + $0xd20] sm:$0xff] }
 0x756   : > { %v19842_v43 = vcombine.low %v3471_v22, %v3475_v28 }
 0x757   : > { %6236 = vmatpush1.bf16.msra.mxu1 %v19786_v30  ;;  %6400 = vmatpush1.bf16.msra.mxu0 %v19788_v31  ;;  %v19843_v30 = vcombine.high %v3471_v22, %v3475_v28  ;;  %v19845_v31 = vcombine.high %v3472_v25, %v3476_v26  ;;  %v3520_v22 = vld [vmem:[%s25975_s13 + $0xe88] sm:$0xff] }
 0x758   : > { %6237 = vmatprep.subr.bf16.mxu1 %v19795_v37  ;;  %6401 = vmatprep.subr.bf16.mxu0 %v19797_v40  ;;  %v3479_v37 = vld [vmem:[%s25975_s13 + $0xd40] sm:$0xff]  ;;  %v3524_v28 = vld [vmem:[%s25975_s13 + $0xea8] sm:$0xff] }
 0x759   : > { %v3483_v40 = vld [vmem:[%s25975_s13 + $0xd60] sm:$0xff] }
 0x75a   : > { %v19850_v54 = vcombine.low %v3479_v37, %v3483_v40 }
 0x75b   : > { %6238 = vmatpush1.bf16.msra.mxu1 %v19794_v45  ;;  %6402 = vmatpush1.bf16.msra.mxu0 %v19796_v46  ;;  %v19851_v45 = vcombine.high %v3479_v37, %v3483_v40  ;;  %v19853_v46 = vcombine.high %v3480_v41, %v3484_v42  ;;  %v3528_v37 = vld [vmem:[%s25975_s13 + $0xec8] sm:$0xff]  ;;  %v19892_v42 = vcombine.low %v3520_v22, %v3524_v28 }
 0x75c   : > { %6239 = vmatprep.subr.bf16.mxu1 %v19803_v11  ;;  %6403 = vmatprep.subr.bf16.mxu0 %v19805_v47  ;;  %v3487_v11 = vld [vmem:[%s25975_s13 + $0xd80] sm:$0xff]  ;;  %v3532_v40 = vld [vmem:[%s25975_s13 + $0xee8] sm:$0xff] }
 0x75d   : > { %v3491_v47 = vld [vmem:[%s25975_s13 + $0xda0] sm:$0xff] }
 0x75e   : > { %v19858_v1 = vcombine.low %v3487_v11, %v3491_v47 }
 0x75f   : > { %6240 = vmatpush1.bf16.msra.mxu1 %v19802_v56  ;;  %6404 = vmatpush1.bf16.msra.mxu0 %v19804_v57  ;;  %v19859_v56 = vcombine.high %v3487_v11, %v3491_v47  ;;  %v19861_v57 = vcombine.high %v3488_v49, %v3492_v51  ;;  %v3536_v11 = vld [vmem:[%s25975_s13 + $0xf08] sm:$0xff]  ;;  %v19900_v51 = vcombine.low %v3528_v37, %v3532_v40 }
 0x760   : > { %6250 = vmatprep.subr.bf16.mxu1 %v19811_v59  ;;  %6414 = vmatprep.subr.bf16.mxu0 %v19813_v61  ;;  %v3495_v59 = vld [vmem:[%s25975_s13 + $0xdc0] sm:$0xff]  ;;  %v3540_v47 = vld [vmem:[%s25975_s13 + $0xf28] sm:$0xff] }
 0x761   : > { %v3499_v61 = vld [vmem:[%s25975_s13 + $0xde0] sm:$0xff] }
 0x762   : > { %6242 = vmatmul.mubr.bf16.vlgmr.msra.gmra.mrb[12].mxu1 %v26577_v3  ;;  %6406 = vmatmul.mubr.bf16.vlgmr.msra.gmra.mrb[16].mxu0 %v26577_v3  ;;  %v19866_v13 = vcombine.low %v3495_v59, %v3499_v61 }
 0x763   : > { %6251 = vmatpush1.bf16.msra.mxu1 %v19810_v4  ;;  %6415 = vmatpush1.bf16.msra.mxu0 %v19812_v5  ;;  %v19867_v4 = vcombine.high %v3495_v59, %v3499_v61  ;;  %v19869_v5 = vcombine.high %v3496_v62, %v3500_v63  ;;  %v3544_v59 = vld [vmem:[%s25975_s13 + $0xf48] sm:$0xff]  ;;  %v19908_v63 = vcombine.low %v3536_v11, %v3540_v47 }
 0x764   : > { %6252 = vmatprep.subr.bf16.mxu1 %v19819_v6  ;;  %6416 = vmatprep.subr.bf16.mxu0 %v19821_v8  ;;  %v3503_v6 = vld [vmem:[%s25975_s13 + $0xe00] sm:$0xff]  ;;  %v3548_v61 = vld [vmem:[%s25975_s13 + $0xf68] sm:$0xff] }
 0x765   : > { %6282 = vmatprep.mubr.bf16.mxu1 %v26585_v10  ;;  %6446 = vmatprep.mubr.bf16.mxu0 %v26585_v10  ;;  %v3507_v8 = vld [vmem:[%s25975_s13 + $0xe20] sm:$0xff] }
 0x766   : > { %v19874_v60 = vcombine.low %v3503_v6, %v3507_v8 }
 0x767   : > { %6253 = vmatpush1.bf16.msra.mxu1 %v19818_v16  ;;  %6417 = vmatpush1.bf16.msra.mxu0 %v19820_v17  ;;  %v19875_v16 = vcombine.high %v3503_v6, %v3507_v8  ;;  %v19877_v17 = vcombine.high %v3504_v9, %v3508_v12  ;;  %v3552_v6 = vld [vmem:[%s25975_s13 + $0xf88] sm:$0xff]  ;;  %v19916_v12 = vcombine.low %v3544_v59, %v3548_v61 }
 0x768   : > { %6254 = vmatprep.subr.bf16.mxu1 %v19827_v20  ;;  %6418 = vmatprep.subr.bf16.mxu0 %v19829_v21  ;;  %v3515_v20 = vld [vmem:[%s25975_s13 + $0xe60] sm:$0xff]  ;;  %v3512_v21 = vld [vmem:[%s25975_s13 + $0xe48] sm:$0xff] }
 0x769   : > { %v19882_v25 = vcombine.low %v3511_v18, %v3515_v20  ;;  %v19884_v26 = vcombine.low %v3512_v21, %v3516_v23  ;;  %v3556_v8 = vld [vmem:[%s25975_s13 + $0xfa8] sm:$0xff] }
 0x76b   : > { %6255 = vmatpush1.bf16.msra.mxu1 %v19826_v7  ;;  %6419 = vmatpush1.bf16.msra.mxu0 %v19828_v34  ;;  %v19883_v7 = vcombine.high %v3511_v18, %v3515_v20  ;;  %v19885_v34 = vcombine.high %v3512_v21, %v3516_v23  ;;  %v3560_v18 = vld [vmem:[%s25975_s13 + $0xfc8] sm:$0xff]  ;;  %v19924_v23 = vcombine.low %v3552_v6, %v3556_v8 }
 0x76c   : > { %6256 = vmatprep.subr.bf16.mxu1 %v19835_v15  ;;  %6420 = vmatprep.subr.bf16.mxu0 %v19837_v19  ;;  %v3519_v15 = vld [vmem:[%s25975_s13 + $0xe80] sm:$0xff]  ;;  %v3564_v20 = vld [vmem:[%s25975_s13 + $0xfe8] sm:$0xff] }
 0x76d   : > { %v3523_v19 = vld [vmem:[%s25975_s13 + $0xea0] sm:$0xff] }
 0x76e   : > { %v19890_v41 = vcombine.low %v3519_v15, %v3523_v19 }
 0x76f   : > { %6257 = vmatpush1.bf16.msra.mxu1 %v19834_v27  ;;  %6421 = vmatpush1.bf16.msra.mxu0 %v19836_v29  ;;  %v19891_v27 = vcombine.high %v3519_v15, %v3523_v19  ;;  %v19893_v29 = vcombine.high %v3520_v22, %v3524_v28  ;;  %v3058_v15 = vld [vmem:[%s25975_s13 + $0x18] sm:$0xff]  ;;  %v19932_v28 = vcombine.low %v3560_v18, %v3564_v20 }
 0x770   : > { %6258 = vmatprep.subr.bf16.mxu1 %v19843_v30  ;;  %6422 = vmatprep.subr.bf16.mxu0 %v19845_v31  ;;  %v3527_v30 = vld [vmem:[%s25975_s13 + $0xec0] sm:$0xff]  ;;  %v3062_v19 = vld [vmem:[%s25975_s13 + $0x38] sm:$0xff] }
 0x771   : > { %v3531_v31 = vld [vmem:[%s25975_s13 + $0xee0] sm:$0xff] }
 0x772   : > { %v19898_v49 = vcombine.low %v3527_v30, %v3531_v31 }
 0x773   : > { %6259 = vmatpush1.bf16.msra.mxu1 %v19842_v43  ;;  %6423 = vmatpush1.bf16.msra.mxu0 %v19844_v44  ;;  %v19899_v43 = vcombine.high %v3527_v30, %v3531_v31  ;;  %v19901_v44 = vcombine.high %v3528_v37, %v3532_v40  ;;  %v3066_v30 = vld [vmem:[%s25975_s13 + $0x58] sm:$0xff]  ;;  %v26653_v40 = vpack.c.bf16 %v26455_v53, %v26455_v53 }
 0x774   : > { %6260 = vmatprep.subr.bf16.mxu1 %v19851_v45  ;;  %6424 = vmatprep.subr.bf16.mxu0 %v19853_v46  ;;  %v3535_v45 = vld [vmem:[%s25975_s13 + $0xf00] sm:$0xff]  ;;  %v3070_v31 = vld [vmem:[%s25975_s13 + $0x78] sm:$0xff] }
 0x775   : > { %v3539_v46 = vld [vmem:[%s25975_s13 + $0xf20] sm:$0xff] }
 0x776   : > { %v19906_v62 = vcombine.low %v3535_v45, %v3539_v46 }
 0x777   : > { %6261 = vmatpush1.bf16.msra.mxu1 %v19850_v54  ;;  %6425 = vmatpush1.bf16.msra.mxu0 %v19852_v55  ;;  %v19907_v54 = vcombine.high %v3535_v45, %v3539_v46  ;;  %v19909_v55 = vcombine.high %v3536_v11, %v3540_v47  ;;  %v3077_v45 = vld [vmem:[%s25975_s13 + $0xb0] sm:$0xff]  ;;  %v3074_v46 = vld [vmem:[%s25975_s13 + $0x98] sm:$0xff]  ;;  %v19440_v47 = vcombine.low %v3066_v30, %v3070_v31 }
 0x778   : > { %6262 = vmatprep.subr.bf16.mxu1 %v19859_v56  ;;  %6426 = vmatprep.subr.bf16.mxu0 %v19861_v57  ;;  %v3543_v56 = vld [vmem:[%s25975_s13 + $0xf40] sm:$0xff]  ;;  %v3078_v11 = vld [vmem:[%s25975_s13 + $0xb8] sm:$0xff] }
 0x779   : > { %v3547_v57 = vld [vmem:[%s25975_s13 + $0xf60] sm:$0xff] }
 0x77a   : > { %v19914_v9 = vcombine.low %v3543_v56, %v3547_v57 }
 0x77b   : > { %6263 = vmatpush1.bf16.msra.mxu1 %v19858_v1  ;;  %6427 = vmatpush1.bf16.msra.mxu0 %v19860_v2  ;;  %v19915_v1 = vcombine.high %v3543_v56, %v3547_v57  ;;  %v19917_v2 = vcombine.high %v3544_v59, %v3548_v61  ;;  %v3082_v56 = vld [vmem:[%s25975_s13 + $0xd8] sm:$0xff] }
 0x77c   : > { %6264 = vmatprep.subr.bf16.mxu1 %v19867_v4  ;;  %6428 = vmatprep.subr.bf16.mxu0 %v19869_v5  ;;  %v3551_v4 = vld [vmem:[%s25975_s13 + $0xf80] sm:$0xff]  ;;  %v3086_v57 = vld [vmem:[%s25975_s13 + $0xf8] sm:$0xff] }
 0x77d   : > { %v3555_v5 = vld [vmem:[%s25975_s13 + $0xfa0] sm:$0xff] }
 0x77e   : > { %v19922_v21 = vcombine.low %v3551_v4, %v3555_v5 }
 0x77f   : > { %6265 = vmatpush1.bf16.msra.mxu1 %v19866_v13  ;;  %6429 = vmatpush1.bf16.msra.mxu0 %v19868_v14  ;;  %v19923_v13 = vcombine.high %v3551_v4, %v3555_v5  ;;  %v19925_v14 = vcombine.high %v3552_v6, %v3556_v8  ;;  %v3094_v4 = vld [vmem:[%s25975_s13 + $0x138] sm:$0xff]  ;;  %v19456_v6 = vcombine.low %v3082_v56, %v3086_v57 }
 0x780   : > { %6266 = vmatprep.subr.bf16.mxu1 %v19875_v16  ;;  %6430 = vmatprep.subr.bf16.mxu0 %v19877_v17  ;;  %v3559_v16 = vld [vmem:[%s25975_s13 + $0xfc0] sm:$0xff] }
 0x781   : > { %v3563_v17 = vld [vmem:[%s25975_s13 + $0xfe0] sm:$0xff] }
 0x782   : > { %v19930_v22 = vcombine.low %v3559_v16, %v3563_v17 }
 0x783   : > { %6267 = vmatpush1.bf16.msra.mxu1 %v19874_v60  ;;  %6431 = vmatpush1.bf16.msra.mxu0 %v19876_v50  ;;  %v19931_v60 = vcombine.high %v3559_v16, %v3563_v17  ;;  %v19933_v50 = vcombine.high %v3560_v18, %v3564_v20  ;;  %v3102_v16 = vld [vmem:[%s25975_s13 + $0x178] sm:$0xff] }
 0x784   : > { %6268 = vmatprep.subr.bf16.mxu1 %v19883_v7  ;;  %6432 = vmatprep.subr.bf16.mxu0 %v19885_v34  ;;  %v3057_v7 = vld [vmem:[%s25975_s13 + $0x10] sm:$0xff] }
 0x785   : > { %v3061_v34 = vld [vmem:[%s25975_s13 + $0x30] sm:$0xff] }
 0x786   : > { %v19430_v37 = vcombine.low %v3057_v7, %v3061_v34 }
 0x787   : > { %6269 = vmatpush1.bf16.msra.mxu1 %v19882_v25  ;;  %6433 = vmatpush1.bf16.msra.mxu0 %v19884_v26  ;;  %v19431_v25 = vcombine.high %v3057_v7, %v3061_v34  ;;  %v19433_v26 = vcombine.high %v3058_v15, %v3062_v19  ;;  %v3110_v7 = vld [vmem:[%s25975_s13 + $0x1b8] sm:$0xff] }
 0x788   : > { %6270 = vmatprep.subr.bf16.mxu1 %v19891_v27  ;;  %6434 = vmatprep.subr.bf16.mxu0 %v19893_v29  ;;  %v3065_v27 = vld [vmem:[%s25975_s13 + $0x50] sm:$0xff] }
 0x789   : > { %v3069_v29 = vld [vmem:[%s25975_s13 + $0x70] sm:$0xff] }
 0x78a   : > { %v19438_v53 = vcombine.low %v3065_v27, %v3069_v29 }
 0x78b   : > { %6271 = vmatpush1.bf16.msra.mxu1 %v19890_v41  ;;  %6435 = vmatpush1.bf16.msra.mxu0 %v19892_v42  ;;  %v19432_v41 = vcombine.low %v3058_v15, %v3062_v19  ;;  %v19439_v42 = vcombine.high %v3065_v27, %v3069_v29  ;;  %v3118_v27 = vld [vmem:[%s25975_s13 + $0x1f8] sm:$0xff] }
 0x78c   : > { %6272 = vmatprep.subr.bf16.mxu1 %v19899_v43  ;;  %6436 = vmatprep.subr.bf16.mxu0 %v19901_v44  ;;  %v19441_v43 = vcombine.high %v3066_v30, %v3070_v31  ;;  %v3073_v44 = vld [vmem:[%s25975_s13 + $0x90] sm:$0xff] }
 0x78d   : > { %v19446_v59 = vcombine.low %v3073_v44, %v3077_v45 }
 0x78f   : > { %6273 = vmatpush1.bf16.msra.mxu1 %v19898_v49  ;;  %6437 = vmatpush1.bf16.msra.mxu0 %v19900_v51  ;;  %v19447_v49 = vcombine.high %v3073_v44, %v3077_v45  ;;  %v19449_v51 = vcombine.high %v3074_v46, %v3078_v11  ;;  %v3126_v44 = vld [vmem:[%s25975_s13 + $0x238] sm:$0xff] }
 0x790   : > { %6274 = vmatprep.subr.bf16.mxu1 %v19907_v54  ;;  %6438 = vmatprep.subr.bf16.mxu0 %v19909_v55  ;;  %v3081_v54 = vld [vmem:[%s25975_s13 + $0xd0] sm:$0xff] }
 0x791   : > { %v3085_v55 = vld [vmem:[%s25975_s13 + $0xf0] sm:$0xff] }
 0x792   : > { %v19455_v61 = vcombine.high %v3081_v54, %v3085_v55  ;;  %v19454_v5 = vcombine.low %v3081_v54, %v3085_v55  ;;  %v3134_v54 = vld [vmem:[%s25975_s13 + $0x278] sm:$0xff] }
 0x793   : > { %6275 = vmatpush1.bf16.msra.mxu1 %v19906_v62  ;;  %6439 = vmatpush1.bf16.msra.mxu0 %v19908_v63  ;;  %v3089_v62 = vld [vmem:[%s25975_s13 + $0x110] sm:$0xff] }
 0x794   : > { %6276 = vmatprep.subr.bf16.mxu1 %v19915_v1  ;;  %6440 = vmatprep.subr.bf16.mxu0 %v19917_v2  ;;  %v3093_v63 = vld [vmem:[%s25975_s13 + $0x130] sm:$0xff]  ;;  %v3090_v1 = vld [vmem:[%s25975_s13 + $0x118] sm:$0xff]  ;;  %v19457_v2 = vcombine.high %v3082_v56, %v3086_v57 }
 0x795   : > { %v19463_v8 = vcombine.high %v3089_v62, %v3093_v63  ;;  %v19462_v17 = vcombine.low %v3089_v62, %v3093_v63  ;;  %v19464_v18 = vcombine.low %v3090_v1, %v3094_v4  ;;  %v3142_v63 = vld [vmem:[%s25975_s13 + $0x2b8] sm:$0xff] }
 0x797   : > { %6277 = vmatpush1.bf16.msra.mxu1 %v19914_v9  ;;  %6441 = vmatpush1.bf16.msra.mxu0 %v19916_v12  ;;  %v3097_v9 = vld [vmem:[%s25975_s13 + $0x150] sm:$0xff] }
 0x798   : > { %6278 = vmatprep.subr.bf16.mxu1 %v19923_v13  ;;  %6442 = vmatprep.subr.bf16.mxu0 %v19925_v14  ;;  %v3101_v12 = vld [vmem:[%s25975_s13 + $0x170] sm:$0xff]  ;;  %v3098_v13 = vld [vmem:[%s25975_s13 + $0x158] sm:$0xff]  ;;  %v19465_v14 = vcombine.high %v3090_v1, %v3094_v4 }
 0x799   : > { %v19471_v20 = vcombine.high %v3097_v9, %v3101_v12  ;;  %v19470_v34 = vcombine.low %v3097_v9, %v3101_v12  ;;  %v19472_v15 = vcombine.low %v3098_v13, %v3102_v16  ;;  %v3150_v12 = vld [vmem:[%s25975_s13 + $0x2f8] sm:$0xff] }
 0x79b   : > { %6279 = vmatpush1.bf16.msra.mxu1 %v19922_v21  ;;  %6443 = vmatpush1.bf16.msra.mxu0 %v19924_v23  ;;  %v3105_v21 = vld [vmem:[%s25975_s13 + $0x190] sm:$0xff] }
 0x79c   : > { %6280 = vmatprep.subr.bf16.mxu1 %v19931_v60  ;;  %6444 = vmatprep.subr.bf16.mxu0 %v19933_v50  ;;  %v3109_v23 = vld [vmem:[%s25975_s13 + $0x1b0] sm:$0xff]  ;;  %v3106_v60 = vld [vmem:[%s25975_s13 + $0x198] sm:$0xff]  ;;  %v19473_v50 = vcombine.high %v3098_v13, %v3102_v16 }
 0x79d   : > { %v19479_v19 = vcombine.high %v3105_v21, %v3109_v23  ;;  %v19478_v29 = vcombine.low %v3105_v21, %v3109_v23  ;;  %v19480_v30 = vcombine.low %v3106_v60, %v3110_v7  ;;  %v3158_v23 = vld [vmem:[%s25975_s13 + $0x338] sm:$0xff] }
 0x79f   : > { %6281 = vmatpush1.bf16.msra.mxu1 %v19930_v22  ;;  %6445 = vmatpush1.bf16.msra.mxu0 %v19932_v28  ;;  %v3113_v22 = vld [vmem:[%s25975_s13 + $0x1d0] sm:$0xff] }
 0x7a0   : > { %6455 = vmatprep.subr.bf16.mxu1 %v19431_v25  ;;  %6619 = vmatprep.subr.bf16.mxu0 %v19433_v26  ;;  %v3117_v28 = vld [vmem:[%s25975_s13 + $0x1f0] sm:$0xff]  ;;  %v3114_v25 = vld [vmem:[%s25975_s13 + $0x1d8] sm:$0xff]  ;;  %v19481_v26 = vcombine.high %v3106_v60, %v3110_v7 }
 0x7a1   : > { %v19487_v31 = vcombine.high %v3113_v22, %v3117_v28  ;;  %v19486_v45 = vcombine.low %v3113_v22, %v3117_v28  ;;  %v3166_v28 = vld [vmem:[%s25975_s13 + $0x378] sm:$0xff] }
 0x7a2   : > { %6283 = vmatmul.mubr.bf16.vlgmr.msra.gmra.mrb[12].mxu1 %v26653_v40  ;;  %6447 = vmatmul.mubr.bf16.vlgmr.msra.gmra.mrb[16].mxu0 %v26653_v40 }
 0x7a3   : > { %6456 = vmatpush1.bf16.msra.mxu1 %v19430_v37  ;;  %6487 = vmatprep.mubr.bf16.mxu1 %v26415_v52  ;;  %v3121_v37 = vld [vmem:[%s25975_s13 + $0x210] sm:$0xff] }
 0x7a4   : > { %6620 = vmatpush1.bf16.msra.mxu0 %v19432_v41  ;;  %6651 = vmatprep.mubr.bf16.mxu0 %v26415_v52  ;;  %v19448_v52 = vcombine.low %v3074_v46, %v3078_v11  ;;  %v3125_v41 = vld [vmem:[%s25975_s13 + $0x230] sm:$0xff]  ;;  %v19488_v46 = vcombine.low %v3114_v25, %v3118_v27 }
 0x7a5   : > { %6457 = vmatprep.subr.bf16.mxu1 %v19439_v42  ;;  %6621 = vmatprep.subr.bf16.mxu0 %v19441_v43  ;;  %v3122_v42 = vld [vmem:[%s25975_s13 + $0x218] sm:$0xff]  ;;  %v19489_v43 = vcombine.high %v3114_v25, %v3118_v27  ;;  %v19495_v11 = vcombine.high %v3121_v37, %v3125_v41  ;;  %v19494_v55 = vcombine.low %v3121_v37, %v3125_v41 }
 0x7a6   : > { %v19496_v56 = vcombine.low %v3122_v42, %v3126_v44  ;;  %v3174_v41 = vld [vmem:[%s25975_s13 + $0x3b8] sm:$0xff] }
 0x7a7   : > { %6458 = vmatpush1.bf16.msra.mxu1 %v19438_v53  ;;  %v3129_v53 = vld [vmem:[%s25975_s13 + $0x250] sm:$0xff] }
 0x7a8   : > { %6622 = vmatpush1.bf16.msra.mxu0 %v19440_v47  ;;  %6459 = vmatprep.subr.bf16.mxu1 %v19447_v49  ;;  %v3133_v47 = vld [vmem:[%s25975_s13 + $0x270] sm:$0xff]  ;;  %v3130_v49 = vld [vmem:[%s25975_s13 + $0x258] sm:$0xff] }
 0x7a9   : > { %6623 = vmatprep.subr.bf16.mxu0 %v19449_v51  ;;  %v19497_v51 = vcombine.high %v3122_v42, %v3126_v44  ;;  %v19503_v57 = vcombine.high %v3129_v53, %v3133_v47  ;;  %v19505_v62 = vcombine.high %v3130_v49, %v3134_v54  ;;  %v19502_v1 = vcombine.low %v3129_v53, %v3133_v47  ;;  %v3182_v47 = vld [vmem:[%s25975_s13 + $0x3f8] sm:$0xff] }
 0x7ab   : > { %6460 = vmatpush1.bf16.msra.mxu1 %v19446_v59  ;;  %v3137_v59 = vld [vmem:[%s25975_s13 + $0x290] sm:$0xff] }
 0x7ac   : > { %6624 = vmatpush1.bf16.msra.mxu0 %v19448_v52  ;;  %6461 = vmatprep.subr.bf16.mxu1 %v19455_v61  ;;  %v3141_v52 = vld [vmem:[%s25975_s13 + $0x2b0] sm:$0xff]  ;;  %v3138_v61 = vld [vmem:[%s25975_s13 + $0x298] sm:$0xff] }
 0x7ad   : > { %6625 = vmatprep.subr.bf16.mxu0 %v19457_v2  ;;  %v19504_v2 = vcombine.low %v3130_v49, %v3134_v54  ;;  %v19511_v4 = vcombine.high %v3137_v59, %v3141_v52  ;;  %v19513_v9 = vcombine.high %v3138_v61, %v3142_v63  ;;  %v19510_v13 = vcombine.low %v3137_v59, %v3141_v52  ;;  %v3190_v52 = vld [vmem:[%s25975_s13 + $0x438] sm:$0xff] }
 0x7af   : > { %6462 = vmatpush1.bf16.msra.mxu1 %v19454_v5  ;;  %v3145_v5 = vld [vmem:[%s25975_s13 + $0x2d0] sm:$0xff] }
 0x7b0   : > { %6626 = vmatpush1.bf16.msra.mxu0 %v19456_v6  ;;  %6463 = vmatprep.subr.bf16.mxu1 %v19463_v8  ;;  %v3149_v6 = vld [vmem:[%s25975_s13 + $0x2f0] sm:$0xff]  ;;  %v3146_v8 = vld [vmem:[%s25975_s13 + $0x2d8] sm:$0xff] }
 0x7b1   : > { %6627 = vmatprep.subr.bf16.mxu0 %v19465_v14  ;;  %v19512_v14 = vcombine.low %v3138_v61, %v3142_v63  ;;  %v19519_v16 = vcombine.high %v3145_v5, %v3149_v6  ;;  %v19521_v21 = vcombine.high %v3146_v8, %v3150_v12  ;;  %v19518_v60 = vcombine.low %v3145_v5, %v3149_v6  ;;  %v3194_v5 = vld [vmem:[%s25975_s13 + $0x458] sm:$0xff] }
 0x7b2   : > { %v3198_v6 = vld [vmem:[%s25975_s13 + $0x478] sm:$0xff] }
 0x7b3   : > { %6464 = vmatpush1.bf16.msra.mxu1 %v19462_v17  ;;  %v3153_v17 = vld [vmem:[%s25975_s13 + $0x310] sm:$0xff] }
 0x7b4   : > { %6628 = vmatpush1.bf16.msra.mxu0 %v19464_v18  ;;  %6465 = vmatprep.subr.bf16.mxu1 %v19471_v20  ;;  %v3157_v18 = vld [vmem:[%s25975_s13 + $0x330] sm:$0xff]  ;;  %v3154_v20 = vld [vmem:[%s25975_s13 + $0x318] sm:$0xff] }
 0x7b5   : > { %6629 = vmatprep.subr.bf16.mxu0 %v19473_v50  ;;  %v19520_v50 = vcombine.low %v3146_v8, %v3150_v12  ;;  %v19527_v7 = vcombine.high %v3153_v17, %v3157_v18  ;;  %v19529_v22 = vcombine.high %v3154_v20, %v3158_v23  ;;  %v19526_v25 = vcombine.low %v3153_v17, %v3157_v18  ;;  %v3206_v18 = vld [vmem:[%s25975_s13 + $0x4b8] sm:$0xff] }
 0x7b6   : > { %v19569_v17 = vcombine.high %v3194_v5, %v3198_v6 }
 0x7b7   : > { %6466 = vmatpush1.bf16.msra.mxu1 %v19470_v34  ;;  %v3161_v34 = vld [vmem:[%s25975_s13 + $0x350] sm:$0xff] }
 0x7b8   : > { %6630 = vmatpush1.bf16.msra.mxu0 %v19472_v15  ;;  %6467 = vmatprep.subr.bf16.mxu1 %v19479_v19  ;;  %v3165_v15 = vld [vmem:[%s25975_s13 + $0x370] sm:$0xff]  ;;  %v3162_v19 = vld [vmem:[%s25975_s13 + $0x358] sm:$0xff] }
 0x7b9   : > { %6631 = vmatprep.subr.bf16.mxu0 %v19481_v26  ;;  %v19528_v26 = vcombine.low %v3154_v20, %v3158_v23  ;;  %v19535_v27 = vcombine.high %v3161_v34, %v3165_v15  ;;  %v19537_v37 = vcombine.high %v3162_v19, %v3166_v28  ;;  %v19534_v42 = vcombine.low %v3161_v34, %v3165_v15  ;;  %v3210_v34 = vld [vmem:[%s25975_s13 + $0x4d8] sm:$0xff] }
 0x7bb   : > { %6468 = vmatpush1.bf16.msra.mxu1 %v19478_v29  ;;  %v3169_v29 = vld [vmem:[%s25975_s13 + $0x390] sm:$0xff] }
 0x7bc   : > { %6632 = vmatpush1.bf16.msra.mxu0 %v19480_v30  ;;  %6469 = vmatprep.subr.bf16.mxu1 %v19487_v31  ;;  %v3173_v30 = vld [vmem:[%s25975_s13 + $0x3b0] sm:$0xff]  ;;  %v3170_v31 = vld [vmem:[%s25975_s13 + $0x398] sm:$0xff] }
 0x7bd   : > { %6633 = vmatprep.subr.bf16.mxu0 %v19489_v43  ;;  %v19536_v43 = vcombine.low %v3162_v19, %v3166_v28  ;;  %v19543_v44 = vcombine.high %v3169_v29, %v3173_v30  ;;  %v19545_v53 = vcombine.high %v3170_v31, %v3174_v41  ;;  %v19542_v49 = vcombine.low %v3169_v29, %v3173_v30  ;;  %v3217_v28 = vld [vmem:[%s25975_s13 + $0x510] sm:$0xff] }
 0x7bf   : > { %6470 = vmatpush1.bf16.msra.mxu1 %v19486_v45  ;;  %v3177_v45 = vld [vmem:[%s25975_s13 + $0x3d0] sm:$0xff] }
 0x7c0   : > { %6634 = vmatpush1.bf16.msra.mxu0 %v19488_v46  ;;  %6471 = vmatprep.subr.bf16.mxu1 %v19495_v11  ;;  %v3181_v46 = vld [vmem:[%s25975_s13 + $0x3f0] sm:$0xff]  ;;  %v3178_v11 = vld [vmem:[%s25975_s13 + $0x3d8] sm:$0xff] }
 0x7c1   : > { %6635 = vmatprep.subr.bf16.mxu0 %v19497_v51  ;;  %v19544_v51 = vcombine.low %v3170_v31, %v3174_v41  ;;  %v19551_v54 = vcombine.high %v3177_v45, %v3181_v46  ;;  %v19553_v59 = vcombine.high %v3178_v11, %v3182_v47  ;;  %v19550_v61 = vcombine.low %v3177_v45, %v3181_v46  ;;  %v3229_v41 = vld [vmem:[%s25975_s13 + $0x570] sm:$0xff] }
 0x7c3   : > { %6472 = vmatpush1.bf16.msra.mxu1 %v19494_v55  ;;  %v3185_v55 = vld [vmem:[%s25975_s13 + $0x410] sm:$0xff] }
 0x7c4   : > { %6636 = vmatpush1.bf16.msra.mxu0 %v19496_v56  ;;  %6473 = vmatprep.subr.bf16.mxu1 %v19503_v57  ;;  %v3189_v56 = vld [vmem:[%s25975_s13 + $0x430] sm:$0xff]  ;;  %v3186_v57 = vld [vmem:[%s25975_s13 + $0x418] sm:$0xff] }
 0x7c5   : > { %6637 = vmatprep.subr.bf16.mxu0 %v19505_v62  ;;  %v19552_v62 = vcombine.low %v3178_v11, %v3182_v47  ;;  %v19559_v63 = vcombine.high %v3185_v55, %v3189_v56  ;;  %v19558_v8 = vcombine.low %v3185_v55, %v3189_v56  ;;  %v3237_v47 = vld [vmem:[%s25975_s13 + $0x5b0] sm:$0xff] }
 0x7c7   : > { %6474 = vmatpush1.bf16.msra.mxu1 %v19502_v1  ;;  %v3193_v1 = vld [vmem:[%s25975_s13 + $0x450] sm:$0xff] }
 0x7c8   : > { %6638 = vmatpush1.bf16.msra.mxu0 %v19504_v2  ;;  %6475 = vmatprep.subr.bf16.mxu1 %v19511_v4  ;;  %v3197_v2 = vld [vmem:[%s25975_s13 + $0x470] sm:$0xff]  ;;  %v19561_v4 = vcombine.high %v3186_v57, %v3190_v52 }
 0x7c9   : > { %6639 = vmatprep.subr.bf16.mxu0 %v19513_v9  ;;  %v19560_v9 = vcombine.low %v3186_v57, %v3190_v52  ;;  %v19567_v12 = vcombine.high %v3193_v1, %v3197_v2  ;;  %v19566_v20 = vcombine.low %v3193_v1, %v3197_v2  ;;  %v3241_v52 = vld [vmem:[%s25975_s13 + $0x5d0] sm:$0xff] }
 0x7cb   : > { %6476 = vmatpush1.bf16.msra.mxu1 %v19510_v13  ;;  %v3201_v13 = vld [vmem:[%s25975_s13 + $0x490] sm:$0xff] }
 0x7cc   : > { %6640 = vmatpush1.bf16.msra.mxu0 %v19512_v14  ;;  %6477 = vmatprep.subr.bf16.mxu1 %v19519_v16  ;;  %v3205_v14 = vld [vmem:[%s25975_s13 + $0x4b0] sm:$0xff]  ;;  %v3202_v16 = vld [vmem:[%s25975_s13 + $0x498] sm:$0xff] }
 0x7cd   : > { %6641 = vmatprep.subr.bf16.mxu0 %v19521_v21  ;;  %v19568_v21 = vcombine.low %v3194_v5, %v3198_v6  ;;  %v19575_v23 = vcombine.high %v3201_v13, %v3205_v14  ;;  %v19574_v15 = vcombine.low %v3201_v13, %v3205_v14  ;;  %v19576_v19 = vcombine.low %v3202_v16, %v3206_v18  ;;  %v3249_v6 = vld [vmem:[%s25975_s13 + $0x610] sm:$0xff] }
 0x7cf   : > { %6478 = vmatpush1.bf16.msra.mxu1 %v19518_v60  ;;  %v19577_v60 = vcombine.high %v3202_v16, %v3206_v18  ;;  %v3261_v18 = vld [vmem:[%s25975_s13 + $0x670] sm:$0xff] }
 0x7d0   : > { %6642 = vmatpush1.bf16.msra.mxu0 %v19520_v50  ;;  %6479 = vmatprep.subr.bf16.mxu1 %v19527_v7  ;;  %v3209_v50 = vld [vmem:[%s25975_s13 + $0x4d0] sm:$0xff] }
 0x7d1   : > { %6643 = vmatprep.subr.bf16.mxu0 %v19529_v22  ;;  %v3213_v7 = vld [vmem:[%s25975_s13 + $0x4f0] sm:$0xff] }
 0x7d2   : > { %v19583_v22 = vcombine.high %v3209_v50, %v3213_v7  ;;  %v19582_v29 = vcombine.low %v3209_v50, %v3213_v7 }
 0x7d3   : > { %6480 = vmatpush1.bf16.msra.mxu1 %v19526_v25  ;;  %v3218_v25 = vld [vmem:[%s25975_s13 + $0x518] sm:$0xff] }
 0x7d4   : > { %6644 = vmatpush1.bf16.msra.mxu0 %v19528_v26  ;;  %6481 = vmatprep.subr.bf16.mxu1 %v19535_v27  ;;  %v3222_v27 = vld [vmem:[%s25975_s13 + $0x538] sm:$0xff] }
 0x7d5   : > { %6645 = vmatprep.subr.bf16.mxu0 %v19537_v37  ;;  %v3225_v37 = vld [vmem:[%s25975_s13 + $0x550] sm:$0xff]  ;;  %v19592_v46 = vcombine.low %v3218_v25, %v3222_v27 }
 0x7d6   : > { %v19599_v11 = vcombine.high %v3225_v37, %v3229_v41  ;;  %v19598_v55 = vcombine.low %v3225_v37, %v3229_v41 }
 0x7d7   : > { %6482 = vmatpush1.bf16.msra.mxu1 %v19534_v42  ;;  %v3226_v42 = vld [vmem:[%s25975_s13 + $0x558] sm:$0xff] }
 0x7d8   : > { %6646 = vmatpush1.bf16.msra.mxu0 %v19536_v43  ;;  %6483 = vmatprep.subr.bf16.mxu1 %v19543_v44  ;;  %v19593_v43 = vcombine.high %v3218_v25, %v3222_v27  ;;  %v3230_v44 = vld [vmem:[%s25975_s13 + $0x578] sm:$0xff]  ;;  %v3277_v27 = vld [vmem:[%s25975_s13 + $0x6f0] sm:$0xff] }
 0x7d9   : > { %6647 = vmatprep.subr.bf16.mxu0 %v19545_v53  ;;  %v3233_v53 = vld [vmem:[%s25975_s13 + $0x590] sm:$0xff]  ;;  %v19600_v56 = vcombine.low %v3226_v42, %v3230_v44 }
 0x7da   : > { %v19607_v57 = vcombine.high %v3233_v53, %v3237_v47  ;;  %v19606_v1 = vcombine.low %v3233_v53, %v3237_v47 }
 0x7db   : > { %6484 = vmatpush1.bf16.msra.mxu1 %v19542_v49  ;;  %v3234_v49 = vld [vmem:[%s25975_s13 + $0x598] sm:$0xff] }
 0x7dc   : > { %6648 = vmatpush1.bf16.msra.mxu0 %v19544_v51  ;;  %6485 = vmatprep.subr.bf16.mxu1 %v19551_v54  ;;  %v19601_v51 = vcombine.high %v3226_v42, %v3230_v44  ;;  %v3238_v54 = vld [vmem:[%s25975_s13 + $0x5b8] sm:$0xff]  ;;  %v3285_v44 = vld [vmem:[%s25975_s13 + $0x730] sm:$0xff] }
 0x7dd   : > { %6649 = vmatprep.subr.bf16.mxu0 %v19553_v59  ;;  %v19609_v59 = vcombine.high %v3234_v49, %v3238_v54  ;;  %v19608_v2 = vcombine.low %v3234_v49, %v3238_v54  ;;  %v3293_v54 = vld [vmem:[%s25975_s13 + $0x770] sm:$0xff] }
 0x7df   : > { %6486 = vmatpush1.bf16.msra.mxu1 %v19550_v61  ;;  %v3245_v61 = vld [vmem:[%s25975_s13 + $0x5f0] sm:$0xff] }
 0x7e0   : > { %6650 = vmatpush1.bf16.msra.mxu0 %v19552_v62  ;;  %6496 = vmatprep.subr.bf16.mxu1 %v19559_v63  ;;  %v3242_v62 = vld [vmem:[%s25975_s13 + $0x5d8] sm:$0xff]  ;;  %v19614_v13 = vcombine.low %v3241_v52, %v3245_v61 }
 0x7e1   : > { %6660 = vmatprep.subr.bf16.mxu0 %v19561_v4  ;;  %v3246_v63 = vld [vmem:[%s25975_s13 + $0x5f8] sm:$0xff]  ;;  %v19615_v4 = vcombine.high %v3241_v52, %v3245_v61 }
 0x7e2   : > { %6488 = vmatmul.mubr.bf16.vlgmr.msra.gmra.mrb[16].mxu1 %v26420_v58  ;;  %v19617_v5 = vcombine.high %v3242_v62, %v3246_v63  ;;  %v19616_v14 = vcombine.low %v3242_v62, %v3246_v63  ;;  %v3297_v62 = vld [vmem:[%s25975_s13 + $0x790] sm:$0xff] }
 0x7e3   : > { %6652 = vmatmul.mubr.bf16.vlgmr.msra.gmra.mrb[20].mxu0 %v26420_v58  ;;  %6497 = vmatpush1.bf16.msra.mxu1 %v19558_v8  ;;  %v3214_v58 = vld [vmem:[%s25975_s13 + $0x4f8] sm:$0xff]  ;;  %v3253_v8 = vld [vmem:[%s25975_s13 + $0x630] sm:$0xff] }
 0x7e4   : > { %6528 = vmatprep.mubr.bf16.mxu1 %v26425_v0  ;;  %6661 = vmatpush1.bf16.msra.mxu0 %v19560_v9  ;;  %v19585_v26 = vcombine.high %v3210_v34, %v3214_v58  ;;  %v19584_v30 = vcombine.low %v3210_v34, %v3214_v58  ;;  %v3250_v9 = vld [vmem:[%s25975_s13 + $0x618] sm:$0xff]  ;;  %v19623_v16 = vcombine.high %v3249_v6, %v3253_v8  ;;  %v3265_v34 = vld [vmem:[%s25975_s13 + $0x690] sm:$0xff] }
 0x7e5   : > { %6692 = vmatprep.mubr.bf16.mxu0 %v26425_v0  ;;  %6498 = vmatprep.subr.bf16.mxu1 %v19567_v12  ;;  %v3221_v0 = vld [vmem:[%s25975_s13 + $0x530] sm:$0xff]  ;;  %v3254_v12 = vld [vmem:[%s25975_s13 + $0x638] sm:$0xff] }
 0x7e6   : > { %6662 = vmatprep.subr.bf16.mxu0 %v19569_v17  ;;  %v19591_v31 = vcombine.high %v3217_v28, %v3221_v0  ;;  %v19590_v45 = vcombine.low %v3217_v28, %v3221_v0  ;;  %v3257_v17 = vld [vmem:[%s25975_s13 + $0x650] sm:$0xff]  ;;  %v19624_v50 = vcombine.low %v3250_v9, %v3254_v12 }
 0x7e7   : > { %6499 = vmatpush1.bf16.msra.mxu1 %v19566_v20  ;;  %v3258_v20 = vld [vmem:[%s25975_s13 + $0x658] sm:$0xff]  ;;  %v19631_v7 = vcombine.high %v3257_v17, %v3261_v18  ;;  %v3269_v58 = vld [vmem:[%s25975_s13 + $0x6b0] sm:$0xff]  ;;  %v19630_v28 = vcombine.low %v3257_v17, %v3261_v18 }
 0x7e8   : > { %6663 = vmatpush1.bf16.msra.mxu0 %v19568_v21  ;;  %6500 = vmatprep.subr.bf16.mxu1 %v19575_v23  ;;  %v19625_v21 = vcombine.high %v3250_v9, %v3254_v12  ;;  %v3262_v23 = vld [vmem:[%s25975_s13 + $0x678] sm:$0xff]  ;;  %v19639_v25 = vcombine.high %v3265_v34, %v3269_v58  ;;  %v19638_v37 = vcombine.low %v3265_v34, %v3269_v58  ;;  %v3301_v63 = vld [vmem:[%s25975_s13 + $0x7b0] sm:$0xff] }
 0x7e9   : > { %6664 = vmatprep.subr.bf16.mxu0 %v19577_v60  ;;  %v19622_v60 = vcombine.low %v3249_v6, %v3253_v8  ;;  %v19632_v0 = vcombine.low %v3258_v20, %v3262_v23  ;;  %v19671_v8 = vcombine.high %v3297_v62, %v3301_v63  ;;  %v3305_v9 = vld [vmem:[%s25975_s13 + $0x7d0] sm:$0xff]  ;;  %v19670_v17 = vcombine.low %v3297_v62, %v3301_v63 }
 0x7ea   : > { %v3309_v12 = vld [vmem:[%s25975_s13 + $0x7f0] sm:$0xff] }
 0x7eb   : > { %6501 = vmatpush1.bf16.msra.mxu1 %v19574_v15  ;;  %v3266_v15 = vld [vmem:[%s25975_s13 + $0x698] sm:$0xff]  ;;  %v19678_v34 = vcombine.low %v3305_v9, %v3309_v12  ;;  %v3357_v62 = vld [vmem:[%s25975_s13 + $0x970] sm:$0xff] }
 0x7ec   : > { %6665 = vmatpush1.bf16.msra.mxu0 %v19576_v19  ;;  %6502 = vmatprep.subr.bf16.mxu1 %v19583_v22  ;;  %v19633_v19 = vcombine.high %v3258_v20, %v3262_v23  ;;  %v3270_v22 = vld [vmem:[%s25975_s13 + $0x6b8] sm:$0xff]  ;;  %v19679_v20 = vcombine.high %v3305_v9, %v3309_v12  ;;  %v3317_v23 = vld [vmem:[%s25975_s13 + $0x830] sm:$0xff] }
 0x7ed   : > { %6666 = vmatprep.subr.bf16.mxu0 %v19585_v26  ;;  %v3273_v26 = vld [vmem:[%s25975_s13 + $0x6d0] sm:$0xff]  ;;  %v19640_v41 = vcombine.low %v3266_v15, %v3270_v22 }
 0x7ee   : > { %v19647_v42 = vcombine.high %v3273_v26, %v3277_v27  ;;  %v19646_v53 = vcombine.low %v3273_v26, %v3277_v27  ;;  %v3329_v27 = vld [vmem:[%s25975_s13 + $0x890] sm:$0xff] }
 0x7ef   : > { %6503 = vmatpush1.bf16.msra.mxu1 %v19582_v29  ;;  %v3274_v29 = vld [vmem:[%s25975_s13 + $0x6d8] sm:$0xff]  ;;  %v3365_v9 = vld [vmem:[%s25975_s13 + $0x9b0] sm:$0xff] }
 0x7f0   : > { %6667 = vmatpush1.bf16.msra.mxu0 %v19584_v30  ;;  %6504 = vmatprep.subr.bf16.mxu1 %v19591_v31  ;;  %v19641_v30 = vcombine.high %v3266_v15, %v3270_v22  ;;  %v3278_v31 = vld [vmem:[%s25975_s13 + $0x6f8] sm:$0xff]  ;;  %v3325_v22 = vld [vmem:[%s25975_s13 + $0x870] sm:$0xff] }
 0x7f1   : > { %6668 = vmatprep.subr.bf16.mxu0 %v19593_v43  ;;  %v3281_v43 = vld [vmem:[%s25975_s13 + $0x710] sm:$0xff]  ;;  %v19648_v47 = vcombine.low %v3274_v29, %v3278_v31 }
 0x7f2   : > { %v19655_v49 = vcombine.high %v3281_v43, %v3285_v44 }
 0x7f3   : > { %6505 = vmatpush1.bf16.msra.mxu1 %v19590_v45  ;;  %v3282_v45 = vld [vmem:[%s25975_s13 + $0x718] sm:$0xff] }
 0x7f4   : > { %6669 = vmatpush1.bf16.msra.mxu0 %v19592_v46  ;;  %6506 = vmatprep.subr.bf16.mxu1 %v19599_v11  ;;  %v19649_v46 = vcombine.high %v3274_v29, %v3278_v31  ;;  %v3286_v11 = vld [vmem:[%s25975_s13 + $0x738] sm:$0xff]  ;;  %v3333_v29 = vld [vmem:[%s25975_s13 + $0x8b0] sm:$0xff] }
 0x7f5   : > { %6670 = vmatprep.subr.bf16.mxu0 %v19601_v51  ;;  %v3289_v51 = vld [vmem:[%s25975_s13 + $0x750] sm:$0xff]  ;;  %v19656_v52 = vcombine.low %v3282_v45, %v3286_v11  ;;  %v3330_v31 = vld [vmem:[%s25975_s13 + $0x898] sm:$0xff] }
 0x7f6   : > { %v19663_v61 = vcombine.high %v3289_v51, %v3293_v54 }
 0x7f7   : > { %6507 = vmatpush1.bf16.msra.mxu1 %v19598_v55  ;;  %v3290_v55 = vld [vmem:[%s25975_s13 + $0x758] sm:$0xff] }
 0x7f8   : > { %6671 = vmatpush1.bf16.msra.mxu0 %v19600_v56  ;;  %6508 = vmatprep.subr.bf16.mxu1 %v19607_v57  ;;  %v19657_v56 = vcombine.high %v3282_v45, %v3286_v11  ;;  %v3294_v57 = vld [vmem:[%s25975_s13 + $0x778] sm:$0xff]  ;;  %v3341_v45 = vld [vmem:[%s25975_s13 + $0x8f0] sm:$0xff]  ;;  %v19703_v11 = vcombine.high %v3329_v27, %v3333_v29 }
 0x7f9   : > { %6672 = vmatprep.subr.bf16.mxu0 %v19609_v59  ;;  %v19654_v59 = vcombine.low %v3281_v43, %v3285_v44  ;;  %v19664_v6 = vcombine.low %v3290_v55, %v3294_v57  ;;  %v3337_v44 = vld [vmem:[%s25975_s13 + $0x8d0] sm:$0xff] }
 0x7fb   : > { %6509 = vmatpush1.bf16.msra.mxu1 %v19606_v1  ;;  %v3298_v1 = vld [vmem:[%s25975_s13 + $0x798] sm:$0xff] }
 0x7fc   : > { %6673 = vmatpush1.bf16.msra.mxu0 %v19608_v2  ;;  %6510 = vmatprep.subr.bf16.mxu1 %v19615_v4  ;;  %v19665_v2 = vcombine.high %v3290_v55, %v3294_v57  ;;  %v3302_v4 = vld [vmem:[%s25975_s13 + $0x7b8] sm:$0xff] }
 0x7fd   : > { %6674 = vmatprep.subr.bf16.mxu0 %v19617_v5  ;;  %v19662_v5 = vcombine.low %v3289_v51, %v3293_v54  ;;  %v19672_v18 = vcombine.low %v3298_v1, %v3302_v4  ;;  %v3345_v51 = vld [vmem:[%s25975_s13 + $0x910] sm:$0xff]  ;;  %v3346_v57 = vld [vmem:[%s25975_s13 + $0x918] sm:$0xff] }
 0x7fe   : > { %v3349_v54 = vld [vmem:[%s25975_s13 + $0x930] sm:$0xff] }
 0x7ff   : > { %6511 = vmatpush1.bf16.msra.mxu1 %v19614_v13  ;;  %v3306_v13 = vld [vmem:[%s25975_s13 + $0x7d8] sm:$0xff] }
 0x800   : > { %6675 = vmatpush1.bf16.msra.mxu0 %v19616_v14  ;;  %6512 = vmatprep.subr.bf16.mxu1 %v19623_v16  ;;  %v19673_v14 = vcombine.high %v3298_v1, %v3302_v4  ;;  %v3310_v16 = vld [vmem:[%s25975_s13 + $0x7f8] sm:$0xff]  ;;  %v19719_v1 = vcombine.high %v3345_v51, %v3349_v54 }
 0x801   : > { %6676 = vmatprep.subr.bf16.mxu0 %v19625_v21  ;;  %v3313_v21 = vld [vmem:[%s25975_s13 + $0x810] sm:$0xff]  ;;  %v19680_v58 = vcombine.low %v3306_v13, %v3310_v16  ;;  %v3358_v4 = vld [vmem:[%s25975_s13 + $0x978] sm:$0xff] }
 0x802   : > { %v19687_v15 = vcombine.high %v3313_v21, %v3317_v23  ;;  %v19686_v26 = vcombine.low %v3313_v21, %v3317_v23  ;;  %v3373_v21 = vld [vmem:[%s25975_s13 + $0x9f0] sm:$0xff] }
 0x803   : > { %6513 = vmatpush1.bf16.msra.mxu1 %v19622_v60  ;;  %v3314_v60 = vld [vmem:[%s25975_s13 + $0x818] sm:$0xff] }
 0x804   : > { %6677 = vmatpush1.bf16.msra.mxu0 %v19624_v50  ;;  %6514 = vmatprep.subr.bf16.mxu1 %v19631_v7  ;;  %v19681_v50 = vcombine.high %v3306_v13, %v3310_v16  ;;  %v3318_v7 = vld [vmem:[%s25975_s13 + $0x838] sm:$0xff] }
 0x805   : > { %6678 = vmatprep.subr.bf16.mxu0 %v19633_v19  ;;  %v3321_v19 = vld [vmem:[%s25975_s13 + $0x850] sm:$0xff]  ;;  %v3366_v16 = vld [vmem:[%s25975_s13 + $0x9b8] sm:$0xff] }
 0x806   : > { %v19694_v43 = vcombine.low %v3321_v19, %v3325_v22 }
 0x807   : > { %6515 = vmatpush1.bf16.msra.mxu1 %v19630_v28  ;;  %v19689_v28 = vcombine.high %v3314_v60, %v3318_v7 }
 0x808   : > { %6679 = vmatpush1.bf16.msra.mxu0 %v19632_v0  ;;  %6516 = vmatprep.subr.bf16.mxu1 %v19639_v25  ;;  %v3322_v0 = vld [vmem:[%s25975_s13 + $0x858] sm:$0xff] }
 0x809   : > { %6680 = vmatprep.subr.bf16.mxu0 %v19641_v30  ;;  %v3326_v25 = vld [vmem:[%s25975_s13 + $0x878] sm:$0xff]  ;;  %v19688_v30 = vcombine.low %v3314_v60, %v3318_v7 }
 0x80a   : > { %v3374_v7 = vld [vmem:[%s25975_s13 + $0x9f8] sm:$0xff] }
 0x80b   : > { %6517 = vmatpush1.bf16.msra.mxu1 %v19638_v37  ;;  %v3334_v37 = vld [vmem:[%s25975_s13 + $0x8b8] sm:$0xff] }
 0x80c   : > { %6681 = vmatpush1.bf16.msra.mxu0 %v19640_v41  ;;  %6518 = vmatprep.subr.bf16.mxu1 %v19647_v42  ;;  %v19695_v41 = vcombine.high %v3321_v19, %v3325_v22  ;;  %v19697_v42 = vcombine.high %v3322_v0, %v3326_v25  ;;  %v19704_v55 = vcombine.low %v3330_v31, %v3334_v37  ;;  %v3381_v19 = vld [vmem:[%s25975_s13 + $0xa30] sm:$0xff] }
 0x80d   : > { %6682 = vmatprep.subr.bf16.mxu0 %v19649_v46  ;;  %v19696_v46 = vcombine.low %v3322_v0, %v3326_v25  ;;  %v3378_v0 = vld [vmem:[%s25975_s13 + $0xa18] sm:$0xff] }
 0x80e   : > { %v3382_v25 = vld [vmem:[%s25975_s13 + $0xa38] sm:$0xff] }
 0x80f   : > { %6519 = vmatpush1.bf16.msra.mxu1 %v19646_v53  ;;  %v3338_v53 = vld [vmem:[%s25975_s13 + $0x8d8] sm:$0xff] }
 0x810   : > { %6683 = vmatpush1.bf16.msra.mxu0 %v19648_v47  ;;  %6520 = vmatprep.subr.bf16.mxu1 %v19655_v49  ;;  %v3342_v47 = vld [vmem:[%s25975_s13 + $0x8f8] sm:$0xff]  ;;  %v19705_v49 = vcombine.high %v3330_v31, %v3334_v37 }
 0x811   : > { %6684 = vmatprep.subr.bf16.mxu0 %v19657_v56  ;;  %v19711_v56 = vcombine.high %v3337_v44, %v3341_v45  ;;  %v19712_v63 = vcombine.low %v3338_v53, %v3342_v47 }
 0x813   : > { %6521 = vmatpush1.bf16.msra.mxu1 %v19654_v59  ;;  %v3350_v59 = vld [vmem:[%s25975_s13 + $0x938] sm:$0xff] }
 0x814   : > { %6685 = vmatpush1.bf16.msra.mxu0 %v19656_v52  ;;  %6522 = vmatprep.subr.bf16.mxu1 %v19663_v61  ;;  %v19710_v52 = vcombine.low %v3337_v44, %v3341_v45  ;;  %v3353_v61 = vld [vmem:[%s25975_s13 + $0x950] sm:$0xff]  ;;  %v19720_v12 = vcombine.low %v3346_v57, %v3350_v59 }
 0x815   : > { %6686 = vmatprep.subr.bf16.mxu0 %v19665_v2  ;;  %v3354_v2 = vld [vmem:[%s25975_s13 + $0x958] sm:$0xff]  ;;  %v19727_v13 = vcombine.high %v3353_v61, %v3357_v62  ;;  %v3393_v45 = vld [vmem:[%s25975_s13 + $0xa90] sm:$0xff] }
 0x816   : > { %v19728_v23 = vcombine.low %v3354_v2, %v3358_v4 }
 0x817   : > { %6523 = vmatpush1.bf16.msra.mxu1 %v19662_v5  ;;  %v19721_v5 = vcombine.high %v3346_v57, %v3350_v59  ;;  %v3402_v59 = vld [vmem:[%s25975_s13 + $0xad8] sm:$0xff] }
 0x818   : > { %6687 = vmatpush1.bf16.msra.mxu0 %v19664_v6  ;;  %6524 = vmatprep.subr.bf16.mxu1 %v19671_v8  ;;  %v19718_v6 = vcombine.low %v3345_v51, %v3349_v54  ;;  %v3361_v8 = vld [vmem:[%s25975_s13 + $0x990] sm:$0xff] }
 0x819   : > { %6688 = vmatprep.subr.bf16.mxu0 %v19673_v14  ;;  %v3362_v14 = vld [vmem:[%s25975_s13 + $0x998] sm:$0xff]  ;;  %v19735_v60 = vcombine.high %v3361_v8, %v3365_v9  ;;  %v3401_v54 = vld [vmem:[%s25975_s13 + $0xad0] sm:$0xff] }
 0x81a   : > { %v19736_v22 = vcombine.low %v3362_v14, %v3366_v16 }
 0x81b   : > { %6525 = vmatpush1.bf16.msra.mxu1 %v19670_v17  ;;  %v19729_v17 = vcombine.high %v3354_v2, %v3358_v4  ;;  %v3410_v4 = vld [vmem:[%s25975_s13 + $0xb18] sm:$0xff] }
 0x81c   : > { %6689 = vmatpush1.bf16.msra.mxu0 %v19672_v18  ;;  %6526 = vmatprep.subr.bf16.mxu1 %v19679_v20  ;;  %v19726_v18 = vcombine.low %v3353_v61, %v3357_v62  ;;  %v3369_v20 = vld [vmem:[%s25975_s13 + $0x9d0] sm:$0xff] }
 0x81d   : > { %6690 = vmatprep.subr.bf16.mxu0 %v19681_v50  ;;  %v3370_v50 = vld [vmem:[%s25975_s13 + $0x9d8] sm:$0xff]  ;;  %v3409_v62 = vld [vmem:[%s25975_s13 + $0xb10] sm:$0xff] }
 0x81e   : > { %v19744_v31 = vcombine.low %v3370_v50, %v3374_v7 }
 0x81f   : > { %6527 = vmatpush1.bf16.msra.mxu1 %v19678_v34  ;;  %v19737_v34 = vcombine.high %v3362_v14, %v3366_v16  ;;  %v3418_v16 = vld [vmem:[%s25975_s13 + $0xb58] sm:$0xff] }
 0x820   : > { %6691 = vmatpush1.bf16.msra.mxu0 %v19680_v58  ;;  %6537 = vmatprep.subr.bf16.mxu1 %v19687_v15  ;;  %v19734_v58 = vcombine.low %v3361_v8, %v3365_v9  ;;  %v3377_v15 = vld [vmem:[%s25975_s13 + $0xa10] sm:$0xff] }
 0x821   : > { %6701 = vmatprep.subr.bf16.mxu0 %v19689_v28  ;;  %v19743_v28 = vcombine.high %v3369_v20, %v3373_v21  ;;  %v19751_v37 = vcombine.high %v3377_v15, %v3381_v19  ;;  %v19750_v44 = vcombine.low %v3377_v15, %v3381_v19  ;;  %v3417_v9 = vld [vmem:[%s25975_s13 + $0xb50] sm:$0xff] }
 0x822   : > { %6529 = vmatmul.mubr.bf16.vlgmr.msra.gmra.mrb[16].mxu1 %v26501_v24  ;;  %v3433_v19 = vld [vmem:[%s25975_s13 + $0xbd0] sm:$0xff] }
 0x823   : > { %6693 = vmatmul.mubr.bf16.vlgmr.msra.gmra.mrb[20].mxu0 %v26501_v24  ;;  %6538 = vmatpush1.bf16.msra.mxu1 %v19686_v26  ;;  %v19702_v24 = vcombine.low %v3329_v27, %v3333_v29  ;;  %v19745_v26 = vcombine.high %v3370_v50, %v3374_v7  ;;  %v19742_v27 = vcombine.low %v3369_v20, %v3373_v21  ;;  %v3385_v29 = vld [vmem:[%s25975_s13 + $0xa50] sm:$0xff]  ;;  %v3426_v7 = vld [vmem:[%s25975_s13 + $0xb98] sm:$0xff] }
 0x824   : > { %6569 = vmatprep.mubr.bf16.mxu1 %v26509_v48  ;;  %6702 = vmatpush1.bf16.msra.mxu0 %v19688_v30  ;;  %v3389_v30 = vld [vmem:[%s25975_s13 + $0xa70] sm:$0xff] }
 0x825   : > { %6733 = vmatprep.mubr.bf16.mxu0 %v26509_v48  ;;  %6539 = vmatprep.subr.bf16.mxu1 %v19695_v41  ;;  %v19713_v48 = vcombine.high %v3338_v53, %v3342_v47  ;;  %v3386_v41 = vld [vmem:[%s25975_s13 + $0xa58] sm:$0xff]  ;;  %v19759_v53 = vcombine.high %v3385_v29, %v3389_v30  ;;  %v19758_v51 = vcombine.low %v3385_v29, %v3389_v30  ;;  %v3425_v21 = vld [vmem:[%s25975_s13 + $0xb90] sm:$0xff] }
 0x826   : > { %6703 = vmatprep.subr.bf16.mxu0 %v19697_v42  ;;  %v3390_v42 = vld [vmem:[%s25975_s13 + $0xa78] sm:$0xff] }
 0x827   : > { %6540 = vmatpush1.bf16.msra.mxu1 %v19694_v43  ;;  %v19753_v43 = vcombine.high %v3378_v0, %v3382_v25  ;;  %v3394_v47 = vld [vmem:[%s25975_s13 + $0xa98] sm:$0xff] }
 0x828   : > { %6704 = vmatpush1.bf16.msra.mxu0 %v19696_v46  ;;  %6541 = vmatprep.subr.bf16.mxu1 %v19703_v11  ;;  %v3397_v46 = vld [vmem:[%s25975_s13 + $0xab0] sm:$0xff]  ;;  %v19752_v11 = vcombine.low %v3378_v0, %v3382_v25  ;;  %v3434_v25 = vld [vmem:[%s25975_s13 + $0xbd8] sm:$0xff] }
 0x829   : > { %6705 = vmatprep.subr.bf16.mxu0 %v19705_v49  ;;  %v3398_v49 = vld [vmem:[%s25975_s13 + $0xab8] sm:$0xff]  ;;  %v19767_v57 = vcombine.high %v3393_v45, %v3397_v46  ;;  %v19766_v61 = vcombine.low %v3393_v45, %v3397_v46 }
 0x82b   : > { %6542 = vmatpush1.bf16.msra.mxu1 %v19702_v24  ;;  %v19761_v24 = vcombine.high %v3386_v41, %v3390_v42 }
 0x82c   : > { %6706 = vmatpush1.bf16.msra.mxu0 %v19704_v55  ;;  %6543 = vmatprep.subr.bf16.mxu1 %v19711_v56  ;;  %v3405_v55 = vld [vmem:[%s25975_s13 + $0xaf0] sm:$0xff]  ;;  %v19760_v56 = vcombine.low %v3386_v41, %v3390_v42 }
 0x82d   : > { %6707 = vmatprep.subr.bf16.mxu0 %v19713_v48  ;;  %v3406_v48 = vld [vmem:[%s25975_s13 + $0xaf8] sm:$0xff]  ;;  %v19775_v2 = vcombine.high %v3401_v54, %v3405_v55  ;;  %v19774_v8 = vcombine.low %v3401_v54, %v3405_v55  ;;  %v3441_v41 = vld [vmem:[%s25975_s13 + $0xc10] sm:$0xff] }
 0x82e   : > { %v3445_v42 = vld [vmem:[%s25975_s13 + $0xc30] sm:$0xff]  ;;  %v3454_v54 = vld [vmem:[%s25975_s13 + $0xc78] sm:$0xff] }
 0x82f   : > { %6544 = vmatpush1.bf16.msra.mxu1 %v19710_v52  ;;  %v19769_v52 = vcombine.high %v3394_v47, %v3398_v49 }
 0x830   : > { %6708 = vmatpush1.bf16.msra.mxu0 %v19712_v63  ;;  %6545 = vmatprep.subr.bf16.mxu1 %v19719_v1  ;;  %v3413_v63 = vld [vmem:[%s25975_s13 + $0xb30] sm:$0xff]  ;;  %v19768_v1 = vcombine.low %v3394_v47, %v3398_v49 }
 0x831   : > { %6709 = vmatprep.subr.bf16.mxu0 %v19721_v5  ;;  %v3414_v5 = vld [vmem:[%s25975_s13 + $0xb38] sm:$0xff]  ;;  %v19783_v14 = vcombine.high %v3409_v62, %v3413_v63  ;;  %v19782_v20 = vcombine.low %v3409_v62, %v3413_v63  ;;  %v3449_v47 = vld [vmem:[%s25975_s13 + $0xc50] sm:$0xff] }
 0x832   : > { %v3453_v49 = vld [vmem:[%s25975_s13 + $0xc70] sm:$0xff] }
 0x833   : > { %6546 = vmatpush1.bf16.msra.mxu1 %v19718_v6  ;;  %v19777_v6 = vcombine.high %v3402_v59, %v3406_v48  ;;  %v19822_v62 = vcombine.low %v3449_v47, %v3453_v49 }
 0x834   : > { %6710 = vmatpush1.bf16.msra.mxu0 %v19720_v12  ;;  %6547 = vmatprep.subr.bf16.mxu1 %v19727_v13  ;;  %v3421_v12 = vld [vmem:[%s25975_s13 + $0xb70] sm:$0xff]  ;;  %v19776_v13 = vcombine.low %v3402_v59, %v3406_v48 }
 0x835   : > { %6711 = vmatprep.subr.bf16.mxu0 %v19729_v17  ;;  %v3422_v17 = vld [vmem:[%s25975_s13 + $0xb78] sm:$0xff]  ;;  %v19791_v50 = vcombine.high %v3417_v9, %v3421_v12  ;;  %v19790_v15 = vcombine.low %v3417_v9, %v3421_v12  ;;  %v3461_v59 = vld [vmem:[%s25975_s13 + $0xcb0] sm:$0xff] }
 0x837   : > { %6548 = vmatpush1.bf16.msra.mxu1 %v19726_v18  ;;  %v19785_v18 = vcombine.high %v3410_v4, %v3414_v5 }
 0x838   : > { %6712 = vmatpush1.bf16.msra.mxu0 %v19728_v23  ;;  %6549 = vmatprep.subr.bf16.mxu1 %v19735_v60  ;;  %v3429_v23 = vld [vmem:[%s25975_s13 + $0xbb0] sm:$0xff]  ;;  %v19784_v60 = vcombine.low %v3410_v4, %v3414_v5 }
 0x839   : > { %6713 = vmatprep.subr.bf16.mxu0 %v19737_v34  ;;  %v3430_v34 = vld [vmem:[%s25975_s13 + $0xbb8] sm:$0xff]  ;;  %v19799_v0 = vcombine.high %v3425_v21, %v3429_v23  ;;  %v19798_v29 = vcombine.low %v3425_v21, %v3429_v23  ;;  %v3465_v4 = vld [vmem:[%s25975_s13 + $0xcd0] sm:$0xff] }
 0x83a   : > { %v19800_v30 = vcombine.low %v3426_v7, %v3430_v34  ;;  %v3469_v5 = vld [vmem:[%s25975_s13 + $0xcf0] sm:$0xff] }
 0x83b   : > { %6550 = vmatpush1.bf16.msra.mxu1 %v19734_v58  ;;  %v19793_v58 = vcombine.high %v3418_v16, %v3422_v17  ;;  %v19839_v12 = vcombine.high %v3465_v4, %v3469_v5 }
 0x83c   : > { %6714 = vmatpush1.bf16.msra.mxu0 %v19736_v22  ;;  %6551 = vmatprep.subr.bf16.mxu1 %v19743_v28  ;;  %v3437_v22 = vld [vmem:[%s25975_s13 + $0xbf0] sm:$0xff]  ;;  %v19792_v28 = vcombine.low %v3418_v16, %v3422_v17  ;;  %v3474_v16 = vld [vmem:[%s25975_s13 + $0xd18] sm:$0xff] }
 0x83d   : > { %6715 = vmatprep.subr.bf16.mxu0 %v19745_v26  ;;  %v19801_v26 = vcombine.high %v3426_v7, %v3430_v34  ;;  %v19806_v45 = vcombine.low %v3433_v19, %v3437_v22  ;;  %v3478_v17 = vld [vmem:[%s25975_s13 + $0xd38] sm:$0xff] }
 0x83e   : > { %v19849_v23 = vcombine.high %v3474_v16, %v3478_v17  ;;  %v3482_v7 = vld [vmem:[%s25975_s13 + $0xd58] sm:$0xff] }
 0x83f   : > { %6552 = vmatpush1.bf16.msra.mxu1 %v19742_v27  ;;  %v3438_v27 = vld [vmem:[%s25975_s13 + $0xbf8] sm:$0xff] }
 0x840   : > { %6716 = vmatpush1.bf16.msra.mxu0 %v19744_v31  ;;  %6553 = vmatprep.subr.bf16.mxu1 %v19751_v37  ;;  %v19807_v31 = vcombine.high %v3433_v19, %v3437_v22  ;;  %v19809_v37 = vcombine.high %v3434_v25, %v3438_v27  ;;  %v19808_v46 = vcombine.low %v3434_v25, %v3438_v27  ;;  %v3486_v34 = vld [vmem:[%s25975_s13 + $0xd78] sm:$0xff] }
 0x841   : > { %6717 = vmatprep.subr.bf16.mxu0 %v19753_v43  ;;  %v3442_v43 = vld [vmem:[%s25975_s13 + $0xc18] sm:$0xff]  ;;  %v19857_v22 = vcombine.high %v3482_v7, %v3486_v34 }
 0x842   : > { %v3490_v25 = vld [vmem:[%s25975_s13 + $0xd98] sm:$0xff] }
 0x843   : > { %6554 = vmatpush1.bf16.msra.mxu1 %v19750_v44  ;;  %v3446_v44 = vld [vmem:[%s25975_s13 + $0xc38] sm:$0xff] }
 0x844   : > { %6718 = vmatpush1.bf16.msra.mxu0 %v19752_v11  ;;  %6555 = vmatprep.subr.bf16.mxu1 %v19759_v53  ;;  %v19815_v11 = vcombine.high %v3441_v41, %v3445_v42  ;;  %v19817_v53 = vcombine.high %v3442_v43, %v3446_v44  ;;  %v19816_v55 = vcombine.low %v3442_v43, %v3446_v44  ;;  %v3501_v43 = vld [vmem:[%s25975_s13 + $0xdf0] sm:$0xff] }
 0x845   : > { %6719 = vmatprep.subr.bf16.mxu0 %v19761_v24  ;;  %v19814_v24 = vcombine.low %v3441_v41, %v3445_v42  ;;  %v3497_v42 = vld [vmem:[%s25975_s13 + $0xdd0] sm:$0xff] }
 0x847   : > { %6556 = vmatpush1.bf16.msra.mxu1 %v19758_v51  ;;  %v3450_v51 = vld [vmem:[%s25975_s13 + $0xc58] sm:$0xff] }
 0x848   : > { %6720 = vmatpush1.bf16.msra.mxu0 %v19760_v56  ;;  %6557 = vmatprep.subr.bf16.mxu1 %v19767_v57  ;;  %v19823_v56 = vcombine.high %v3449_v47, %v3453_v49  ;;  %v3457_v57 = vld [vmem:[%s25975_s13 + $0xc90] sm:$0xff]  ;;  %v19825_v48 = vcombine.high %v3450_v51, %v3454_v54  ;;  %v19824_v63 = vcombine.low %v3450_v51, %v3454_v54 }
 0x849   : > { %6721 = vmatprep.subr.bf16.mxu0 %v19769_v52  ;;  %v3458_v52 = vld [vmem:[%s25975_s13 + $0xc98] sm:$0xff] }
 0x84b   : > { %6558 = vmatpush1.bf16.msra.mxu1 %v19766_v61  ;;  %v3462_v61 = vld [vmem:[%s25975_s13 + $0xcb8] sm:$0xff] }
 0x84c   : > { %6722 = vmatpush1.bf16.msra.mxu0 %v19768_v1  ;;  %6559 = vmatprep.subr.bf16.mxu1 %v19775_v2  ;;  %v19831_v1 = vcombine.high %v3457_v57, %v3461_v59  ;;  %v19833_v2 = vcombine.high %v3458_v52, %v3462_v61  ;;  %v19832_v9 = vcombine.low %v3458_v52, %v3462_v61  ;;  %v3505_v61 = vld [vmem:[%s25975_s13 + $0xe10] sm:$0xff] }
 0x84d   : > { %6723 = vmatprep.subr.bf16.mxu0 %v19777_v6  ;;  %v3466_v6 = vld [vmem:[%s25975_s13 + $0xcd8] sm:$0xff] }
 0x84f   : > { %6560 = vmatpush1.bf16.msra.mxu1 %v19774_v8  ;;  %v19830_v8 = vcombine.low %v3457_v57, %v3461_v59  ;;  %v19871_v59 = vcombine.high %v3497_v42, %v3501_v43 }
 0x850   : > { %6724 = vmatpush1.bf16.msra.mxu0 %v19776_v13  ;;  %6561 = vmatprep.subr.bf16.mxu1 %v19783_v14  ;;  %v3473_v13 = vld [vmem:[%s25975_s13 + $0xd10] sm:$0xff] }
 0x851   : > { %6725 = vmatprep.subr.bf16.mxu0 %v19785_v18  ;;  %v3477_v14 = vld [vmem:[%s25975_s13 + $0xd30] sm:$0xff]  ;;  %v19838_v18 = vcombine.low %v3465_v4, %v3469_v5  ;;  %v19870_v5 = vcombine.low %v3497_v42, %v3501_v43  ;;  %v3538_v42 = vld [vmem:[%s25975_s13 + $0xf18] sm:$0xff] }
 0x852   : > { %v19847_v21 = vcombine.high %v3473_v13, %v3477_v14  ;;  %v3542_v43 = vld [vmem:[%s25975_s13 + $0xf38] sm:$0xff] }
 0x853   : > { %6562 = vmatpush1.bf16.msra.mxu1 %v19782_v20 }
 0x854   : > { %6726 = vmatpush1.bf16.msra.mxu0 %v19784_v60  ;;  %6563 = vmatprep.subr.bf16.mxu1 %v19791_v50  ;;  %v3481_v60 = vld [vmem:[%s25975_s13 + $0xd50] sm:$0xff] }
 0x855   : > { %6727 = vmatprep.subr.bf16.mxu0 %v19793_v58  ;;  %v3485_v50 = vld [vmem:[%s25975_s13 + $0xd70] sm:$0xff]  ;;  %v19846_v58 = vcombine.low %v3473_v13, %v3477_v14  ;;  %v3514_v13 = vld [vmem:[%s25975_s13 + $0xe58] sm:$0xff] }
 0x856   : > { %v19855_v19 = vcombine.high %v3481_v60, %v3485_v50  ;;  %v19854_v27 = vcombine.low %v3481_v60, %v3485_v50  ;;  %v3518_v14 = vld [vmem:[%s25975_s13 + $0xe78] sm:$0xff] }
 0x857   : > { %6564 = vmatpush1.bf16.msra.mxu1 %v19790_v15  ;;  %v19848_v15 = vcombine.low %v3474_v16, %v3478_v17  ;;  %v3522_v60 = vld [vmem:[%s25975_s13 + $0xe98] sm:$0xff] }
 0x858   : > { %6728 = vmatpush1.bf16.msra.mxu0 %v19792_v28  ;;  %6565 = vmatprep.subr.bf16.mxu1 %v19799_v0  ;;  %v3489_v28 = vld [vmem:[%s25975_s13 + $0xd90] sm:$0xff]  ;;  %v3526_v50 = vld [vmem:[%s25975_s13 + $0xeb8] sm:$0xff] }
 0x859   : > { %6729 = vmatprep.subr.bf16.mxu0 %v19801_v26  ;;  %v3493_v0 = vld [vmem:[%s25975_s13 + $0xdb0] sm:$0xff]  ;;  %v3494_v26 = vld [vmem:[%s25975_s13 + $0xdb8] sm:$0xff] }
 0x85a   : > { %v19865_v41 = vcombine.high %v3490_v25, %v3494_v26  ;;  %v19862_v51 = vcombine.low %v3489_v28, %v3493_v0  ;;  %v19864_v57 = vcombine.low %v3490_v25, %v3494_v26  ;;  %v19896_v26 = vcombine.low %v3522_v60, %v3526_v50 }
 0x85b   : > { %6566 = vmatpush1.bf16.msra.mxu1 %v19798_v29  ;;  %v19856_v29 = vcombine.low %v3482_v7, %v3486_v34  ;;  %v19888_v34 = vcombine.low %v3514_v13, %v3518_v14 }
 0x85c   : > { %6730 = vmatpush1.bf16.msra.mxu0 %v19800_v30  ;;  %6567 = vmatprep.subr.bf16.mxu1 %v19807_v31  ;;  %v19863_v30 = vcombine.high %v3489_v28, %v3493_v0  ;;  %v3530_v28 = vld [vmem:[%s25975_s13 + $0xed8] sm:$0xff] }
 0x85d   : > { %6731 = vmatprep.subr.bf16.mxu0 %v19809_v37  ;;  %v3534_v0 = vld [vmem:[%s25975_s13 + $0xef8] sm:$0xff] }
 0x85f   : > { %6568 = vmatpush1.bf16.msra.mxu1 %v19806_v45 }
 0x860   : > { %6732 = vmatpush1.bf16.msra.mxu0 %v19808_v46  ;;  %6578 = vmatprep.subr.bf16.mxu1 %v19815_v11  ;;  %v3498_v11 = vld [vmem:[%s25975_s13 + $0xdd8] sm:$0xff] }
 0x861   : > { %6742 = vmatprep.subr.bf16.mxu0 %v19817_v53  ;;  %v3502_v53 = vld [vmem:[%s25975_s13 + $0xdf8] sm:$0xff] }
 0x862   : > { %6570 = vmatmul.mubr.bf16.vlgmr.msra.gmra.mrb[16].mxu1 %v26577_v3  ;;  %v19873_v52 = vcombine.high %v3498_v11, %v3502_v53 }
 0x863   : > { %6734 = vmatmul.mubr.bf16.vlgmr.msra.gmra.mrb[20].mxu0 %v26577_v3  ;;  %6579 = vmatpush1.bf16.msra.mxu1 %v19814_v24  ;;  %v3470_v3 = vld [vmem:[%s25975_s13 + $0xcf8] sm:$0xff] }
 0x864   : > { %6610 = vmatprep.mubr.bf16.mxu1 %v26585_v10  ;;  %6743 = vmatpush1.bf16.msra.mxu0 %v19816_v55  ;;  %v19840_v20 = vcombine.low %v3466_v6, %v3470_v3 }
 0x865   : > { %6774 = vmatprep.mubr.bf16.mxu0 %v26585_v10  ;;  %6580 = vmatprep.subr.bf16.mxu1 %v19823_v56  ;;  %v19841_v10 = vcombine.high %v3466_v6, %v3470_v3  ;;  %v19872_v3 = vcombine.low %v3498_v11, %v3502_v53  ;;  %v19904_v11 = vcombine.low %v3530_v28, %v3534_v0 }
 0x866   : > { %6744 = vmatprep.subr.bf16.mxu0 %v19825_v48 }
 0x867   : > { %6581 = vmatpush1.bf16.msra.mxu1 %v19822_v62  ;;  %v3509_v62 = vld [vmem:[%s25975_s13 + $0xe30] sm:$0xff] }
 0x868   : > { %6745 = vmatpush1.bf16.msra.mxu0 %v19824_v63  ;;  %6582 = vmatprep.subr.bf16.mxu1 %v19831_v1  ;;  %v3506_v1 = vld [vmem:[%s25975_s13 + $0xe18] sm:$0xff]  ;;  %v19878_v16 = vcombine.low %v3505_v61, %v3509_v62 }
 0x869   : > { %6746 = vmatprep.subr.bf16.mxu0 %v19833_v2  ;;  %v3510_v2 = vld [vmem:[%s25975_s13 + $0xe38] sm:$0xff] }
 0x86a   : > { %v19880_v17 = vcombine.low %v3506_v1, %v3510_v2 }
 0x86b   : > { %6583 = vmatpush1.bf16.msra.mxu1 %v19830_v8  ;;  %v19879_v8 = vcombine.high %v3505_v61, %v3509_v62  ;;  %v3554_v61 = vld [vmem:[%s25975_s13 + $0xf98] sm:$0xff] }
 0x86c   : > { %6747 = vmatpush1.bf16.msra.mxu0 %v19832_v9  ;;  %6584 = vmatprep.subr.bf16.mxu1 %v19839_v12  ;;  %v19881_v9 = vcombine.high %v3506_v1, %v3510_v2  ;;  %v3513_v12 = vld [vmem:[%s25975_s13 + $0xe50] sm:$0xff]  ;;  %v3558_v62 = vld [vmem:[%s25975_s13 + $0xfb8] sm:$0xff] }
 0x86d   : > { %6748 = vmatprep.subr.bf16.mxu0 %v19841_v10  ;;  %v3517_v10 = vld [vmem:[%s25975_s13 + $0xe70] sm:$0xff] }
 0x86e   : > { %v19886_v7 = vcombine.low %v3513_v12, %v3517_v10 }
 0x86f   : > { %6585 = vmatpush1.bf16.msra.mxu1 %v19838_v18  ;;  %v19887_v18 = vcombine.high %v3513_v12, %v3517_v10  ;;  %v19928_v10 = vcombine.low %v3554_v61, %v3558_v62 }
 0x870   : > { %6749 = vmatpush1.bf16.msra.mxu0 %v19840_v20  ;;  %6586 = vmatprep.subr.bf16.mxu1 %v19847_v21  ;;  %v19889_v20 = vcombine.high %v3514_v13, %v3518_v14  ;;  %v3521_v21 = vld [vmem:[%s25975_s13 + $0xe90] sm:$0xff] }
 0x871   : > { %6750 = vmatprep.subr.bf16.mxu0 %v19849_v23  ;;  %v3525_v23 = vld [vmem:[%s25975_s13 + $0xeb0] sm:$0xff] }
 0x872   : > { %v19894_v25 = vcombine.low %v3521_v21, %v3525_v23 }
 0x873   : > { %6587 = vmatpush1.bf16.msra.mxu1 %v19846_v58  ;;  %v19895_v58 = vcombine.high %v3521_v21, %v3525_v23 }
 0x874   : > { %6751 = vmatpush1.bf16.msra.mxu0 %v19848_v15  ;;  %6588 = vmatprep.subr.bf16.mxu1 %v19855_v19  ;;  %v19897_v15 = vcombine.high %v3522_v60, %v3526_v50  ;;  %v3529_v19 = vld [vmem:[%s25975_s13 + $0xed0] sm:$0xff] }
 0x875   : > { %v26883_v31 = vpop.f32.mrb[12].mxu1  ;;  %v26885_v37 = vpop.f32.mrb[16].mxu0  ;;  %6752 = vmatprep.subr.bf16.mxu0 %v19857_v22  ;;  %v3533_v22 = vld [vmem:[%s25975_s13 + $0xef0] sm:$0xff] }
 0x876   : > { %v6784_v44 = vsel %vm6783_vm5, %v26883_v31, 0.0  ;;  %v26891_v45 = vpop.f32.mrb[13].mxu1  ;;  %v26893_v46 = vpop.f32.mrb[17].mxu0  ;;  %v6787_v48 = vsel %vm6783_vm5, %v26885_v37, 0.0 }
 0x877   : > { %v6785_v47 = vsel %vm6783_vm5, %v26891_v45, 0.0  ;;  %v6288_v49 = vpop.f32.mrb[14].mxu1  ;;  %v6452_v24 = vpop.f32.mrb[18].mxu0  ;;  %6589 = vmatpush1.bf16.msra.mxu1 %v19854_v27  ;;  %v6789_v4 = vsel %vm6783_vm5, %v26893_v46, 0.0  ;;  %v19903_v27 = vcombine.high %v3529_v19, %v3533_v22 }
 0x878   : > { %v6786_v54 = vadd.f32 %v6785_v47, %v6784_v44  ;;  %6753 = vmatpush1.bf16.msra.mxu0 %v19856_v29  ;;  %v6289_v55 = vpop.f32.mrb[15].mxu1  ;;  %v6453_v56 = vpop.f32.mrb[19].mxu0  ;;  %6590 = vmatprep.subr.bf16.mxu1 %v19863_v30  ;;  %v19905_v29 = vcombine.high %v3530_v28, %v3534_v0  ;;  %v3537_v30 = vld [vmem:[%s25975_s13 + $0xf10] sm:$0xff]  ;;  %v19902_v44 = vcombine.low %v3529_v19, %v3533_v22 }
 0x879   : > { %6754 = vmatprep.subr.bf16.mxu0 %v19865_v41  ;;  %v3541_v41 = vld [vmem:[%s25975_s13 + $0xf30] sm:$0xff]  ;;  %v19913_v47 = vcombine.high %v3538_v42, %v3542_v43  ;;  %v19912_v56 = vcombine.low %v3538_v42, %v3542_v43  ;;  %v22444_v43 = vld [vmem:[#allocation14 + $0x828] ss:$16 sps:$4 sm:$0xff]  }
 0x87a   : > { %v6788_v63 = vadd.f32 %v6787_v48, %v6786_v54  ;;  %v19911_v53 = vcombine.high %v3537_v30, %v3541_v41  ;;  %v3545_v49 = vld [vmem:[%s25975_s13 + $0xf50] sm:$0xff]  ;;  %v3550_v54 = vld [vmem:[%s25975_s13 + $0xf78] sm:$0xff]  ;;  %v19910_v55 = vcombine.low %v3537_v30, %v3541_v41 }
 0x87b   : > { %6591 = vmatpush1.bf16.msra.mxu1 %v19862_v51  ;;  %v3549_v24 = vld [vmem:[%s25975_s13 + $0xf70] sm:$0xff]  ;;  %v3546_v51 = vld [vmem:[%s25975_s13 + $0xf58] sm:$0xff] }
 0x87c   : > { %v26907_v6 = vadd.f32 %v6789_v4, %v6788_v63  ;;  %6755 = vmatpush1.bf16.msra.mxu0 %v19864_v57  ;;  %6592 = vmatprep.subr.bf16.mxu1 %v19871_v59  ;;  %v19919_v57 = vcombine.high %v3545_v49, %v3549_v24  ;;  %v19921_v59 = vcombine.high %v3546_v51, %v3550_v54  ;;  %v3553_v48 = vld [vmem:[%s25975_s13 + $0xf90] sm:$0xff]  ;;  %v22446_v41 = vld [vmem:[#allocation14 + $0x82c] ss:$16 sps:$4 sm:$0xff]  }
 0x87d   : > { %6756 = vmatprep.subr.bf16.mxu0 %v19873_v52  ;;  %v3557_v52 = vld [vmem:[%s25975_s13 + $0xfb0] sm:$0xff]  ;;  %v19918_v63 = vcombine.low %v3545_v49, %v3549_v24  ;;  %v19920_v1 = vcombine.low %v3546_v51, %v3550_v54  ;;  %v19929_v4 = vcombine.high %v3554_v61, %v3558_v62  ;;  %v22458_v24 = vld [vmem:[#allocation14 + $0x86c] ss:$16 sps:$4 sm:$0xff]   ;;  %v22456_v54 = vld [vmem:[#allocation14 + $0x868] ss:$16 sps:$4 sm:$0xff]  }
 0x87e   : > { %v19927_v2 = vcombine.high %v3553_v48, %v3557_v52  ;;  %v19926_v12 = vcombine.low %v3553_v48, %v3557_v52  ;;  %v22443_v30 = vld [vmem:[#allocation14 + $0x824] ss:$16 sps:$4 sm:$0xff]   ;;  %v22441_v42 = vld [vmem:[#allocation14 + $0x820] ss:$16 sps:$4 sm:$0xff]   ;;  %v22470_v52 = vld [vmem:[#allocation14 + $0x8ac] ss:$16 sps:$4 sm:$0xff]  }
 0x87f   : > { %6593 = vmatpush1.bf16.msra.mxu1 %v19870_v5  ;;  %v3561_v5 = vld [vmem:[%s25975_s13 + $0xfd0] sm:$0xff]  ;;  %v22468_v62 = vld [vmem:[#allocation14 + $0x8a8] ss:$16 sps:$4 sm:$0xff]  }
 0x880   : > { %6757 = vmatpush1.bf16.msra.mxu0 %v19872_v3  ;;  %6594 = vmatprep.subr.bf16.mxu1 %v19879_v8  ;;  %v3565_v3 = vld [vmem:[%s25975_s13 + $0xff0] sm:$0xff]  ;;  %v3562_v8 = vld [vmem:[%s25975_s13 + $0xfd8] sm:$0xff] }
 0x881   : > { %6758 = vmatprep.subr.bf16.mxu0 %v19881_v9  ;;  %v3566_v9 = vld [vmem:[%s25975_s13 + $0xff8] sm:$0xff]  ;;  %v19935_v13 = vcombine.high %v3561_v5, %v3565_v3  ;;  %v22455_v49 = vld [vmem:[#allocation14 + $0x864] ss:$16 sps:$4 sm:$0xff]   ;;  %v22453_v51 = vld [vmem:[#allocation14 + $0x860] ss:$16 sps:$4 sm:$0xff]  }
 0x882   : > { %v19937_v14 = vcombine.high %v3562_v8, %v3566_v9  ;;  %v22467_v48 = vld [vmem:[#allocation14 + $0x8a4] ss:$16 sps:$4 sm:$0xff]   ;;  %v22465_v61 = vld [vmem:[#allocation14 + $0x8a0] ss:$16 sps:$4 sm:$0xff]  }
 0x883   : > { %6595 = vmatpush1.bf16.msra.mxu1 %v19878_v16  ;;  %v19934_v16 = vcombine.low %v3561_v5, %v3565_v3  ;;  %v22479_v5 = vld [vmem:[#allocation14 + $0x8e4] ss:$16 sps:$4 sm:$0xff]   ;;  %v22482_v3 = vld [vmem:[#allocation14 + $0x8ec] ss:$16 sps:$4 sm:$0xff]  }
 0x884   : > { %6759 = vmatpush1.bf16.msra.mxu0 %v19880_v17  ;;  %6596 = vmatprep.subr.bf16.mxu1 %v19887_v18  ;;  %v19936_v17 = vcombine.low %v3562_v8, %v3566_v9  ;;  %v22477_v8 = vld [vmem:[#allocation14 + $0x8e0] ss:$16 sps:$4 sm:$0xff]   ;;  %v22480_v9 = vld [vmem:[#allocation14 + $0x8e8] ss:$16 sps:$4 sm:$0xff]  }
 0x885   : > { %6760 = vmatprep.subr.bf16.mxu0 %v19889_v20 }
 0x887   : > { %6597 = vmatpush1.bf16.msra.mxu1 %v19886_v7 }
 0x888   : > { %6761 = vmatpush1.bf16.msra.mxu0 %v19888_v34  ;;  %6598 = vmatprep.subr.bf16.mxu1 %v19895_v58 }
 0x889   : > { %6762 = vmatprep.subr.bf16.mxu0 %v19897_v15 }
 0x88b   : > { %6599 = vmatpush1.bf16.msra.mxu1 %v19894_v25 }
 0x88c   : > { %6763 = vmatpush1.bf16.msra.mxu0 %v19896_v26  ;;  %6600 = vmatprep.subr.bf16.mxu1 %v19903_v27  ;;  %v22437_v26 = vld [vmem:[#allocation14 + $0x804] ss:$16 sps:$4 sm:$0xff]   ;;  %v22438_v27 = vld [vmem:[#allocation14 + $0x808] ss:$16 sps:$4 sm:$0xff]  }
 0x88d   : > { %6764 = vmatprep.subr.bf16.mxu0 %v19905_v29  ;;  %v22440_v29 = vld [vmem:[#allocation14 + $0x80c] ss:$16 sps:$4 sm:$0xff]  }
 0x88f   : > { %6601 = vmatpush1.bf16.msra.mxu1 %v19902_v44  ;;  %v22449_v44 = vld [vmem:[#allocation14 + $0x844] ss:$16 sps:$4 sm:$0xff]  }
 0x890   : > { %6765 = vmatpush1.bf16.msra.mxu0 %v19904_v11  ;;  %6602 = vmatprep.subr.bf16.mxu1 %v19911_v53  ;;  %v22452_v11 = vld [vmem:[#allocation14 + $0x84c] ss:$16 sps:$4 sm:$0xff]   ;;  %v22447_v53 = vld [vmem:[#allocation14 + $0x840] ss:$16 sps:$4 sm:$0xff]  }
 0x891   : > { %6766 = vmatprep.subr.bf16.mxu0 %v19913_v47  ;;  %v22450_v47 = vld [vmem:[#allocation14 + $0x848] ss:$16 sps:$4 sm:$0xff]  }
 0x893   : > { %6603 = vmatpush1.bf16.msra.mxu1 %v19910_v55  ;;  %v22461_v55 = vld [vmem:[#allocation14 + $0x884] ss:$16 sps:$4 sm:$0xff]  }
 0x894   : > { %6767 = vmatpush1.bf16.msra.mxu0 %v19912_v56  ;;  %6604 = vmatprep.subr.bf16.mxu1 %v19919_v57  ;;  %v22464_v56 = vld [vmem:[#allocation14 + $0x88c] ss:$16 sps:$4 sm:$0xff]   ;;  %v22459_v57 = vld [vmem:[#allocation14 + $0x880] ss:$16 sps:$4 sm:$0xff]  }
 0x895   : > { %6768 = vmatprep.subr.bf16.mxu0 %v19921_v59  ;;  %v22462_v59 = vld [vmem:[#allocation14 + $0x888] ss:$16 sps:$4 sm:$0xff]  }
 0x897   : > { %6605 = vmatpush1.bf16.msra.mxu1 %v19918_v63  ;;  %v22473_v63 = vld [vmem:[#allocation14 + $0x8c4] ss:$16 sps:$4 sm:$0xff]  }
 0x898   : > { %6769 = vmatpush1.bf16.msra.mxu0 %v19920_v1  ;;  %6606 = vmatprep.subr.bf16.mxu1 %v19927_v2  ;;  %v22476_v1 = vld [vmem:[#allocation14 + $0x8cc] ss:$16 sps:$4 sm:$0xff]   ;;  %v22471_v2 = vld [vmem:[#allocation14 + $0x8c0] ss:$16 sps:$4 sm:$0xff]  }
 0x899   : > { %6770 = vmatprep.subr.bf16.mxu0 %v19929_v4  ;;  %v22474_v4 = vld [vmem:[#allocation14 + $0x8c8] ss:$16 sps:$4 sm:$0xff]  }
 0x89b   : > { %6607 = vmatpush1.bf16.msra.mxu1 %v19926_v12  ;;  %v22485_v12 = vld [vmem:[#allocation14 + $0x904] ss:$16 sps:$4 sm:$0xff]  }
 0x89c   : > { %6771 = vmatpush1.bf16.msra.mxu0 %v19928_v10  ;;  %6608 = vmatprep.subr.bf16.mxu1 %v19935_v13  ;;  %v22488_v10 = vld [vmem:[#allocation14 + $0x90c] ss:$16 sps:$4 sm:$0xff]   ;;  %v22483_v13 = vld [vmem:[#allocation14 + $0x900] ss:$16 sps:$4 sm:$0xff]  }
 0x89d   : > { %6772 = vmatprep.subr.bf16.mxu0 %v19937_v14  ;;  %v22486_v14 = vld [vmem:[#allocation14 + $0x908] ss:$16 sps:$4 sm:$0xff]  }
 0x89f   : > { %6609 = vmatpush1.bf16.msra.mxu1 %v19934_v16  ;;  %v22491_v16 = vld [vmem:[#allocation14 + $0x924] ss:$16 sps:$4 sm:$0xff]  }
 0x8a0   : > { %6773 = vmatpush1.bf16.msra.mxu0 %v19936_v17  ;;  %8804 = vmatprep.subr.bf16.mxu1 %v22437_v26  ;;  %v22494_v17 = vld [vmem:[#allocation14 + $0x92c] ss:$16 sps:$4 sm:$0xff]  }
 0x8a1   : > { %8968 = vmatprep.subr.bf16.mxu0 %v22440_v29 }
 0x8a2   : > { %6611 = vmatmul.mubr.bf16.vlgmr.msra.gmra.mrb[16].mxu1 %v26653_v40 }
 0x8a3   : > { %6775 = vmatmul.mubr.bf16.vlgmr.msra.gmra.mrb[20].mxu0 %v26653_v40 }
 0x8a4   : > { %8969 = vmatpush1.bf16.msra.mxu0 %v22438_v27 }
 0x8a5   : > { %8970 = vmatprep.subr.bf16.mxu0 %v22446_v41 }
 0x8a8   : > { %8971 = vmatpush1.bf16.msra.mxu0 %v22444_v43 }
 0x8a9   : > { %8972 = vmatprep.subr.bf16.mxu0 %v22452_v11 }
 0x8ac   : > { %8973 = vmatpush1.bf16.msra.mxu0 %v22450_v47 }
 0x8ad   : > { %8974 = vmatprep.subr.bf16.mxu0 %v22458_v24 }
 0x8b0   : > { %8975 = vmatpush1.bf16.msra.mxu0 %v22456_v54 }
 0x8b1   : > { %8976 = vmatprep.subr.bf16.mxu0 %v22464_v56 }
 0x8b4   : > { %8977 = vmatpush1.bf16.msra.mxu0 %v22462_v59  ;;  %v22500_v59 = vld [vmem:[#allocation14 + $0x94c] ss:$16 sps:$4 sm:$0xff]  }
 0x8b5   : > { %8978 = vmatprep.subr.bf16.mxu0 %v22470_v52  ;;  %v22498_v52 = vld [vmem:[#allocation14 + $0x948] ss:$16 sps:$4 sm:$0xff]  }
 0x8b8   : > { %8979 = vmatpush1.bf16.msra.mxu0 %v22468_v62  ;;  %v22503_v62 = vld [vmem:[#allocation14 + $0x964] ss:$16 sps:$4 sm:$0xff]  }
 0x8b9   : > { %8980 = vmatprep.subr.bf16.mxu0 %v22476_v1  ;;  %v22506_v1 = vld [vmem:[#allocation14 + $0x96c] ss:$16 sps:$4 sm:$0xff]  }
 0x8bc   : > { %8981 = vmatpush1.bf16.msra.mxu0 %v22474_v4  ;;  %v22512_v4 = vld [vmem:[#allocation14 + $0x98c] ss:$16 sps:$4 sm:$0xff]  }
 0x8bd   : > { %8982 = vmatprep.subr.bf16.mxu0 %v22482_v3  ;;  %v22510_v3 = vld [vmem:[#allocation14 + $0x988] ss:$16 sps:$4 sm:$0xff]  }
 0x8c0   : > { %8983 = vmatpush1.bf16.msra.mxu0 %v22480_v9  ;;  %v22518_v9 = vld [vmem:[#allocation14 + $0x9ac] ss:$16 sps:$4 sm:$0xff]  }
 0x8c1   : > { %8984 = vmatprep.subr.bf16.mxu0 %v22488_v10  ;;  %v22516_v10 = vld [vmem:[#allocation14 + $0x9a8] ss:$16 sps:$4 sm:$0xff]  }
 0x8c4   : > { %8985 = vmatpush1.bf16.msra.mxu0 %v22486_v14  ;;  %v22524_v14 = vld [vmem:[#allocation14 + $0x9cc] ss:$16 sps:$4 sm:$0xff]  }
 0x8c5   : > { %8986 = vmatprep.subr.bf16.mxu0 %v22494_v17  ;;  %v22522_v17 = vld [vmem:[#allocation14 + $0x9c8] ss:$16 sps:$4 sm:$0xff]  }
 0x975   : > { %v26939_v18 = vpop.f32.mrb[16].mxu1 }
 0x976   : > { %v6791_v20 = vsel %vm6783_vm5, %v26939_v18, 0.0  ;;  %v26943_v21 = vpop.f32.mrb[20].mxu0  ;;  %v26945_v23 = vpop.f32.mrb[17].mxu1 }
 0x977   : > { %v6792_v60 = vadd.f32 %v6791_v20, %v26907_v6  ;;  %v6793_v50 = vsel %vm6783_vm5, %v26945_v23, 0.0  ;;  %v26950_v7 = vpop.f32.mrb[21].mxu0  ;;  %v6616_v34 = vpop.f32.mrb[18].mxu1  ;;  %v6795_v22 = vsel %vm6783_vm5, %v26943_v21, 0.0  ;;  %v22435_v6 = vld [vmem:[#allocation14 + $0x800] ss:$16 sps:$4 sm:$0xff]  }
 0x978   : > { %v6780_v58 = vpop.f32.mrb[22].mxu0  ;;  %v6617_v15 = vpop.f32.mrb[19].mxu1  ;;  %v6797_v0 = vsel %vm6783_vm5, %v26950_v7, 0.0  ;;  %8805 = vmatpush1.bf16.msra.mxu1 %v22435_v6  ;;  %v22489_v20 = vld [vmem:[#allocation14 + $0x920] ss:$16 sps:$4 sm:$0xff]   ;;  %v6803_v34 = vand.u32 127, %v1134_v32 }
 0x979   : > { %v6794_v40 = vadd.f32 %v6793_v50, %v6792_v60  ;;  %v6781_v19 = vpop.f32.mrb[23].mxu0  ;;  %8806 = vmatprep.subr.bf16.mxu1 %v22443_v30  ;;  %v22492_v60 = vld [vmem:[#allocation14 + $0x928] ss:$16 sps:$4 sm:$0xff]  }
 0x97a   : > { %8987 = vmatpush1.bf16.msra.mxu0 %v22492_v60  ;;  %v22530_v60 = vld [vmem:[#allocation14 + $0x9ec] ss:$16 sps:$4 sm:$0xff]   ;;  %v24369_v32 = vld [vmem:[#allocation17 + $0x44] ss:$16 sps:$4 sm:$0xff] (!%p19421_p1)  }
 0x97b   : > { %v6796_v28 = vadd.f32 %v6795_v22, %v6794_v40  ;;  %8988 = vmatprep.subr.bf16.mxu0 %v22500_v59 }
 0x97c   : > { %8807 = vmatpush1.bf16.msra.mxu1 %v22441_v42 }
 0x97d   : > { %v6798_v25 = vadd.f32 %v6797_v0, %v6796_v28  ;;  %8808 = vmatprep.subr.bf16.mxu1 %v22449_v44  ;;  %v6810_v28 = vadd.s32 896, %v6803_v34  ;;  %v22528_v34 = vld [vmem:[#allocation14 + $0x9e8] ss:$16 sps:$4 sm:$0xff]  }
 0x97e   : > { %8989 = vmatpush1.bf16.msra.mxu0 %v22498_v52 }
 0x97f   : > { %6799 = vadd.xlane.f32.xlu0 %v6798_v25  ;;  %vm6818_vm6 = vcmp.lt.s32.totalorder %v6810_v28, 1000  ;;  %8990 = vmatprep.subr.bf16.mxu0 %v22506_v1  ;;  %v22536_v28 = vld [vmem:[#allocation14 + $0xa0c] ss:$16 sps:$4 sm:$0xff]  }
 0x980   : > { %8809 = vmatpush1.bf16.msra.mxu1 %v22447_v53 }
 0x981   : > { %8810 = vmatprep.subr.bf16.mxu1 %v22455_v49 }
 0x984   : > { %8811 = vmatpush1.bf16.msra.mxu1 %v22453_v51 }
 0x985   : > { %8812 = vmatprep.subr.bf16.mxu1 %v22461_v55 }
 0x988   : > { %8813 = vmatpush1.bf16.msra.mxu1 %v22459_v57  ;;  %v22497_v57 = vld [vmem:[#allocation14 + $0x944] ss:$16 sps:$4 sm:$0xff]  }
 0x989   : > { %8814 = vmatprep.subr.bf16.mxu1 %v22467_v48  ;;  %v22495_v48 = vld [vmem:[#allocation14 + $0x940] ss:$16 sps:$4 sm:$0xff]  }
 0x98c   : > { %8815 = vmatpush1.bf16.msra.mxu1 %v22465_v61  ;;  %v22501_v61 = vld [vmem:[#allocation14 + $0x960] ss:$16 sps:$4 sm:$0xff]  }
 0x98d   : > { %8816 = vmatprep.subr.bf16.mxu1 %v22473_v63  ;;  %v22504_v63 = vld [vmem:[#allocation14 + $0x968] ss:$16 sps:$4 sm:$0xff]  }
 0x98e   : > { %8991 = vmatpush1.bf16.msra.mxu0 %v22504_v63 }
 0x98f   : > { %8992 = vmatprep.subr.bf16.mxu0 %v22512_v4 }
 0x990   : > { %8817 = vmatpush1.bf16.msra.mxu1 %v22471_v2  ;;  %v22509_v2 = vld [vmem:[#allocation14 + $0x984] ss:$16 sps:$4 sm:$0xff]  }
 0x991   : > { %8818 = vmatprep.subr.bf16.mxu1 %v22479_v5  ;;  %v22507_v5 = vld [vmem:[#allocation14 + $0x980] ss:$16 sps:$4 sm:$0xff]  }
 0x992   : > { %8993 = vmatpush1.bf16.msra.mxu0 %v22510_v3 }
 0x993   : > { %8994 = vmatprep.subr.bf16.mxu0 %v22518_v9 }
 0x994   : > { %8819 = vmatpush1.bf16.msra.mxu1 %v22477_v8  ;;  %v22515_v8 = vld [vmem:[#allocation14 + $0x9a4] ss:$16 sps:$4 sm:$0xff]  }
 0x995   : > { %8820 = vmatprep.subr.bf16.mxu1 %v22485_v12  ;;  %v22513_v12 = vld [vmem:[#allocation14 + $0x9a0] ss:$16 sps:$4 sm:$0xff]  }
 0x996   : > { %8995 = vmatpush1.bf16.msra.mxu0 %v22516_v10 }
 0x997   : > { %8996 = vmatprep.subr.bf16.mxu0 %v22524_v14 }
 0x998   : > { %8821 = vmatpush1.bf16.msra.mxu1 %v22483_v13  ;;  %v22521_v13 = vld [vmem:[#allocation14 + $0x9c4] ss:$16 sps:$4 sm:$0xff]  }
 0x999   : > { %8822 = vmatprep.subr.bf16.mxu1 %v22491_v16  ;;  %v22519_v16 = vld [vmem:[#allocation14 + $0x9c0] ss:$16 sps:$4 sm:$0xff]  }
 0x99a   : > { %8997 = vmatpush1.bf16.msra.mxu0 %v22522_v17 }
 0x99b   : > { %8998 = vmatprep.subr.bf16.mxu0 %v22530_v60 }
 0x99c   : > { %8823 = vmatpush1.bf16.msra.mxu1 %v22489_v20  ;;  %v22527_v20 = vld [vmem:[#allocation14 + $0x9e4] ss:$16 sps:$4 sm:$0xff]  }
 0x99d   : > { %8824 = vmatprep.subr.bf16.mxu1 %v22497_v57 }
 0x99e   : > { %8999 = vmatpush1.bf16.msra.mxu0 %v22528_v34  ;;  %v22534_v34 = vld [vmem:[#allocation14 + $0xa08] ss:$16 sps:$4 sm:$0xff]  }
 0x99f   : > { %9009 = vmatprep.subr.bf16.mxu0 %v22536_v28  ;;  %v22539_v28 = vld [vmem:[#allocation14 + $0xa24] ss:$16 sps:$4 sm:$0xff]  }
 0x9a0   : > { %8825 = vmatpush1.bf16.msra.mxu1 %v22495_v48 }
 0x9a1   : > { %8826 = vmatprep.subr.bf16.mxu1 %v22503_v62 }
 0x9a4   : > { %8827 = vmatpush1.bf16.msra.mxu1 %v22501_v61 }
 0x9a5   : > { %8828 = vmatprep.subr.bf16.mxu1 %v22509_v2 }
 0x9a8   : > { %8829 = vmatpush1.bf16.msra.mxu1 %v22507_v5 }
 0x9a9   : > { %8830 = vmatprep.subr.bf16.mxu1 %v22515_v8 }
 0x9ac   : > { %8831 = vmatpush1.bf16.msra.mxu1 %v22513_v12 }
 0x9ad   : > { %8832 = vmatprep.subr.bf16.mxu1 %v22521_v13 }
 0x9b0   : > { %8833 = vmatpush1.bf16.msra.mxu1 %v22519_v16 }
 0x9b1   : > { %8834 = vmatprep.subr.bf16.mxu1 %v22527_v20 }
 0xa0c   : > { %v6800_v50 = vpop.xlane.xlu0 %6799 }
 0xa0d   : > { %v6801_v58 = vmul.f32 0.001, %v6800_v50  ;;  %v22525_v50 = vld [vmem:[#allocation14 + $0x9e0] ss:$16 sps:$4 sm:$0xff]  }
 0xa0e   : > { %8835 = vmatpush1.bf16.msra.mxu1 %v22525_v50  ;;  %v22531_v50 = vld [vmem:[#allocation14 + $0xa00] ss:$16 sps:$4 sm:$0xff]  }
 0xa0f   : > { %v26958_v15 = vsub.f32 %v26883_v31, %v6801_v58  ;;  %v26961_v40 = vsub.f32 %v26891_v45, %v6801_v58  ;;  %v26964_v19 = vsub.f32 %v26885_v37, %v6801_v58  ;;  %v26967_v22 = vsub.f32 %v26893_v46, %v6801_v58 }
 0xa10   : > { %v26970_v0 = vsub.f32 %v26939_v18, %v6801_v58  ;;  %v26979_v6 = vsub.f32 %v26945_v23, %v6801_v58  ;;  %v6826_v26 = vsub.f32 %v26950_v7, %v6801_v58  ;;  %v26987_v29 = vsub.f32 %v26943_v21, %v6801_v58  ;;  %v22533_v58 = vld [vmem:[#allocation14 + $0xa04] ss:$16 sps:$4 sm:$0xff]  }
 0xa11   : > { %v6835_v25 = vmul.f32 %v26958_v15, %v26958_v15  ;;  %v6836_v31 = vmul.f32 %v26961_v40, %v26961_v40  ;;  %v6837_v45 = vmul.f32 %v26964_v19, %v26964_v19  ;;  %v6838_v37 = vmul.f32 %v26967_v22, %v26967_v22  ;;  %8845 = vmatprep.subr.bf16.mxu1 %v22533_v58 }
 0xa12   : > { %v6839_v30 = vmul.f32 %v26970_v0, %v26970_v0  ;;  %v6840_v42 = vmul.f32 %v26979_v6, %v26979_v6  ;;  %v26995_v44 = vsel %vm6818_vm6, %v6826_v26, 0.0  ;;  %v6841_v7 = vmul.f32 %v26987_v29, %v26987_v29 }
 0xa13   : > { %v6843_v46 = vsel %vm6783_vm5, %v6835_v25, 0.0  ;;  %v6844_v18 = vsel %vm6783_vm5, %v6836_v31, 0.0  ;;  %v6846_v23 = vsel %vm6783_vm5, %v6837_v45, 0.0  ;;  %v6848_v43 = vsel %vm6783_vm5, %v6838_v37, 0.0  ;;  %v6871_v37 = vld [vmem:[%s25981_s3] sm:$0xff] }
 0xa14   : > { %v6845_v27 = vadd.f32 %v6844_v18, %v6843_v46  ;;  %v6850_v21 = vsel %vm6783_vm5, %v6839_v30, 0.0  ;;  %v6842_v47 = vmul.f32 %v26995_v44, %v26995_v44  ;;  %v6852_v49 = vsel %vm6783_vm5, %v6840_v42, 0.0 }
 0xa15   : > { %v6854_v51 = vsel %vm6783_vm5, %v6841_v7, 0.0  ;;  %v6895_v46 = vsub.s32 5, %v26304_v33  ;;  %v6891_v18 = vsub.s32 4, %v26304_v33  ;;  %v6903_v26 = vsub.s32 7, %v26304_v33 }
 0xa16   : > { %v6847_v41 = vadd.f32 %v6846_v23, %v6845_v27  ;;  %v6856_v55 = vsel %vm6783_vm5, %v6842_v47, 0.0  ;;  %v6921_v27 = vld [vmem:[%s25983_s28] sm:$0xff]  ;;  %v6899_v30 = vsub.s32 6, %v26304_v33  ;;  %v6880_v23 = vrot.slane %v6871_v37, %v26307_v35 }
 0xa17   : > { %v6888_v42 = vrot.slane %v6871_v37, %v26310_v36  ;;  %v6896_v7 = vrot.slane %v6871_v37, %v6895_v46  ;;  %v6926_v47 = vrot.slane %v6921_v27, %v26317_v39 }
 0xa18   : > { %v6849_v11 = vadd.f32 %v6848_v43, %v6847_v41  ;;  %v6876_v41 = vrot.slane %v6871_v37, %v26317_v39  ;;  %v6884_v43 = vrot.slane %v6871_v37, %v26314_v38  ;;  %v6900_v57 = vrot.slane %v6871_v37, %v6899_v30 }
 0xa19   : > { %v6950_v59 = vrot.slane %v6921_v27, %v6899_v30  ;;  %v22551_v30 = vld [vmem:[#allocation14 + $0xa64] ss:$16 sps:$4 sm:$0xff]  }
 0xa1a   : > { %v6851_v53 = vadd.f32 %v6850_v21, %v6849_v11  ;;  %v6930_v11 = vrot.slane %v6921_v27, %v26307_v35  ;;  %v6892_v21 = vrot.slane %v6871_v37, %v6891_v18 }
 0xa1c   : > { %v6853_v24 = vadd.f32 %v6852_v49, %v6851_v53  ;;  %v6904_v53 = vrot.slane %v6871_v37, %v6903_v26  ;;  %v6938_v49 = vrot.slane %v6921_v27, %v26310_v36  ;;  %v22540_v37 = vld [vmem:[#allocation14 + $0xa28] ss:$16 sps:$4 sm:$0xff]  }
 0xa1e   : > { %v6855_v54 = vadd.f32 %v6854_v51, %v6853_v24  ;;  %v6934_v24 = vrot.slane %v6921_v27, %v26314_v38  ;;  %v6946_v51 = vrot.slane %v6921_v27, %v6895_v46  ;;  %v22545_v46 = vld [vmem:[#allocation14 + $0xa44] ss:$16 sps:$4 sm:$0xff]  }
 0xa20   : > { %v6857_v56 = vadd.f32 %v6856_v55, %v6855_v54  ;;  %v6942_v55 = vrot.slane %v6921_v27, %v6891_v18  ;;  %v22548_v18 = vld [vmem:[#allocation14 + $0xa4c] ss:$16 sps:$4 sm:$0xff]  }
 0xa22   : > { %6858 = vadd.xlane.f32.xlu0 %v6857_v56  ;;  %v6954_v56 = vrot.slane %v6921_v27, %v6903_v26  ;;  %v22543_v26 = vld [vmem:[#allocation14 + $0xa40] ss:$16 sps:$4 sm:$0xff]   ;;  %v22546_v27 = vld [vmem:[#allocation14 + $0xa48] ss:$16 sps:$4 sm:$0xff]  }
 0xaaf   : > { %v6859_v25 = vpop.xlane.xlu0 %6858 }
 0xab0   : > { %v6860_v31 = vmul.f32 0.001, %v6859_v25  ;;  %v22542_v25 = vld [vmem:[#allocation14 + $0xa2c] ss:$16 sps:$4 sm:$0xff]  }
 0xab2   : > { %v6861_v45 = vadd.f32 1e-05, %v6860_v31 }
 0xab4   : > { %24355 = vrsqrt.f32 %v6861_v45  ;;  %v22537_v45 = vld [vmem:[#allocation14 + $0xa20] ss:$16 sps:$4 sm:$0xff]  }
 0xabe   : > { %v24356_v54 = vpop.eup %24355 }
 0xabf   : > { %v6864_v48 = vmul.f32 %v24356_v54, %v26961_v40  ;;  %v6863_v52 = vmul.f32 %v24356_v54, %v26958_v15  ;;  %v6866_v61 = vmul.f32 %v24356_v54, %v26967_v22  ;;  %v6865_v62 = vmul.f32 %v24356_v54, %v26964_v19 }
 0xac0   : > { %v6868_v63 = vmul.f32 %v24356_v54, %v26979_v6  ;;  %v6867_v1 = vmul.f32 %v24356_v54, %v26970_v0  ;;  %v6870_v2 = vmul.f32 %v24356_v54, %v26995_v44  ;;  %v6869_v4 = vmul.f32 %v24356_v54, %v26987_v29  ;;  %v22572_v54 = vld [vmem:[#allocation14 + $0xacc] ss:$16 sps:$4 sm:$0xff]  }
 0xac1   : > { %v6914_v5 = vmul.f32 %v6880_v23, %v6864_v48  ;;  %v6913_v3 = vmul.f32 %v6876_v41, %v6863_v52  ;;  %v6916_v8 = vmul.f32 %v6888_v42, %v6866_v61  ;;  %v6915_v9 = vmul.f32 %v6884_v43, %v6865_v62  ;;  %v22554_v23 = vld [vmem:[#allocation14 + $0xa6c] ss:$16 sps:$4 sm:$0xff]   ;;  %v22549_v41 = vld [vmem:[#allocation14 + $0xa60] ss:$16 sps:$4 sm:$0xff]   ;;  %v22552_v42 = vld [vmem:[#allocation14 + $0xa68] ss:$16 sps:$4 sm:$0xff]  }
 0xac2   : > { %v6918_v12 = vmul.f32 %v6896_v7, %v6868_v63  ;;  %v6917_v40 = vmul.f32 %v6892_v21, %v6867_v1  ;;  %v6920_v10 = vmul.f32 %v6904_v53, %v6870_v2  ;;  %v6919_v15 = vmul.f32 %v6900_v57, %v6869_v4  ;;  %v22557_v43 = vld [vmem:[#allocation14 + $0xa84] ss:$16 sps:$4 sm:$0xff]   ;;  %v22555_v7 = vld [vmem:[#allocation14 + $0xa80] ss:$16 sps:$4 sm:$0xff]   ;;  %v22558_v21 = vld [vmem:[#allocation14 + $0xa88] ss:$16 sps:$4 sm:$0xff]  }
 0xac3   : > { %v6964_v13 = vadd.f32 %v6930_v11, %v6914_v5  ;;  %v6963_v22 = vadd.f32 %v6926_v47, %v6913_v3  ;;  %v6966_v14 = vadd.f32 %v6938_v49, %v6916_v8  ;;  %v27027_v19 = vadd.f32 %v6934_v24, %v6915_v9  ;;  %v22560_v11 = vld [vmem:[#allocation14 + $0xa8c] ss:$16 sps:$4 sm:$0xff]   ;;  %v22563_v53 = vld [vmem:[#allocation14 + $0xaa4] ss:$16 sps:$4 sm:$0xff]   ;;  %v22561_v49 = vld [vmem:[#allocation14 + $0xaa0] ss:$16 sps:$4 sm:$0xff]  }
 0xac4   : > { %v27029_v6 = vadd.f32 %v6946_v51, %v6918_v12  ;;  %v27031_v0 = vadd.f32 %v6942_v55, %v6917_v40  ;;  %v27033_v44 = vadd.f32 %v6954_v56, %v6920_v10  ;;  %v27035_v29 = vadd.f32 %v6950_v59, %v6919_v15  ;;  %v22566_v47 = vld [vmem:[#allocation14 + $0xaac] ss:$16 sps:$4 sm:$0xff]   ;;  %v22564_v24 = vld [vmem:[#allocation14 + $0xaa8] ss:$16 sps:$4 sm:$0xff]   ;;  %v22569_v51 = vld [vmem:[#allocation14 + $0xac4] ss:$16 sps:$4 sm:$0xff]  }
 0xac5   : > { %v27037_v16 = vpack.c.bf16 %v6964_v13, %v6964_v13  ;;  %v27039_v17 = vpack.c.bf16 %v6963_v22, %v6963_v22  ;;  %v27041_v20 = vpack.c.bf16 %v6966_v14, %v6966_v14  ;;  %v22567_v55 = vld [vmem:[#allocation14 + $0xac0] ss:$16 sps:$4 sm:$0xff]   ;;  %v22570_v56 = vld [vmem:[#allocation14 + $0xac8] ss:$16 sps:$4 sm:$0xff]   ;;  %v22575_v57 = vld [vmem:[#allocation14 + $0xae4] ss:$16 sps:$4 sm:$0xff]  }
 0xac6   : > { %v22578_v59 = vld [vmem:[#allocation14 + $0xaec] ss:$16 sps:$4 sm:$0xff]   ;;  %v22573_v48 = vld [vmem:[#allocation14 + $0xae0] ss:$16 sps:$4 sm:$0xff]   ;;  %v22576_v52 = vld [vmem:[#allocation14 + $0xae8] ss:$16 sps:$4 sm:$0xff]  }
 0xac7   : > { %v27044_v60 = vshrl.u32 %v27037_v16, 16  ;;  %v27047_v58 = vshrl.u32 %v27039_v17, 16  ;;  %v27054_v31 = vshrl.u32 %v27041_v20, 16  ;;  %v22581_v61 = vld [vmem:[#allocation14 + $0xb04] ss:$16 sps:$4 sm:$0xff]  }
 0xac8   : > { %v22584_v62 = vld [vmem:[#allocation14 + $0xb0c] ss:$16 sps:$4 sm:$0xff]   ;;  %v22579_v63 = vld [vmem:[#allocation14 + $0xb00] ss:$16 sps:$4 sm:$0xff]   ;;  %v22582_v1 = vld [vmem:[#allocation14 + $0xb08] ss:$16 sps:$4 sm:$0xff]  }
 0xac9   : > { %8836 = vmatprep.mubr.bf16.mxu1 %v27044_v60  ;;  %9000 = vmatprep.mubr.bf16.mxu0 %v27044_v60  ;;  %v22587_v2 = vld [vmem:[#allocation14 + $0xb24] ss:$16 sps:$4 sm:$0xff]   ;;  %v22590_v4 = vld [vmem:[#allocation14 + $0xb2c] ss:$16 sps:$4 sm:$0xff]   ;;  %v22585_v5 = vld [vmem:[#allocation14 + $0xb20] ss:$16 sps:$4 sm:$0xff]  }
 0xaca   : > { %8837 = vmatmul.mubr.bf16.vlgmr.msra.gmra.mrb[20].mxu1 %v27047_v58  ;;  %9001 = vmatmul.mubr.bf16.vlgmr.msra.gmra.mrb[24].mxu0 %v27047_v58  ;;  %v22588_v3 = vld [vmem:[#allocation14 + $0xb28] ss:$16 sps:$4 sm:$0xff]   ;;  %v22593_v8 = vld [vmem:[#allocation14 + $0xb44] ss:$16 sps:$4 sm:$0xff]   ;;  %v22596_v9 = vld [vmem:[#allocation14 + $0xb4c] ss:$16 sps:$4 sm:$0xff]  }
 0xacb   : > { %8846 = vmatpush1.bf16.msra.mxu1 %v22531_v50  ;;  %9010 = vmatpush1.bf16.msra.mxu0 %v22534_v34  ;;  %v22591_v12 = vld [vmem:[#allocation14 + $0xb40] ss:$16 sps:$4 sm:$0xff]   ;;  %v22594_v40 = vld [vmem:[#allocation14 + $0xb48] ss:$16 sps:$4 sm:$0xff]   ;;  %v22599_v10 = vld [vmem:[#allocation14 + $0xb64] ss:$16 sps:$4 sm:$0xff]  }
 0xacc   : > { %8877 = vmatprep.mubr.bf16.mxu1 %v27054_v31  ;;  %9041 = vmatprep.mubr.bf16.mxu0 %v27054_v31  ;;  %v22602_v15 = vld [vmem:[#allocation14 + $0xb6c] ss:$16 sps:$4 sm:$0xff]   ;;  %v22597_v13 = vld [vmem:[#allocation14 + $0xb60] ss:$16 sps:$4 sm:$0xff]   ;;  %v22600_v22 = vld [vmem:[#allocation14 + $0xb68] ss:$16 sps:$4 sm:$0xff]  }
 0xacd   : > { %8847 = vmatprep.subr.bf16.mxu1 %v22539_v28  ;;  %9011 = vmatprep.subr.bf16.mxu0 %v22542_v25  ;;  %v22605_v14 = vld [vmem:[#allocation14 + $0xb84] ss:$16 sps:$4 sm:$0xff]   ;;  %v22608_v50 = vld [vmem:[#allocation14 + $0xb8c] ss:$16 sps:$4 sm:$0xff]   ;;  %v22603_v34 = vld [vmem:[#allocation14 + $0xb80] ss:$16 sps:$4 sm:$0xff]  }
 0xace   : > { %v22606_v28 = vld [vmem:[#allocation14 + $0xb88] ss:$16 sps:$4 sm:$0xff]   ;;  %v22611_v25 = vld [vmem:[#allocation14 + $0xba4] ss:$16 sps:$4 sm:$0xff]  }
 0xacf   : > { %8848 = vmatpush1.bf16.msra.mxu1 %v22537_v45  ;;  %9012 = vmatpush1.bf16.msra.mxu0 %v22540_v37  ;;  %v22614_v45 = vld [vmem:[#allocation14 + $0xbac] ss:$16 sps:$4 sm:$0xff]   ;;  %v22609_v37 = vld [vmem:[#allocation14 + $0xba0] ss:$16 sps:$4 sm:$0xff]  }
 0xad0   : > { %8849 = vmatprep.subr.bf16.mxu1 %v22545_v46  ;;  %9013 = vmatprep.subr.bf16.mxu0 %v22548_v18  ;;  %v22612_v46 = vld [vmem:[#allocation14 + $0xba8] ss:$16 sps:$4 sm:$0xff]   ;;  %v22617_v18 = vld [vmem:[#allocation14 + $0xbc4] ss:$16 sps:$4 sm:$0xff]  }
 0xad3   : > { %8850 = vmatpush1.bf16.msra.mxu1 %v22543_v26  ;;  %9014 = vmatpush1.bf16.msra.mxu0 %v22546_v27  ;;  %v22620_v26 = vld [vmem:[#allocation14 + $0xbcc] ss:$16 sps:$4 sm:$0xff]   ;;  %v22615_v27 = vld [vmem:[#allocation14 + $0xbc0] ss:$16 sps:$4 sm:$0xff]  }
 0xad4   : > { %8851 = vmatprep.subr.bf16.mxu1 %v22551_v30  ;;  %9015 = vmatprep.subr.bf16.mxu0 %v22554_v23  ;;  %v22618_v30 = vld [vmem:[#allocation14 + $0xbc8] ss:$16 sps:$4 sm:$0xff]   ;;  %v22623_v23 = vld [vmem:[#allocation14 + $0xbe4] ss:$16 sps:$4 sm:$0xff]  }
 0xad7   : > { %8852 = vmatpush1.bf16.msra.mxu1 %v22549_v41  ;;  %9016 = vmatpush1.bf16.msra.mxu0 %v22552_v42  ;;  %v22626_v41 = vld [vmem:[#allocation14 + $0xbec] ss:$16 sps:$4 sm:$0xff]   ;;  %v22621_v42 = vld [vmem:[#allocation14 + $0xbe0] ss:$16 sps:$4 sm:$0xff]  }
 0xad8   : > { %8853 = vmatprep.subr.bf16.mxu1 %v22557_v43  ;;  %9017 = vmatprep.subr.bf16.mxu0 %v22560_v11  ;;  %v22624_v43 = vld [vmem:[#allocation14 + $0xbe8] ss:$16 sps:$4 sm:$0xff]   ;;  %v27060_v11 = vpack.c.bf16 %v27027_v19, %v27027_v19  ;;  %v22635_v19 = vld [vmem:[#allocation14 + $0xc24] ss:$16 sps:$4 sm:$0xff]  }
 0xadb   : > { %8854 = vmatpush1.bf16.msra.mxu1 %v22555_v7  ;;  %9018 = vmatpush1.bf16.msra.mxu0 %v22558_v21  ;;  %v22629_v7 = vld [vmem:[#allocation14 + $0xc04] ss:$16 sps:$4 sm:$0xff]   ;;  %v22632_v21 = vld [vmem:[#allocation14 + $0xc0c] ss:$16 sps:$4 sm:$0xff]  }
 0xadc   : > { %8855 = vmatprep.subr.bf16.mxu1 %v22563_v53  ;;  %9019 = vmatprep.subr.bf16.mxu0 %v22566_v47  ;;  %v27064_v53 = vpack.c.bf16 %v27029_v6, %v27029_v6  ;;  %v22627_v47 = vld [vmem:[#allocation14 + $0xc00] ss:$16 sps:$4 sm:$0xff]  }
 0xadd   : > { %v22633_v6 = vld [vmem:[#allocation14 + $0xc20] ss:$16 sps:$4 sm:$0xff]  }
 0xadf   : > { %8856 = vmatpush1.bf16.msra.mxu1 %v22561_v49  ;;  %9020 = vmatpush1.bf16.msra.mxu0 %v22564_v24  ;;  %v27067_v49 = vshrl.u32 %v27060_v11, 16  ;;  %v22630_v24 = vld [vmem:[#allocation14 + $0xc08] ss:$16 sps:$4 sm:$0xff]  }
 0xae0   : > { %8857 = vmatprep.subr.bf16.mxu1 %v22569_v51  ;;  %9021 = vmatprep.subr.bf16.mxu0 %v22572_v54  ;;  %v27070_v51 = vshrl.u32 %v27064_v53, 16  ;;  %v22638_v54 = vld [vmem:[#allocation14 + $0xc2c] ss:$16 sps:$4 sm:$0xff]  }
 0xae3   : > { %8858 = vmatpush1.bf16.msra.mxu1 %v22567_v55  ;;  %9022 = vmatpush1.bf16.msra.mxu0 %v22570_v56  ;;  %v22636_v55 = vld [vmem:[#allocation14 + $0xc28] ss:$16 sps:$4 sm:$0xff]   ;;  %v22641_v56 = vld [vmem:[#allocation14 + $0xc44] ss:$16 sps:$4 sm:$0xff]  }
 0xae4   : > { %8859 = vmatprep.subr.bf16.mxu1 %v22575_v57  ;;  %9023 = vmatprep.subr.bf16.mxu0 %v22578_v59  ;;  %v22644_v57 = vld [vmem:[#allocation14 + $0xc4c] ss:$16 sps:$4 sm:$0xff]   ;;  %v22639_v59 = vld [vmem:[#allocation14 + $0xc40] ss:$16 sps:$4 sm:$0xff]  }
 0xae7   : > { %8860 = vmatpush1.bf16.msra.mxu1 %v22573_v48  ;;  %9024 = vmatpush1.bf16.msra.mxu0 %v22576_v52  ;;  %v22642_v48 = vld [vmem:[#allocation14 + $0xc48] ss:$16 sps:$4 sm:$0xff]   ;;  %v22647_v52 = vld [vmem:[#allocation14 + $0xc64] ss:$16 sps:$4 sm:$0xff]  }
 0xae8   : > { %8861 = vmatprep.subr.bf16.mxu1 %v22581_v61  ;;  %9025 = vmatprep.subr.bf16.mxu0 %v22584_v62  ;;  %v22650_v61 = vld [vmem:[#allocation14 + $0xc6c] ss:$16 sps:$4 sm:$0xff]   ;;  %v22645_v62 = vld [vmem:[#allocation14 + $0xc60] ss:$16 sps:$4 sm:$0xff]  }
 0xaeb   : > { %8862 = vmatpush1.bf16.msra.mxu1 %v22579_v63  ;;  %9026 = vmatpush1.bf16.msra.mxu0 %v22582_v1  ;;  %v22648_v63 = vld [vmem:[#allocation14 + $0xc68] ss:$16 sps:$4 sm:$0xff]   ;;  %v22653_v1 = vld [vmem:[#allocation14 + $0xc84] ss:$16 sps:$4 sm:$0xff]  }
 0xaec   : > { %8863 = vmatprep.subr.bf16.mxu1 %v22587_v2  ;;  %9027 = vmatprep.subr.bf16.mxu0 %v22590_v4  ;;  %v22656_v2 = vld [vmem:[#allocation14 + $0xc8c] ss:$16 sps:$4 sm:$0xff]   ;;  %v22651_v4 = vld [vmem:[#allocation14 + $0xc80] ss:$16 sps:$4 sm:$0xff]  }
 0xaef   : > { %8864 = vmatpush1.bf16.msra.mxu1 %v22585_v5  ;;  %9028 = vmatpush1.bf16.msra.mxu0 %v22588_v3  ;;  %v22654_v5 = vld [vmem:[#allocation14 + $0xc88] ss:$16 sps:$4 sm:$0xff]   ;;  %v22659_v3 = vld [vmem:[#allocation14 + $0xca4] ss:$16 sps:$4 sm:$0xff]  }
 0xaf0   : > { %8865 = vmatprep.subr.bf16.mxu1 %v22593_v8  ;;  %9029 = vmatprep.subr.bf16.mxu0 %v22596_v9  ;;  %v22662_v8 = vld [vmem:[#allocation14 + $0xcac] ss:$16 sps:$4 sm:$0xff]   ;;  %v22657_v9 = vld [vmem:[#allocation14 + $0xca0] ss:$16 sps:$4 sm:$0xff]  }
 0xaf3   : > { %8866 = vmatpush1.bf16.msra.mxu1 %v22591_v12  ;;  %9030 = vmatpush1.bf16.msra.mxu0 %v22594_v40  ;;  %v22660_v12 = vld [vmem:[#allocation14 + $0xca8] ss:$16 sps:$4 sm:$0xff]   ;;  %v22665_v40 = vld [vmem:[#allocation14 + $0xcc4] ss:$16 sps:$4 sm:$0xff]  }
 0xaf4   : > { %8867 = vmatprep.subr.bf16.mxu1 %v22599_v10  ;;  %9031 = vmatprep.subr.bf16.mxu0 %v22602_v15  ;;  %v22668_v10 = vld [vmem:[#allocation14 + $0xccc] ss:$16 sps:$4 sm:$0xff]   ;;  %v22663_v15 = vld [vmem:[#allocation14 + $0xcc0] ss:$16 sps:$4 sm:$0xff]  }
 0xaf7   : > { %8868 = vmatpush1.bf16.msra.mxu1 %v22597_v13  ;;  %9032 = vmatpush1.bf16.msra.mxu0 %v22600_v22  ;;  %v22666_v13 = vld [vmem:[#allocation14 + $0xcc8] ss:$16 sps:$4 sm:$0xff]   ;;  %v22671_v22 = vld [vmem:[#allocation14 + $0xce4] ss:$16 sps:$4 sm:$0xff]  }
 0xaf8   : > { %8869 = vmatprep.subr.bf16.mxu1 %v22605_v14  ;;  %9033 = vmatprep.subr.bf16.mxu0 %v22608_v50  ;;  %v22674_v14 = vld [vmem:[#allocation14 + $0xcec] ss:$16 sps:$4 sm:$0xff]   ;;  %v22669_v50 = vld [vmem:[#allocation14 + $0xce0] ss:$16 sps:$4 sm:$0xff]  }
 0xafb   : > { %8870 = vmatpush1.bf16.msra.mxu1 %v22603_v34  ;;  %9034 = vmatpush1.bf16.msra.mxu0 %v22606_v28  ;;  %v22672_v34 = vld [vmem:[#allocation14 + $0xce8] ss:$16 sps:$4 sm:$0xff]   ;;  %v22677_v28 = vld [vmem:[#allocation14 + $0xd04] ss:$16 sps:$4 sm:$0xff]  }
 0xafc   : > { %8871 = vmatprep.subr.bf16.mxu1 %v22611_v25  ;;  %9035 = vmatprep.subr.bf16.mxu0 %v22614_v45  ;;  %v22680_v25 = vld [vmem:[#allocation14 + $0xd0c] ss:$16 sps:$4 sm:$0xff]   ;;  %v22675_v45 = vld [vmem:[#allocation14 + $0xd00] ss:$16 sps:$4 sm:$0xff]  }
 0xaff   : > { %8872 = vmatpush1.bf16.msra.mxu1 %v22609_v37  ;;  %9036 = vmatpush1.bf16.msra.mxu0 %v22612_v46  ;;  %v22678_v37 = vld [vmem:[#allocation14 + $0xd08] ss:$16 sps:$4 sm:$0xff]   ;;  %v22683_v46 = vld [vmem:[#allocation14 + $0xd24] ss:$16 sps:$4 sm:$0xff]  }
 0xb00   : > { %8873 = vmatprep.subr.bf16.mxu1 %v22617_v18  ;;  %9037 = vmatprep.subr.bf16.mxu0 %v22620_v26  ;;  %v22686_v18 = vld [vmem:[#allocation14 + $0xd2c] ss:$16 sps:$4 sm:$0xff]   ;;  %v22681_v26 = vld [vmem:[#allocation14 + $0xd20] ss:$16 sps:$4 sm:$0xff]  }
 0xb03   : > { %8874 = vmatpush1.bf16.msra.mxu1 %v22615_v27  ;;  %9038 = vmatpush1.bf16.msra.mxu0 %v22618_v30  ;;  %v22684_v27 = vld [vmem:[#allocation14 + $0xd28] ss:$16 sps:$4 sm:$0xff]   ;;  %v22689_v30 = vld [vmem:[#allocation14 + $0xd44] ss:$16 sps:$4 sm:$0xff]  }
 0xb04   : > { %8875 = vmatprep.subr.bf16.mxu1 %v22623_v23  ;;  %9039 = vmatprep.subr.bf16.mxu0 %v22626_v41  ;;  %v22692_v23 = vld [vmem:[#allocation14 + $0xd4c] ss:$16 sps:$4 sm:$0xff]   ;;  %v22687_v41 = vld [vmem:[#allocation14 + $0xd40] ss:$16 sps:$4 sm:$0xff]  }
 0xb07   : > { %8876 = vmatpush1.bf16.msra.mxu1 %v22621_v42  ;;  %9040 = vmatpush1.bf16.msra.mxu0 %v22624_v43  ;;  %v22690_v42 = vld [vmem:[#allocation14 + $0xd48] ss:$16 sps:$4 sm:$0xff]   ;;  %v22695_v43 = vld [vmem:[#allocation14 + $0xd64] ss:$16 sps:$4 sm:$0xff]  }
 0xb08   : > { %8886 = vmatprep.subr.bf16.mxu1 %v22629_v7  ;;  %9050 = vmatprep.subr.bf16.mxu0 %v22632_v21  ;;  %v22698_v7 = vld [vmem:[#allocation14 + $0xd6c] ss:$16 sps:$4 sm:$0xff]   ;;  %v22693_v21 = vld [vmem:[#allocation14 + $0xd60] ss:$16 sps:$4 sm:$0xff]  }
 0xb0a   : > { %8878 = vmatmul.mubr.bf16.vlgmr.msra.gmra.mrb[20].mxu1 %v27067_v49  ;;  %9042 = vmatmul.mubr.bf16.vlgmr.msra.gmra.mrb[24].mxu0 %v27067_v49 }
 0xb0b   : > { %8887 = vmatpush1.bf16.msra.mxu1 %v22627_v47  ;;  %8918 = vmatprep.mubr.bf16.mxu1 %v27070_v51  ;;  %v22696_v47 = vld [vmem:[#allocation14 + $0xd68] ss:$16 sps:$4 sm:$0xff]  }
 0xb0c   : > { %9051 = vmatpush1.bf16.msra.mxu0 %v22630_v24  ;;  %9082 = vmatprep.mubr.bf16.mxu0 %v27070_v51  ;;  %v22701_v24 = vld [vmem:[#allocation14 + $0xd84] ss:$16 sps:$4 sm:$0xff]  }
 0xb0d   : > { %8888 = vmatprep.subr.bf16.mxu1 %v22635_v19  ;;  %9052 = vmatprep.subr.bf16.mxu0 %v22638_v54  ;;  %v22704_v19 = vld [vmem:[#allocation14 + $0xd8c] ss:$16 sps:$4 sm:$0xff]   ;;  %v22699_v54 = vld [vmem:[#allocation14 + $0xd80] ss:$16 sps:$4 sm:$0xff]  }
 0xb0f   : > { %8889 = vmatpush1.bf16.msra.mxu1 %v22633_v6  ;;  %v22702_v6 = vld [vmem:[#allocation14 + $0xd88] ss:$16 sps:$4 sm:$0xff]  }
 0xb10   : > { %9053 = vmatpush1.bf16.msra.mxu0 %v22636_v55  ;;  %8890 = vmatprep.subr.bf16.mxu1 %v22641_v56  ;;  %v22707_v55 = vld [vmem:[#allocation14 + $0xda4] ss:$16 sps:$4 sm:$0xff]   ;;  %v22710_v56 = vld [vmem:[#allocation14 + $0xdac] ss:$16 sps:$4 sm:$0xff]  }
 0xb11   : > { %9054 = vmatprep.subr.bf16.mxu0 %v22644_v57  ;;  %v22705_v57 = vld [vmem:[#allocation14 + $0xda0] ss:$16 sps:$4 sm:$0xff]  }
 0xb13   : > { %8891 = vmatpush1.bf16.msra.mxu1 %v22639_v59  ;;  %v22708_v59 = vld [vmem:[#allocation14 + $0xda8] ss:$16 sps:$4 sm:$0xff]  }
 0xb14   : > { %9055 = vmatpush1.bf16.msra.mxu0 %v22642_v48  ;;  %8892 = vmatprep.subr.bf16.mxu1 %v22647_v52  ;;  %v22713_v48 = vld [vmem:[#allocation14 + $0xdc4] ss:$16 sps:$4 sm:$0xff]   ;;  %v22716_v52 = vld [vmem:[#allocation14 + $0xdcc] ss:$16 sps:$4 sm:$0xff]  }
 0xb15   : > { %9056 = vmatprep.subr.bf16.mxu0 %v22650_v61  ;;  %v22711_v61 = vld [vmem:[#allocation14 + $0xdc0] ss:$16 sps:$4 sm:$0xff]  }
 0xb17   : > { %8893 = vmatpush1.bf16.msra.mxu1 %v22645_v62  ;;  %v22714_v62 = vld [vmem:[#allocation14 + $0xdc8] ss:$16 sps:$4 sm:$0xff]  }
 0xb18   : > { %9057 = vmatpush1.bf16.msra.mxu0 %v22648_v63  ;;  %8894 = vmatprep.subr.bf16.mxu1 %v22653_v1  ;;  %v22719_v63 = vld [vmem:[#allocation14 + $0xde4] ss:$16 sps:$4 sm:$0xff]   ;;  %v22722_v1 = vld [vmem:[#allocation14 + $0xdec] ss:$16 sps:$4 sm:$0xff]  }
 0xb19   : > { %9058 = vmatprep.subr.bf16.mxu0 %v22656_v2  ;;  %v22717_v2 = vld [vmem:[#allocation14 + $0xde0] ss:$16 sps:$4 sm:$0xff]  }
 0xb1b   : > { %8895 = vmatpush1.bf16.msra.mxu1 %v22651_v4  ;;  %v22720_v4 = vld [vmem:[#allocation14 + $0xde8] ss:$16 sps:$4 sm:$0xff]  }
 0xb1c   : > { %9059 = vmatpush1.bf16.msra.mxu0 %v22654_v5  ;;  %8896 = vmatprep.subr.bf16.mxu1 %v22659_v3  ;;  %v27078_v5 = vpack.c.bf16 %v27031_v0, %v27031_v0  ;;  %v22725_v3 = vld [vmem:[#allocation14 + $0xe04] ss:$16 sps:$4 sm:$0xff]  }
 0xb1d   : > { %9060 = vmatprep.subr.bf16.mxu0 %v22662_v8  ;;  %v22728_v8 = vld [vmem:[#allocation14 + $0xe0c] ss:$16 sps:$4 sm:$0xff]  }
 0xb1f   : > { %8897 = vmatpush1.bf16.msra.mxu1 %v22657_v9  ;;  %v27082_v9 = vpack.c.bf16 %v27033_v44, %v27033_v44  ;;  %v22729_v44 = vld [vmem:[#allocation14 + $0xe20] ss:$16 sps:$4 sm:$0xff]  }
 0xb20   : > { %9061 = vmatpush1.bf16.msra.mxu0 %v22660_v12  ;;  %8898 = vmatprep.subr.bf16.mxu1 %v22665_v40  ;;  %v22723_v12 = vld [vmem:[#allocation14 + $0xe00] ss:$16 sps:$4 sm:$0xff]   ;;  %v27085_v40 = vshrl.u32 %v27078_v5, 16 }
 0xb21   : > { %9062 = vmatprep.subr.bf16.mxu0 %v22668_v10  ;;  %v22726_v10 = vld [vmem:[#allocation14 + $0xe08] ss:$16 sps:$4 sm:$0xff]   ;;  %v27089_v0 = vshrl.u32 %v27082_v9, 16 }
 0xb23   : > { %8899 = vmatpush1.bf16.msra.mxu1 %v22663_v15  ;;  %v22731_v15 = vld [vmem:[#allocation14 + $0xe24] ss:$16 sps:$4 sm:$0xff]  }
 0xb24   : > { %9063 = vmatpush1.bf16.msra.mxu0 %v22666_v13  ;;  %8900 = vmatprep.subr.bf16.mxu1 %v22671_v22  ;;  %v22734_v13 = vld [vmem:[#allocation14 + $0xe2c] ss:$16 sps:$4 sm:$0xff]   ;;  %v22732_v22 = vld [vmem:[#allocation14 + $0xe28] ss:$16 sps:$4 sm:$0xff]  }
 0xb25   : > { %9064 = vmatprep.subr.bf16.mxu0 %v22674_v14  ;;  %v22737_v14 = vld [vmem:[#allocation14 + $0xe44] ss:$16 sps:$4 sm:$0xff]  }
 0xb27   : > { %8901 = vmatpush1.bf16.msra.mxu1 %v22669_v50  ;;  %v22740_v50 = vld [vmem:[#allocation14 + $0xe4c] ss:$16 sps:$4 sm:$0xff]  }
 0xb28   : > { %9065 = vmatpush1.bf16.msra.mxu0 %v22672_v34  ;;  %8902 = vmatprep.subr.bf16.mxu1 %v22677_v28  ;;  %v22735_v34 = vld [vmem:[#allocation14 + $0xe40] ss:$16 sps:$4 sm:$0xff]   ;;  %v22738_v28 = vld [vmem:[#allocation14 + $0xe48] ss:$16 sps:$4 sm:$0xff]  }
 0xb29   : > { %9066 = vmatprep.subr.bf16.mxu0 %v22680_v25  ;;  %v22743_v25 = vld [vmem:[#allocation14 + $0xe64] ss:$16 sps:$4 sm:$0xff]  }
 0xb2b   : > { %8903 = vmatpush1.bf16.msra.mxu1 %v22675_v45  ;;  %v22746_v45 = vld [vmem:[#allocation14 + $0xe6c] ss:$16 sps:$4 sm:$0xff]  }
 0xb2c   : > { %9067 = vmatpush1.bf16.msra.mxu0 %v22678_v37  ;;  %8904 = vmatprep.subr.bf16.mxu1 %v22683_v46  ;;  %v22741_v37 = vld [vmem:[#allocation14 + $0xe60] ss:$16 sps:$4 sm:$0xff]   ;;  %v22744_v46 = vld [vmem:[#allocation14 + $0xe68] ss:$16 sps:$4 sm:$0xff]  }
 0xb2d   : > { %9068 = vmatprep.subr.bf16.mxu0 %v22686_v18  ;;  %v22749_v18 = vld [vmem:[#allocation14 + $0xe84] ss:$16 sps:$4 sm:$0xff]  }
 0xb2f   : > { %8905 = vmatpush1.bf16.msra.mxu1 %v22681_v26  ;;  %v22752_v26 = vld [vmem:[#allocation14 + $0xe8c] ss:$16 sps:$4 sm:$0xff]  }
 0xb30   : > { %9069 = vmatpush1.bf16.msra.mxu0 %v22684_v27  ;;  %8906 = vmatprep.subr.bf16.mxu1 %v22689_v30  ;;  %v22747_v27 = vld [vmem:[#allocation14 + $0xe80] ss:$16 sps:$4 sm:$0xff]   ;;  %v22750_v30 = vld [vmem:[#allocation14 + $0xe88] ss:$16 sps:$4 sm:$0xff]  }
 0xb31   : > { %9070 = vmatprep.subr.bf16.mxu0 %v22692_v23  ;;  %v22755_v23 = vld [vmem:[#allocation14 + $0xea4] ss:$16 sps:$4 sm:$0xff]  }
 0xb33   : > { %8907 = vmatpush1.bf16.msra.mxu1 %v22687_v41  ;;  %v22758_v41 = vld [vmem:[#allocation14 + $0xeac] ss:$16 sps:$4 sm:$0xff]  }
 0xb34   : > { %9071 = vmatpush1.bf16.msra.mxu0 %v22690_v42  ;;  %8908 = vmatprep.subr.bf16.mxu1 %v22695_v43  ;;  %v22753_v42 = vld [vmem:[#allocation14 + $0xea0] ss:$16 sps:$4 sm:$0xff]   ;;  %v22756_v43 = vld [vmem:[#allocation14 + $0xea8] ss:$16 sps:$4 sm:$0xff]  }
 0xb35   : > { %9072 = vmatprep.subr.bf16.mxu0 %v22698_v7  ;;  %v22761_v7 = vld [vmem:[#allocation14 + $0xec4] ss:$16 sps:$4 sm:$0xff]  }
 0xb37   : > { %8909 = vmatpush1.bf16.msra.mxu1 %v22693_v21  ;;  %v22764_v21 = vld [vmem:[#allocation14 + $0xecc] ss:$16 sps:$4 sm:$0xff]  }
 0xb38   : > { %9073 = vmatpush1.bf16.msra.mxu0 %v22696_v47  ;;  %8910 = vmatprep.subr.bf16.mxu1 %v22701_v24  ;;  %v22759_v47 = vld [vmem:[#allocation14 + $0xec0] ss:$16 sps:$4 sm:$0xff]   ;;  %v22762_v24 = vld [vmem:[#allocation14 + $0xec8] ss:$16 sps:$4 sm:$0xff]  }
 0xb39   : > { %9074 = vmatprep.subr.bf16.mxu0 %v22704_v19  ;;  %v22767_v19 = vld [vmem:[#allocation14 + $0xee4] ss:$16 sps:$4 sm:$0xff]  }
 0xb3b   : > { %8911 = vmatpush1.bf16.msra.mxu1 %v22699_v54  ;;  %v22770_v54 = vld [vmem:[#allocation14 + $0xeec] ss:$16 sps:$4 sm:$0xff]  }
 0xb3c   : > { %9075 = vmatpush1.bf16.msra.mxu0 %v22702_v6  ;;  %8912 = vmatprep.subr.bf16.mxu1 %v22707_v55  ;;  %v22765_v6 = vld [vmem:[#allocation14 + $0xee0] ss:$16 sps:$4 sm:$0xff]   ;;  %v22768_v55 = vld [vmem:[#allocation14 + $0xee8] ss:$16 sps:$4 sm:$0xff]  }
 0xb3d   : > { %9076 = vmatprep.subr.bf16.mxu0 %v22710_v56  ;;  %v22773_v56 = vld [vmem:[#allocation14 + $0xf04] ss:$16 sps:$4 sm:$0xff]  }
 0xb3f   : > { %8913 = vmatpush1.bf16.msra.mxu1 %v22705_v57  ;;  %v22776_v57 = vld [vmem:[#allocation14 + $0xf0c] ss:$16 sps:$4 sm:$0xff]  }
 0xb40   : > { %9077 = vmatpush1.bf16.msra.mxu0 %v22708_v59  ;;  %8914 = vmatprep.subr.bf16.mxu1 %v22713_v48  ;;  %v22771_v59 = vld [vmem:[#allocation14 + $0xf00] ss:$16 sps:$4 sm:$0xff]   ;;  %v22774_v48 = vld [vmem:[#allocation14 + $0xf08] ss:$16 sps:$4 sm:$0xff]  }
 0xb41   : > { %9078 = vmatprep.subr.bf16.mxu0 %v22716_v52  ;;  %v22779_v52 = vld [vmem:[#allocation14 + $0xf24] ss:$16 sps:$4 sm:$0xff]  }
 0xb43   : > { %8915 = vmatpush1.bf16.msra.mxu1 %v22711_v61  ;;  %v22782_v61 = vld [vmem:[#allocation14 + $0xf2c] ss:$16 sps:$4 sm:$0xff]  }
 0xb44   : > { %9079 = vmatpush1.bf16.msra.mxu0 %v22714_v62  ;;  %8916 = vmatprep.subr.bf16.mxu1 %v22719_v63  ;;  %v22777_v62 = vld [vmem:[#allocation14 + $0xf20] ss:$16 sps:$4 sm:$0xff]   ;;  %v22780_v63 = vld [vmem:[#allocation14 + $0xf28] ss:$16 sps:$4 sm:$0xff]  }
 0xb45   : > { %9080 = vmatprep.subr.bf16.mxu0 %v22722_v1  ;;  %v22785_v1 = vld [vmem:[#allocation14 + $0xf44] ss:$16 sps:$4 sm:$0xff]  }
 0xb47   : > { %8917 = vmatpush1.bf16.msra.mxu1 %v22717_v2  ;;  %v22788_v2 = vld [vmem:[#allocation14 + $0xf4c] ss:$16 sps:$4 sm:$0xff]  }
 0xb48   : > { %9081 = vmatpush1.bf16.msra.mxu0 %v22720_v4  ;;  %8927 = vmatprep.subr.bf16.mxu1 %v22725_v3  ;;  %v22783_v4 = vld [vmem:[#allocation14 + $0xf40] ss:$16 sps:$4 sm:$0xff]   ;;  %v22786_v3 = vld [vmem:[#allocation14 + $0xf48] ss:$16 sps:$4 sm:$0xff]  }
 0xb49   : > { %9091 = vmatprep.subr.bf16.mxu0 %v22728_v8  ;;  %v22791_v8 = vld [vmem:[#allocation14 + $0xf64] ss:$16 sps:$4 sm:$0xff]  }
 0xb4a   : > { %8919 = vmatmul.mubr.bf16.vlgmr.msra.gmra.mrb[20].mxu1 %v27085_v40 }
 0xb4b   : > { %9083 = vmatmul.mubr.bf16.vlgmr.msra.gmra.mrb[24].mxu0 %v27085_v40  ;;  %8928 = vmatpush1.bf16.msra.mxu1 %v22723_v12  ;;  %v22794_v12 = vld [vmem:[#allocation14 + $0xf6c] ss:$16 sps:$4 sm:$0xff]  }
 0xb4c   : > { %8959 = vmatprep.mubr.bf16.mxu1 %v27089_v0  ;;  %9092 = vmatpush1.bf16.msra.mxu0 %v22726_v10  ;;  %v22789_v10 = vld [vmem:[#allocation14 + $0xf60] ss:$16 sps:$4 sm:$0xff]  }
 0xb4d   : > { %9123 = vmatprep.mubr.bf16.mxu0 %v27089_v0  ;;  %8929 = vmatprep.subr.bf16.mxu1 %v22731_v15  ;;  %v22792_v15 = vld [vmem:[#allocation14 + $0xf68] ss:$16 sps:$4 sm:$0xff]  }
 0xb4e   : > { %9093 = vmatprep.subr.bf16.mxu0 %v22734_v13  ;;  %v22797_v13 = vld [vmem:[#allocation14 + $0xf84] ss:$16 sps:$4 sm:$0xff]  }
 0xb4f   : > { %8930 = vmatpush1.bf16.msra.mxu1 %v22729_v44  ;;  %v22800_v44 = vld [vmem:[#allocation14 + $0xf8c] ss:$16 sps:$4 sm:$0xff]  }
 0xb50   : > { %9094 = vmatpush1.bf16.msra.mxu0 %v22732_v22  ;;  %8931 = vmatprep.subr.bf16.mxu1 %v22737_v14  ;;  %v22795_v22 = vld [vmem:[#allocation14 + $0xf80] ss:$16 sps:$4 sm:$0xff]   ;;  %v22798_v14 = vld [vmem:[#allocation14 + $0xf88] ss:$16 sps:$4 sm:$0xff]  }
 0xb51   : > { %9095 = vmatprep.subr.bf16.mxu0 %v22740_v50  ;;  %v22803_v50 = vld [vmem:[#allocation14 + $0xfa4] ss:$16 sps:$4 sm:$0xff]  }
 0xb53   : > { %8932 = vmatpush1.bf16.msra.mxu1 %v22735_v34  ;;  %v22806_v34 = vld [vmem:[#allocation14 + $0xfac] ss:$16 sps:$4 sm:$0xff]  }
 0xb54   : > { %9096 = vmatpush1.bf16.msra.mxu0 %v22738_v28  ;;  %8933 = vmatprep.subr.bf16.mxu1 %v22743_v25  ;;  %v22801_v28 = vld [vmem:[#allocation14 + $0xfa0] ss:$16 sps:$4 sm:$0xff]   ;;  %v22804_v25 = vld [vmem:[#allocation14 + $0xfa8] ss:$16 sps:$4 sm:$0xff]  }
 0xb55   : > { %9097 = vmatprep.subr.bf16.mxu0 %v22746_v45  ;;  %v22809_v45 = vld [vmem:[#allocation14 + $0xfc4] ss:$16 sps:$4 sm:$0xff]  }
 0xb57   : > { %8934 = vmatpush1.bf16.msra.mxu1 %v22741_v37  ;;  %v22812_v37 = vld [vmem:[#allocation14 + $0xfcc] ss:$16 sps:$4 sm:$0xff]  }
 0xb58   : > { %9098 = vmatpush1.bf16.msra.mxu0 %v22744_v46  ;;  %8935 = vmatprep.subr.bf16.mxu1 %v22749_v18  ;;  %v22807_v46 = vld [vmem:[#allocation14 + $0xfc0] ss:$16 sps:$4 sm:$0xff]   ;;  %v22810_v18 = vld [vmem:[#allocation14 + $0xfc8] ss:$16 sps:$4 sm:$0xff]  }
 0xb59   : > { %9099 = vmatprep.subr.bf16.mxu0 %v22752_v26  ;;  %v22815_v26 = vld [vmem:[#allocation14 + $0xfe4] ss:$16 sps:$4 sm:$0xff]  }
 0xb5b   : > { %8936 = vmatpush1.bf16.msra.mxu1 %v22747_v27  ;;  %v22818_v27 = vld [vmem:[#allocation14 + $0xfec] ss:$16 sps:$4 sm:$0xff]  }
 0xb5c   : > { %9100 = vmatpush1.bf16.msra.mxu0 %v22750_v30  ;;  %8937 = vmatprep.subr.bf16.mxu1 %v22755_v23  ;;  %v22813_v30 = vld [vmem:[#allocation14 + $0xfe0] ss:$16 sps:$4 sm:$0xff]   ;;  %v22816_v23 = vld [vmem:[#allocation14 + $0xfe8] ss:$16 sps:$4 sm:$0xff]  }
 0xb5d   : > { %9101 = vmatprep.subr.bf16.mxu0 %v22758_v41  ;;  %v27096_v41 = vpack.c.bf16 %v27035_v29, %v27035_v29  ;;  %v22825_v29 = vld [vmem:[#allocation14 + $0x20] ss:$16 sps:$4 sm:$0xff]  }
 0xb5f   : > { %8938 = vmatpush1.bf16.msra.mxu1 %v22753_v42  ;;  %v22821_v42 = vld [vmem:[#allocation14 + $0x4] ss:$16 sps:$4 sm:$0xff]  }
 0xb60   : > { %9102 = vmatpush1.bf16.msra.mxu0 %v22756_v43  ;;  %8939 = vmatprep.subr.bf16.mxu1 %v22761_v7  ;;  %v22824_v43 = vld [vmem:[#allocation14 + $0xc] ss:$16 sps:$4 sm:$0xff]   ;;  %v22819_v7 = vld [vmem:[#allocation14] ss:$16 sps:$4 sm:$0xff]  }
 0xb61   : > { %9103 = vmatprep.subr.bf16.mxu0 %v22764_v21  ;;  %v27099_v21 = vshrl.u32 %v27096_v41, 16 }
 0xb63   : > { %8940 = vmatpush1.bf16.msra.mxu1 %v22759_v47  ;;  %v22822_v47 = vld [vmem:[#allocation14 + $0x8] ss:$16 sps:$4 sm:$0xff]  }
 0xb64   : > { %9104 = vmatpush1.bf16.msra.mxu0 %v22762_v24  ;;  %8941 = vmatprep.subr.bf16.mxu1 %v22767_v19  ;;  %v22827_v24 = vld [vmem:[#allocation14 + $0x24] ss:$16 sps:$4 sm:$0xff]   ;;  %v22830_v19 = vld [vmem:[#allocation14 + $0x2c] ss:$16 sps:$4 sm:$0xff]  }
 0xb65   : > { %9105 = vmatprep.subr.bf16.mxu0 %v22770_v54  ;;  %v22828_v54 = vld [vmem:[#allocation14 + $0x28] ss:$16 sps:$4 sm:$0xff]  }
 0xb67   : > { %8942 = vmatpush1.bf16.msra.mxu1 %v22765_v6  ;;  %v22833_v6 = vld [vmem:[#allocation14 + $0x44] ss:$16 sps:$4 sm:$0xff]  }
 0xb68   : > { %9106 = vmatpush1.bf16.msra.mxu0 %v22768_v55  ;;  %8943 = vmatprep.subr.bf16.mxu1 %v22773_v56  ;;  %v22836_v55 = vld [vmem:[#allocation14 + $0x4c] ss:$16 sps:$4 sm:$0xff]   ;;  %v22831_v56 = vld [vmem:[#allocation14 + $0x40] ss:$16 sps:$4 sm:$0xff]  }
 0xb69   : > { %9107 = vmatprep.subr.bf16.mxu0 %v22776_v57  ;;  %v22834_v57 = vld [vmem:[#allocation14 + $0x48] ss:$16 sps:$4 sm:$0xff]  }
 0xb6b   : > { %8944 = vmatpush1.bf16.msra.mxu1 %v22771_v59  ;;  %v22839_v59 = vld [vmem:[#allocation14 + $0x64] ss:$16 sps:$4 sm:$0xff]  }
 0xb6c   : > { %9108 = vmatpush1.bf16.msra.mxu0 %v22774_v48  ;;  %8945 = vmatprep.subr.bf16.mxu1 %v22779_v52  ;;  %v22842_v48 = vld [vmem:[#allocation14 + $0x6c] ss:$16 sps:$4 sm:$0xff]   ;;  %v22837_v52 = vld [vmem:[#allocation14 + $0x60] ss:$16 sps:$4 sm:$0xff]  }
 0xb6d   : > { %9109 = vmatprep.subr.bf16.mxu0 %v22782_v61  ;;  %v22840_v61 = vld [vmem:[#allocation14 + $0x68] ss:$16 sps:$4 sm:$0xff]  }
 0xb6f   : > { %8946 = vmatpush1.bf16.msra.mxu1 %v22777_v62  ;;  %v22845_v62 = vld [vmem:[#allocation14 + $0x84] ss:$16 sps:$4 sm:$0xff]  }
 0xb70   : > { %9110 = vmatpush1.bf16.msra.mxu0 %v22780_v63  ;;  %8947 = vmatprep.subr.bf16.mxu1 %v22785_v1  ;;  %v22848_v63 = vld [vmem:[#allocation14 + $0x8c] ss:$16 sps:$4 sm:$0xff]   ;;  %v22843_v1 = vld [vmem:[#allocation14 + $0x80] ss:$16 sps:$4 sm:$0xff]  }
 0xb71   : > { %9111 = vmatprep.subr.bf16.mxu0 %v22788_v2  ;;  %v22846_v2 = vld [vmem:[#allocation14 + $0x88] ss:$16 sps:$4 sm:$0xff]  }
 0xb73   : > { %8948 = vmatpush1.bf16.msra.mxu1 %v22783_v4  ;;  %v22851_v4 = vld [vmem:[#allocation14 + $0xa4] ss:$16 sps:$4 sm:$0xff]  }
 0xb74   : > { %9112 = vmatpush1.bf16.msra.mxu0 %v22786_v3  ;;  %8949 = vmatprep.subr.bf16.mxu1 %v22791_v8  ;;  %v22854_v3 = vld [vmem:[#allocation14 + $0xac] ss:$16 sps:$4 sm:$0xff]   ;;  %v22849_v8 = vld [vmem:[#allocation14 + $0xa0] ss:$16 sps:$4 sm:$0xff]  }
 0xb75   : > { %9113 = vmatprep.subr.bf16.mxu0 %v22794_v12  ;;  %v22852_v12 = vld [vmem:[#allocation14 + $0xa8] ss:$16 sps:$4 sm:$0xff]  }
 0xb77   : > { %8950 = vmatpush1.bf16.msra.mxu1 %v22789_v10  ;;  %v22857_v10 = vld [vmem:[#allocation14 + $0xc4] ss:$16 sps:$4 sm:$0xff]  }
 0xb78   : > { %9114 = vmatpush1.bf16.msra.mxu0 %v22792_v15  ;;  %8951 = vmatprep.subr.bf16.mxu1 %v22797_v13  ;;  %v22860_v15 = vld [vmem:[#allocation14 + $0xcc] ss:$16 sps:$4 sm:$0xff]   ;;  %v22855_v13 = vld [vmem:[#allocation14 + $0xc0] ss:$16 sps:$4 sm:$0xff]  }
 0xb79   : > { %9115 = vmatprep.subr.bf16.mxu0 %v22800_v44  ;;  %v22858_v44 = vld [vmem:[#allocation14 + $0xc8] ss:$16 sps:$4 sm:$0xff]  }
 0xb7b   : > { %8952 = vmatpush1.bf16.msra.mxu1 %v22795_v22  ;;  %v22863_v22 = vld [vmem:[#allocation14 + $0xe4] ss:$16 sps:$4 sm:$0xff]  }
 0xb7c   : > { %9116 = vmatpush1.bf16.msra.mxu0 %v22798_v14  ;;  %8953 = vmatprep.subr.bf16.mxu1 %v22803_v50  ;;  %v22866_v14 = vld [vmem:[#allocation14 + $0xec] ss:$16 sps:$4 sm:$0xff]   ;;  %v22861_v50 = vld [vmem:[#allocation14 + $0xe0] ss:$16 sps:$4 sm:$0xff]  }
 0xb7d   : > { %9117 = vmatprep.subr.bf16.mxu0 %v22806_v34  ;;  %v22864_v34 = vld [vmem:[#allocation14 + $0xe8] ss:$16 sps:$4 sm:$0xff]  }
 0xb7f   : > { %8954 = vmatpush1.bf16.msra.mxu1 %v22801_v28  ;;  %v22869_v28 = vld [vmem:[#allocation14 + $0x104] ss:$16 sps:$4 sm:$0xff]  }
 0xb80   : > { %9118 = vmatpush1.bf16.msra.mxu0 %v22804_v25  ;;  %8955 = vmatprep.subr.bf16.mxu1 %v22809_v45  ;;  %v22872_v25 = vld [vmem:[#allocation14 + $0x10c] ss:$16 sps:$4 sm:$0xff]   ;;  %v22867_v45 = vld [vmem:[#allocation14 + $0x100] ss:$16 sps:$4 sm:$0xff]  }
 0xb81   : > { %9119 = vmatprep.subr.bf16.mxu0 %v22812_v37  ;;  %v22870_v37 = vld [vmem:[#allocation14 + $0x108] ss:$16 sps:$4 sm:$0xff]  }
 0xb83   : > { %8956 = vmatpush1.bf16.msra.mxu1 %v22807_v46  ;;  %v22875_v46 = vld [vmem:[#allocation14 + $0x124] ss:$16 sps:$4 sm:$0xff]  }
 0xb84   : > { %9120 = vmatpush1.bf16.msra.mxu0 %v22810_v18  ;;  %8957 = vmatprep.subr.bf16.mxu1 %v22815_v26  ;;  %v22878_v18 = vld [vmem:[#allocation14 + $0x12c] ss:$16 sps:$4 sm:$0xff]   ;;  %v22873_v26 = vld [vmem:[#allocation14 + $0x120] ss:$16 sps:$4 sm:$0xff]  }
 0xb85   : > { %9121 = vmatprep.subr.bf16.mxu0 %v22818_v27  ;;  %v22876_v27 = vld [vmem:[#allocation14 + $0x128] ss:$16 sps:$4 sm:$0xff]  }
 0xb87   : > { %8958 = vmatpush1.bf16.msra.mxu1 %v22813_v30  ;;  %v22881_v30 = vld [vmem:[#allocation14 + $0x144] ss:$16 sps:$4 sm:$0xff]  }
 0xb88   : > { %9122 = vmatpush1.bf16.msra.mxu0 %v22816_v23  ;;  %10412 = vmatprep.subr.bf16.mxu1 %v22821_v42  ;;  %v22884_v23 = vld [vmem:[#allocation14 + $0x14c] ss:$16 sps:$4 sm:$0xff]   ;;  %v22879_v42 = vld [vmem:[#allocation14 + $0x140] ss:$16 sps:$4 sm:$0xff]  }
 0xb89   : > { %10576 = vmatprep.subr.bf16.mxu0 %v22824_v43  ;;  %v22882_v43 = vld [vmem:[#allocation14 + $0x148] ss:$16 sps:$4 sm:$0xff]  }
 0xb8a   : > { %8960 = vmatmul.mubr.bf16.vlgmr.msra.gmra.mrb[20].mxu1 %v27099_v21 }
 0xb8b   : > { %9124 = vmatmul.mubr.bf16.vlgmr.msra.gmra.mrb[24].mxu0 %v27099_v21  ;;  %10413 = vmatpush1.bf16.msra.mxu1 %v22819_v7  ;;  %v22887_v7 = vld [vmem:[#allocation14 + $0x164] ss:$16 sps:$4 sm:$0xff]  }
 0xb8c   : > { %10444 = vmatprep.mubr.bf16.mxu1 %v27037_v16  ;;  %10577 = vmatpush1.bf16.msra.mxu0 %v22822_v47  ;;  %v22890_v47 = vld [vmem:[#allocation14 + $0x16c] ss:$16 sps:$4 sm:$0xff]  }
 0xb8d   : > { %10608 = vmatprep.mubr.bf16.mxu0 %v27037_v16  ;;  %10414 = vmatprep.subr.bf16.mxu1 %v22827_v24  ;;  %v22885_v24 = vld [vmem:[#allocation14 + $0x160] ss:$16 sps:$4 sm:$0xff]  }
 0xb8e   : > { %10578 = vmatprep.subr.bf16.mxu0 %v22830_v19  ;;  %v22888_v19 = vld [vmem:[#allocation14 + $0x168] ss:$16 sps:$4 sm:$0xff]  }
 0xb8f   : > { %10415 = vmatpush1.bf16.msra.mxu1 %v22825_v29  ;;  %v22893_v29 = vld [vmem:[#allocation14 + $0x184] ss:$16 sps:$4 sm:$0xff]  }
 0xb90   : > { %10579 = vmatpush1.bf16.msra.mxu0 %v22828_v54  ;;  %10416 = vmatprep.subr.bf16.mxu1 %v22833_v6  ;;  %v22896_v54 = vld [vmem:[#allocation14 + $0x18c] ss:$16 sps:$4 sm:$0xff]   ;;  %v22891_v6 = vld [vmem:[#allocation14 + $0x180] ss:$16 sps:$4 sm:$0xff]  }
 0xb91   : > { %10580 = vmatprep.subr.bf16.mxu0 %v22836_v55  ;;  %v22894_v55 = vld [vmem:[#allocation14 + $0x188] ss:$16 sps:$4 sm:$0xff]  }
 0xb93   : > { %10417 = vmatpush1.bf16.msra.mxu1 %v22831_v56  ;;  %v22899_v56 = vld [vmem:[#allocation14 + $0x1a4] ss:$16 sps:$4 sm:$0xff]  }
 0xb94   : > { %10581 = vmatpush1.bf16.msra.mxu0 %v22834_v57  ;;  %10418 = vmatprep.subr.bf16.mxu1 %v22839_v59  ;;  %v22902_v57 = vld [vmem:[#allocation14 + $0x1ac] ss:$16 sps:$4 sm:$0xff]   ;;  %v22897_v59 = vld [vmem:[#allocation14 + $0x1a0] ss:$16 sps:$4 sm:$0xff]  }
 0xb95   : > { %10582 = vmatprep.subr.bf16.mxu0 %v22842_v48  ;;  %v22900_v48 = vld [vmem:[#allocation14 + $0x1a8] ss:$16 sps:$4 sm:$0xff]  }
 0xb97   : > { %10419 = vmatpush1.bf16.msra.mxu1 %v22837_v52  ;;  %v22905_v52 = vld [vmem:[#allocation14 + $0x1c4] ss:$16 sps:$4 sm:$0xff]  }
 0xb98   : > { %10583 = vmatpush1.bf16.msra.mxu0 %v22840_v61  ;;  %10420 = vmatprep.subr.bf16.mxu1 %v22845_v62  ;;  %v22908_v61 = vld [vmem:[#allocation14 + $0x1cc] ss:$16 sps:$4 sm:$0xff]   ;;  %v22903_v62 = vld [vmem:[#allocation14 + $0x1c0] ss:$16 sps:$4 sm:$0xff]  }
 0xb99   : > { %10584 = vmatprep.subr.bf16.mxu0 %v22848_v63  ;;  %v22906_v63 = vld [vmem:[#allocation14 + $0x1c8] ss:$16 sps:$4 sm:$0xff]  }
 0xb9b   : > { %10421 = vmatpush1.bf16.msra.mxu1 %v22843_v1  ;;  %v22911_v1 = vld [vmem:[#allocation14 + $0x1e4] ss:$16 sps:$4 sm:$0xff]  }
 0xb9c   : > { %10585 = vmatpush1.bf16.msra.mxu0 %v22846_v2  ;;  %10422 = vmatprep.subr.bf16.mxu1 %v22851_v4  ;;  %v22914_v2 = vld [vmem:[#allocation14 + $0x1ec] ss:$16 sps:$4 sm:$0xff]   ;;  %v22909_v4 = vld [vmem:[#allocation14 + $0x1e0] ss:$16 sps:$4 sm:$0xff]  }
 0xb9d   : > { %10586 = vmatprep.subr.bf16.mxu0 %v22854_v3  ;;  %v22912_v3 = vld [vmem:[#allocation14 + $0x1e8] ss:$16 sps:$4 sm:$0xff]  }
 0xb9f   : > { %10423 = vmatpush1.bf16.msra.mxu1 %v22849_v8  ;;  %v22917_v8 = vld [vmem:[#allocation14 + $0x204] ss:$16 sps:$4 sm:$0xff]  }
 0xba0   : > { %10587 = vmatpush1.bf16.msra.mxu0 %v22852_v12  ;;  %10424 = vmatprep.subr.bf16.mxu1 %v22857_v10  ;;  %v22920_v12 = vld [vmem:[#allocation14 + $0x20c] ss:$16 sps:$4 sm:$0xff]   ;;  %v22915_v10 = vld [vmem:[#allocation14 + $0x200] ss:$16 sps:$4 sm:$0xff]  }
 0xba1   : > { %10588 = vmatprep.subr.bf16.mxu0 %v22860_v15  ;;  %v22918_v15 = vld [vmem:[#allocation14 + $0x208] ss:$16 sps:$4 sm:$0xff]  }
 0xba3   : > { %10425 = vmatpush1.bf16.msra.mxu1 %v22855_v13  ;;  %v22923_v13 = vld [vmem:[#allocation14 + $0x224] ss:$16 sps:$4 sm:$0xff]  }
 0xba4   : > { %10589 = vmatpush1.bf16.msra.mxu0 %v22858_v44  ;;  %10426 = vmatprep.subr.bf16.mxu1 %v22863_v22  ;;  %v22926_v44 = vld [vmem:[#allocation14 + $0x22c] ss:$16 sps:$4 sm:$0xff]   ;;  %v22921_v22 = vld [vmem:[#allocation14 + $0x220] ss:$16 sps:$4 sm:$0xff]  }
 0xba5   : > { %10590 = vmatprep.subr.bf16.mxu0 %v22866_v14  ;;  %v22924_v14 = vld [vmem:[#allocation14 + $0x228] ss:$16 sps:$4 sm:$0xff]  }
 0xba7   : > { %10427 = vmatpush1.bf16.msra.mxu1 %v22861_v50  ;;  %v22929_v50 = vld [vmem:[#allocation14 + $0x244] ss:$16 sps:$4 sm:$0xff]  }
 0xba8   : > { %10591 = vmatpush1.bf16.msra.mxu0 %v22864_v34  ;;  %10428 = vmatprep.subr.bf16.mxu1 %v22869_v28  ;;  %v22932_v34 = vld [vmem:[#allocation14 + $0x24c] ss:$16 sps:$4 sm:$0xff]   ;;  %v22927_v28 = vld [vmem:[#allocation14 + $0x240] ss:$16 sps:$4 sm:$0xff]  }
 0xba9   : > { %10592 = vmatprep.subr.bf16.mxu0 %v22872_v25  ;;  %v22930_v25 = vld [vmem:[#allocation14 + $0x248] ss:$16 sps:$4 sm:$0xff]  }
 0xbab   : > { %10429 = vmatpush1.bf16.msra.mxu1 %v22867_v45  ;;  %v22935_v45 = vld [vmem:[#allocation14 + $0x264] ss:$16 sps:$4 sm:$0xff]  }
 0xbac   : > { %10593 = vmatpush1.bf16.msra.mxu0 %v22870_v37  ;;  %10430 = vmatprep.subr.bf16.mxu1 %v22875_v46  ;;  %v22938_v37 = vld [vmem:[#allocation14 + $0x26c] ss:$16 sps:$4 sm:$0xff]   ;;  %v22933_v46 = vld [vmem:[#allocation14 + $0x260] ss:$16 sps:$4 sm:$0xff]  }
 0xbad   : > { %10594 = vmatprep.subr.bf16.mxu0 %v22878_v18  ;;  %v22936_v18 = vld [vmem:[#allocation14 + $0x268] ss:$16 sps:$4 sm:$0xff]  }
 0xbaf   : > { %10431 = vmatpush1.bf16.msra.mxu1 %v22873_v26  ;;  %v22941_v26 = vld [vmem:[#allocation14 + $0x284] ss:$16 sps:$4 sm:$0xff]  }
 0xbb0   : > { %10595 = vmatpush1.bf16.msra.mxu0 %v22876_v27  ;;  %10432 = vmatprep.subr.bf16.mxu1 %v22881_v30  ;;  %v22944_v27 = vld [vmem:[#allocation14 + $0x28c] ss:$16 sps:$4 sm:$0xff]   ;;  %v22939_v30 = vld [vmem:[#allocation14 + $0x280] ss:$16 sps:$4 sm:$0xff]  }
 0xbb1   : > { %10596 = vmatprep.subr.bf16.mxu0 %v22884_v23  ;;  %v22942_v23 = vld [vmem:[#allocation14 + $0x288] ss:$16 sps:$4 sm:$0xff]  }
 0xbb3   : > { %10433 = vmatpush1.bf16.msra.mxu1 %v22879_v42  ;;  %v22947_v42 = vld [vmem:[#allocation14 + $0x2a4] ss:$16 sps:$4 sm:$0xff]  }
 0xbb4   : > { %10597 = vmatpush1.bf16.msra.mxu0 %v22882_v43  ;;  %10434 = vmatprep.subr.bf16.mxu1 %v22887_v7  ;;  %v22950_v43 = vld [vmem:[#allocation14 + $0x2ac] ss:$16 sps:$4 sm:$0xff]   ;;  %v22945_v7 = vld [vmem:[#allocation14 + $0x2a0] ss:$16 sps:$4 sm:$0xff]  }
 0xbb5   : > { %10598 = vmatprep.subr.bf16.mxu0 %v22890_v47  ;;  %v22948_v47 = vld [vmem:[#allocation14 + $0x2a8] ss:$16 sps:$4 sm:$0xff]  }
 0xbb7   : > { %10435 = vmatpush1.bf16.msra.mxu1 %v22885_v24  ;;  %v22953_v24 = vld [vmem:[#allocation14 + $0x2c4] ss:$16 sps:$4 sm:$0xff]  }
 0xbb8   : > { %10599 = vmatpush1.bf16.msra.mxu0 %v22888_v19  ;;  %10436 = vmatprep.subr.bf16.mxu1 %v22893_v29  ;;  %v22956_v19 = vld [vmem:[#allocation14 + $0x2cc] ss:$16 sps:$4 sm:$0xff]   ;;  %v22951_v29 = vld [vmem:[#allocation14 + $0x2c0] ss:$16 sps:$4 sm:$0xff]  }
 0xbb9   : > { %10600 = vmatprep.subr.bf16.mxu0 %v22896_v54  ;;  %v22954_v54 = vld [vmem:[#allocation14 + $0x2c8] ss:$16 sps:$4 sm:$0xff]  }
 0xbbb   : > { %10437 = vmatpush1.bf16.msra.mxu1 %v22891_v6  ;;  %v22959_v6 = vld [vmem:[#allocation14 + $0x2e4] ss:$16 sps:$4 sm:$0xff]  }
 0xbbc   : > { %10601 = vmatpush1.bf16.msra.mxu0 %v22894_v55  ;;  %10438 = vmatprep.subr.bf16.mxu1 %v22899_v56  ;;  %v22962_v55 = vld [vmem:[#allocation14 + $0x2ec] ss:$16 sps:$4 sm:$0xff]   ;;  %v22957_v56 = vld [vmem:[#allocation14 + $0x2e0] ss:$16 sps:$4 sm:$0xff]  }
 0xbbd   : > { %10602 = vmatprep.subr.bf16.mxu0 %v22902_v57  ;;  %v22960_v57 = vld [vmem:[#allocation14 + $0x2e8] ss:$16 sps:$4 sm:$0xff]  }
 0xbbf   : > { %10439 = vmatpush1.bf16.msra.mxu1 %v22897_v59  ;;  %v22965_v59 = vld [vmem:[#allocation14 + $0x304] ss:$16 sps:$4 sm:$0xff]  }
 0xbc0   : > { %10603 = vmatpush1.bf16.msra.mxu0 %v22900_v48  ;;  %10440 = vmatprep.subr.bf16.mxu1 %v22905_v52  ;;  %v22968_v48 = vld [vmem:[#allocation14 + $0x30c] ss:$16 sps:$4 sm:$0xff]   ;;  %v22963_v52 = vld [vmem:[#allocation14 + $0x300] ss:$16 sps:$4 sm:$0xff]  }
 0xbc1   : > { %10604 = vmatprep.subr.bf16.mxu0 %v22908_v61  ;;  %v22966_v61 = vld [vmem:[#allocation14 + $0x308] ss:$16 sps:$4 sm:$0xff]  }
 0xbc3   : > { %10441 = vmatpush1.bf16.msra.mxu1 %v22903_v62  ;;  %v22971_v62 = vld [vmem:[#allocation14 + $0x324] ss:$16 sps:$4 sm:$0xff]  }
 0xbc4   : > { %10605 = vmatpush1.bf16.msra.mxu0 %v22906_v63  ;;  %10442 = vmatprep.subr.bf16.mxu1 %v22911_v1  ;;  %v22974_v63 = vld [vmem:[#allocation14 + $0x32c] ss:$16 sps:$4 sm:$0xff]   ;;  %v22969_v1 = vld [vmem:[#allocation14 + $0x320] ss:$16 sps:$4 sm:$0xff]  }
 0xbc5   : > { %10606 = vmatprep.subr.bf16.mxu0 %v22914_v2  ;;  %v22972_v2 = vld [vmem:[#allocation14 + $0x328] ss:$16 sps:$4 sm:$0xff]  }
 0xbc7   : > { %10443 = vmatpush1.bf16.msra.mxu1 %v22909_v4  ;;  %v22977_v4 = vld [vmem:[#allocation14 + $0x344] ss:$16 sps:$4 sm:$0xff]  }
 0xbc8   : > { %10607 = vmatpush1.bf16.msra.mxu0 %v22912_v3  ;;  %10453 = vmatprep.subr.bf16.mxu1 %v22917_v8  ;;  %v22980_v3 = vld [vmem:[#allocation14 + $0x34c] ss:$16 sps:$4 sm:$0xff]   ;;  %v22975_v8 = vld [vmem:[#allocation14 + $0x340] ss:$16 sps:$4 sm:$0xff]  }
 0xbc9   : > { %10617 = vmatprep.subr.bf16.mxu0 %v22920_v12  ;;  %v22978_v12 = vld [vmem:[#allocation14 + $0x348] ss:$16 sps:$4 sm:$0xff]  }
 0xbca   : > { %10445 = vmatmul.mubr.bf16.vlgmr.msra.gmra.mrb[20].mxu1 %v27039_v17 }
 0xbcb   : > { %10609 = vmatmul.mubr.bf16.vlgmr.msra.gmra.mrb[24].mxu0 %v27039_v17  ;;  %10454 = vmatpush1.bf16.msra.mxu1 %v22915_v10  ;;  %v22983_v10 = vld [vmem:[#allocation14 + $0x364] ss:$16 sps:$4 sm:$0xff]  }
 0xbcc   : > { %10485 = vmatprep.mubr.bf16.mxu1 %v27041_v20  ;;  %10618 = vmatpush1.bf16.msra.mxu0 %v22918_v15  ;;  %v22986_v15 = vld [vmem:[#allocation14 + $0x36c] ss:$16 sps:$4 sm:$0xff]  }
 0xbcd   : > { %10649 = vmatprep.mubr.bf16.mxu0 %v27041_v20  ;;  %10455 = vmatprep.subr.bf16.mxu1 %v22923_v13  ;;  %v22981_v13 = vld [vmem:[#allocation14 + $0x360] ss:$16 sps:$4 sm:$0xff]  }
 0xbce   : > { %10619 = vmatprep.subr.bf16.mxu0 %v22926_v44  ;;  %v22984_v44 = vld [vmem:[#allocation14 + $0x368] ss:$16 sps:$4 sm:$0xff]  }
 0xbcf   : > { %10456 = vmatpush1.bf16.msra.mxu1 %v22921_v22  ;;  %v22989_v22 = vld [vmem:[#allocation14 + $0x384] ss:$16 sps:$4 sm:$0xff]  }
 0xbd0   : > { %10620 = vmatpush1.bf16.msra.mxu0 %v22924_v14  ;;  %10457 = vmatprep.subr.bf16.mxu1 %v22929_v50  ;;  %v22992_v14 = vld [vmem:[#allocation14 + $0x38c] ss:$16 sps:$4 sm:$0xff]   ;;  %v22987_v50 = vld [vmem:[#allocation14 + $0x380] ss:$16 sps:$4 sm:$0xff]  }
 0xbd1   : > { %10621 = vmatprep.subr.bf16.mxu0 %v22932_v34  ;;  %v22990_v34 = vld [vmem:[#allocation14 + $0x388] ss:$16 sps:$4 sm:$0xff]  }
 0xbd3   : > { %10458 = vmatpush1.bf16.msra.mxu1 %v22927_v28  ;;  %v22995_v28 = vld [vmem:[#allocation14 + $0x3a4] ss:$16 sps:$4 sm:$0xff]  }
 0xbd4   : > { %10622 = vmatpush1.bf16.msra.mxu0 %v22930_v25  ;;  %10459 = vmatprep.subr.bf16.mxu1 %v22935_v45  ;;  %v22998_v25 = vld [vmem:[#allocation14 + $0x3ac] ss:$16 sps:$4 sm:$0xff]   ;;  %v22993_v45 = vld [vmem:[#allocation14 + $0x3a0] ss:$16 sps:$4 sm:$0xff]  }
 0xbd5   : > { %10623 = vmatprep.subr.bf16.mxu0 %v22938_v37  ;;  %v22996_v37 = vld [vmem:[#allocation14 + $0x3a8] ss:$16 sps:$4 sm:$0xff]  }
 0xbd7   : > { %10460 = vmatpush1.bf16.msra.mxu1 %v22933_v46  ;;  %v23001_v46 = vld [vmem:[#allocation14 + $0x3c4] ss:$16 sps:$4 sm:$0xff]  }
 0xbd8   : > { %10624 = vmatpush1.bf16.msra.mxu0 %v22936_v18  ;;  %10461 = vmatprep.subr.bf16.mxu1 %v22941_v26  ;;  %v23004_v18 = vld [vmem:[#allocation14 + $0x3cc] ss:$16 sps:$4 sm:$0xff]   ;;  %v22999_v26 = vld [vmem:[#allocation14 + $0x3c0] ss:$16 sps:$4 sm:$0xff]  }
 0xbd9   : > { %10625 = vmatprep.subr.bf16.mxu0 %v22944_v27  ;;  %v23002_v27 = vld [vmem:[#allocation14 + $0x3c8] ss:$16 sps:$4 sm:$0xff]  }
 0xbdb   : > { %10462 = vmatpush1.bf16.msra.mxu1 %v22939_v30  ;;  %v23007_v30 = vld [vmem:[#allocation14 + $0x3e4] ss:$16 sps:$4 sm:$0xff]  }
 0xbdc   : > { %10626 = vmatpush1.bf16.msra.mxu0 %v22942_v23  ;;  %10463 = vmatprep.subr.bf16.mxu1 %v22947_v42  ;;  %v23010_v23 = vld [vmem:[#allocation14 + $0x3ec] ss:$16 sps:$4 sm:$0xff]   ;;  %v23005_v42 = vld [vmem:[#allocation14 + $0x3e0] ss:$16 sps:$4 sm:$0xff]  }
 0xbdd   : > { %10627 = vmatprep.subr.bf16.mxu0 %v22950_v43  ;;  %v23008_v43 = vld [vmem:[#allocation14 + $0x3e8] ss:$16 sps:$4 sm:$0xff]  }
 0xbdf   : > { %10464 = vmatpush1.bf16.msra.mxu1 %v22945_v7  ;;  %v23013_v7 = vld [vmem:[#allocation14 + $0x404] ss:$16 sps:$4 sm:$0xff]  }
 0xbe0   : > { %10628 = vmatpush1.bf16.msra.mxu0 %v22948_v47  ;;  %10465 = vmatprep.subr.bf16.mxu1 %v22953_v24  ;;  %v23016_v47 = vld [vmem:[#allocation14 + $0x40c] ss:$16 sps:$4 sm:$0xff]   ;;  %v23011_v24 = vld [vmem:[#allocation14 + $0x400] ss:$16 sps:$4 sm:$0xff]  }
 0xbe1   : > { %10629 = vmatprep.subr.bf16.mxu0 %v22956_v19  ;;  %v23014_v19 = vld [vmem:[#allocation14 + $0x408] ss:$16 sps:$4 sm:$0xff]  }
 0xbe3   : > { %10466 = vmatpush1.bf16.msra.mxu1 %v22951_v29  ;;  %v23019_v29 = vld [vmem:[#allocation14 + $0x424] ss:$16 sps:$4 sm:$0xff]  }
 0xbe4   : > { %10630 = vmatpush1.bf16.msra.mxu0 %v22954_v54  ;;  %10467 = vmatprep.subr.bf16.mxu1 %v22959_v6  ;;  %v23022_v54 = vld [vmem:[#allocation14 + $0x42c] ss:$16 sps:$4 sm:$0xff]   ;;  %v23017_v6 = vld [vmem:[#allocation14 + $0x420] ss:$16 sps:$4 sm:$0xff]  }
 0xbe5   : > { %10631 = vmatprep.subr.bf16.mxu0 %v22962_v55  ;;  %v23020_v55 = vld [vmem:[#allocation14 + $0x428] ss:$16 sps:$4 sm:$0xff]  }
 0xbe7   : > { %10468 = vmatpush1.bf16.msra.mxu1 %v22957_v56  ;;  %v23025_v56 = vld [vmem:[#allocation14 + $0x444] ss:$16 sps:$4 sm:$0xff]  }
 0xbe8   : > { %10632 = vmatpush1.bf16.msra.mxu0 %v22960_v57  ;;  %10469 = vmatprep.subr.bf16.mxu1 %v22965_v59  ;;  %v23028_v57 = vld [vmem:[#allocation14 + $0x44c] ss:$16 sps:$4 sm:$0xff]   ;;  %v23023_v59 = vld [vmem:[#allocation14 + $0x440] ss:$16 sps:$4 sm:$0xff]  }
 0xbe9   : > { %10633 = vmatprep.subr.bf16.mxu0 %v22968_v48  ;;  %v23026_v48 = vld [vmem:[#allocation14 + $0x448] ss:$16 sps:$4 sm:$0xff]  }
 0xbeb   : > { %10470 = vmatpush1.bf16.msra.mxu1 %v22963_v52  ;;  %v23031_v52 = vld [vmem:[#allocation14 + $0x464] ss:$16 sps:$4 sm:$0xff]  }
 0xbec   : > { %10634 = vmatpush1.bf16.msra.mxu0 %v22966_v61  ;;  %10471 = vmatprep.subr.bf16.mxu1 %v22971_v62  ;;  %v23034_v61 = vld [vmem:[#allocation14 + $0x46c] ss:$16 sps:$4 sm:$0xff]   ;;  %v23029_v62 = vld [vmem:[#allocation14 + $0x460] ss:$16 sps:$4 sm:$0xff]  }
 0xbed   : > { %10635 = vmatprep.subr.bf16.mxu0 %v22974_v63  ;;  %v23032_v63 = vld [vmem:[#allocation14 + $0x468] ss:$16 sps:$4 sm:$0xff]  }
 0xbef   : > { %10472 = vmatpush1.bf16.msra.mxu1 %v22969_v1  ;;  %v23037_v1 = vld [vmem:[#allocation14 + $0x484] ss:$16 sps:$4 sm:$0xff]  }
 0xbf0   : > { %10636 = vmatpush1.bf16.msra.mxu0 %v22972_v2  ;;  %10473 = vmatprep.subr.bf16.mxu1 %v22977_v4  ;;  %v23040_v2 = vld [vmem:[#allocation14 + $0x48c] ss:$16 sps:$4 sm:$0xff]   ;;  %v23035_v4 = vld [vmem:[#allocation14 + $0x480] ss:$16 sps:$4 sm:$0xff]  }
 0xbf1   : > { %10637 = vmatprep.subr.bf16.mxu0 %v22980_v3  ;;  %v23038_v3 = vld [vmem:[#allocation14 + $0x488] ss:$16 sps:$4 sm:$0xff]  }
 0xbf3   : > { %10474 = vmatpush1.bf16.msra.mxu1 %v22975_v8  ;;  %v23043_v8 = vld [vmem:[#allocation14 + $0x4a4] ss:$16 sps:$4 sm:$0xff]  }
 0xbf4   : > { %10638 = vmatpush1.bf16.msra.mxu0 %v22978_v12  ;;  %10475 = vmatprep.subr.bf16.mxu1 %v22983_v10  ;;  %v23046_v12 = vld [vmem:[#allocation14 + $0x4ac] ss:$16 sps:$4 sm:$0xff]   ;;  %v23041_v10 = vld [vmem:[#allocation14 + $0x4a0] ss:$16 sps:$4 sm:$0xff]  }
 0xbf5   : > { %10639 = vmatprep.subr.bf16.mxu0 %v22986_v15  ;;  %v23044_v15 = vld [vmem:[#allocation14 + $0x4a8] ss:$16 sps:$4 sm:$0xff]  }
 0xbf7   : > { %10476 = vmatpush1.bf16.msra.mxu1 %v22981_v13  ;;  %v23049_v13 = vld [vmem:[#allocation14 + $0x4c4] ss:$16 sps:$4 sm:$0xff]  }
 0xbf8   : > { %10640 = vmatpush1.bf16.msra.mxu0 %v22984_v44  ;;  %10477 = vmatprep.subr.bf16.mxu1 %v22989_v22  ;;  %v23052_v44 = vld [vmem:[#allocation14 + $0x4cc] ss:$16 sps:$4 sm:$0xff]   ;;  %v23047_v22 = vld [vmem:[#allocation14 + $0x4c0] ss:$16 sps:$4 sm:$0xff]  }
 0xbf9   : > { %10641 = vmatprep.subr.bf16.mxu0 %v22992_v14  ;;  %v23050_v14 = vld [vmem:[#allocation14 + $0x4c8] ss:$16 sps:$4 sm:$0xff]  }
 0xbfb   : > { %10478 = vmatpush1.bf16.msra.mxu1 %v22987_v50  ;;  %v23055_v50 = vld [vmem:[#allocation14 + $0x4e4] ss:$16 sps:$4 sm:$0xff]  }
 0xbfc   : > { %10642 = vmatpush1.bf16.msra.mxu0 %v22990_v34  ;;  %10479 = vmatprep.subr.bf16.mxu1 %v22995_v28  ;;  %v23058_v34 = vld [vmem:[#allocation14 + $0x4ec] ss:$16 sps:$4 sm:$0xff]   ;;  %v23053_v28 = vld [vmem:[#allocation14 + $0x4e0] ss:$16 sps:$4 sm:$0xff]  }
 0xbfd   : > { %10643 = vmatprep.subr.bf16.mxu0 %v22998_v25  ;;  %v23056_v25 = vld [vmem:[#allocation14 + $0x4e8] ss:$16 sps:$4 sm:$0xff]  }
 0xbff   : > { %10480 = vmatpush1.bf16.msra.mxu1 %v22993_v45  ;;  %v23061_v45 = vld [vmem:[#allocation14 + $0x504] ss:$16 sps:$4 sm:$0xff]  }
 0xc00   : > { %10644 = vmatpush1.bf16.msra.mxu0 %v22996_v37  ;;  %10481 = vmatprep.subr.bf16.mxu1 %v23001_v46  ;;  %v23064_v37 = vld [vmem:[#allocation14 + $0x50c] ss:$16 sps:$4 sm:$0xff]   ;;  %v23059_v46 = vld [vmem:[#allocation14 + $0x500] ss:$16 sps:$4 sm:$0xff]  }
 0xc01   : > { %10645 = vmatprep.subr.bf16.mxu0 %v23004_v18  ;;  %v23062_v18 = vld [vmem:[#allocation14 + $0x508] ss:$16 sps:$4 sm:$0xff]  }
 0xc03   : > { %10482 = vmatpush1.bf16.msra.mxu1 %v22999_v26  ;;  %v23067_v26 = vld [vmem:[#allocation14 + $0x524] ss:$16 sps:$4 sm:$0xff]  }
 0xc04   : > { %10646 = vmatpush1.bf16.msra.mxu0 %v23002_v27  ;;  %10483 = vmatprep.subr.bf16.mxu1 %v23007_v30  ;;  %v23070_v27 = vld [vmem:[#allocation14 + $0x52c] ss:$16 sps:$4 sm:$0xff]   ;;  %v23065_v30 = vld [vmem:[#allocation14 + $0x520] ss:$16 sps:$4 sm:$0xff]  }
 0xc05   : > { %10647 = vmatprep.subr.bf16.mxu0 %v23010_v23  ;;  %v23068_v23 = vld [vmem:[#allocation14 + $0x528] ss:$16 sps:$4 sm:$0xff]  }
 0xc07   : > { %10484 = vmatpush1.bf16.msra.mxu1 %v23005_v42  ;;  %v23073_v42 = vld [vmem:[#allocation14 + $0x544] ss:$16 sps:$4 sm:$0xff]  }
 0xc08   : > { %10648 = vmatpush1.bf16.msra.mxu0 %v23008_v43  ;;  %10494 = vmatprep.subr.bf16.mxu1 %v23013_v7  ;;  %v23076_v43 = vld [vmem:[#allocation14 + $0x54c] ss:$16 sps:$4 sm:$0xff]   ;;  %v23071_v7 = vld [vmem:[#allocation14 + $0x540] ss:$16 sps:$4 sm:$0xff]  }
 0xc09   : > { %10658 = vmatprep.subr.bf16.mxu0 %v23016_v47  ;;  %v23074_v47 = vld [vmem:[#allocation14 + $0x548] ss:$16 sps:$4 sm:$0xff]  }
 0xc0a   : > { %10486 = vmatmul.mubr.bf16.vlgmr.msra.gmra.mrb[20].mxu1 %v27060_v11 }
 0xc0b   : > { %10650 = vmatmul.mubr.bf16.vlgmr.msra.gmra.mrb[24].mxu0 %v27060_v11  ;;  %10495 = vmatpush1.bf16.msra.mxu1 %v23011_v24  ;;  %v23079_v24 = vld [vmem:[#allocation14 + $0x564] ss:$16 sps:$4 sm:$0xff]  }
 0xc0c   : > { %10526 = vmatprep.mubr.bf16.mxu1 %v27064_v53  ;;  %10659 = vmatpush1.bf16.msra.mxu0 %v23014_v19  ;;  %v23082_v19 = vld [vmem:[#allocation14 + $0x56c] ss:$16 sps:$4 sm:$0xff]  }
 0xc0d   : > { %10690 = vmatprep.mubr.bf16.mxu0 %v27064_v53  ;;  %10496 = vmatprep.subr.bf16.mxu1 %v23019_v29  ;;  %v23077_v29 = vld [vmem:[#allocation14 + $0x560] ss:$16 sps:$4 sm:$0xff]  }
 0xc0e   : > { %10660 = vmatprep.subr.bf16.mxu0 %v23022_v54  ;;  %v23080_v54 = vld [vmem:[#allocation14 + $0x568] ss:$16 sps:$4 sm:$0xff]  }
 0xc0f   : > { %10497 = vmatpush1.bf16.msra.mxu1 %v23017_v6  ;;  %v23085_v6 = vld [vmem:[#allocation14 + $0x584] ss:$16 sps:$4 sm:$0xff]  }
 0xc10   : > { %10661 = vmatpush1.bf16.msra.mxu0 %v23020_v55  ;;  %10498 = vmatprep.subr.bf16.mxu1 %v23025_v56  ;;  %v23088_v55 = vld [vmem:[#allocation14 + $0x58c] ss:$16 sps:$4 sm:$0xff]   ;;  %v23083_v56 = vld [vmem:[#allocation14 + $0x580] ss:$16 sps:$4 sm:$0xff]  }
 0xc11   : > { %10662 = vmatprep.subr.bf16.mxu0 %v23028_v57  ;;  %v23086_v57 = vld [vmem:[#allocation14 + $0x588] ss:$16 sps:$4 sm:$0xff]  }
 0xc13   : > { %10499 = vmatpush1.bf16.msra.mxu1 %v23023_v59  ;;  %v23091_v59 = vld [vmem:[#allocation14 + $0x5a4] ss:$16 sps:$4 sm:$0xff]  }
 0xc14   : > { %10663 = vmatpush1.bf16.msra.mxu0 %v23026_v48  ;;  %10500 = vmatprep.subr.bf16.mxu1 %v23031_v52  ;;  %v23094_v48 = vld [vmem:[#allocation14 + $0x5ac] ss:$16 sps:$4 sm:$0xff]   ;;  %v23089_v52 = vld [vmem:[#allocation14 + $0x5a0] ss:$16 sps:$4 sm:$0xff]  }
 0xc15   : > { %10664 = vmatprep.subr.bf16.mxu0 %v23034_v61  ;;  %v23092_v61 = vld [vmem:[#allocation14 + $0x5a8] ss:$16 sps:$4 sm:$0xff]  }
 0xc17   : > { %10501 = vmatpush1.bf16.msra.mxu1 %v23029_v62  ;;  %v23097_v62 = vld [vmem:[#allocation14 + $0x5c4] ss:$16 sps:$4 sm:$0xff]  }
 0xc18   : > { %10665 = vmatpush1.bf16.msra.mxu0 %v23032_v63  ;;  %10502 = vmatprep.subr.bf16.mxu1 %v23037_v1  ;;  %v23100_v63 = vld [vmem:[#allocation14 + $0x5cc] ss:$16 sps:$4 sm:$0xff]   ;;  %v23095_v1 = vld [vmem:[#allocation14 + $0x5c0] ss:$16 sps:$4 sm:$0xff]  }
 0xc19   : > { %10666 = vmatprep.subr.bf16.mxu0 %v23040_v2  ;;  %v23098_v2 = vld [vmem:[#allocation14 + $0x5c8] ss:$16 sps:$4 sm:$0xff]  }
 0xc1b   : > { %10503 = vmatpush1.bf16.msra.mxu1 %v23035_v4  ;;  %v23103_v4 = vld [vmem:[#allocation14 + $0x5e4] ss:$16 sps:$4 sm:$0xff]  }
 0xc1c   : > { %10667 = vmatpush1.bf16.msra.mxu0 %v23038_v3  ;;  %10504 = vmatprep.subr.bf16.mxu1 %v23043_v8  ;;  %v23106_v3 = vld [vmem:[#allocation14 + $0x5ec] ss:$16 sps:$4 sm:$0xff]   ;;  %v23101_v8 = vld [vmem:[#allocation14 + $0x5e0] ss:$16 sps:$4 sm:$0xff]  }
 0xc1d   : > { %10668 = vmatprep.subr.bf16.mxu0 %v23046_v12  ;;  %v23104_v12 = vld [vmem:[#allocation14 + $0x5e8] ss:$16 sps:$4 sm:$0xff]  }
 0xc1f   : > { %10505 = vmatpush1.bf16.msra.mxu1 %v23041_v10  ;;  %v23109_v10 = vld [vmem:[#allocation14 + $0x604] ss:$16 sps:$4 sm:$0xff]  }
 0xc20   : > { %10669 = vmatpush1.bf16.msra.mxu0 %v23044_v15  ;;  %10506 = vmatprep.subr.bf16.mxu1 %v23049_v13  ;;  %v23112_v15 = vld [vmem:[#allocation14 + $0x60c] ss:$16 sps:$4 sm:$0xff]   ;;  %v23107_v13 = vld [vmem:[#allocation14 + $0x600] ss:$16 sps:$4 sm:$0xff]  }
 0xc21   : > { %10670 = vmatprep.subr.bf16.mxu0 %v23052_v44  ;;  %v23110_v44 = vld [vmem:[#allocation14 + $0x608] ss:$16 sps:$4 sm:$0xff]  }
 0xc23   : > { %10507 = vmatpush1.bf16.msra.mxu1 %v23047_v22  ;;  %v23115_v22 = vld [vmem:[#allocation14 + $0x624] ss:$16 sps:$4 sm:$0xff]  }
 0xc24   : > { %10671 = vmatpush1.bf16.msra.mxu0 %v23050_v14  ;;  %10508 = vmatprep.subr.bf16.mxu1 %v23055_v50  ;;  %v23118_v14 = vld [vmem:[#allocation14 + $0x62c] ss:$16 sps:$4 sm:$0xff]   ;;  %v23113_v50 = vld [vmem:[#allocation14 + $0x620] ss:$16 sps:$4 sm:$0xff]  }
 0xc25   : > { %10672 = vmatprep.subr.bf16.mxu0 %v23058_v34  ;;  %v23116_v34 = vld [vmem:[#allocation14 + $0x628] ss:$16 sps:$4 sm:$0xff]  }
 0xc27   : > { %10509 = vmatpush1.bf16.msra.mxu1 %v23053_v28  ;;  %v23121_v28 = vld [vmem:[#allocation14 + $0x644] ss:$16 sps:$4 sm:$0xff]  }
 0xc28   : > { %10673 = vmatpush1.bf16.msra.mxu0 %v23056_v25  ;;  %10510 = vmatprep.subr.bf16.mxu1 %v23061_v45  ;;  %v23124_v25 = vld [vmem:[#allocation14 + $0x64c] ss:$16 sps:$4 sm:$0xff]   ;;  %v23119_v45 = vld [vmem:[#allocation14 + $0x640] ss:$16 sps:$4 sm:$0xff]  }
 0xc29   : > { %10674 = vmatprep.subr.bf16.mxu0 %v23064_v37  ;;  %v23122_v37 = vld [vmem:[#allocation14 + $0x648] ss:$16 sps:$4 sm:$0xff]  }
 0xc2b   : > { %10511 = vmatpush1.bf16.msra.mxu1 %v23059_v46  ;;  %v23127_v46 = vld [vmem:[#allocation14 + $0x664] ss:$16 sps:$4 sm:$0xff]  }
 0xc2c   : > { %10675 = vmatpush1.bf16.msra.mxu0 %v23062_v18  ;;  %10512 = vmatprep.subr.bf16.mxu1 %v23067_v26  ;;  %v23130_v18 = vld [vmem:[#allocation14 + $0x66c] ss:$16 sps:$4 sm:$0xff]   ;;  %v23125_v26 = vld [vmem:[#allocation14 + $0x660] ss:$16 sps:$4 sm:$0xff]  }
 0xc2d   : > { %10676 = vmatprep.subr.bf16.mxu0 %v23070_v27  ;;  %v23128_v27 = vld [vmem:[#allocation14 + $0x668] ss:$16 sps:$4 sm:$0xff]  }
 0xc2f   : > { %10513 = vmatpush1.bf16.msra.mxu1 %v23065_v30  ;;  %v23133_v30 = vld [vmem:[#allocation14 + $0x684] ss:$16 sps:$4 sm:$0xff]  }
 0xc30   : > { %10677 = vmatpush1.bf16.msra.mxu0 %v23068_v23  ;;  %10514 = vmatprep.subr.bf16.mxu1 %v23073_v42  ;;  %v23136_v23 = vld [vmem:[#allocation14 + $0x68c] ss:$16 sps:$4 sm:$0xff]   ;;  %v23131_v42 = vld [vmem:[#allocation14 + $0x680] ss:$16 sps:$4 sm:$0xff]  }
 0xc31   : > { %10678 = vmatprep.subr.bf16.mxu0 %v23076_v43  ;;  %v23134_v43 = vld [vmem:[#allocation14 + $0x688] ss:$16 sps:$4 sm:$0xff]  }
 0xc33   : > { %10515 = vmatpush1.bf16.msra.mxu1 %v23071_v7  ;;  %v23139_v7 = vld [vmem:[#allocation14 + $0x6a4] ss:$16 sps:$4 sm:$0xff]  }
 0xc34   : > { %10679 = vmatpush1.bf16.msra.mxu0 %v23074_v47  ;;  %10516 = vmatprep.subr.bf16.mxu1 %v23079_v24  ;;  %v23142_v47 = vld [vmem:[#allocation14 + $0x6ac] ss:$16 sps:$4 sm:$0xff]   ;;  %v23137_v24 = vld [vmem:[#allocation14 + $0x6a0] ss:$16 sps:$4 sm:$0xff]  }
 0xc35   : > { %10680 = vmatprep.subr.bf16.mxu0 %v23082_v19  ;;  %v23140_v19 = vld [vmem:[#allocation14 + $0x6a8] ss:$16 sps:$4 sm:$0xff]  }
 0xc37   : > { %10517 = vmatpush1.bf16.msra.mxu1 %v23077_v29  ;;  %v23145_v29 = vld [vmem:[#allocation14 + $0x6c4] ss:$16 sps:$4 sm:$0xff]  }
 0xc38   : > { %10681 = vmatpush1.bf16.msra.mxu0 %v23080_v54  ;;  %10518 = vmatprep.subr.bf16.mxu1 %v23085_v6  ;;  %v23148_v54 = vld [vmem:[#allocation14 + $0x6cc] ss:$16 sps:$4 sm:$0xff]   ;;  %v23143_v6 = vld [vmem:[#allocation14 + $0x6c0] ss:$16 sps:$4 sm:$0xff]  }
 0xc39   : > { %10682 = vmatprep.subr.bf16.mxu0 %v23088_v55  ;;  %v23146_v55 = vld [vmem:[#allocation14 + $0x6c8] ss:$16 sps:$4 sm:$0xff]  }
 0xc3b   : > { %10519 = vmatpush1.bf16.msra.mxu1 %v23083_v56  ;;  %v23151_v56 = vld [vmem:[#allocation14 + $0x6e4] ss:$16 sps:$4 sm:$0xff]  }
 0xc3c   : > { %10683 = vmatpush1.bf16.msra.mxu0 %v23086_v57  ;;  %10520 = vmatprep.subr.bf16.mxu1 %v23091_v59  ;;  %v23154_v57 = vld [vmem:[#allocation14 + $0x6ec] ss:$16 sps:$4 sm:$0xff]   ;;  %v23149_v59 = vld [vmem:[#allocation14 + $0x6e0] ss:$16 sps:$4 sm:$0xff]  }
 0xc3d   : > { %10684 = vmatprep.subr.bf16.mxu0 %v23094_v48  ;;  %v23152_v48 = vld [vmem:[#allocation14 + $0x6e8] ss:$16 sps:$4 sm:$0xff]  }
 0xc3f   : > { %10521 = vmatpush1.bf16.msra.mxu1 %v23089_v52  ;;  %v23157_v52 = vld [vmem:[#allocation14 + $0x704] ss:$16 sps:$4 sm:$0xff]  }
 0xc40   : > { %10685 = vmatpush1.bf16.msra.mxu0 %v23092_v61  ;;  %10522 = vmatprep.subr.bf16.mxu1 %v23097_v62  ;;  %v23160_v61 = vld [vmem:[#allocation14 + $0x70c] ss:$16 sps:$4 sm:$0xff]   ;;  %v23155_v62 = vld [vmem:[#allocation14 + $0x700] ss:$16 sps:$4 sm:$0xff]  }
 0xc41   : > { %10686 = vmatprep.subr.bf16.mxu0 %v23100_v63  ;;  %v23158_v63 = vld [vmem:[#allocation14 + $0x708] ss:$16 sps:$4 sm:$0xff]  }
 0xc43   : > { %10523 = vmatpush1.bf16.msra.mxu1 %v23095_v1  ;;  %v23163_v1 = vld [vmem:[#allocation14 + $0x724] ss:$16 sps:$4 sm:$0xff]  }
 0xc44   : > { %10687 = vmatpush1.bf16.msra.mxu0 %v23098_v2  ;;  %10524 = vmatprep.subr.bf16.mxu1 %v23103_v4  ;;  %v23166_v2 = vld [vmem:[#allocation14 + $0x72c] ss:$16 sps:$4 sm:$0xff]   ;;  %v23161_v4 = vld [vmem:[#allocation14 + $0x720] ss:$16 sps:$4 sm:$0xff]  }
 0xc45   : > { %10688 = vmatprep.subr.bf16.mxu0 %v23106_v3  ;;  %v23164_v3 = vld [vmem:[#allocation14 + $0x728] ss:$16 sps:$4 sm:$0xff]  }
 0xc47   : > { %10525 = vmatpush1.bf16.msra.mxu1 %v23101_v8  ;;  %v23169_v8 = vld [vmem:[#allocation14 + $0x744] ss:$16 sps:$4 sm:$0xff]  }
 0xc48   : > { %10689 = vmatpush1.bf16.msra.mxu0 %v23104_v12  ;;  %10535 = vmatprep.subr.bf16.mxu1 %v23109_v10  ;;  %v23172_v12 = vld [vmem:[#allocation14 + $0x74c] ss:$16 sps:$4 sm:$0xff]   ;;  %v23167_v10 = vld [vmem:[#allocation14 + $0x740] ss:$16 sps:$4 sm:$0xff]  }
 0xc49   : > { %10699 = vmatprep.subr.bf16.mxu0 %v23112_v15  ;;  %v23170_v15 = vld [vmem:[#allocation14 + $0x748] ss:$16 sps:$4 sm:$0xff]  }
 0xc4a   : > { %10527 = vmatmul.mubr.bf16.vlgmr.msra.gmra.mrb[20].mxu1 %v27078_v5 }
 0xc4b   : > { %10691 = vmatmul.mubr.bf16.vlgmr.msra.gmra.mrb[24].mxu0 %v27078_v5  ;;  %10536 = vmatpush1.bf16.msra.mxu1 %v23107_v13  ;;  %v23175_v13 = vld [vmem:[#allocation14 + $0x764] ss:$16 sps:$4 sm:$0xff]  }
 0xc4c   : > { %10567 = vmatprep.mubr.bf16.mxu1 %v27082_v9  ;;  %10700 = vmatpush1.bf16.msra.mxu0 %v23110_v44  ;;  %v23178_v44 = vld [vmem:[#allocation14 + $0x76c] ss:$16 sps:$4 sm:$0xff]  }
 0xc4d   : > { %10731 = vmatprep.mubr.bf16.mxu0 %v27082_v9  ;;  %10537 = vmatprep.subr.bf16.mxu1 %v23115_v22  ;;  %v23173_v22 = vld [vmem:[#allocation14 + $0x760] ss:$16 sps:$4 sm:$0xff]  }
 0xc4e   : > { %10701 = vmatprep.subr.bf16.mxu0 %v23118_v14  ;;  %v23176_v14 = vld [vmem:[#allocation14 + $0x768] ss:$16 sps:$4 sm:$0xff]  }
 0xc4f   : > { %10538 = vmatpush1.bf16.msra.mxu1 %v23113_v50  ;;  %v23181_v50 = vld [vmem:[#allocation14 + $0x784] ss:$16 sps:$4 sm:$0xff]  }
 0xc50   : > { %10702 = vmatpush1.bf16.msra.mxu0 %v23116_v34  ;;  %10539 = vmatprep.subr.bf16.mxu1 %v23121_v28  ;;  %v23184_v34 = vld [vmem:[#allocation14 + $0x78c] ss:$16 sps:$4 sm:$0xff]   ;;  %v23179_v28 = vld [vmem:[#allocation14 + $0x780] ss:$16 sps:$4 sm:$0xff]  }
 0xc51   : > { %10703 = vmatprep.subr.bf16.mxu0 %v23124_v25  ;;  %v23182_v25 = vld [vmem:[#allocation14 + $0x788] ss:$16 sps:$4 sm:$0xff]  }
 0xc53   : > { %10540 = vmatpush1.bf16.msra.mxu1 %v23119_v45  ;;  %v23187_v45 = vld [vmem:[#allocation14 + $0x7a4] ss:$16 sps:$4 sm:$0xff]  }
 0xc54   : > { %10704 = vmatpush1.bf16.msra.mxu0 %v23122_v37  ;;  %10541 = vmatprep.subr.bf16.mxu1 %v23127_v46  ;;  %v23190_v37 = vld [vmem:[#allocation14 + $0x7ac] ss:$16 sps:$4 sm:$0xff]   ;;  %v23185_v46 = vld [vmem:[#allocation14 + $0x7a0] ss:$16 sps:$4 sm:$0xff]  }
 0xc55   : > { %10705 = vmatprep.subr.bf16.mxu0 %v23130_v18  ;;  %v23188_v18 = vld [vmem:[#allocation14 + $0x7a8] ss:$16 sps:$4 sm:$0xff]  }
 0xc57   : > { %10542 = vmatpush1.bf16.msra.mxu1 %v23125_v26  ;;  %v23193_v26 = vld [vmem:[#allocation14 + $0x7c4] ss:$16 sps:$4 sm:$0xff]  }
 0xc58   : > { %10706 = vmatpush1.bf16.msra.mxu0 %v23128_v27  ;;  %10543 = vmatprep.subr.bf16.mxu1 %v23133_v30  ;;  %v23196_v27 = vld [vmem:[#allocation14 + $0x7cc] ss:$16 sps:$4 sm:$0xff]   ;;  %v23191_v30 = vld [vmem:[#allocation14 + $0x7c0] ss:$16 sps:$4 sm:$0xff]  }
 0xc59   : > { %10707 = vmatprep.subr.bf16.mxu0 %v23136_v23  ;;  %v23194_v23 = vld [vmem:[#allocation14 + $0x7c8] ss:$16 sps:$4 sm:$0xff]  }
 0xc5b   : > { %10544 = vmatpush1.bf16.msra.mxu1 %v23131_v42  ;;  %v23199_v42 = vld [vmem:[#allocation14 + $0x7e4] ss:$16 sps:$4 sm:$0xff]  }
 0xc5c   : > { %10708 = vmatpush1.bf16.msra.mxu0 %v23134_v43  ;;  %10545 = vmatprep.subr.bf16.mxu1 %v23139_v7  ;;  %v23202_v43 = vld [vmem:[#allocation14 + $0x7ec] ss:$16 sps:$4 sm:$0xff]   ;;  %v23197_v7 = vld [vmem:[#allocation14 + $0x7e0] ss:$16 sps:$4 sm:$0xff]  }
 0xc5d   : > { %10709 = vmatprep.subr.bf16.mxu0 %v23142_v47  ;;  %v23200_v47 = vld [vmem:[#allocation14 + $0x7e8] ss:$16 sps:$4 sm:$0xff]  }
 0xc5f   : > { %10546 = vmatpush1.bf16.msra.mxu1 %v23137_v24  ;;  %v23205_v24 = vld [vmem:[#allocation14 + $0x1004] ss:$16 sps:$4 sm:$0xff]  }
 0xc60   : > { %10710 = vmatpush1.bf16.msra.mxu0 %v23140_v19  ;;  %10547 = vmatprep.subr.bf16.mxu1 %v23145_v29  ;;  %v23208_v19 = vld [vmem:[#allocation14 + $0x100c] ss:$16 sps:$4 sm:$0xff]   ;;  %v23203_v29 = vld [vmem:[#allocation14 + $0x1000] ss:$16 sps:$4 sm:$0xff]  }
 0xc61   : > { %10711 = vmatprep.subr.bf16.mxu0 %v23148_v54  ;;  %v23206_v54 = vld [vmem:[#allocation14 + $0x1008] ss:$16 sps:$4 sm:$0xff]  }
 0xc63   : > { %10548 = vmatpush1.bf16.msra.mxu1 %v23143_v6  ;;  %v23211_v6 = vld [vmem:[#allocation14 + $0x1024] ss:$16 sps:$4 sm:$0xff]  }
 0xc64   : > { %10712 = vmatpush1.bf16.msra.mxu0 %v23146_v55  ;;  %10549 = vmatprep.subr.bf16.mxu1 %v23151_v56  ;;  %v11006_v55 = vrot.slane %v27037_v16, 1  ;;  %v23214_v56 = vld [vmem:[#allocation14 + $0x102c] ss:$16 sps:$4 sm:$0xff]  }
 0xc65   : > { %10713 = vmatprep.subr.bf16.mxu0 %v23154_v57  ;;  %v23209_v57 = vld [vmem:[#allocation14 + $0x1020] ss:$16 sps:$4 sm:$0xff]  }
 0xc67   : > { %10550 = vmatpush1.bf16.msra.mxu1 %v23149_v59  ;;  %v23212_v59 = vld [vmem:[#allocation14 + $0x1028] ss:$16 sps:$4 sm:$0xff]  }
 0xc68   : > { %10714 = vmatpush1.bf16.msra.mxu0 %v23152_v48  ;;  %10551 = vmatprep.subr.bf16.mxu1 %v23157_v52  ;;  %v23217_v48 = vld [vmem:[#allocation14 + $0x1044] ss:$16 sps:$4 sm:$0xff]   ;;  %v23220_v52 = vld [vmem:[#allocation14 + $0x104c] ss:$16 sps:$4 sm:$0xff]  }
 0xc69   : > { %10715 = vmatprep.subr.bf16.mxu0 %v23160_v61  ;;  %v23215_v61 = vld [vmem:[#allocation14 + $0x1040] ss:$16 sps:$4 sm:$0xff]  }
 0xc6b   : > { %10552 = vmatpush1.bf16.msra.mxu1 %v23155_v62  ;;  %v23218_v62 = vld [vmem:[#allocation14 + $0x1048] ss:$16 sps:$4 sm:$0xff]  }
 0xc6c   : > { %10716 = vmatpush1.bf16.msra.mxu0 %v23158_v63  ;;  %10553 = vmatprep.subr.bf16.mxu1 %v23163_v1  ;;  %v23223_v63 = vld [vmem:[#allocation14 + $0x1064] ss:$16 sps:$4 sm:$0xff]   ;;  %v23226_v1 = vld [vmem:[#allocation14 + $0x106c] ss:$16 sps:$4 sm:$0xff]  }
 0xc6d   : > { %10717 = vmatprep.subr.bf16.mxu0 %v23166_v2  ;;  %v23221_v2 = vld [vmem:[#allocation14 + $0x1060] ss:$16 sps:$4 sm:$0xff]  }
 0xc6f   : > { %10554 = vmatpush1.bf16.msra.mxu1 %v23161_v4  ;;  %v23224_v4 = vld [vmem:[#allocation14 + $0x1068] ss:$16 sps:$4 sm:$0xff]  }
 0xc70   : > { %10718 = vmatpush1.bf16.msra.mxu0 %v23164_v3  ;;  %10555 = vmatprep.subr.bf16.mxu1 %v23169_v8  ;;  %v23229_v3 = vld [vmem:[#allocation14 + $0x1084] ss:$16 sps:$4 sm:$0xff]   ;;  %v23232_v8 = vld [vmem:[#allocation14 + $0x108c] ss:$16 sps:$4 sm:$0xff]  }
 0xc71   : > { %10719 = vmatprep.subr.bf16.mxu0 %v23172_v12  ;;  %v23227_v12 = vld [vmem:[#allocation14 + $0x1080] ss:$16 sps:$4 sm:$0xff]  }
 0xc73   : > { %10556 = vmatpush1.bf16.msra.mxu1 %v23167_v10  ;;  %v23230_v10 = vld [vmem:[#allocation14 + $0x1088] ss:$16 sps:$4 sm:$0xff]  }
 0xc74   : > { %10720 = vmatpush1.bf16.msra.mxu0 %v23170_v15  ;;  %10557 = vmatprep.subr.bf16.mxu1 %v23175_v13  ;;  %v23235_v15 = vld [vmem:[#allocation14 + $0x10a4] ss:$16 sps:$4 sm:$0xff]   ;;  %v23238_v13 = vld [vmem:[#allocation14 + $0x10ac] ss:$16 sps:$4 sm:$0xff]  }
 0xc75   : > { %10721 = vmatprep.subr.bf16.mxu0 %v23178_v44  ;;  %v23233_v44 = vld [vmem:[#allocation14 + $0x10a0] ss:$16 sps:$4 sm:$0xff]  }
 0xc77   : > { %10558 = vmatpush1.bf16.msra.mxu1 %v23173_v22  ;;  %v23236_v22 = vld [vmem:[#allocation14 + $0x10a8] ss:$16 sps:$4 sm:$0xff]  }
 0xc78   : > { %10722 = vmatpush1.bf16.msra.mxu0 %v23176_v14  ;;  %10559 = vmatprep.subr.bf16.mxu1 %v23181_v50  ;;  %v23241_v14 = vld [vmem:[#allocation14 + $0x10c4] ss:$16 sps:$4 sm:$0xff]   ;;  %v23244_v50 = vld [vmem:[#allocation14 + $0x10cc] ss:$16 sps:$4 sm:$0xff]  }
 0xc79   : > { %10723 = vmatprep.subr.bf16.mxu0 %v23184_v34  ;;  %v23239_v34 = vld [vmem:[#allocation14 + $0x10c0] ss:$16 sps:$4 sm:$0xff]  }
 0xc7b   : > { %10560 = vmatpush1.bf16.msra.mxu1 %v23179_v28  ;;  %v23242_v28 = vld [vmem:[#allocation14 + $0x10c8] ss:$16 sps:$4 sm:$0xff]  }
 0xc7c   : > { %10724 = vmatpush1.bf16.msra.mxu0 %v23182_v25  ;;  %10561 = vmatprep.subr.bf16.mxu1 %v23187_v45  ;;  %v23247_v25 = vld [vmem:[#allocation14 + $0x10e4] ss:$16 sps:$4 sm:$0xff]   ;;  %v23250_v45 = vld [vmem:[#allocation14 + $0x10ec] ss:$16 sps:$4 sm:$0xff]  }
 0xc7d   : > { %10725 = vmatprep.subr.bf16.mxu0 %v23190_v37  ;;  %v23245_v37 = vld [vmem:[#allocation14 + $0x10e0] ss:$16 sps:$4 sm:$0xff]  }
 0xc7f   : > { %10562 = vmatpush1.bf16.msra.mxu1 %v23185_v46  ;;  %v23248_v46 = vld [vmem:[#allocation14 + $0x10e8] ss:$16 sps:$4 sm:$0xff]  }
 0xc80   : > { %10726 = vmatpush1.bf16.msra.mxu0 %v23188_v18  ;;  %10563 = vmatprep.subr.bf16.mxu1 %v23193_v26  ;;  %v23253_v18 = vld [vmem:[#allocation14 + $0x1104] ss:$16 sps:$4 sm:$0xff]   ;;  %v23256_v26 = vld [vmem:[#allocation14 + $0x110c] ss:$16 sps:$4 sm:$0xff]  }
 0xc81   : > { %10727 = vmatprep.subr.bf16.mxu0 %v23196_v27  ;;  %v23251_v27 = vld [vmem:[#allocation14 + $0x1100] ss:$16 sps:$4 sm:$0xff]  }
 0xc83   : > { %10564 = vmatpush1.bf16.msra.mxu1 %v23191_v30  ;;  %v23254_v30 = vld [vmem:[#allocation14 + $0x1108] ss:$16 sps:$4 sm:$0xff]  }
 0xc84   : > { %10728 = vmatpush1.bf16.msra.mxu0 %v23194_v23  ;;  %10565 = vmatprep.subr.bf16.mxu1 %v23199_v42  ;;  %v23259_v23 = vld [vmem:[#allocation14 + $0x1124] ss:$16 sps:$4 sm:$0xff]   ;;  %v23262_v42 = vld [vmem:[#allocation14 + $0x112c] ss:$16 sps:$4 sm:$0xff]  }
 0xc85   : > { %10729 = vmatprep.subr.bf16.mxu0 %v23202_v43  ;;  %v23257_v43 = vld [vmem:[#allocation14 + $0x1120] ss:$16 sps:$4 sm:$0xff]  }
 0xc87   : > { %10566 = vmatpush1.bf16.msra.mxu1 %v23197_v7  ;;  %v23260_v7 = vld [vmem:[#allocation14 + $0x1128] ss:$16 sps:$4 sm:$0xff]  }
 0xc88   : > { %10730 = vmatpush1.bf16.msra.mxu0 %v23200_v47  ;;  %12301 = vmatprep.subr.bf16.mxu1 %v23205_v24  ;;  %v23265_v47 = vld [vmem:[#allocation14 + $0x1144] ss:$16 sps:$4 sm:$0xff]   ;;  %v23268_v24 = vld [vmem:[#allocation14 + $0x114c] ss:$16 sps:$4 sm:$0xff]  }
 0xc89   : > { %12465 = vmatprep.subr.bf16.mxu0 %v23208_v19  ;;  %v23263_v19 = vld [vmem:[#allocation14 + $0x1140] ss:$16 sps:$4 sm:$0xff]  }
 0xc8a   : > { %10568 = vmatmul.mubr.bf16.vlgmr.msra.gmra.mrb[20].mxu1 %v27096_v41 }
 0xc8b   : > { %10732 = vmatmul.mubr.bf16.vlgmr.msra.gmra.mrb[24].mxu0 %v27096_v41  ;;  %12302 = vmatpush1.bf16.msra.mxu1 %v23203_v29  ;;  %v23266_v29 = vld [vmem:[#allocation14 + $0x1148] ss:$16 sps:$4 sm:$0xff]  }
 0xc8c   : > { %12333 = vmatprep.mubr.bf16.mxu1 %v11006_v55  ;;  %12466 = vmatpush1.bf16.msra.mxu0 %v23206_v54  ;;  %v23271_v54 = vld [vmem:[#allocation14 + $0x1164] ss:$16 sps:$4 sm:$0xff]  }
 0xc8d   : > { %12497 = vmatprep.mubr.bf16.mxu0 %v11006_v55  ;;  %12303 = vmatprep.subr.bf16.mxu1 %v23211_v6  ;;  %v23274_v6 = vld [vmem:[#allocation14 + $0x116c] ss:$16 sps:$4 sm:$0xff]   ;;  %v23269_v55 = vld [vmem:[#allocation14 + $0x1160] ss:$16 sps:$4 sm:$0xff]  }
 0xc8e   : > { %12467 = vmatprep.subr.bf16.mxu0 %v23214_v56  ;;  %v23272_v56 = vld [vmem:[#allocation14 + $0x1168] ss:$16 sps:$4 sm:$0xff]  }
 0xc8f   : > { %12304 = vmatpush1.bf16.msra.mxu1 %v23209_v57  ;;  %v23277_v57 = vld [vmem:[#allocation14 + $0x1184] ss:$16 sps:$4 sm:$0xff]  }
 0xc90   : > { %12468 = vmatpush1.bf16.msra.mxu0 %v23212_v59  ;;  %12305 = vmatprep.subr.bf16.mxu1 %v23217_v48  ;;  %v23280_v59 = vld [vmem:[#allocation14 + $0x118c] ss:$16 sps:$4 sm:$0xff]   ;;  %v23275_v48 = vld [vmem:[#allocation14 + $0x1180] ss:$16 sps:$4 sm:$0xff]  }
 0xc91   : > { %12469 = vmatprep.subr.bf16.mxu0 %v23220_v52  ;;  %v23278_v52 = vld [vmem:[#allocation14 + $0x1188] ss:$16 sps:$4 sm:$0xff]  }
 0xc93   : > { %12306 = vmatpush1.bf16.msra.mxu1 %v23215_v61  ;;  %v23283_v61 = vld [vmem:[#allocation14 + $0x11a4] ss:$16 sps:$4 sm:$0xff]  }
 0xc94   : > { %12470 = vmatpush1.bf16.msra.mxu0 %v23218_v62  ;;  %12307 = vmatprep.subr.bf16.mxu1 %v23223_v63  ;;  %v23286_v62 = vld [vmem:[#allocation14 + $0x11ac] ss:$16 sps:$4 sm:$0xff]   ;;  %v23281_v63 = vld [vmem:[#allocation14 + $0x11a0] ss:$16 sps:$4 sm:$0xff]  }
 0xc95   : > { %12471 = vmatprep.subr.bf16.mxu0 %v23226_v1  ;;  %v23284_v1 = vld [vmem:[#allocation14 + $0x11a8] ss:$16 sps:$4 sm:$0xff]  }
 0xc97   : > { %12308 = vmatpush1.bf16.msra.mxu1 %v23221_v2  ;;  %v23289_v2 = vld [vmem:[#allocation14 + $0x11c4] ss:$16 sps:$4 sm:$0xff]  }
 0xc98   : > { %12472 = vmatpush1.bf16.msra.mxu0 %v23224_v4  ;;  %12309 = vmatprep.subr.bf16.mxu1 %v23229_v3  ;;  %v23292_v4 = vld [vmem:[#allocation14 + $0x11cc] ss:$16 sps:$4 sm:$0xff]   ;;  %v23287_v3 = vld [vmem:[#allocation14 + $0x11c0] ss:$16 sps:$4 sm:$0xff]  }
 0xc99   : > { %12473 = vmatprep.subr.bf16.mxu0 %v23232_v8  ;;  %v23290_v8 = vld [vmem:[#allocation14 + $0x11c8] ss:$16 sps:$4 sm:$0xff]  }
 0xc9b   : > { %12310 = vmatpush1.bf16.msra.mxu1 %v23227_v12  ;;  %v23295_v12 = vld [vmem:[#allocation14 + $0x11e4] ss:$16 sps:$4 sm:$0xff]  }
 0xc9c   : > { %12474 = vmatpush1.bf16.msra.mxu0 %v23230_v10  ;;  %12311 = vmatprep.subr.bf16.mxu1 %v23235_v15  ;;  %v23298_v10 = vld [vmem:[#allocation14 + $0x11ec] ss:$16 sps:$4 sm:$0xff]   ;;  %v23293_v15 = vld [vmem:[#allocation14 + $0x11e0] ss:$16 sps:$4 sm:$0xff]  }
 0xc9d   : > { %12475 = vmatprep.subr.bf16.mxu0 %v23238_v13  ;;  %v23296_v13 = vld [vmem:[#allocation14 + $0x11e8] ss:$16 sps:$4 sm:$0xff]  }
 0xc9f   : > { %12312 = vmatpush1.bf16.msra.mxu1 %v23233_v44  ;;  %v23301_v44 = vld [vmem:[#allocation14 + $0x1204] ss:$16 sps:$4 sm:$0xff]  }
 0xca0   : > { %12476 = vmatpush1.bf16.msra.mxu0 %v23236_v22  ;;  %12313 = vmatprep.subr.bf16.mxu1 %v23241_v14  ;;  %v23304_v22 = vld [vmem:[#allocation14 + $0x120c] ss:$16 sps:$4 sm:$0xff]   ;;  %v23299_v14 = vld [vmem:[#allocation14 + $0x1200] ss:$16 sps:$4 sm:$0xff]  }
 0xca1   : > { %12477 = vmatprep.subr.bf16.mxu0 %v23244_v50  ;;  %v11005_v50 = vrot.slane %v27039_v17, 1 }
 0xca3   : > { %12314 = vmatpush1.bf16.msra.mxu1 %v23239_v34  ;;  %v23302_v34 = vld [vmem:[#allocation14 + $0x1208] ss:$16 sps:$4 sm:$0xff]  }
 0xca4   : > { %12478 = vmatpush1.bf16.msra.mxu0 %v23242_v28  ;;  %12315 = vmatprep.subr.bf16.mxu1 %v23247_v25  ;;  %v23307_v28 = vld [vmem:[#allocation14 + $0x1224] ss:$16 sps:$4 sm:$0xff]   ;;  %v11008_v25 = vrot.slane %v27041_v20, 1 }
 0xca5   : > { %12479 = vmatprep.subr.bf16.mxu0 %v23250_v45  ;;  %v23310_v45 = vld [vmem:[#allocation14 + $0x122c] ss:$16 sps:$4 sm:$0xff]  }
 0xca7   : > { %12316 = vmatpush1.bf16.msra.mxu1 %v23245_v37  ;;  %v23305_v37 = vld [vmem:[#allocation14 + $0x1220] ss:$16 sps:$4 sm:$0xff]  }
 0xca8   : > { %12480 = vmatpush1.bf16.msra.mxu0 %v23248_v46  ;;  %12317 = vmatprep.subr.bf16.mxu1 %v23253_v18  ;;  %v23308_v46 = vld [vmem:[#allocation14 + $0x1228] ss:$16 sps:$4 sm:$0xff]   ;;  %v23313_v18 = vld [vmem:[#allocation14 + $0x1244] ss:$16 sps:$4 sm:$0xff]  }
 0xca9   : > { %12481 = vmatprep.subr.bf16.mxu0 %v23256_v26  ;;  %v23316_v26 = vld [vmem:[#allocation14 + $0x124c] ss:$16 sps:$4 sm:$0xff]  }
 0xcab   : > { %12318 = vmatpush1.bf16.msra.mxu1 %v23251_v27  ;;  %v23311_v27 = vld [vmem:[#allocation14 + $0x1240] ss:$16 sps:$4 sm:$0xff]  }
 0xcac   : > { %12482 = vmatpush1.bf16.msra.mxu0 %v23254_v30  ;;  %12319 = vmatprep.subr.bf16.mxu1 %v23259_v23  ;;  %v23314_v30 = vld [vmem:[#allocation14 + $0x1248] ss:$16 sps:$4 sm:$0xff]   ;;  %v23319_v23 = vld [vmem:[#allocation14 + $0x1264] ss:$16 sps:$4 sm:$0xff]  }
 0xcad   : > { %12483 = vmatprep.subr.bf16.mxu0 %v23262_v42  ;;  %v23322_v42 = vld [vmem:[#allocation14 + $0x126c] ss:$16 sps:$4 sm:$0xff]  }
 0xcaf   : > { %12320 = vmatpush1.bf16.msra.mxu1 %v23257_v43  ;;  %v23317_v43 = vld [vmem:[#allocation14 + $0x1260] ss:$16 sps:$4 sm:$0xff]  }
 0xcb0   : > { %12484 = vmatpush1.bf16.msra.mxu0 %v23260_v7  ;;  %12321 = vmatprep.subr.bf16.mxu1 %v23265_v47  ;;  %v23320_v7 = vld [vmem:[#allocation14 + $0x1268] ss:$16 sps:$4 sm:$0xff]   ;;  %v23325_v47 = vld [vmem:[#allocation14 + $0x1284] ss:$16 sps:$4 sm:$0xff]  }
 0xcb1   : > { %12485 = vmatprep.subr.bf16.mxu0 %v23268_v24  ;;  %v23328_v24 = vld [vmem:[#allocation14 + $0x128c] ss:$16 sps:$4 sm:$0xff]  }
 0xcb3   : > { %12322 = vmatpush1.bf16.msra.mxu1 %v23263_v19  ;;  %v23323_v19 = vld [vmem:[#allocation14 + $0x1280] ss:$16 sps:$4 sm:$0xff]  }
 0xcb4   : > { %12486 = vmatpush1.bf16.msra.mxu0 %v23266_v29  ;;  %12323 = vmatprep.subr.bf16.mxu1 %v23271_v54  ;;  %v23326_v29 = vld [vmem:[#allocation14 + $0x1288] ss:$16 sps:$4 sm:$0xff]   ;;  %v23331_v54 = vld [vmem:[#allocation14 + $0x12a4] ss:$16 sps:$4 sm:$0xff]  }
 0xcb5   : > { %12487 = vmatprep.subr.bf16.mxu0 %v23274_v6  ;;  %v23334_v6 = vld [vmem:[#allocation14 + $0x12ac] ss:$16 sps:$4 sm:$0xff]  }
 0xcb7   : > { %12324 = vmatpush1.bf16.msra.mxu1 %v23269_v55  ;;  %v23329_v55 = vld [vmem:[#allocation14 + $0x12a0] ss:$16 sps:$4 sm:$0xff]  }
 0xcb8   : > { %12488 = vmatpush1.bf16.msra.mxu0 %v23272_v56  ;;  %12325 = vmatprep.subr.bf16.mxu1 %v23277_v57  ;;  %v23332_v56 = vld [vmem:[#allocation14 + $0x12a8] ss:$16 sps:$4 sm:$0xff]   ;;  %v23337_v57 = vld [vmem:[#allocation14 + $0x12c4] ss:$16 sps:$4 sm:$0xff]  }
 0xcb9   : > { %12489 = vmatprep.subr.bf16.mxu0 %v23280_v59  ;;  %v23340_v59 = vld [vmem:[#allocation14 + $0x12cc] ss:$16 sps:$4 sm:$0xff]  }
 0xcbb   : > { %12326 = vmatpush1.bf16.msra.mxu1 %v23275_v48  ;;  %v23335_v48 = vld [vmem:[#allocation14 + $0x12c0] ss:$16 sps:$4 sm:$0xff]  }
 0xcbc   : > { %12490 = vmatpush1.bf16.msra.mxu0 %v23278_v52  ;;  %12327 = vmatprep.subr.bf16.mxu1 %v23283_v61  ;;  %v23338_v52 = vld [vmem:[#allocation14 + $0x12c8] ss:$16 sps:$4 sm:$0xff]   ;;  %v23343_v61 = vld [vmem:[#allocation14 + $0x12e4] ss:$16 sps:$4 sm:$0xff]  }
 0xcbd   : > { %12491 = vmatprep.subr.bf16.mxu0 %v23286_v62  ;;  %v23346_v62 = vld [vmem:[#allocation14 + $0x12ec] ss:$16 sps:$4 sm:$0xff]  }
 0xcbf   : > { %12328 = vmatpush1.bf16.msra.mxu1 %v23281_v63  ;;  %v23341_v63 = vld [vmem:[#allocation14 + $0x12e0] ss:$16 sps:$4 sm:$0xff]  }
 0xcc0   : > { %12492 = vmatpush1.bf16.msra.mxu0 %v23284_v1  ;;  %12329 = vmatprep.subr.bf16.mxu1 %v23289_v2  ;;  %v23344_v1 = vld [vmem:[#allocation14 + $0x12e8] ss:$16 sps:$4 sm:$0xff]   ;;  %v23349_v2 = vld [vmem:[#allocation14 + $0x1304] ss:$16 sps:$4 sm:$0xff]  }
 0xcc1   : > { %12493 = vmatprep.subr.bf16.mxu0 %v23292_v4  ;;  %v23352_v4 = vld [vmem:[#allocation14 + $0x130c] ss:$16 sps:$4 sm:$0xff]  }
 0xcc3   : > { %12330 = vmatpush1.bf16.msra.mxu1 %v23287_v3  ;;  %v23347_v3 = vld [vmem:[#allocation14 + $0x1300] ss:$16 sps:$4 sm:$0xff]  }
 0xcc4   : > { %12494 = vmatpush1.bf16.msra.mxu0 %v23290_v8  ;;  %12331 = vmatprep.subr.bf16.mxu1 %v23295_v12  ;;  %v23350_v8 = vld [vmem:[#allocation14 + $0x1308] ss:$16 sps:$4 sm:$0xff]   ;;  %v23355_v12 = vld [vmem:[#allocation14 + $0x1324] ss:$16 sps:$4 sm:$0xff]  }
 0xcc5   : > { %12495 = vmatprep.subr.bf16.mxu0 %v23298_v10  ;;  %v23358_v10 = vld [vmem:[#allocation14 + $0x132c] ss:$16 sps:$4 sm:$0xff]  }
 0xcc7   : > { %12332 = vmatpush1.bf16.msra.mxu1 %v23293_v15  ;;  %v23353_v15 = vld [vmem:[#allocation14 + $0x1320] ss:$16 sps:$4 sm:$0xff]  }
 0xcc8   : > { %12496 = vmatpush1.bf16.msra.mxu0 %v23296_v13  ;;  %12342 = vmatprep.subr.bf16.mxu1 %v23301_v44  ;;  %v23356_v13 = vld [vmem:[#allocation14 + $0x1328] ss:$16 sps:$4 sm:$0xff]   ;;  %v23361_v44 = vld [vmem:[#allocation14 + $0x1344] ss:$16 sps:$4 sm:$0xff]  }
 0xcc9   : > { %12506 = vmatprep.subr.bf16.mxu0 %v23304_v22  ;;  %v23364_v22 = vld [vmem:[#allocation14 + $0x134c] ss:$16 sps:$4 sm:$0xff]  }
 0xcca   : > { %12334 = vmatmul.mubr.bf16.vlgmr.msra.gmra.mrb[20].mxu1 %v11005_v50 }
 0xccb   : > { %12498 = vmatmul.mubr.bf16.vlgmr.msra.gmra.mrb[24].mxu0 %v11005_v50  ;;  %12343 = vmatpush1.bf16.msra.mxu1 %v23299_v14  ;;  %v23359_v14 = vld [vmem:[#allocation14 + $0x1340] ss:$16 sps:$4 sm:$0xff]   ;;  %v23362_v50 = vld [vmem:[#allocation14 + $0x1348] ss:$16 sps:$4 sm:$0xff]  }
 0xccc   : > { %12374 = vmatprep.mubr.bf16.mxu1 %v11008_v25  ;;  %12507 = vmatpush1.bf16.msra.mxu0 %v23302_v34  ;;  %v23367_v34 = vld [vmem:[#allocation14 + $0x1364] ss:$16 sps:$4 sm:$0xff]  }
 0xccd   : > { %12538 = vmatprep.mubr.bf16.mxu0 %v11008_v25  ;;  %12344 = vmatprep.subr.bf16.mxu1 %v23307_v28  ;;  %v23370_v28 = vld [vmem:[#allocation14 + $0x136c] ss:$16 sps:$4 sm:$0xff]   ;;  %v23365_v25 = vld [vmem:[#allocation14 + $0x1360] ss:$16 sps:$4 sm:$0xff]  }
 0xcce   : > { %12508 = vmatprep.subr.bf16.mxu0 %v23310_v45  ;;  %v23368_v45 = vld [vmem:[#allocation14 + $0x1368] ss:$16 sps:$4 sm:$0xff]  }
 0xccf   : > { %12345 = vmatpush1.bf16.msra.mxu1 %v23305_v37  ;;  %v23373_v37 = vld [vmem:[#allocation14 + $0x1384] ss:$16 sps:$4 sm:$0xff]  }
 0xcd0   : > { %12509 = vmatpush1.bf16.msra.mxu0 %v23308_v46  ;;  %12346 = vmatprep.subr.bf16.mxu1 %v23313_v18  ;;  %v23376_v46 = vld [vmem:[#allocation14 + $0x138c] ss:$16 sps:$4 sm:$0xff]   ;;  %v23371_v18 = vld [vmem:[#allocation14 + $0x1380] ss:$16 sps:$4 sm:$0xff]  }
 0xcd1   : > { %12510 = vmatprep.subr.bf16.mxu0 %v23316_v26  ;;  %v23374_v26 = vld [vmem:[#allocation14 + $0x1388] ss:$16 sps:$4 sm:$0xff]  }
 0xcd3   : > { %12347 = vmatpush1.bf16.msra.mxu1 %v23311_v27  ;;  %v23379_v27 = vld [vmem:[#allocation14 + $0x13a4] ss:$16 sps:$4 sm:$0xff]  }
 0xcd4   : > { %12511 = vmatpush1.bf16.msra.mxu0 %v23314_v30  ;;  %12348 = vmatprep.subr.bf16.mxu1 %v23319_v23  ;;  %v23382_v30 = vld [vmem:[#allocation14 + $0x13ac] ss:$16 sps:$4 sm:$0xff]   ;;  %v23377_v23 = vld [vmem:[#allocation14 + $0x13a0] ss:$16 sps:$4 sm:$0xff]  }
 0xcd5   : > { %12512 = vmatprep.subr.bf16.mxu0 %v23322_v42  ;;  %v23380_v42 = vld [vmem:[#allocation14 + $0x13a8] ss:$16 sps:$4 sm:$0xff]  }
 0xcd7   : > { %12349 = vmatpush1.bf16.msra.mxu1 %v23317_v43  ;;  %v23385_v43 = vld [vmem:[#allocation14 + $0x13c4] ss:$16 sps:$4 sm:$0xff]  }
 0xcd8   : > { %12513 = vmatpush1.bf16.msra.mxu0 %v23320_v7  ;;  %12350 = vmatprep.subr.bf16.mxu1 %v23325_v47  ;;  %v23388_v7 = vld [vmem:[#allocation14 + $0x13cc] ss:$16 sps:$4 sm:$0xff]   ;;  %v23383_v47 = vld [vmem:[#allocation14 + $0x13c0] ss:$16 sps:$4 sm:$0xff]  }
 0xcd9   : > { %12514 = vmatprep.subr.bf16.mxu0 %v23328_v24  ;;  %v23386_v24 = vld [vmem:[#allocation14 + $0x13c8] ss:$16 sps:$4 sm:$0xff]  }
 0xcdb   : > { %12351 = vmatpush1.bf16.msra.mxu1 %v23323_v19  ;;  %v23391_v19 = vld [vmem:[#allocation14 + $0x13e4] ss:$16 sps:$4 sm:$0xff]  }
 0xcdc   : > { %12515 = vmatpush1.bf16.msra.mxu0 %v23326_v29  ;;  %12352 = vmatprep.subr.bf16.mxu1 %v23331_v54  ;;  %v23394_v29 = vld [vmem:[#allocation14 + $0x13ec] ss:$16 sps:$4 sm:$0xff]   ;;  %v23389_v54 = vld [vmem:[#allocation14 + $0x13e0] ss:$16 sps:$4 sm:$0xff]  }
 0xcdd   : > { %12516 = vmatprep.subr.bf16.mxu0 %v23334_v6  ;;  %v23392_v6 = vld [vmem:[#allocation14 + $0x13e8] ss:$16 sps:$4 sm:$0xff]  }
 0xcdf   : > { %12353 = vmatpush1.bf16.msra.mxu1 %v23329_v55  ;;  %v23397_v55 = vld [vmem:[#allocation14 + $0x1404] ss:$16 sps:$4 sm:$0xff]  }
 0xce0   : > { %12517 = vmatpush1.bf16.msra.mxu0 %v23332_v56  ;;  %12354 = vmatprep.subr.bf16.mxu1 %v23337_v57  ;;  %v23400_v56 = vld [vmem:[#allocation14 + $0x140c] ss:$16 sps:$4 sm:$0xff]   ;;  %v23395_v57 = vld [vmem:[#allocation14 + $0x1400] ss:$16 sps:$4 sm:$0xff]  }
 0xce1   : > { %12518 = vmatprep.subr.bf16.mxu0 %v23340_v59  ;;  %v11007_v59 = vrot.slane %v27060_v11, 1 }
 0xce3   : > { %12355 = vmatpush1.bf16.msra.mxu1 %v23335_v48  ;;  %v23398_v48 = vld [vmem:[#allocation14 + $0x1408] ss:$16 sps:$4 sm:$0xff]  }
 0xce4   : > { %12519 = vmatpush1.bf16.msra.mxu0 %v23338_v52  ;;  %12356 = vmatprep.subr.bf16.mxu1 %v23343_v61  ;;  %v23403_v52 = vld [vmem:[#allocation14 + $0x1424] ss:$16 sps:$4 sm:$0xff]   ;;  %v11010_v61 = vrot.slane %v27064_v53, 1 }
 0xce5   : > { %12520 = vmatprep.subr.bf16.mxu0 %v23346_v62  ;;  %v23406_v62 = vld [vmem:[#allocation14 + $0x142c] ss:$16 sps:$4 sm:$0xff]  }
 0xce7   : > { %12357 = vmatpush1.bf16.msra.mxu1 %v23341_v63  ;;  %v23401_v63 = vld [vmem:[#allocation14 + $0x1420] ss:$16 sps:$4 sm:$0xff]  }
 0xce8   : > { %12521 = vmatpush1.bf16.msra.mxu0 %v23344_v1  ;;  %12358 = vmatprep.subr.bf16.mxu1 %v23349_v2  ;;  %v23404_v1 = vld [vmem:[#allocation14 + $0x1428] ss:$16 sps:$4 sm:$0xff]   ;;  %v23409_v2 = vld [vmem:[#allocation14 + $0x1444] ss:$16 sps:$4 sm:$0xff]  }
 0xce9   : > { %12522 = vmatprep.subr.bf16.mxu0 %v23352_v4  ;;  %v23412_v4 = vld [vmem:[#allocation14 + $0x144c] ss:$16 sps:$4 sm:$0xff]  }
 0xceb   : > { %12359 = vmatpush1.bf16.msra.mxu1 %v23347_v3  ;;  %v23407_v3 = vld [vmem:[#allocation14 + $0x1440] ss:$16 sps:$4 sm:$0xff]  }
 0xcec   : > { %12523 = vmatpush1.bf16.msra.mxu0 %v23350_v8  ;;  %12360 = vmatprep.subr.bf16.mxu1 %v23355_v12  ;;  %v23410_v8 = vld [vmem:[#allocation14 + $0x1448] ss:$16 sps:$4 sm:$0xff]   ;;  %v23415_v12 = vld [vmem:[#allocation14 + $0x1464] ss:$16 sps:$4 sm:$0xff]  }
 0xced   : > { %12524 = vmatprep.subr.bf16.mxu0 %v23358_v10  ;;  %v23418_v10 = vld [vmem:[#allocation14 + $0x146c] ss:$16 sps:$4 sm:$0xff]  }
 0xcef   : > { %12361 = vmatpush1.bf16.msra.mxu1 %v23353_v15  ;;  %v23413_v15 = vld [vmem:[#allocation14 + $0x1460] ss:$16 sps:$4 sm:$0xff]  }
 0xcf0   : > { %12525 = vmatpush1.bf16.msra.mxu0 %v23356_v13  ;;  %12362 = vmatprep.subr.bf16.mxu1 %v23361_v44  ;;  %v23416_v13 = vld [vmem:[#allocation14 + $0x1468] ss:$16 sps:$4 sm:$0xff]   ;;  %v23421_v44 = vld [vmem:[#allocation14 + $0x1484] ss:$16 sps:$4 sm:$0xff]  }
 0xcf1   : > { %12526 = vmatprep.subr.bf16.mxu0 %v23364_v22  ;;  %v23424_v22 = vld [vmem:[#allocation14 + $0x148c] ss:$16 sps:$4 sm:$0xff]  }
 0xcf3   : > { %12363 = vmatpush1.bf16.msra.mxu1 %v23359_v14  ;;  %v23419_v14 = vld [vmem:[#allocation14 + $0x1480] ss:$16 sps:$4 sm:$0xff]  }
 0xcf4   : > { %12527 = vmatpush1.bf16.msra.mxu0 %v23362_v50  ;;  %12364 = vmatprep.subr.bf16.mxu1 %v23367_v34  ;;  %v23422_v50 = vld [vmem:[#allocation14 + $0x1488] ss:$16 sps:$4 sm:$0xff]   ;;  %v23427_v34 = vld [vmem:[#allocation14 + $0x14a4] ss:$16 sps:$4 sm:$0xff]  }
 0xcf5   : > { %12528 = vmatprep.subr.bf16.mxu0 %v23370_v28  ;;  %v23430_v28 = vld [vmem:[#allocation14 + $0x14ac] ss:$16 sps:$4 sm:$0xff]  }
 0xcf7   : > { %12365 = vmatpush1.bf16.msra.mxu1 %v23365_v25  ;;  %v23425_v25 = vld [vmem:[#allocation14 + $0x14a0] ss:$16 sps:$4 sm:$0xff]  }
 0xcf8   : > { %12529 = vmatpush1.bf16.msra.mxu0 %v23368_v45  ;;  %12366 = vmatprep.subr.bf16.mxu1 %v23373_v37  ;;  %v23428_v45 = vld [vmem:[#allocation14 + $0x14a8] ss:$16 sps:$4 sm:$0xff]   ;;  %v23433_v37 = vld [vmem:[#allocation14 + $0x14c4] ss:$16 sps:$4 sm:$0xff]  }
 0xcf9   : > { %12530 = vmatprep.subr.bf16.mxu0 %v23376_v46  ;;  %v23436_v46 = vld [vmem:[#allocation14 + $0x14cc] ss:$16 sps:$4 sm:$0xff]  }
 0xcfb   : > { %12367 = vmatpush1.bf16.msra.mxu1 %v23371_v18  ;;  %v23431_v18 = vld [vmem:[#allocation14 + $0x14c0] ss:$16 sps:$4 sm:$0xff]  }
 0xcfc   : > { %12531 = vmatpush1.bf16.msra.mxu0 %v23374_v26  ;;  %12368 = vmatprep.subr.bf16.mxu1 %v23379_v27  ;;  %v23434_v26 = vld [vmem:[#allocation14 + $0x14c8] ss:$16 sps:$4 sm:$0xff]   ;;  %v23439_v27 = vld [vmem:[#allocation14 + $0x14e4] ss:$16 sps:$4 sm:$0xff]  }
 0xcfd   : > { %12532 = vmatprep.subr.bf16.mxu0 %v23382_v30  ;;  %v23442_v30 = vld [vmem:[#allocation14 + $0x14ec] ss:$16 sps:$4 sm:$0xff]  }
 0xcff   : > { %12369 = vmatpush1.bf16.msra.mxu1 %v23377_v23  ;;  %v23437_v23 = vld [vmem:[#allocation14 + $0x14e0] ss:$16 sps:$4 sm:$0xff]  }
 0xd00   : > { %12533 = vmatpush1.bf16.msra.mxu0 %v23380_v42  ;;  %12370 = vmatprep.subr.bf16.mxu1 %v23385_v43  ;;  %v23440_v42 = vld [vmem:[#allocation14 + $0x14e8] ss:$16 sps:$4 sm:$0xff]   ;;  %v23445_v43 = vld [vmem:[#allocation14 + $0x1504] ss:$16 sps:$4 sm:$0xff]  }
 0xd01   : > { %12534 = vmatprep.subr.bf16.mxu0 %v23388_v7  ;;  %v23448_v7 = vld [vmem:[#allocation14 + $0x150c] ss:$16 sps:$4 sm:$0xff]  }
 0xd03   : > { %12371 = vmatpush1.bf16.msra.mxu1 %v23383_v47  ;;  %v23443_v47 = vld [vmem:[#allocation14 + $0x1500] ss:$16 sps:$4 sm:$0xff]  }
 0xd04   : > { %12535 = vmatpush1.bf16.msra.mxu0 %v23386_v24  ;;  %12372 = vmatprep.subr.bf16.mxu1 %v23391_v19  ;;  %v23446_v24 = vld [vmem:[#allocation14 + $0x1508] ss:$16 sps:$4 sm:$0xff]   ;;  %v23451_v19 = vld [vmem:[#allocation14 + $0x1524] ss:$16 sps:$4 sm:$0xff]  }
 0xd05   : > { %12536 = vmatprep.subr.bf16.mxu0 %v23394_v29  ;;  %v23454_v29 = vld [vmem:[#allocation14 + $0x152c] ss:$16 sps:$4 sm:$0xff]  }
 0xd07   : > { %12373 = vmatpush1.bf16.msra.mxu1 %v23389_v54  ;;  %v23449_v54 = vld [vmem:[#allocation14 + $0x1520] ss:$16 sps:$4 sm:$0xff]  }
 0xd08   : > { %12537 = vmatpush1.bf16.msra.mxu0 %v23392_v6  ;;  %12383 = vmatprep.subr.bf16.mxu1 %v23397_v55  ;;  %v23452_v6 = vld [vmem:[#allocation14 + $0x1528] ss:$16 sps:$4 sm:$0xff]   ;;  %v23457_v55 = vld [vmem:[#allocation14 + $0x1544] ss:$16 sps:$4 sm:$0xff]  }
 0xd09   : > { %12547 = vmatprep.subr.bf16.mxu0 %v23400_v56  ;;  %v23460_v56 = vld [vmem:[#allocation14 + $0x154c] ss:$16 sps:$4 sm:$0xff]  }
 0xd0a   : > { %12375 = vmatmul.mubr.bf16.vlgmr.msra.gmra.mrb[20].mxu1 %v11007_v59 }
 0xd0b   : > { %12539 = vmatmul.mubr.bf16.vlgmr.msra.gmra.mrb[24].mxu0 %v11007_v59  ;;  %12384 = vmatpush1.bf16.msra.mxu1 %v23395_v57  ;;  %v23455_v57 = vld [vmem:[#allocation14 + $0x1540] ss:$16 sps:$4 sm:$0xff]   ;;  %v23458_v59 = vld [vmem:[#allocation14 + $0x1548] ss:$16 sps:$4 sm:$0xff]  }
 0xd0c   : > { %12415 = vmatprep.mubr.bf16.mxu1 %v11010_v61  ;;  %12548 = vmatpush1.bf16.msra.mxu0 %v23398_v48  ;;  %v23463_v48 = vld [vmem:[#allocation14 + $0x1564] ss:$16 sps:$4 sm:$0xff]  }
 0xd0d   : > { %12579 = vmatprep.mubr.bf16.mxu0 %v11010_v61  ;;  %12385 = vmatprep.subr.bf16.mxu1 %v23403_v52  ;;  %v23466_v52 = vld [vmem:[#allocation14 + $0x156c] ss:$16 sps:$4 sm:$0xff]   ;;  %v23461_v61 = vld [vmem:[#allocation14 + $0x1560] ss:$16 sps:$4 sm:$0xff]  }
 0xd0e   : > { %12549 = vmatprep.subr.bf16.mxu0 %v23406_v62  ;;  %v23464_v62 = vld [vmem:[#allocation14 + $0x1568] ss:$16 sps:$4 sm:$0xff]  }
 0xd0f   : > { %12386 = vmatpush1.bf16.msra.mxu1 %v23401_v63  ;;  %v23469_v63 = vld [vmem:[#allocation14 + $0x1584] ss:$16 sps:$4 sm:$0xff]  }
 0xd10   : > { %12550 = vmatpush1.bf16.msra.mxu0 %v23404_v1  ;;  %12387 = vmatprep.subr.bf16.mxu1 %v23409_v2  ;;  %v23472_v1 = vld [vmem:[#allocation14 + $0x158c] ss:$16 sps:$4 sm:$0xff]   ;;  %v23467_v2 = vld [vmem:[#allocation14 + $0x1580] ss:$16 sps:$4 sm:$0xff]  }
 0xd11   : > { %12551 = vmatprep.subr.bf16.mxu0 %v23412_v4  ;;  %v23470_v4 = vld [vmem:[#allocation14 + $0x1588] ss:$16 sps:$4 sm:$0xff]  }
 0xd13   : > { %12388 = vmatpush1.bf16.msra.mxu1 %v23407_v3  ;;  %v23475_v3 = vld [vmem:[#allocation14 + $0x15a4] ss:$16 sps:$4 sm:$0xff]  }
 0xd14   : > { %12552 = vmatpush1.bf16.msra.mxu0 %v23410_v8  ;;  %12389 = vmatprep.subr.bf16.mxu1 %v23415_v12  ;;  %v23478_v8 = vld [vmem:[#allocation14 + $0x15ac] ss:$16 sps:$4 sm:$0xff]   ;;  %v23473_v12 = vld [vmem:[#allocation14 + $0x15a0] ss:$16 sps:$4 sm:$0xff]  }
 0xd15   : > { %12553 = vmatprep.subr.bf16.mxu0 %v23418_v10  ;;  %v23476_v10 = vld [vmem:[#allocation14 + $0x15a8] ss:$16 sps:$4 sm:$0xff]  }
 0xd17   : > { %12390 = vmatpush1.bf16.msra.mxu1 %v23413_v15  ;;  %v23481_v15 = vld [vmem:[#allocation14 + $0x15c4] ss:$16 sps:$4 sm:$0xff]  }
 0xd18   : > { %12554 = vmatpush1.bf16.msra.mxu0 %v23416_v13  ;;  %12391 = vmatprep.subr.bf16.mxu1 %v23421_v44  ;;  %v23484_v13 = vld [vmem:[#allocation14 + $0x15cc] ss:$16 sps:$4 sm:$0xff]   ;;  %v23479_v44 = vld [vmem:[#allocation14 + $0x15c0] ss:$16 sps:$4 sm:$0xff]  }
 0xd19   : > { %12555 = vmatprep.subr.bf16.mxu0 %v23424_v22  ;;  %v23482_v22 = vld [vmem:[#allocation14 + $0x15c8] ss:$16 sps:$4 sm:$0xff]  }
 0xd1b   : > { %12392 = vmatpush1.bf16.msra.mxu1 %v23419_v14  ;;  %v23487_v14 = vld [vmem:[#allocation14 + $0x15e4] ss:$16 sps:$4 sm:$0xff]  }
 0xd1c   : > { %12556 = vmatpush1.bf16.msra.mxu0 %v23422_v50  ;;  %12393 = vmatprep.subr.bf16.mxu1 %v23427_v34  ;;  %v23490_v50 = vld [vmem:[#allocation14 + $0x15ec] ss:$16 sps:$4 sm:$0xff]   ;;  %v23485_v34 = vld [vmem:[#allocation14 + $0x15e0] ss:$16 sps:$4 sm:$0xff]  }
 0xd1d   : > { %12557 = vmatprep.subr.bf16.mxu0 %v23430_v28  ;;  %v23488_v28 = vld [vmem:[#allocation14 + $0x15e8] ss:$16 sps:$4 sm:$0xff]  }
 0xd1f   : > { %12394 = vmatpush1.bf16.msra.mxu1 %v23425_v25  ;;  %v23493_v25 = vld [vmem:[#allocation14 + $0x1604] ss:$16 sps:$4 sm:$0xff]  }
 0xd20   : > { %12558 = vmatpush1.bf16.msra.mxu0 %v23428_v45  ;;  %12395 = vmatprep.subr.bf16.mxu1 %v23433_v37  ;;  %v23496_v45 = vld [vmem:[#allocation14 + $0x160c] ss:$16 sps:$4 sm:$0xff]   ;;  %v23491_v37 = vld [vmem:[#allocation14 + $0x1600] ss:$16 sps:$4 sm:$0xff]  }
 0xd21   : > { %12559 = vmatprep.subr.bf16.mxu0 %v23436_v46  ;;  %v11009_v46 = vrot.slane %v27078_v5, 1 }
 0xd23   : > { %12396 = vmatpush1.bf16.msra.mxu1 %v23431_v18  ;;  %v23494_v18 = vld [vmem:[#allocation14 + $0x1608] ss:$16 sps:$4 sm:$0xff]  }
 0xd24   : > { %12560 = vmatpush1.bf16.msra.mxu0 %v23434_v26  ;;  %12397 = vmatprep.subr.bf16.mxu1 %v23439_v27  ;;  %v23499_v26 = vld [vmem:[#allocation14 + $0x1624] ss:$16 sps:$4 sm:$0xff]   ;;  %v11012_v27 = vrot.slane %v27082_v9, 1 }
 0xd25   : > { %12561 = vmatprep.subr.bf16.mxu0 %v23442_v30  ;;  %v23502_v30 = vld [vmem:[#allocation14 + $0x162c] ss:$16 sps:$4 sm:$0xff]  }
 0xd27   : > { %12398 = vmatpush1.bf16.msra.mxu1 %v23437_v23  ;;  %v23497_v23 = vld [vmem:[#allocation14 + $0x1620] ss:$16 sps:$4 sm:$0xff]  }
 0xd28   : > { %12562 = vmatpush1.bf16.msra.mxu0 %v23440_v42  ;;  %12399 = vmatprep.subr.bf16.mxu1 %v23445_v43  ;;  %v23500_v42 = vld [vmem:[#allocation14 + $0x1628] ss:$16 sps:$4 sm:$0xff]   ;;  %v23505_v43 = vld [vmem:[#allocation14 + $0x1644] ss:$16 sps:$4 sm:$0xff]  }
 0xd29   : > { %12563 = vmatprep.subr.bf16.mxu0 %v23448_v7  ;;  %v23508_v7 = vld [vmem:[#allocation14 + $0x164c] ss:$16 sps:$4 sm:$0xff]  }
 0xd2b   : > { %12400 = vmatpush1.bf16.msra.mxu1 %v23443_v47  ;;  %v23503_v47 = vld [vmem:[#allocation14 + $0x1640] ss:$16 sps:$4 sm:$0xff]  }
 0xd2c   : > { %12564 = vmatpush1.bf16.msra.mxu0 %v23446_v24  ;;  %12401 = vmatprep.subr.bf16.mxu1 %v23451_v19  ;;  %v23506_v24 = vld [vmem:[#allocation14 + $0x1648] ss:$16 sps:$4 sm:$0xff]   ;;  %v23511_v19 = vld [vmem:[#allocation14 + $0x1664] ss:$16 sps:$4 sm:$0xff]  }
 0xd2d   : > { %12565 = vmatprep.subr.bf16.mxu0 %v23454_v29  ;;  %v23514_v29 = vld [vmem:[#allocation14 + $0x166c] ss:$16 sps:$4 sm:$0xff]  }
 0xd2f   : > { %12402 = vmatpush1.bf16.msra.mxu1 %v23449_v54  ;;  %v23509_v54 = vld [vmem:[#allocation14 + $0x1660] ss:$16 sps:$4 sm:$0xff]  }
 0xd30   : > { %12566 = vmatpush1.bf16.msra.mxu0 %v23452_v6  ;;  %12403 = vmatprep.subr.bf16.mxu1 %v23457_v55  ;;  %v23512_v6 = vld [vmem:[#allocation14 + $0x1668] ss:$16 sps:$4 sm:$0xff]   ;;  %v23517_v55 = vld [vmem:[#allocation14 + $0x1684] ss:$16 sps:$4 sm:$0xff]  }
 0xd31   : > { %12567 = vmatprep.subr.bf16.mxu0 %v23460_v56  ;;  %v23520_v56 = vld [vmem:[#allocation14 + $0x168c] ss:$16 sps:$4 sm:$0xff]  }
 0xd33   : > { %12404 = vmatpush1.bf16.msra.mxu1 %v23455_v57  ;;  %v23515_v57 = vld [vmem:[#allocation14 + $0x1680] ss:$16 sps:$4 sm:$0xff]  }
 0xd34   : > { %12568 = vmatpush1.bf16.msra.mxu0 %v23458_v59  ;;  %12405 = vmatprep.subr.bf16.mxu1 %v23463_v48  ;;  %v23518_v59 = vld [vmem:[#allocation14 + $0x1688] ss:$16 sps:$4 sm:$0xff]   ;;  %v23523_v48 = vld [vmem:[#allocation14 + $0x16a4] ss:$16 sps:$4 sm:$0xff]  }
 0xd35   : > { %12569 = vmatprep.subr.bf16.mxu0 %v23466_v52  ;;  %v23526_v52 = vld [vmem:[#allocation14 + $0x16ac] ss:$16 sps:$4 sm:$0xff]  }
 0xd37   : > { %12406 = vmatpush1.bf16.msra.mxu1 %v23461_v61  ;;  %v23521_v61 = vld [vmem:[#allocation14 + $0x16a0] ss:$16 sps:$4 sm:$0xff]  }
 0xd38   : > { %12570 = vmatpush1.bf16.msra.mxu0 %v23464_v62  ;;  %12407 = vmatprep.subr.bf16.mxu1 %v23469_v63  ;;  %v23524_v62 = vld [vmem:[#allocation14 + $0x16a8] ss:$16 sps:$4 sm:$0xff]   ;;  %v23529_v63 = vld [vmem:[#allocation14 + $0x16c4] ss:$16 sps:$4 sm:$0xff]  }
 0xd39   : > { %12571 = vmatprep.subr.bf16.mxu0 %v23472_v1  ;;  %v23532_v1 = vld [vmem:[#allocation14 + $0x16cc] ss:$16 sps:$4 sm:$0xff]  }
 0xd3b   : > { %12408 = vmatpush1.bf16.msra.mxu1 %v23467_v2  ;;  %v23527_v2 = vld [vmem:[#allocation14 + $0x16c0] ss:$16 sps:$4 sm:$0xff]  }
 0xd3c   : > { %12572 = vmatpush1.bf16.msra.mxu0 %v23470_v4  ;;  %12409 = vmatprep.subr.bf16.mxu1 %v23475_v3  ;;  %v23530_v4 = vld [vmem:[#allocation14 + $0x16c8] ss:$16 sps:$4 sm:$0xff]   ;;  %v23535_v3 = vld [vmem:[#allocation14 + $0x16e4] ss:$16 sps:$4 sm:$0xff]  }
 0xd3d   : > { %12573 = vmatprep.subr.bf16.mxu0 %v23478_v8  ;;  %v23538_v8 = vld [vmem:[#allocation14 + $0x16ec] ss:$16 sps:$4 sm:$0xff]  }
 0xd3f   : > { %12410 = vmatpush1.bf16.msra.mxu1 %v23473_v12  ;;  %v23533_v12 = vld [vmem:[#allocation14 + $0x16e0] ss:$16 sps:$4 sm:$0xff]  }
 0xd40   : > { %12574 = vmatpush1.bf16.msra.mxu0 %v23476_v10  ;;  %12411 = vmatprep.subr.bf16.mxu1 %v23481_v15  ;;  %v23536_v10 = vld [vmem:[#allocation14 + $0x16e8] ss:$16 sps:$4 sm:$0xff]   ;;  %v23541_v15 = vld [vmem:[#allocation14 + $0x1704] ss:$16 sps:$4 sm:$0xff]  }
 0xd41   : > { %12575 = vmatprep.subr.bf16.mxu0 %v23484_v13  ;;  %v23544_v13 = vld [vmem:[#allocation14 + $0x170c] ss:$16 sps:$4 sm:$0xff]  }
 0xd43   : > { %12412 = vmatpush1.bf16.msra.mxu1 %v23479_v44  ;;  %v23539_v44 = vld [vmem:[#allocation14 + $0x1700] ss:$16 sps:$4 sm:$0xff]  }
 0xd44   : > { %12576 = vmatpush1.bf16.msra.mxu0 %v23482_v22  ;;  %12413 = vmatprep.subr.bf16.mxu1 %v23487_v14  ;;  %v23542_v22 = vld [vmem:[#allocation14 + $0x1708] ss:$16 sps:$4 sm:$0xff]   ;;  %v23547_v14 = vld [vmem:[#allocation14 + $0x1724] ss:$16 sps:$4 sm:$0xff]  }
 0xd45   : > { %12577 = vmatprep.subr.bf16.mxu0 %v23490_v50  ;;  %v23550_v50 = vld [vmem:[#allocation14 + $0x172c] ss:$16 sps:$4 sm:$0xff]  }
 0xd47   : > { %12414 = vmatpush1.bf16.msra.mxu1 %v23485_v34  ;;  %v23545_v34 = vld [vmem:[#allocation14 + $0x1720] ss:$16 sps:$4 sm:$0xff]  }
 0xd48   : > { %12578 = vmatpush1.bf16.msra.mxu0 %v23488_v28  ;;  %12424 = vmatprep.subr.bf16.mxu1 %v23493_v25  ;;  %v23548_v28 = vld [vmem:[#allocation14 + $0x1728] ss:$16 sps:$4 sm:$0xff]   ;;  %v23553_v25 = vld [vmem:[#allocation14 + $0x1744] ss:$16 sps:$4 sm:$0xff]  }
 0xd49   : > { %12588 = vmatprep.subr.bf16.mxu0 %v23496_v45  ;;  %v23556_v45 = vld [vmem:[#allocation14 + $0x174c] ss:$16 sps:$4 sm:$0xff]  }
 0xd4a   : > { %12416 = vmatmul.mubr.bf16.vlgmr.msra.gmra.mrb[20].mxu1 %v11009_v46 }
 0xd4b   : > { %12580 = vmatmul.mubr.bf16.vlgmr.msra.gmra.mrb[24].mxu0 %v11009_v46  ;;  %12425 = vmatpush1.bf16.msra.mxu1 %v23491_v37  ;;  %v23551_v37 = vld [vmem:[#allocation14 + $0x1740] ss:$16 sps:$4 sm:$0xff]   ;;  %v23554_v46 = vld [vmem:[#allocation14 + $0x1748] ss:$16 sps:$4 sm:$0xff]  }
 0xd4c   : > { %12456 = vmatprep.mubr.bf16.mxu1 %v11012_v27  ;;  %12589 = vmatpush1.bf16.msra.mxu0 %v23494_v18  ;;  %v23559_v18 = vld [vmem:[#allocation14 + $0x1764] ss:$16 sps:$4 sm:$0xff]  }
 0xd4d   : > { %12620 = vmatprep.mubr.bf16.mxu0 %v11012_v27  ;;  %12426 = vmatprep.subr.bf16.mxu1 %v23499_v26  ;;  %v23562_v26 = vld [vmem:[#allocation14 + $0x176c] ss:$16 sps:$4 sm:$0xff]   ;;  %v23557_v27 = vld [vmem:[#allocation14 + $0x1760] ss:$16 sps:$4 sm:$0xff]  }
 0xd4e   : > { %12590 = vmatprep.subr.bf16.mxu0 %v23502_v30  ;;  %v23560_v30 = vld [vmem:[#allocation14 + $0x1768] ss:$16 sps:$4 sm:$0xff]  }
 0xd4f   : > { %12427 = vmatpush1.bf16.msra.mxu1 %v23497_v23  ;;  %v23565_v23 = vld [vmem:[#allocation14 + $0x1784] ss:$16 sps:$4 sm:$0xff]  }
 0xd50   : > { %12591 = vmatpush1.bf16.msra.mxu0 %v23500_v42  ;;  %12428 = vmatprep.subr.bf16.mxu1 %v23505_v43  ;;  %v23568_v42 = vld [vmem:[#allocation14 + $0x178c] ss:$16 sps:$4 sm:$0xff]   ;;  %v23563_v43 = vld [vmem:[#allocation14 + $0x1780] ss:$16 sps:$4 sm:$0xff]  }
 0xd51   : > { %12592 = vmatprep.subr.bf16.mxu0 %v23508_v7  ;;  %v23566_v7 = vld [vmem:[#allocation14 + $0x1788] ss:$16 sps:$4 sm:$0xff]  }
 0xd53   : > { %12429 = vmatpush1.bf16.msra.mxu1 %v23503_v47  ;;  %v23571_v47 = vld [vmem:[#allocation14 + $0x17a4] ss:$16 sps:$4 sm:$0xff]  }
 0xd54   : > { %12593 = vmatpush1.bf16.msra.mxu0 %v23506_v24  ;;  %12430 = vmatprep.subr.bf16.mxu1 %v23511_v19  ;;  %v23574_v24 = vld [vmem:[#allocation14 + $0x17ac] ss:$16 sps:$4 sm:$0xff]   ;;  %v23569_v19 = vld [vmem:[#allocation14 + $0x17a0] ss:$16 sps:$4 sm:$0xff]  }
 0xd55   : > { %12594 = vmatprep.subr.bf16.mxu0 %v23514_v29  ;;  %v23572_v29 = vld [vmem:[#allocation14 + $0x17a8] ss:$16 sps:$4 sm:$0xff]  }
 0xd57   : > { %12431 = vmatpush1.bf16.msra.mxu1 %v23509_v54  ;;  %v23577_v54 = vld [vmem:[#allocation14 + $0x17c4] ss:$16 sps:$4 sm:$0xff]  }
 0xd58   : > { %12595 = vmatpush1.bf16.msra.mxu0 %v23512_v6  ;;  %12432 = vmatprep.subr.bf16.mxu1 %v23517_v55  ;;  %v23580_v6 = vld [vmem:[#allocation14 + $0x17cc] ss:$16 sps:$4 sm:$0xff]   ;;  %v23575_v55 = vld [vmem:[#allocation14 + $0x17c0] ss:$16 sps:$4 sm:$0xff]  }
 0xd59   : > { %12596 = vmatprep.subr.bf16.mxu0 %v23520_v56  ;;  %v23578_v56 = vld [vmem:[#allocation14 + $0x17c8] ss:$16 sps:$4 sm:$0xff]  }
 0xd5b   : > { %12433 = vmatpush1.bf16.msra.mxu1 %v23515_v57  ;;  %v23583_v57 = vld [vmem:[#allocation14 + $0x17e4] ss:$16 sps:$4 sm:$0xff]  }
 0xd5c   : > { %12597 = vmatpush1.bf16.msra.mxu0 %v23518_v59  ;;  %12434 = vmatprep.subr.bf16.mxu1 %v23523_v48  ;;  %v23586_v59 = vld [vmem:[#allocation14 + $0x17ec] ss:$16 sps:$4 sm:$0xff]   ;;  %v23581_v48 = vld [vmem:[#allocation14 + $0x17e0] ss:$16 sps:$4 sm:$0xff]  }
 0xd5d   : > { %12598 = vmatprep.subr.bf16.mxu0 %v23526_v52  ;;  %v23584_v52 = vld [vmem:[#allocation14 + $0x17e8] ss:$16 sps:$4 sm:$0xff]  }
 0xd5f   : > { %12435 = vmatpush1.bf16.msra.mxu1 %v23521_v61  ;;  %v23589_v61 = vld [vmem:[#allocation14 + $0x1804] ss:$16 sps:$4 sm:$0xff]  }
 0xd60   : > { %12599 = vmatpush1.bf16.msra.mxu0 %v23524_v62  ;;  %12436 = vmatprep.subr.bf16.mxu1 %v23529_v63  ;;  %v23592_v62 = vld [vmem:[#allocation14 + $0x180c] ss:$16 sps:$4 sm:$0xff]   ;;  %v23587_v63 = vld [vmem:[#allocation14 + $0x1800] ss:$16 sps:$4 sm:$0xff]  }
 0xd61   : > { %12600 = vmatprep.subr.bf16.mxu0 %v23532_v1  ;;  %v11011_v1 = vrot.slane %v27096_v41, 1 }
 0xd63   : > { %12437 = vmatpush1.bf16.msra.mxu1 %v23527_v2  ;;  %v23590_v2 = vld [vmem:[#allocation14 + $0x1808] ss:$16 sps:$4 sm:$0xff]  }
 0xd64   : > { %12601 = vmatpush1.bf16.msra.mxu0 %v23530_v4  ;;  %12438 = vmatprep.subr.bf16.mxu1 %v23535_v3  ;;  %v23595_v4 = vld [vmem:[#allocation14 + $0x1824] ss:$16 sps:$4 sm:$0xff]   ;;  %v12891_v3 = vrot.slane %v27044_v60, 1  ;;  %v23610_v60 = vld [vmem:[#allocation14 + $0x186c] ss:$16 sps:$4 sm:$0xff]  }
 0xd65   : > { %12602 = vmatprep.subr.bf16.mxu0 %v23538_v8  ;;  %v23598_v8 = vld [vmem:[#allocation14 + $0x182c] ss:$16 sps:$4 sm:$0xff]  }
 0xd67   : > { %12439 = vmatpush1.bf16.msra.mxu1 %v23533_v12  ;;  %v23593_v12 = vld [vmem:[#allocation14 + $0x1820] ss:$16 sps:$4 sm:$0xff]  }
 0xd68   : > { %12603 = vmatpush1.bf16.msra.mxu0 %v23536_v10  ;;  %12440 = vmatprep.subr.bf16.mxu1 %v23541_v15  ;;  %v23596_v10 = vld [vmem:[#allocation14 + $0x1828] ss:$16 sps:$4 sm:$0xff]   ;;  %v23601_v15 = vld [vmem:[#allocation14 + $0x1844] ss:$16 sps:$4 sm:$0xff]  }
 0xd69   : > { %12604 = vmatprep.subr.bf16.mxu0 %v23544_v13  ;;  %v23604_v13 = vld [vmem:[#allocation14 + $0x184c] ss:$16 sps:$4 sm:$0xff]  }
 0xd6b   : > { %12441 = vmatpush1.bf16.msra.mxu1 %v23539_v44  ;;  %v23599_v44 = vld [vmem:[#allocation14 + $0x1840] ss:$16 sps:$4 sm:$0xff]  }
 0xd6c   : > { %12605 = vmatpush1.bf16.msra.mxu0 %v23542_v22  ;;  %12442 = vmatprep.subr.bf16.mxu1 %v23547_v14  ;;  %v23602_v22 = vld [vmem:[#allocation14 + $0x1848] ss:$16 sps:$4 sm:$0xff]   ;;  %v23607_v14 = vld [vmem:[#allocation14 + $0x1864] ss:$16 sps:$4 sm:$0xff]  }
 0xd6d   : > { %12606 = vmatprep.subr.bf16.mxu0 %v23550_v50  ;;  %v23605_v50 = vld [vmem:[#allocation14 + $0x1860] ss:$16 sps:$4 sm:$0xff]  }
 0xd6f   : > { %12443 = vmatpush1.bf16.msra.mxu1 %v23545_v34  ;;  %v23608_v34 = vld [vmem:[#allocation14 + $0x1868] ss:$16 sps:$4 sm:$0xff]  }
 0xd70   : > { %12607 = vmatpush1.bf16.msra.mxu0 %v23548_v28  ;;  %12444 = vmatprep.subr.bf16.mxu1 %v23553_v25  ;;  %v23613_v28 = vld [vmem:[#allocation14 + $0x1884] ss:$16 sps:$4 sm:$0xff]   ;;  %v23616_v25 = vld [vmem:[#allocation14 + $0x188c] ss:$16 sps:$4 sm:$0xff]  }
 0xd71   : > { %12608 = vmatprep.subr.bf16.mxu0 %v23556_v45  ;;  %v23611_v45 = vld [vmem:[#allocation14 + $0x1880] ss:$16 sps:$4 sm:$0xff]  }
 0xd73   : > { %12445 = vmatpush1.bf16.msra.mxu1 %v23551_v37  ;;  %v23614_v37 = vld [vmem:[#allocation14 + $0x1888] ss:$16 sps:$4 sm:$0xff]  }
 0xd74   : > { %12609 = vmatpush1.bf16.msra.mxu0 %v23554_v46  ;;  %12446 = vmatprep.subr.bf16.mxu1 %v23559_v18  ;;  %v23619_v46 = vld [vmem:[#allocation14 + $0x18a4] ss:$16 sps:$4 sm:$0xff]   ;;  %v23622_v18 = vld [vmem:[#allocation14 + $0x18ac] ss:$16 sps:$4 sm:$0xff]  }
 0xd75   : > { %12610 = vmatprep.subr.bf16.mxu0 %v23562_v26  ;;  %v23617_v26 = vld [vmem:[#allocation14 + $0x18a0] ss:$16 sps:$4 sm:$0xff]  }
 0xd77   : > { %12447 = vmatpush1.bf16.msra.mxu1 %v23557_v27  ;;  %v23620_v27 = vld [vmem:[#allocation14 + $0x18a8] ss:$16 sps:$4 sm:$0xff]  }
 0xd78   : > { %12611 = vmatpush1.bf16.msra.mxu0 %v23560_v30  ;;  %12448 = vmatprep.subr.bf16.mxu1 %v23565_v23  ;;  %v23625_v30 = vld [vmem:[#allocation14 + $0x18c4] ss:$16 sps:$4 sm:$0xff]   ;;  %v23628_v23 = vld [vmem:[#allocation14 + $0x18cc] ss:$16 sps:$4 sm:$0xff]  }
 0xd79   : > { %12612 = vmatprep.subr.bf16.mxu0 %v23568_v42  ;;  %v23623_v42 = vld [vmem:[#allocation14 + $0x18c0] ss:$16 sps:$4 sm:$0xff]  }
 0xd7b   : > { %12449 = vmatpush1.bf16.msra.mxu1 %v23563_v43  ;;  %v23626_v43 = vld [vmem:[#allocation14 + $0x18c8] ss:$16 sps:$4 sm:$0xff]  }
 0xd7c   : > { %12613 = vmatpush1.bf16.msra.mxu0 %v23566_v7  ;;  %12450 = vmatprep.subr.bf16.mxu1 %v23571_v47  ;;  %v23631_v7 = vld [vmem:[#allocation14 + $0x18e4] ss:$16 sps:$4 sm:$0xff]   ;;  %v23634_v47 = vld [vmem:[#allocation14 + $0x18ec] ss:$16 sps:$4 sm:$0xff]  }
 0xd7d   : > { %12614 = vmatprep.subr.bf16.mxu0 %v23574_v24  ;;  %v23629_v24 = vld [vmem:[#allocation14 + $0x18e0] ss:$16 sps:$4 sm:$0xff]  }
 0xd7f   : > { %12451 = vmatpush1.bf16.msra.mxu1 %v23569_v19  ;;  %v23632_v19 = vld [vmem:[#allocation14 + $0x18e8] ss:$16 sps:$4 sm:$0xff]  }
 0xd80   : > { %12615 = vmatpush1.bf16.msra.mxu0 %v23572_v29  ;;  %12452 = vmatprep.subr.bf16.mxu1 %v23577_v54  ;;  %v23637_v29 = vld [vmem:[#allocation14 + $0x1904] ss:$16 sps:$4 sm:$0xff]   ;;  %v23640_v54 = vld [vmem:[#allocation14 + $0x190c] ss:$16 sps:$4 sm:$0xff]  }
 0xd81   : > { %12616 = vmatprep.subr.bf16.mxu0 %v23580_v6  ;;  %v23635_v6 = vld [vmem:[#allocation14 + $0x1900] ss:$16 sps:$4 sm:$0xff]  }
 0xd83   : > { %12453 = vmatpush1.bf16.msra.mxu1 %v23575_v55  ;;  %v23638_v55 = vld [vmem:[#allocation14 + $0x1908] ss:$16 sps:$4 sm:$0xff]  }
 0xd84   : > { %12617 = vmatpush1.bf16.msra.mxu0 %v23578_v56  ;;  %12454 = vmatprep.subr.bf16.mxu1 %v23583_v57  ;;  %v23643_v56 = vld [vmem:[#allocation14 + $0x1924] ss:$16 sps:$4 sm:$0xff]   ;;  %v23646_v57 = vld [vmem:[#allocation14 + $0x192c] ss:$16 sps:$4 sm:$0xff]  }
 0xd85   : > { %12618 = vmatprep.subr.bf16.mxu0 %v23586_v59  ;;  %v23641_v59 = vld [vmem:[#allocation14 + $0x1920] ss:$16 sps:$4 sm:$0xff]  }
 0xd87   : > { %12455 = vmatpush1.bf16.msra.mxu1 %v23581_v48  ;;  %v23644_v48 = vld [vmem:[#allocation14 + $0x1928] ss:$16 sps:$4 sm:$0xff]  }
 0xd88   : > { %12619 = vmatpush1.bf16.msra.mxu0 %v23584_v52  ;;  %14186 = vmatprep.subr.bf16.mxu1 %v23589_v61  ;;  %v23649_v52 = vld [vmem:[#allocation14 + $0x1944] ss:$16 sps:$4 sm:$0xff]   ;;  %v23652_v61 = vld [vmem:[#allocation14 + $0x194c] ss:$16 sps:$4 sm:$0xff]  }
 0xd89   : > { %14350 = vmatprep.subr.bf16.mxu0 %v23592_v62  ;;  %v23647_v62 = vld [vmem:[#allocation14 + $0x1940] ss:$16 sps:$4 sm:$0xff]  }
 0xd8a   : > { %12457 = vmatmul.mubr.bf16.vlgmr.msra.gmra.mrb[20].mxu1 %v11011_v1 }
 0xd8b   : > { %12621 = vmatmul.mubr.bf16.vlgmr.msra.gmra.mrb[24].mxu0 %v11011_v1  ;;  %14187 = vmatpush1.bf16.msra.mxu1 %v23587_v63  ;;  %v23650_v63 = vld [vmem:[#allocation14 + $0x1948] ss:$16 sps:$4 sm:$0xff]   ;;  %v23655_v1 = vld [vmem:[#allocation14 + $0x1964] ss:$16 sps:$4 sm:$0xff]  }
 0xd8c   : > { %14218 = vmatprep.mubr.bf16.mxu1 %v12891_v3  ;;  %14351 = vmatpush1.bf16.msra.mxu0 %v23590_v2  ;;  %v23658_v2 = vld [vmem:[#allocation14 + $0x196c] ss:$16 sps:$4 sm:$0xff]  }
 0xd8d   : > { %14382 = vmatprep.mubr.bf16.mxu0 %v12891_v3  ;;  %14188 = vmatprep.subr.bf16.mxu1 %v23595_v4  ;;  %v23653_v4 = vld [vmem:[#allocation14 + $0x1960] ss:$16 sps:$4 sm:$0xff]   ;;  %v23656_v3 = vld [vmem:[#allocation14 + $0x1968] ss:$16 sps:$4 sm:$0xff]  }
 0xd8e   : > { %14352 = vmatprep.subr.bf16.mxu0 %v23598_v8  ;;  %v23661_v8 = vld [vmem:[#allocation14 + $0x1984] ss:$16 sps:$4 sm:$0xff]  }
 0xd8f   : > { %14189 = vmatpush1.bf16.msra.mxu1 %v23593_v12  ;;  %v23664_v12 = vld [vmem:[#allocation14 + $0x198c] ss:$16 sps:$4 sm:$0xff]  }
 0xd90   : > { %14353 = vmatpush1.bf16.msra.mxu0 %v23596_v10  ;;  %14190 = vmatprep.subr.bf16.mxu1 %v23601_v15  ;;  %v23659_v10 = vld [vmem:[#allocation14 + $0x1980] ss:$16 sps:$4 sm:$0xff]   ;;  %v23662_v15 = vld [vmem:[#allocation14 + $0x1988] ss:$16 sps:$4 sm:$0xff]  }
 0xd91   : > { %14354 = vmatprep.subr.bf16.mxu0 %v23604_v13  ;;  %v23667_v13 = vld [vmem:[#allocation14 + $0x19a4] ss:$16 sps:$4 sm:$0xff]  }
 0xd93   : > { %14191 = vmatpush1.bf16.msra.mxu1 %v23599_v44  ;;  %v23670_v44 = vld [vmem:[#allocation14 + $0x19ac] ss:$16 sps:$4 sm:$0xff]  }
 0xd94   : > { %14355 = vmatpush1.bf16.msra.mxu0 %v23602_v22  ;;  %14192 = vmatprep.subr.bf16.mxu1 %v23607_v14  ;;  %v23665_v22 = vld [vmem:[#allocation14 + $0x19a0] ss:$16 sps:$4 sm:$0xff]   ;;  %v23668_v14 = vld [vmem:[#allocation14 + $0x19a8] ss:$16 sps:$4 sm:$0xff]  }
 0xd95   : > { %14356 = vmatprep.subr.bf16.mxu0 %v23610_v60  ;;  %v23673_v60 = vld [vmem:[#allocation14 + $0x19c4] ss:$16 sps:$4 sm:$0xff]  }
 0xd97   : > { %14193 = vmatpush1.bf16.msra.mxu1 %v23605_v50  ;;  %v23676_v50 = vld [vmem:[#allocation14 + $0x19cc] ss:$16 sps:$4 sm:$0xff]  }
 0xd98   : > { %14357 = vmatpush1.bf16.msra.mxu0 %v23608_v34  ;;  %14194 = vmatprep.subr.bf16.mxu1 %v23613_v28  ;;  %v23671_v34 = vld [vmem:[#allocation14 + $0x19c0] ss:$16 sps:$4 sm:$0xff]   ;;  %v23674_v28 = vld [vmem:[#allocation14 + $0x19c8] ss:$16 sps:$4 sm:$0xff]  }
 0xd99   : > { %14358 = vmatprep.subr.bf16.mxu0 %v23616_v25  ;;  %v23679_v25 = vld [vmem:[#allocation14 + $0x19e4] ss:$16 sps:$4 sm:$0xff]  }
 0xd9b   : > { %14195 = vmatpush1.bf16.msra.mxu1 %v23611_v45  ;;  %v23682_v45 = vld [vmem:[#allocation14 + $0x19ec] ss:$16 sps:$4 sm:$0xff]  }
 0xd9c   : > { %14359 = vmatpush1.bf16.msra.mxu0 %v23614_v37  ;;  %14196 = vmatprep.subr.bf16.mxu1 %v23619_v46  ;;  %v23677_v37 = vld [vmem:[#allocation14 + $0x19e0] ss:$16 sps:$4 sm:$0xff]   ;;  %v23680_v46 = vld [vmem:[#allocation14 + $0x19e8] ss:$16 sps:$4 sm:$0xff]  }
 0xd9d   : > { %14360 = vmatprep.subr.bf16.mxu0 %v23622_v18  ;;  %v23685_v18 = vld [vmem:[#allocation14 + $0x1a04] ss:$16 sps:$4 sm:$0xff]  }
 0xd9f   : > { %14197 = vmatpush1.bf16.msra.mxu1 %v23617_v26  ;;  %v23688_v26 = vld [vmem:[#allocation14 + $0x1a0c] ss:$16 sps:$4 sm:$0xff]  }
 0xda0   : > { %14361 = vmatpush1.bf16.msra.mxu0 %v23620_v27  ;;  %14198 = vmatprep.subr.bf16.mxu1 %v23625_v30  ;;  %v23683_v27 = vld [vmem:[#allocation14 + $0x1a00] ss:$16 sps:$4 sm:$0xff]   ;;  %v12890_v30 = vrot.slane %v27047_v58, 1 }
 0xda1   : > { %14362 = vmatprep.subr.bf16.mxu0 %v23628_v23  ;;  %v23686_v23 = vld [vmem:[#allocation14 + $0x1a08] ss:$16 sps:$4 sm:$0xff]   ;;  %v23695_v58 = vld [vmem:[#allocation14 + $0x1a40] ss:$16 sps:$4 sm:$0xff]  }
 0xda3   : > { %14199 = vmatpush1.bf16.msra.mxu1 %v23623_v42  ;;  %v23691_v42 = vld [vmem:[#allocation14 + $0x1a24] ss:$16 sps:$4 sm:$0xff]  }
 0xda4   : > { %14363 = vmatpush1.bf16.msra.mxu0 %v23626_v43  ;;  %14200 = vmatprep.subr.bf16.mxu1 %v23631_v7  ;;  %v12893_v43 = vrot.slane %v27054_v31, 1  ;;  %v23694_v7 = vld [vmem:[#allocation14 + $0x1a2c] ss:$16 sps:$4 sm:$0xff]  }
 0xda5   : > { %14364 = vmatprep.subr.bf16.mxu0 %v23634_v47  ;;  %v23689_v47 = vld [vmem:[#allocation14 + $0x1a20] ss:$16 sps:$4 sm:$0xff]   ;;  %v23706_v31 = vld [vmem:[#allocation14 + $0x1a6c] ss:$16 sps:$4 sm:$0xff]  }
 0xda7   : > { %14201 = vmatpush1.bf16.msra.mxu1 %v23629_v24  ;;  %v23692_v24 = vld [vmem:[#allocation14 + $0x1a28] ss:$16 sps:$4 sm:$0xff]  }
 0xda8   : > { %14365 = vmatpush1.bf16.msra.mxu0 %v23632_v19  ;;  %14202 = vmatprep.subr.bf16.mxu1 %v23637_v29  ;;  %v23697_v19 = vld [vmem:[#allocation14 + $0x1a44] ss:$16 sps:$4 sm:$0xff]   ;;  %v23700_v29 = vld [vmem:[#allocation14 + $0x1a4c] ss:$16 sps:$4 sm:$0xff]  }
 0xda9   : > { %14366 = vmatprep.subr.bf16.mxu0 %v23640_v54  ;;  %v23698_v54 = vld [vmem:[#allocation14 + $0x1a48] ss:$16 sps:$4 sm:$0xff]  }
 0xdab   : > { %14203 = vmatpush1.bf16.msra.mxu1 %v23635_v6  ;;  %v23703_v6 = vld [vmem:[#allocation14 + $0x1a64] ss:$16 sps:$4 sm:$0xff]  }
 0xdac   : > { %14367 = vmatpush1.bf16.msra.mxu0 %v23638_v55  ;;  %14204 = vmatprep.subr.bf16.mxu1 %v23643_v56  ;;  %v23701_v55 = vld [vmem:[#allocation14 + $0x1a60] ss:$16 sps:$4 sm:$0xff]   ;;  %v23704_v56 = vld [vmem:[#allocation14 + $0x1a68] ss:$16 sps:$4 sm:$0xff]  }
 0xdad   : > { %14368 = vmatprep.subr.bf16.mxu0 %v23646_v57  ;;  %v23709_v57 = vld [vmem:[#allocation14 + $0x1a84] ss:$16 sps:$4 sm:$0xff]  }
 0xdaf   : > { %14205 = vmatpush1.bf16.msra.mxu1 %v23641_v59  ;;  %v23712_v59 = vld [vmem:[#allocation14 + $0x1a8c] ss:$16 sps:$4 sm:$0xff]  }
 0xdb0   : > { %14369 = vmatpush1.bf16.msra.mxu0 %v23644_v48  ;;  %14206 = vmatprep.subr.bf16.mxu1 %v23649_v52  ;;  %v23707_v48 = vld [vmem:[#allocation14 + $0x1a80] ss:$16 sps:$4 sm:$0xff]   ;;  %v23710_v52 = vld [vmem:[#allocation14 + $0x1a88] ss:$16 sps:$4 sm:$0xff]  }
 0xdb1   : > { %14370 = vmatprep.subr.bf16.mxu0 %v23652_v61  ;;  %v23715_v61 = vld [vmem:[#allocation14 + $0x1aa4] ss:$16 sps:$4 sm:$0xff]  }
 0xdb3   : > { %14207 = vmatpush1.bf16.msra.mxu1 %v23647_v62  ;;  %v23718_v62 = vld [vmem:[#allocation14 + $0x1aac] ss:$16 sps:$4 sm:$0xff]  }
 0xdb4   : > { %14371 = vmatpush1.bf16.msra.mxu0 %v23650_v63  ;;  %14208 = vmatprep.subr.bf16.mxu1 %v23655_v1  ;;  %v23713_v63 = vld [vmem:[#allocation14 + $0x1aa0] ss:$16 sps:$4 sm:$0xff]   ;;  %v23716_v1 = vld [vmem:[#allocation14 + $0x1aa8] ss:$16 sps:$4 sm:$0xff]  }
 0xdb5   : > { %14372 = vmatprep.subr.bf16.mxu0 %v23658_v2  ;;  %v23721_v2 = vld [vmem:[#allocation14 + $0x1ac4] ss:$16 sps:$4 sm:$0xff]  }
 0xdb7   : > { %14209 = vmatpush1.bf16.msra.mxu1 %v23653_v4  ;;  %v23724_v4 = vld [vmem:[#allocation14 + $0x1acc] ss:$16 sps:$4 sm:$0xff]  }
 0xdb8   : > { %14373 = vmatpush1.bf16.msra.mxu0 %v23656_v3  ;;  %14210 = vmatprep.subr.bf16.mxu1 %v23661_v8  ;;  %v23719_v3 = vld [vmem:[#allocation14 + $0x1ac0] ss:$16 sps:$4 sm:$0xff]   ;;  %v23722_v8 = vld [vmem:[#allocation14 + $0x1ac8] ss:$16 sps:$4 sm:$0xff]  }
 0xdb9   : > { %14374 = vmatprep.subr.bf16.mxu0 %v23664_v12  ;;  %v23727_v12 = vld [vmem:[#allocation14 + $0x1ae4] ss:$16 sps:$4 sm:$0xff]  }
 0xdbb   : > { %14211 = vmatpush1.bf16.msra.mxu1 %v23659_v10  ;;  %v23730_v10 = vld [vmem:[#allocation14 + $0x1aec] ss:$16 sps:$4 sm:$0xff]  }
 0xdbc   : > { %14375 = vmatpush1.bf16.msra.mxu0 %v23662_v15  ;;  %14212 = vmatprep.subr.bf16.mxu1 %v23667_v13  ;;  %v23725_v15 = vld [vmem:[#allocation14 + $0x1ae0] ss:$16 sps:$4 sm:$0xff]   ;;  %v23728_v13 = vld [vmem:[#allocation14 + $0x1ae8] ss:$16 sps:$4 sm:$0xff]  }
 0xdbd   : > { %14376 = vmatprep.subr.bf16.mxu0 %v23670_v44  ;;  %v23733_v44 = vld [vmem:[#allocation14 + $0x1b04] ss:$16 sps:$4 sm:$0xff]  }
 0xdbf   : > { %14213 = vmatpush1.bf16.msra.mxu1 %v23665_v22  ;;  %v23736_v22 = vld [vmem:[#allocation14 + $0x1b0c] ss:$16 sps:$4 sm:$0xff]  }
 0xdc0   : > { %14377 = vmatpush1.bf16.msra.mxu0 %v23668_v14  ;;  %14214 = vmatprep.subr.bf16.mxu1 %v23673_v60  ;;  %v23731_v14 = vld [vmem:[#allocation14 + $0x1b00] ss:$16 sps:$4 sm:$0xff]   ;;  %v23734_v60 = vld [vmem:[#allocation14 + $0x1b08] ss:$16 sps:$4 sm:$0xff]  }
 0xdc1   : > { %14378 = vmatprep.subr.bf16.mxu0 %v23676_v50  ;;  %v23739_v50 = vld [vmem:[#allocation14 + $0x1b24] ss:$16 sps:$4 sm:$0xff]  }
 0xdc3   : > { %14215 = vmatpush1.bf16.msra.mxu1 %v23671_v34  ;;  %v23742_v34 = vld [vmem:[#allocation14 + $0x1b2c] ss:$16 sps:$4 sm:$0xff]  }
 0xdc4   : > { %14379 = vmatpush1.bf16.msra.mxu0 %v23674_v28  ;;  %14216 = vmatprep.subr.bf16.mxu1 %v23679_v25  ;;  %v23737_v28 = vld [vmem:[#allocation14 + $0x1b20] ss:$16 sps:$4 sm:$0xff]   ;;  %v23740_v25 = vld [vmem:[#allocation14 + $0x1b28] ss:$16 sps:$4 sm:$0xff]  }
 0xdc5   : > { %14380 = vmatprep.subr.bf16.mxu0 %v23682_v45  ;;  %v23745_v45 = vld [vmem:[#allocation14 + $0x1b44] ss:$16 sps:$4 sm:$0xff]  }
 0xdc7   : > { %14217 = vmatpush1.bf16.msra.mxu1 %v23677_v37  ;;  %v23748_v37 = vld [vmem:[#allocation14 + $0x1b4c] ss:$16 sps:$4 sm:$0xff]  }
 0xdc8   : > { %14381 = vmatpush1.bf16.msra.mxu0 %v23680_v46  ;;  %14227 = vmatprep.subr.bf16.mxu1 %v23685_v18  ;;  %v23743_v46 = vld [vmem:[#allocation14 + $0x1b40] ss:$16 sps:$4 sm:$0xff]   ;;  %v23746_v18 = vld [vmem:[#allocation14 + $0x1b48] ss:$16 sps:$4 sm:$0xff]  }
 0xdc9   : > { %14391 = vmatprep.subr.bf16.mxu0 %v23688_v26  ;;  %v23751_v26 = vld [vmem:[#allocation14 + $0x1b64] ss:$16 sps:$4 sm:$0xff]  }
 0xdca   : > { %14219 = vmatmul.mubr.bf16.vlgmr.msra.gmra.mrb[20].mxu1 %v12890_v30 }
 0xdcb   : > { %14383 = vmatmul.mubr.bf16.vlgmr.msra.gmra.mrb[24].mxu0 %v12890_v30  ;;  %14228 = vmatpush1.bf16.msra.mxu1 %v23683_v27  ;;  %v23754_v27 = vld [vmem:[#allocation14 + $0x1b6c] ss:$16 sps:$4 sm:$0xff]   ;;  %v23749_v30 = vld [vmem:[#allocation14 + $0x1b60] ss:$16 sps:$4 sm:$0xff]  }
 0xdcc   : > { %14259 = vmatprep.mubr.bf16.mxu1 %v12893_v43  ;;  %14392 = vmatpush1.bf16.msra.mxu0 %v23686_v23  ;;  %v23752_v23 = vld [vmem:[#allocation14 + $0x1b68] ss:$16 sps:$4 sm:$0xff]  }
 0xdcd   : > { %14423 = vmatprep.mubr.bf16.mxu0 %v12893_v43  ;;  %14229 = vmatprep.subr.bf16.mxu1 %v23691_v42  ;;  %v23757_v42 = vld [vmem:[#allocation14 + $0x1b84] ss:$16 sps:$4 sm:$0xff]   ;;  %v23760_v43 = vld [vmem:[#allocation14 + $0x1b8c] ss:$16 sps:$4 sm:$0xff]  }
 0xdce   : > { %14393 = vmatprep.subr.bf16.mxu0 %v23694_v7  ;;  %v23755_v7 = vld [vmem:[#allocation14 + $0x1b80] ss:$16 sps:$4 sm:$0xff]  }
 0xdcf   : > { %14230 = vmatpush1.bf16.msra.mxu1 %v23689_v47  ;;  %v23758_v47 = vld [vmem:[#allocation14 + $0x1b88] ss:$16 sps:$4 sm:$0xff]  }
 0xdd0   : > { %14394 = vmatpush1.bf16.msra.mxu0 %v23692_v24  ;;  %14231 = vmatprep.subr.bf16.mxu1 %v23697_v19  ;;  %v23763_v24 = vld [vmem:[#allocation14 + $0x1ba4] ss:$16 sps:$4 sm:$0xff]   ;;  %v23766_v19 = vld [vmem:[#allocation14 + $0x1bac] ss:$16 sps:$4 sm:$0xff]  }
 0xdd1   : > { %14395 = vmatprep.subr.bf16.mxu0 %v23700_v29  ;;  %v23761_v29 = vld [vmem:[#allocation14 + $0x1ba0] ss:$16 sps:$4 sm:$0xff]  }
 0xdd3   : > { %14232 = vmatpush1.bf16.msra.mxu1 %v23695_v58  ;;  %v23764_v58 = vld [vmem:[#allocation14 + $0x1ba8] ss:$16 sps:$4 sm:$0xff]  }
 0xdd4   : > { %14396 = vmatpush1.bf16.msra.mxu0 %v23698_v54  ;;  %14233 = vmatprep.subr.bf16.mxu1 %v23703_v6  ;;  %v23769_v54 = vld [vmem:[#allocation14 + $0x1bc4] ss:$16 sps:$4 sm:$0xff]   ;;  %v23772_v6 = vld [vmem:[#allocation14 + $0x1bcc] ss:$16 sps:$4 sm:$0xff]  }
 0xdd5   : > { %14397 = vmatprep.subr.bf16.mxu0 %v23706_v31  ;;  %v23767_v31 = vld [vmem:[#allocation14 + $0x1bc0] ss:$16 sps:$4 sm:$0xff]  }
 0xdd7   : > { %14234 = vmatpush1.bf16.msra.mxu1 %v23701_v55  ;;  %v23770_v55 = vld [vmem:[#allocation14 + $0x1bc8] ss:$16 sps:$4 sm:$0xff]  }
 0xdd8   : > { %14398 = vmatpush1.bf16.msra.mxu0 %v23704_v56  ;;  %14235 = vmatprep.subr.bf16.mxu1 %v23709_v57  ;;  %v23775_v56 = vld [vmem:[#allocation14 + $0x1be4] ss:$16 sps:$4 sm:$0xff]   ;;  %v23778_v57 = vld [vmem:[#allocation14 + $0x1bec] ss:$16 sps:$4 sm:$0xff]  }
 0xdd9   : > { %14399 = vmatprep.subr.bf16.mxu0 %v23712_v59  ;;  %v23773_v59 = vld [vmem:[#allocation14 + $0x1be0] ss:$16 sps:$4 sm:$0xff]  }
 0xddb   : > { %14236 = vmatpush1.bf16.msra.mxu1 %v23707_v48  ;;  %v23776_v48 = vld [vmem:[#allocation14 + $0x1be8] ss:$16 sps:$4 sm:$0xff]  }
 0xddc   : > { %14400 = vmatpush1.bf16.msra.mxu0 %v23710_v52  ;;  %14237 = vmatprep.subr.bf16.mxu1 %v23715_v61  ;;  %v23781_v52 = vld [vmem:[#allocation14 + $0x1c04] ss:$16 sps:$4 sm:$0xff]   ;;  %v23784_v61 = vld [vmem:[#allocation14 + $0x1c0c] ss:$16 sps:$4 sm:$0xff]  }
 0xddd   : > { %14401 = vmatprep.subr.bf16.mxu0 %v23718_v62  ;;  %v23779_v62 = vld [vmem:[#allocation14 + $0x1c00] ss:$16 sps:$4 sm:$0xff]  }
 0xddf   : > { %14238 = vmatpush1.bf16.msra.mxu1 %v23713_v63  ;;  %v12892_v63 = vrot.slane %v27067_v49, 1  ;;  %v23791_v49 = vld [vmem:[#allocation14 + $0x1c40] ss:$16 sps:$4 sm:$0xff]  }
 0xde0   : > { %14402 = vmatpush1.bf16.msra.mxu0 %v23716_v1  ;;  %14239 = vmatprep.subr.bf16.mxu1 %v23721_v2  ;;  %v23782_v1 = vld [vmem:[#allocation14 + $0x1c08] ss:$16 sps:$4 sm:$0xff]   ;;  %v23787_v2 = vld [vmem:[#allocation14 + $0x1c24] ss:$16 sps:$4 sm:$0xff]  }
 0xde1   : > { %14403 = vmatprep.subr.bf16.mxu0 %v23724_v4  ;;  %v12895_v4 = vrot.slane %v27070_v51, 1  ;;  %v23802_v51 = vld [vmem:[#allocation14 + $0x1c6c] ss:$16 sps:$4 sm:$0xff]  }
 0xde3   : > { %14240 = vmatpush1.bf16.msra.mxu1 %v23719_v3  ;;  %v23790_v3 = vld [vmem:[#allocation14 + $0x1c2c] ss:$16 sps:$4 sm:$0xff]  }
 0xde4   : > { %14404 = vmatpush1.bf16.msra.mxu0 %v23722_v8  ;;  %14241 = vmatprep.subr.bf16.mxu1 %v23727_v12  ;;  %v23785_v8 = vld [vmem:[#allocation14 + $0x1c20] ss:$16 sps:$4 sm:$0xff]   ;;  %v23788_v12 = vld [vmem:[#allocation14 + $0x1c28] ss:$16 sps:$4 sm:$0xff]  }
 0xde5   : > { %14405 = vmatprep.subr.bf16.mxu0 %v23730_v10  ;;  %v23793_v10 = vld [vmem:[#allocation14 + $0x1c44] ss:$16 sps:$4 sm:$0xff]  }
 0xde7   : > { %14242 = vmatpush1.bf16.msra.mxu1 %v23725_v15  ;;  %v23796_v15 = vld [vmem:[#allocation14 + $0x1c4c] ss:$16 sps:$4 sm:$0xff]  }
 0xde8   : > { %14406 = vmatpush1.bf16.msra.mxu0 %v23728_v13  ;;  %14243 = vmatprep.subr.bf16.mxu1 %v23733_v44  ;;  %v23794_v13 = vld [vmem:[#allocation14 + $0x1c48] ss:$16 sps:$4 sm:$0xff]   ;;  %v23799_v44 = vld [vmem:[#allocation14 + $0x1c64] ss:$16 sps:$4 sm:$0xff]  }
 0xde9   : > { %14407 = vmatprep.subr.bf16.mxu0 %v23736_v22  ;;  %v23797_v22 = vld [vmem:[#allocation14 + $0x1c60] ss:$16 sps:$4 sm:$0xff]  }
 0xdeb   : > { %14244 = vmatpush1.bf16.msra.mxu1 %v23731_v14  ;;  %v23800_v14 = vld [vmem:[#allocation14 + $0x1c68] ss:$16 sps:$4 sm:$0xff]  }
 0xdec   : > { %14408 = vmatpush1.bf16.msra.mxu0 %v23734_v60  ;;  %14245 = vmatprep.subr.bf16.mxu1 %v23739_v50  ;;  %v23805_v60 = vld [vmem:[#allocation14 + $0x1c84] ss:$16 sps:$4 sm:$0xff]   ;;  %v23808_v50 = vld [vmem:[#allocation14 + $0x1c8c] ss:$16 sps:$4 sm:$0xff]  }
 0xded   : > { %14409 = vmatprep.subr.bf16.mxu0 %v23742_v34  ;;  %v23803_v34 = vld [vmem:[#allocation14 + $0x1c80] ss:$16 sps:$4 sm:$0xff]  }
 0xdef   : > { %14246 = vmatpush1.bf16.msra.mxu1 %v23737_v28  ;;  %v23806_v28 = vld [vmem:[#allocation14 + $0x1c88] ss:$16 sps:$4 sm:$0xff]  }
 0xdf0   : > { %14410 = vmatpush1.bf16.msra.mxu0 %v23740_v25  ;;  %14247 = vmatprep.subr.bf16.mxu1 %v23745_v45  ;;  %v23811_v25 = vld [vmem:[#allocation14 + $0x1ca4] ss:$16 sps:$4 sm:$0xff]   ;;  %v23814_v45 = vld [vmem:[#allocation14 + $0x1cac] ss:$16 sps:$4 sm:$0xff]  }
 0xdf1   : > { %14411 = vmatprep.subr.bf16.mxu0 %v23748_v37  ;;  %v23809_v37 = vld [vmem:[#allocation14 + $0x1ca0] ss:$16 sps:$4 sm:$0xff]  }
 0xdf3   : > { %14248 = vmatpush1.bf16.msra.mxu1 %v23743_v46  ;;  %v23812_v46 = vld [vmem:[#allocation14 + $0x1ca8] ss:$16 sps:$4 sm:$0xff]  }
 0xdf4   : > { %14412 = vmatpush1.bf16.msra.mxu0 %v23746_v18  ;;  %14249 = vmatprep.subr.bf16.mxu1 %v23751_v26  ;;  %v23817_v18 = vld [vmem:[#allocation14 + $0x1cc4] ss:$16 sps:$4 sm:$0xff]   ;;  %v23820_v26 = vld [vmem:[#allocation14 + $0x1ccc] ss:$16 sps:$4 sm:$0xff]  }
 0xdf5   : > { %14413 = vmatprep.subr.bf16.mxu0 %v23754_v27  ;;  %v23815_v27 = vld [vmem:[#allocation14 + $0x1cc0] ss:$16 sps:$4 sm:$0xff]  }
 0xdf7   : > { %14250 = vmatpush1.bf16.msra.mxu1 %v23749_v30  ;;  %v23818_v30 = vld [vmem:[#allocation14 + $0x1cc8] ss:$16 sps:$4 sm:$0xff]  }
 0xdf8   : > { %14414 = vmatpush1.bf16.msra.mxu0 %v23752_v23  ;;  %14251 = vmatprep.subr.bf16.mxu1 %v23757_v42  ;;  %v23823_v23 = vld [vmem:[#allocation14 + $0x1ce4] ss:$16 sps:$4 sm:$0xff]   ;;  %v23826_v42 = vld [vmem:[#allocation14 + $0x1cec] ss:$16 sps:$4 sm:$0xff]  }
 0xdf9   : > { %14415 = vmatprep.subr.bf16.mxu0 %v23760_v43  ;;  %v23821_v43 = vld [vmem:[#allocation14 + $0x1ce0] ss:$16 sps:$4 sm:$0xff]  }
 0xdfb   : > { %14252 = vmatpush1.bf16.msra.mxu1 %v23755_v7  ;;  %v23824_v7 = vld [vmem:[#allocation14 + $0x1ce8] ss:$16 sps:$4 sm:$0xff]  }
 0xdfc   : > { %14416 = vmatpush1.bf16.msra.mxu0 %v23758_v47  ;;  %14253 = vmatprep.subr.bf16.mxu1 %v23763_v24  ;;  %v23829_v47 = vld [vmem:[#allocation14 + $0x1d04] ss:$16 sps:$4 sm:$0xff]   ;;  %v23832_v24 = vld [vmem:[#allocation14 + $0x1d0c] ss:$16 sps:$4 sm:$0xff]  }
 0xdfd   : > { %14417 = vmatprep.subr.bf16.mxu0 %v23766_v19  ;;  %v23827_v19 = vld [vmem:[#allocation14 + $0x1d00] ss:$16 sps:$4 sm:$0xff]  }
 0xdff   : > { %14254 = vmatpush1.bf16.msra.mxu1 %v23761_v29  ;;  %v23830_v29 = vld [vmem:[#allocation14 + $0x1d08] ss:$16 sps:$4 sm:$0xff]  }
 0xe00   : > { %14418 = vmatpush1.bf16.msra.mxu0 %v23764_v58  ;;  %14255 = vmatprep.subr.bf16.mxu1 %v23769_v54  ;;  %v23835_v58 = vld [vmem:[#allocation14 + $0x1d24] ss:$16 sps:$4 sm:$0xff]   ;;  %v23838_v54 = vld [vmem:[#allocation14 + $0x1d2c] ss:$16 sps:$4 sm:$0xff]  }
 0xe01   : > { %14419 = vmatprep.subr.bf16.mxu0 %v23772_v6  ;;  %v23833_v6 = vld [vmem:[#allocation14 + $0x1d20] ss:$16 sps:$4 sm:$0xff]  }
 0xe03   : > { %14256 = vmatpush1.bf16.msra.mxu1 %v23767_v31  ;;  %v23836_v31 = vld [vmem:[#allocation14 + $0x1d28] ss:$16 sps:$4 sm:$0xff]  }
 0xe04   : > { %14420 = vmatpush1.bf16.msra.mxu0 %v23770_v55  ;;  %14257 = vmatprep.subr.bf16.mxu1 %v23775_v56  ;;  %v23841_v55 = vld [vmem:[#allocation14 + $0x1d44] ss:$16 sps:$4 sm:$0xff]   ;;  %v23844_v56 = vld [vmem:[#allocation14 + $0x1d4c] ss:$16 sps:$4 sm:$0xff]  }
 0xe05   : > { %14421 = vmatprep.subr.bf16.mxu0 %v23778_v57  ;;  %v23839_v57 = vld [vmem:[#allocation14 + $0x1d40] ss:$16 sps:$4 sm:$0xff]  }
 0xe07   : > { %14258 = vmatpush1.bf16.msra.mxu1 %v23773_v59  ;;  %v23842_v59 = vld [vmem:[#allocation14 + $0x1d48] ss:$16 sps:$4 sm:$0xff]  }
 0xe08   : > { %14422 = vmatpush1.bf16.msra.mxu0 %v23776_v48  ;;  %14268 = vmatprep.subr.bf16.mxu1 %v23781_v52  ;;  %v23847_v48 = vld [vmem:[#allocation14 + $0x1d64] ss:$16 sps:$4 sm:$0xff]   ;;  %v23850_v52 = vld [vmem:[#allocation14 + $0x1d6c] ss:$16 sps:$4 sm:$0xff]  }
 0xe09   : > { %14432 = vmatprep.subr.bf16.mxu0 %v23784_v61  ;;  %v23845_v61 = vld [vmem:[#allocation14 + $0x1d60] ss:$16 sps:$4 sm:$0xff]  }
 0xe0a   : > { %14260 = vmatmul.mubr.bf16.vlgmr.msra.gmra.mrb[20].mxu1 %v12892_v63 }
 0xe0b   : > { %14424 = vmatmul.mubr.bf16.vlgmr.msra.gmra.mrb[24].mxu0 %v12892_v63  ;;  %14269 = vmatpush1.bf16.msra.mxu1 %v23779_v62  ;;  %v23848_v62 = vld [vmem:[#allocation14 + $0x1d68] ss:$16 sps:$4 sm:$0xff]   ;;  %v23853_v63 = vld [vmem:[#allocation14 + $0x1d84] ss:$16 sps:$4 sm:$0xff]  }
 0xe0c   : > { %14300 = vmatprep.mubr.bf16.mxu1 %v12895_v4  ;;  %14433 = vmatpush1.bf16.msra.mxu0 %v23782_v1  ;;  %v23856_v1 = vld [vmem:[#allocation14 + $0x1d8c] ss:$16 sps:$4 sm:$0xff]  }
 0xe0d   : > { %14464 = vmatprep.mubr.bf16.mxu0 %v12895_v4  ;;  %14270 = vmatprep.subr.bf16.mxu1 %v23787_v2  ;;  %v23851_v2 = vld [vmem:[#allocation14 + $0x1d80] ss:$16 sps:$4 sm:$0xff]   ;;  %v23854_v4 = vld [vmem:[#allocation14 + $0x1d88] ss:$16 sps:$4 sm:$0xff]  }
 0xe0e   : > { %14434 = vmatprep.subr.bf16.mxu0 %v23790_v3  ;;  %v23859_v3 = vld [vmem:[#allocation14 + $0x1da4] ss:$16 sps:$4 sm:$0xff]  }
 0xe0f   : > { %14271 = vmatpush1.bf16.msra.mxu1 %v23785_v8  ;;  %v23862_v8 = vld [vmem:[#allocation14 + $0x1dac] ss:$16 sps:$4 sm:$0xff]  }
 0xe10   : > { %14435 = vmatpush1.bf16.msra.mxu0 %v23788_v12  ;;  %14272 = vmatprep.subr.bf16.mxu1 %v23793_v10  ;;  %v23857_v12 = vld [vmem:[#allocation14 + $0x1da0] ss:$16 sps:$4 sm:$0xff]   ;;  %v23860_v10 = vld [vmem:[#allocation14 + $0x1da8] ss:$16 sps:$4 sm:$0xff]  }
 0xe11   : > { %14436 = vmatprep.subr.bf16.mxu0 %v23796_v15  ;;  %v23865_v15 = vld [vmem:[#allocation14 + $0x1dc4] ss:$16 sps:$4 sm:$0xff]  }
 0xe13   : > { %14273 = vmatpush1.bf16.msra.mxu1 %v23791_v49  ;;  %v23868_v49 = vld [vmem:[#allocation14 + $0x1dcc] ss:$16 sps:$4 sm:$0xff]  }
 0xe14   : > { %14437 = vmatpush1.bf16.msra.mxu0 %v23794_v13  ;;  %14274 = vmatprep.subr.bf16.mxu1 %v23799_v44  ;;  %v23863_v13 = vld [vmem:[#allocation14 + $0x1dc0] ss:$16 sps:$4 sm:$0xff]   ;;  %v23866_v44 = vld [vmem:[#allocation14 + $0x1dc8] ss:$16 sps:$4 sm:$0xff]  }
 0xe15   : > { %14438 = vmatprep.subr.bf16.mxu0 %v23802_v51  ;;  %v23871_v51 = vld [vmem:[#allocation14 + $0x1de4] ss:$16 sps:$4 sm:$0xff]  }
 0xe17   : > { %14275 = vmatpush1.bf16.msra.mxu1 %v23797_v22  ;;  %v23874_v22 = vld [vmem:[#allocation14 + $0x1dec] ss:$16 sps:$4 sm:$0xff]  }
 0xe18   : > { %14439 = vmatpush1.bf16.msra.mxu0 %v23800_v14  ;;  %14276 = vmatprep.subr.bf16.mxu1 %v23805_v60  ;;  %v23869_v14 = vld [vmem:[#allocation14 + $0x1de0] ss:$16 sps:$4 sm:$0xff]   ;;  %v23872_v60 = vld [vmem:[#allocation14 + $0x1de8] ss:$16 sps:$4 sm:$0xff]  }
 0xe19   : > { %14440 = vmatprep.subr.bf16.mxu0 %v23808_v50  ;;  %v23877_v50 = vld [vmem:[#allocation14 + $0x1e04] ss:$16 sps:$4 sm:$0xff]  }
 0xe1b   : > { %14277 = vmatpush1.bf16.msra.mxu1 %v23803_v34  ;;  %v23880_v34 = vld [vmem:[#allocation14 + $0x1e0c] ss:$16 sps:$4 sm:$0xff]  }
 0xe1c   : > { %14441 = vmatpush1.bf16.msra.mxu0 %v23806_v28  ;;  %14278 = vmatprep.subr.bf16.mxu1 %v23811_v25  ;;  %v23875_v28 = vld [vmem:[#allocation14 + $0x1e00] ss:$16 sps:$4 sm:$0xff]   ;;  %v12894_v25 = vrot.slane %v27085_v40, 1 }
 0xe1d   : > { %14442 = vmatprep.subr.bf16.mxu0 %v23814_v45  ;;  %v23878_v45 = vld [vmem:[#allocation14 + $0x1e08] ss:$16 sps:$4 sm:$0xff]   ;;  %v23887_v40 = vld [vmem:[#allocation14 + $0x1e40] ss:$16 sps:$4 sm:$0xff]  }
 0xe1f   : > { %14279 = vmatpush1.bf16.msra.mxu1 %v23809_v37  ;;  %v23883_v37 = vld [vmem:[#allocation14 + $0x1e24] ss:$16 sps:$4 sm:$0xff]  }
 0xe20   : > { %14443 = vmatpush1.bf16.msra.mxu0 %v23812_v46  ;;  %14280 = vmatprep.subr.bf16.mxu1 %v23817_v18  ;;  %v12897_v46 = vrot.slane %v27089_v0, 1  ;;  %v23886_v18 = vld [vmem:[#allocation14 + $0x1e2c] ss:$16 sps:$4 sm:$0xff]  }
 0xe21   : > { %14444 = vmatprep.subr.bf16.mxu0 %v23820_v26  ;;  %v23881_v26 = vld [vmem:[#allocation14 + $0x1e20] ss:$16 sps:$4 sm:$0xff]   ;;  %v23898_v0 = vld [vmem:[#allocation14 + $0x1e6c] ss:$16 sps:$4 sm:$0xff]  }
 0xe23   : > { %14281 = vmatpush1.bf16.msra.mxu1 %v23815_v27  ;;  %v23884_v27 = vld [vmem:[#allocation14 + $0x1e28] ss:$16 sps:$4 sm:$0xff]  }
 0xe24   : > { %14445 = vmatpush1.bf16.msra.mxu0 %v23818_v30  ;;  %14282 = vmatprep.subr.bf16.mxu1 %v23823_v23  ;;  %v23889_v30 = vld [vmem:[#allocation14 + $0x1e44] ss:$16 sps:$4 sm:$0xff]   ;;  %v23892_v23 = vld [vmem:[#allocation14 + $0x1e4c] ss:$16 sps:$4 sm:$0xff]  }
 0xe25   : > { %14446 = vmatprep.subr.bf16.mxu0 %v23826_v42  ;;  %v23890_v42 = vld [vmem:[#allocation14 + $0x1e48] ss:$16 sps:$4 sm:$0xff]  }
 0xe27   : > { %14283 = vmatpush1.bf16.msra.mxu1 %v23821_v43  ;;  %v23895_v43 = vld [vmem:[#allocation14 + $0x1e64] ss:$16 sps:$4 sm:$0xff]  }
 0xe28   : > { %14447 = vmatpush1.bf16.msra.mxu0 %v23824_v7  ;;  %14284 = vmatprep.subr.bf16.mxu1 %v23829_v47  ;;  %v23893_v7 = vld [vmem:[#allocation14 + $0x1e60] ss:$16 sps:$4 sm:$0xff]   ;;  %v23896_v47 = vld [vmem:[#allocation14 + $0x1e68] ss:$16 sps:$4 sm:$0xff]  }
 0xe29   : > { %14448 = vmatprep.subr.bf16.mxu0 %v23832_v24  ;;  %v23901_v24 = vld [vmem:[#allocation14 + $0x1e84] ss:$16 sps:$4 sm:$0xff]  }
 0xe2b   : > { %14285 = vmatpush1.bf16.msra.mxu1 %v23827_v19  ;;  %v23904_v19 = vld [vmem:[#allocation14 + $0x1e8c] ss:$16 sps:$4 sm:$0xff]  }
 0xe2c   : > { %14449 = vmatpush1.bf16.msra.mxu0 %v23830_v29  ;;  %14286 = vmatprep.subr.bf16.mxu1 %v23835_v58  ;;  %v23899_v29 = vld [vmem:[#allocation14 + $0x1e80] ss:$16 sps:$4 sm:$0xff]   ;;  %v23902_v58 = vld [vmem:[#allocation14 + $0x1e88] ss:$16 sps:$4 sm:$0xff]  }
 0xe2d   : > { %14450 = vmatprep.subr.bf16.mxu0 %v23838_v54  ;;  %v23907_v54 = vld [vmem:[#allocation14 + $0x1ea4] ss:$16 sps:$4 sm:$0xff]  }
 0xe2f   : > { %14287 = vmatpush1.bf16.msra.mxu1 %v23833_v6  ;;  %v23910_v6 = vld [vmem:[#allocation14 + $0x1eac] ss:$16 sps:$4 sm:$0xff]  }
 0xe30   : > { %14451 = vmatpush1.bf16.msra.mxu0 %v23836_v31  ;;  %14288 = vmatprep.subr.bf16.mxu1 %v23841_v55  ;;  %v23905_v31 = vld [vmem:[#allocation14 + $0x1ea0] ss:$16 sps:$4 sm:$0xff]   ;;  %v23908_v55 = vld [vmem:[#allocation14 + $0x1ea8] ss:$16 sps:$4 sm:$0xff]  }
 0xe31   : > { %14452 = vmatprep.subr.bf16.mxu0 %v23844_v56  ;;  %v23913_v56 = vld [vmem:[#allocation14 + $0x1ec4] ss:$16 sps:$4 sm:$0xff]  }
 0xe33   : > { %14289 = vmatpush1.bf16.msra.mxu1 %v23839_v57  ;;  %v23916_v57 = vld [vmem:[#allocation14 + $0x1ecc] ss:$16 sps:$4 sm:$0xff]  }
 0xe34   : > { %14453 = vmatpush1.bf16.msra.mxu0 %v23842_v59  ;;  %14290 = vmatprep.subr.bf16.mxu1 %v23847_v48  ;;  %v23911_v59 = vld [vmem:[#allocation14 + $0x1ec0] ss:$16 sps:$4 sm:$0xff]   ;;  %v23914_v48 = vld [vmem:[#allocation14 + $0x1ec8] ss:$16 sps:$4 sm:$0xff]  }
 0xe35   : > { %14454 = vmatprep.subr.bf16.mxu0 %v23850_v52  ;;  %v23919_v52 = vld [vmem:[#allocation14 + $0x1ee4] ss:$16 sps:$4 sm:$0xff]  }
 0xe37   : > { %14291 = vmatpush1.bf16.msra.mxu1 %v23845_v61  ;;  %v23922_v61 = vld [vmem:[#allocation14 + $0x1eec] ss:$16 sps:$4 sm:$0xff]  }
 0xe38   : > { %14455 = vmatpush1.bf16.msra.mxu0 %v23848_v62  ;;  %14292 = vmatprep.subr.bf16.mxu1 %v23853_v63  ;;  %v23917_v62 = vld [vmem:[#allocation14 + $0x1ee0] ss:$16 sps:$4 sm:$0xff]   ;;  %v23920_v63 = vld [vmem:[#allocation14 + $0x1ee8] ss:$16 sps:$4 sm:$0xff]  }
 0xe39   : > { %14456 = vmatprep.subr.bf16.mxu0 %v23856_v1  ;;  %v23925_v1 = vld [vmem:[#allocation14 + $0x1f04] ss:$16 sps:$4 sm:$0xff]  }
 0xe3b   : > { %14293 = vmatpush1.bf16.msra.mxu1 %v23851_v2  ;;  %v23928_v2 = vld [vmem:[#allocation14 + $0x1f0c] ss:$16 sps:$4 sm:$0xff]  }
 0xe3c   : > { %14457 = vmatpush1.bf16.msra.mxu0 %v23854_v4  ;;  %14294 = vmatprep.subr.bf16.mxu1 %v23859_v3  ;;  %v23923_v4 = vld [vmem:[#allocation14 + $0x1f00] ss:$16 sps:$4 sm:$0xff]   ;;  %v23926_v3 = vld [vmem:[#allocation14 + $0x1f08] ss:$16 sps:$4 sm:$0xff]  }
 0xe3d   : > { %14458 = vmatprep.subr.bf16.mxu0 %v23862_v8  ;;  %v23931_v8 = vld [vmem:[#allocation14 + $0x1f24] ss:$16 sps:$4 sm:$0xff]  }
 0xe3f   : > { %14295 = vmatpush1.bf16.msra.mxu1 %v23857_v12  ;;  %v23934_v12 = vld [vmem:[#allocation14 + $0x1f2c] ss:$16 sps:$4 sm:$0xff]  }
 0xe40   : > { %14459 = vmatpush1.bf16.msra.mxu0 %v23860_v10  ;;  %14296 = vmatprep.subr.bf16.mxu1 %v23865_v15  ;;  %v23929_v10 = vld [vmem:[#allocation14 + $0x1f20] ss:$16 sps:$4 sm:$0xff]   ;;  %v23932_v15 = vld [vmem:[#allocation14 + $0x1f28] ss:$16 sps:$4 sm:$0xff]  }
 0xe41   : > { %14460 = vmatprep.subr.bf16.mxu0 %v23868_v49  ;;  %v23937_v49 = vld [vmem:[#allocation14 + $0x1f44] ss:$16 sps:$4 sm:$0xff]  }
 0xe43   : > { %14297 = vmatpush1.bf16.msra.mxu1 %v23863_v13  ;;  %v23940_v13 = vld [vmem:[#allocation14 + $0x1f4c] ss:$16 sps:$4 sm:$0xff]  }
 0xe44   : > { %14461 = vmatpush1.bf16.msra.mxu0 %v23866_v44  ;;  %14298 = vmatprep.subr.bf16.mxu1 %v23871_v51  ;;  %v23935_v44 = vld [vmem:[#allocation14 + $0x1f40] ss:$16 sps:$4 sm:$0xff]   ;;  %v23938_v51 = vld [vmem:[#allocation14 + $0x1f48] ss:$16 sps:$4 sm:$0xff]  }
 0xe45   : > { %14462 = vmatprep.subr.bf16.mxu0 %v23874_v22  ;;  %v23943_v22 = vld [vmem:[#allocation14 + $0x1f64] ss:$16 sps:$4 sm:$0xff]  }
 0xe47   : > { %14299 = vmatpush1.bf16.msra.mxu1 %v23869_v14  ;;  %v23946_v14 = vld [vmem:[#allocation14 + $0x1f6c] ss:$16 sps:$4 sm:$0xff]  }
 0xe48   : > { %14463 = vmatpush1.bf16.msra.mxu0 %v23872_v60  ;;  %14309 = vmatprep.subr.bf16.mxu1 %v23877_v50  ;;  %v23941_v60 = vld [vmem:[#allocation14 + $0x1f60] ss:$16 sps:$4 sm:$0xff]   ;;  %v23944_v50 = vld [vmem:[#allocation14 + $0x1f68] ss:$16 sps:$4 sm:$0xff]  }
 0xe49   : > { %14473 = vmatprep.subr.bf16.mxu0 %v23880_v34  ;;  %v23949_v34 = vld [vmem:[#allocation14 + $0x1f84] ss:$16 sps:$4 sm:$0xff]  }
 0xe4a   : > { %14301 = vmatmul.mubr.bf16.vlgmr.msra.gmra.mrb[20].mxu1 %v12894_v25 }
 0xe4b   : > { %14465 = vmatmul.mubr.bf16.vlgmr.msra.gmra.mrb[24].mxu0 %v12894_v25  ;;  %14310 = vmatpush1.bf16.msra.mxu1 %v23875_v28  ;;  %v23952_v28 = vld [vmem:[#allocation14 + $0x1f8c] ss:$16 sps:$4 sm:$0xff]   ;;  %v23947_v25 = vld [vmem:[#allocation14 + $0x1f80] ss:$16 sps:$4 sm:$0xff]  }
 0xe4c   : > { %14341 = vmatprep.mubr.bf16.mxu1 %v12897_v46  ;;  %14474 = vmatpush1.bf16.msra.mxu0 %v23878_v45  ;;  %v23950_v45 = vld [vmem:[#allocation14 + $0x1f88] ss:$16 sps:$4 sm:$0xff]  }
 0xe4d   : > { %14505 = vmatprep.mubr.bf16.mxu0 %v12897_v46  ;;  %14311 = vmatprep.subr.bf16.mxu1 %v23883_v37  ;;  %v23955_v37 = vld [vmem:[#allocation14 + $0x1fa4] ss:$16 sps:$4 sm:$0xff]   ;;  %v23958_v46 = vld [vmem:[#allocation14 + $0x1fac] ss:$16 sps:$4 sm:$0xff]  }
 0xe4e   : > { %14475 = vmatprep.subr.bf16.mxu0 %v23886_v18  ;;  %v23953_v18 = vld [vmem:[#allocation14 + $0x1fa0] ss:$16 sps:$4 sm:$0xff]  }
 0xe4f   : > { %14312 = vmatpush1.bf16.msra.mxu1 %v23881_v26  ;;  %v23956_v26 = vld [vmem:[#allocation14 + $0x1fa8] ss:$16 sps:$4 sm:$0xff]  }
 0xe50   : > { %14476 = vmatpush1.bf16.msra.mxu0 %v23884_v27  ;;  %14313 = vmatprep.subr.bf16.mxu1 %v23889_v30  ;;  %v23961_v27 = vld [vmem:[#allocation14 + $0x1fc4] ss:$16 sps:$4 sm:$0xff]   ;;  %v23964_v30 = vld [vmem:[#allocation14 + $0x1fcc] ss:$16 sps:$4 sm:$0xff]  }
 0xe51   : > { %14477 = vmatprep.subr.bf16.mxu0 %v23892_v23  ;;  %v23959_v23 = vld [vmem:[#allocation14 + $0x1fc0] ss:$16 sps:$4 sm:$0xff]  }
 0xe53   : > { %14314 = vmatpush1.bf16.msra.mxu1 %v23887_v40  ;;  %v23962_v40 = vld [vmem:[#allocation14 + $0x1fc8] ss:$16 sps:$4 sm:$0xff]  }
 0xe54   : > { %14478 = vmatpush1.bf16.msra.mxu0 %v23890_v42  ;;  %14315 = vmatprep.subr.bf16.mxu1 %v23895_v43  ;;  %v23967_v42 = vld [vmem:[#allocation14 + $0x1fe4] ss:$16 sps:$4 sm:$0xff]   ;;  %v23970_v43 = vld [vmem:[#allocation14 + $0x1fec] ss:$16 sps:$4 sm:$0xff]  }
 0xe55   : > { %14479 = vmatprep.subr.bf16.mxu0 %v23898_v0  ;;  %v23965_v0 = vld [vmem:[#allocation14 + $0x1fe0] ss:$16 sps:$4 sm:$0xff]  }
 0xe57   : > { %14316 = vmatpush1.bf16.msra.mxu1 %v23893_v7  ;;  %v23968_v7 = vld [vmem:[#allocation14 + $0x1fe8] ss:$16 sps:$4 sm:$0xff]  }
 0xe58   : > { %14480 = vmatpush1.bf16.msra.mxu0 %v23896_v47  ;;  %14317 = vmatprep.subr.bf16.mxu1 %v23901_v24  ;;  %v23973_v47 = vld [vmem:[#allocation14 + $0x2004] ss:$16 sps:$4 sm:$0xff]   ;;  %v23976_v24 = vld [vmem:[#allocation14 + $0x200c] ss:$16 sps:$4 sm:$0xff]  }
 0xe59   : > { %14481 = vmatprep.subr.bf16.mxu0 %v23904_v19  ;;  %v23971_v19 = vld [vmem:[#allocation14 + $0x2000] ss:$16 sps:$4 sm:$0xff]  }
 0xe5b   : > { %14318 = vmatpush1.bf16.msra.mxu1 %v23899_v29  ;;  %v12896_v29 = vrot.slane %v27099_v21, 1  ;;  %v23983_v21 = vld [vmem:[#allocation14 + $0x2040] ss:$16 sps:$4 sm:$0xff]  }
 0xe5c   : > { %14482 = vmatpush1.bf16.msra.mxu0 %v23902_v58  ;;  %14319 = vmatprep.subr.bf16.mxu1 %v23907_v54  ;;  %v23974_v58 = vld [vmem:[#allocation14 + $0x2008] ss:$16 sps:$4 sm:$0xff]   ;;  %v23979_v54 = vld [vmem:[#allocation14 + $0x2024] ss:$16 sps:$4 sm:$0xff]  }
 0xe5d   : > { %14483 = vmatprep.subr.bf16.mxu0 %v23910_v6  ;;  %v14776_v6 = vrot.slane %v27037_v16, 2  ;;  %v23994_v16 = vld [vmem:[#allocation14 + $0x206c] ss:$16 sps:$4 sm:$0xff]  }
 0xe5f   : > { %14320 = vmatpush1.bf16.msra.mxu1 %v23905_v31  ;;  %v23982_v31 = vld [vmem:[#allocation14 + $0x202c] ss:$16 sps:$4 sm:$0xff]  }
 0xe60   : > { %14484 = vmatpush1.bf16.msra.mxu0 %v23908_v55  ;;  %14321 = vmatprep.subr.bf16.mxu1 %v23913_v56  ;;  %v23977_v55 = vld [vmem:[#allocation14 + $0x2020] ss:$16 sps:$4 sm:$0xff]   ;;  %v23980_v56 = vld [vmem:[#allocation14 + $0x2028] ss:$16 sps:$4 sm:$0xff]  }
 0xe61   : > { %14485 = vmatprep.subr.bf16.mxu0 %v23916_v57  ;;  %v23985_v57 = vld [vmem:[#allocation14 + $0x2044] ss:$16 sps:$4 sm:$0xff]  }
 0xe63   : > { %14322 = vmatpush1.bf16.msra.mxu1 %v23911_v59  ;;  %v23988_v59 = vld [vmem:[#allocation14 + $0x204c] ss:$16 sps:$4 sm:$0xff]  }
 0xe64   : > { %14486 = vmatpush1.bf16.msra.mxu0 %v23914_v48  ;;  %14323 = vmatprep.subr.bf16.mxu1 %v23919_v52  ;;  %v23986_v48 = vld [vmem:[#allocation14 + $0x2048] ss:$16 sps:$4 sm:$0xff]   ;;  %v23991_v52 = vld [vmem:[#allocation14 + $0x2064] ss:$16 sps:$4 sm:$0xff]  }
 0xe65   : > { %14487 = vmatprep.subr.bf16.mxu0 %v23922_v61  ;;  %v23989_v61 = vld [vmem:[#allocation14 + $0x2060] ss:$16 sps:$4 sm:$0xff]  }
 0xe67   : > { %14324 = vmatpush1.bf16.msra.mxu1 %v23917_v62  ;;  %v23992_v62 = vld [vmem:[#allocation14 + $0x2068] ss:$16 sps:$4 sm:$0xff]  }
 0xe68   : > { %14488 = vmatpush1.bf16.msra.mxu0 %v23920_v63  ;;  %14325 = vmatprep.subr.bf16.mxu1 %v23925_v1  ;;  %v23997_v63 = vld [vmem:[#allocation14 + $0x2084] ss:$16 sps:$4 sm:$0xff]   ;;  %v24000_v1 = vld [vmem:[#allocation14 + $0x208c] ss:$16 sps:$4 sm:$0xff]  }
 0xe69   : > { %14489 = vmatprep.subr.bf16.mxu0 %v23928_v2  ;;  %v23995_v2 = vld [vmem:[#allocation14 + $0x2080] ss:$16 sps:$4 sm:$0xff]  }
 0xe6b   : > { %14326 = vmatpush1.bf16.msra.mxu1 %v23923_v4  ;;  %v23998_v4 = vld [vmem:[#allocation14 + $0x2088] ss:$16 sps:$4 sm:$0xff]  }
 0xe6c   : > { %14490 = vmatpush1.bf16.msra.mxu0 %v23926_v3  ;;  %14327 = vmatprep.subr.bf16.mxu1 %v23931_v8  ;;  %v24003_v3 = vld [vmem:[#allocation14 + $0x20a4] ss:$16 sps:$4 sm:$0xff]   ;;  %v24006_v8 = vld [vmem:[#allocation14 + $0x20ac] ss:$16 sps:$4 sm:$0xff]  }
 0xe6d   : > { %14491 = vmatprep.subr.bf16.mxu0 %v23934_v12  ;;  %v24001_v12 = vld [vmem:[#allocation14 + $0x20a0] ss:$16 sps:$4 sm:$0xff]  }
 0xe6f   : > { %14328 = vmatpush1.bf16.msra.mxu1 %v23929_v10  ;;  %v24004_v10 = vld [vmem:[#allocation14 + $0x20a8] ss:$16 sps:$4 sm:$0xff]  }
 0xe70   : > { %14492 = vmatpush1.bf16.msra.mxu0 %v23932_v15  ;;  %14329 = vmatprep.subr.bf16.mxu1 %v23937_v49  ;;  %v24009_v15 = vld [vmem:[#allocation14 + $0x20c4] ss:$16 sps:$4 sm:$0xff]   ;;  %v24012_v49 = vld [vmem:[#allocation14 + $0x20cc] ss:$16 sps:$4 sm:$0xff]  }
 0xe71   : > { %14493 = vmatprep.subr.bf16.mxu0 %v23940_v13  ;;  %v24007_v13 = vld [vmem:[#allocation14 + $0x20c0] ss:$16 sps:$4 sm:$0xff]  }
 0xe73   : > { %14330 = vmatpush1.bf16.msra.mxu1 %v23935_v44  ;;  %v24010_v44 = vld [vmem:[#allocation14 + $0x20c8] ss:$16 sps:$4 sm:$0xff]  }
 0xe74   : > { %14494 = vmatpush1.bf16.msra.mxu0 %v23938_v51  ;;  %14331 = vmatprep.subr.bf16.mxu1 %v23943_v22  ;;  %v24015_v51 = vld [vmem:[#allocation14 + $0x20e4] ss:$16 sps:$4 sm:$0xff]   ;;  %v24018_v22 = vld [vmem:[#allocation14 + $0x20ec] ss:$16 sps:$4 sm:$0xff]  }
 0xe75   : > { %14495 = vmatprep.subr.bf16.mxu0 %v23946_v14  ;;  %v24013_v14 = vld [vmem:[#allocation14 + $0x20e0] ss:$16 sps:$4 sm:$0xff]  }
 0xe77   : > { %14332 = vmatpush1.bf16.msra.mxu1 %v23941_v60  ;;  %v24016_v60 = vld [vmem:[#allocation14 + $0x20e8] ss:$16 sps:$4 sm:$0xff]  }
 0xe78   : > { %14496 = vmatpush1.bf16.msra.mxu0 %v23944_v50  ;;  %14333 = vmatprep.subr.bf16.mxu1 %v23949_v34  ;;  %v24021_v50 = vld [vmem:[#allocation14 + $0x2104] ss:$16 sps:$4 sm:$0xff]   ;;  %v24024_v34 = vld [vmem:[#allocation14 + $0x210c] ss:$16 sps:$4 sm:$0xff]  }
 0xe79   : > { %14497 = vmatprep.subr.bf16.mxu0 %v23952_v28  ;;  %v24019_v28 = vld [vmem:[#allocation14 + $0x2100] ss:$16 sps:$4 sm:$0xff]  }
 0xe7b   : > { %14334 = vmatpush1.bf16.msra.mxu1 %v23947_v25  ;;  %v24022_v25 = vld [vmem:[#allocation14 + $0x2108] ss:$16 sps:$4 sm:$0xff]  }
 0xe7c   : > { %14498 = vmatpush1.bf16.msra.mxu0 %v23950_v45  ;;  %14335 = vmatprep.subr.bf16.mxu1 %v23955_v37  ;;  %v24027_v45 = vld [vmem:[#allocation14 + $0x2124] ss:$16 sps:$4 sm:$0xff]   ;;  %v24030_v37 = vld [vmem:[#allocation14 + $0x212c] ss:$16 sps:$4 sm:$0xff]  }
 0xe7d   : > { %14499 = vmatprep.subr.bf16.mxu0 %v23958_v46  ;;  %v24025_v46 = vld [vmem:[#allocation14 + $0x2120] ss:$16 sps:$4 sm:$0xff]  }
 0xe7f   : > { %14336 = vmatpush1.bf16.msra.mxu1 %v23953_v18  ;;  %v24028_v18 = vld [vmem:[#allocation14 + $0x2128] ss:$16 sps:$4 sm:$0xff]  }
 0xe80   : > { %14500 = vmatpush1.bf16.msra.mxu0 %v23956_v26  ;;  %14337 = vmatprep.subr.bf16.mxu1 %v23961_v27  ;;  %v24033_v26 = vld [vmem:[#allocation14 + $0x2144] ss:$16 sps:$4 sm:$0xff]   ;;  %v24036_v27 = vld [vmem:[#allocation14 + $0x214c] ss:$16 sps:$4 sm:$0xff]  }
 0xe81   : > { %14501 = vmatprep.subr.bf16.mxu0 %v23964_v30  ;;  %v24031_v30 = vld [vmem:[#allocation14 + $0x2140] ss:$16 sps:$4 sm:$0xff]  }
 0xe83   : > { %14338 = vmatpush1.bf16.msra.mxu1 %v23959_v23  ;;  %v24034_v23 = vld [vmem:[#allocation14 + $0x2148] ss:$16 sps:$4 sm:$0xff]  }
 0xe84   : > { %14502 = vmatpush1.bf16.msra.mxu0 %v23962_v40  ;;  %14339 = vmatprep.subr.bf16.mxu1 %v23967_v42  ;;  %v24039_v40 = vld [vmem:[#allocation14 + $0x2164] ss:$16 sps:$4 sm:$0xff]   ;;  %v24042_v42 = vld [vmem:[#allocation14 + $0x216c] ss:$16 sps:$4 sm:$0xff]  }
 0xe85   : > { %14503 = vmatprep.subr.bf16.mxu0 %v23970_v43  ;;  %v24037_v43 = vld [vmem:[#allocation14 + $0x2160] ss:$16 sps:$4 sm:$0xff]  }
 0xe87   : > { %14340 = vmatpush1.bf16.msra.mxu1 %v23965_v0  ;;  %v24040_v0 = vld [vmem:[#allocation14 + $0x2168] ss:$16 sps:$4 sm:$0xff]  }
 0xe88   : > { %14504 = vmatpush1.bf16.msra.mxu0 %v23968_v7  ;;  %16071 = vmatprep.subr.bf16.mxu1 %v23973_v47  ;;  %v24045_v7 = vld [vmem:[#allocation14 + $0x2184] ss:$16 sps:$4 sm:$0xff]   ;;  %v24048_v47 = vld [vmem:[#allocation14 + $0x218c] ss:$16 sps:$4 sm:$0xff]  }
 0xe89   : > { %16235 = vmatprep.subr.bf16.mxu0 %v23976_v24  ;;  %v24043_v24 = vld [vmem:[#allocation14 + $0x2180] ss:$16 sps:$4 sm:$0xff]  }
 0xe8a   : > { %14342 = vmatmul.mubr.bf16.vlgmr.msra.gmra.mrb[20].mxu1 %v12896_v29 }
 0xe8b   : > { %14506 = vmatmul.mubr.bf16.vlgmr.msra.gmra.mrb[24].mxu0 %v12896_v29  ;;  %16072 = vmatpush1.bf16.msra.mxu1 %v23971_v19  ;;  %v24046_v19 = vld [vmem:[#allocation14 + $0x2188] ss:$16 sps:$4 sm:$0xff]   ;;  %v24051_v29 = vld [vmem:[#allocation14 + $0x21a4] ss:$16 sps:$4 sm:$0xff]  }
 0xe8c   : > { %16103 = vmatprep.mubr.bf16.mxu1 %v14776_v6  ;;  %16236 = vmatpush1.bf16.msra.mxu0 %v23974_v58  ;;  %v24054_v58 = vld [vmem:[#allocation14 + $0x21ac] ss:$16 sps:$4 sm:$0xff]  }
 0xe8d   : > { %16267 = vmatprep.mubr.bf16.mxu0 %v14776_v6  ;;  %16073 = vmatprep.subr.bf16.mxu1 %v23979_v54  ;;  %v24049_v54 = vld [vmem:[#allocation14 + $0x21a0] ss:$16 sps:$4 sm:$0xff]   ;;  %v24052_v6 = vld [vmem:[#allocation14 + $0x21a8] ss:$16 sps:$4 sm:$0xff]  }
 0xe8e   : > { %16237 = vmatprep.subr.bf16.mxu0 %v23982_v31  ;;  %v24057_v31 = vld [vmem:[#allocation14 + $0x21c4] ss:$16 sps:$4 sm:$0xff]  }
 0xe8f   : > { %16074 = vmatpush1.bf16.msra.mxu1 %v23977_v55  ;;  %v24060_v55 = vld [vmem:[#allocation14 + $0x21cc] ss:$16 sps:$4 sm:$0xff]  }
 0xe90   : > { %16238 = vmatpush1.bf16.msra.mxu0 %v23980_v56  ;;  %16075 = vmatprep.subr.bf16.mxu1 %v23985_v57  ;;  %v24055_v56 = vld [vmem:[#allocation14 + $0x21c0] ss:$16 sps:$4 sm:$0xff]   ;;  %v24058_v57 = vld [vmem:[#allocation14 + $0x21c8] ss:$16 sps:$4 sm:$0xff]  }
 0xe91   : > { %16239 = vmatprep.subr.bf16.mxu0 %v23988_v59  ;;  %v24063_v59 = vld [vmem:[#allocation14 + $0x21e4] ss:$16 sps:$4 sm:$0xff]  }
 0xe93   : > { %16076 = vmatpush1.bf16.msra.mxu1 %v23983_v21  ;;  %v24066_v21 = vld [vmem:[#allocation14 + $0x21ec] ss:$16 sps:$4 sm:$0xff]  }
 0xe94   : > { %16240 = vmatpush1.bf16.msra.mxu0 %v23986_v48  ;;  %16077 = vmatprep.subr.bf16.mxu1 %v23991_v52  ;;  %v24061_v48 = vld [vmem:[#allocation14 + $0x21e0] ss:$16 sps:$4 sm:$0xff]   ;;  %v24064_v52 = vld [vmem:[#allocation14 + $0x21e8] ss:$16 sps:$4 sm:$0xff]  }
 0xe95   : > { %16241 = vmatprep.subr.bf16.mxu0 %v23994_v16  ;;  %v24069_v16 = vld [vmem:[#allocation14 + $0x2204] ss:$16 sps:$4 sm:$0xff]  }
 0xe97   : > { %16078 = vmatpush1.bf16.msra.mxu1 %v23989_v61  ;;  %v24072_v61 = vld [vmem:[#allocation14 + $0x220c] ss:$16 sps:$4 sm:$0xff]  }
 0xe98   : > { %16242 = vmatpush1.bf16.msra.mxu0 %v23992_v62  ;;  %16079 = vmatprep.subr.bf16.mxu1 %v23997_v63  ;;  %v24067_v62 = vld [vmem:[#allocation14 + $0x2200] ss:$16 sps:$4 sm:$0xff]   ;;  %v14775_v63 = vrot.slane %v27039_v17, 2 }
 0xe99   : > { %16243 = vmatprep.subr.bf16.mxu0 %v24000_v1  ;;  %v24070_v1 = vld [vmem:[#allocation14 + $0x2208] ss:$16 sps:$4 sm:$0xff]   ;;  %v24079_v17 = vld [vmem:[#allocation14 + $0x2240] ss:$16 sps:$4 sm:$0xff]  }
 0xe9b   : > { %16080 = vmatpush1.bf16.msra.mxu1 %v23995_v2  ;;  %v24075_v2 = vld [vmem:[#allocation14 + $0x2224] ss:$16 sps:$4 sm:$0xff]  }
 0xe9c   : > { %16244 = vmatpush1.bf16.msra.mxu0 %v23998_v4  ;;  %16081 = vmatprep.subr.bf16.mxu1 %v24003_v3  ;;  %v14778_v4 = vrot.slane %v27041_v20, 2  ;;  %v24078_v3 = vld [vmem:[#allocation14 + $0x222c] ss:$16 sps:$4 sm:$0xff]  }
 0xe9d   : > { %16245 = vmatprep.subr.bf16.mxu0 %v24006_v8  ;;  %v24073_v8 = vld [vmem:[#allocation14 + $0x2220] ss:$16 sps:$4 sm:$0xff]   ;;  %v24090_v20 = vld [vmem:[#allocation14 + $0x226c] ss:$16 sps:$4 sm:$0xff]  }
 0xe9f   : > { %16082 = vmatpush1.bf16.msra.mxu1 %v24001_v12  ;;  %v24076_v12 = vld [vmem:[#allocation14 + $0x2228] ss:$16 sps:$4 sm:$0xff]  }
 0xea0   : > { %16246 = vmatpush1.bf16.msra.mxu0 %v24004_v10  ;;  %16083 = vmatprep.subr.bf16.mxu1 %v24009_v15  ;;  %v24081_v10 = vld [vmem:[#allocation14 + $0x2244] ss:$16 sps:$4 sm:$0xff]   ;;  %v24084_v15 = vld [vmem:[#allocation14 + $0x224c] ss:$16 sps:$4 sm:$0xff]  }
 0xea1   : > { %16247 = vmatprep.subr.bf16.mxu0 %v24012_v49  ;;  %v24082_v49 = vld [vmem:[#allocation14 + $0x2248] ss:$16 sps:$4 sm:$0xff]  }
 0xea3   : > { %16084 = vmatpush1.bf16.msra.mxu1 %v24007_v13  ;;  %v24087_v13 = vld [vmem:[#allocation14 + $0x2264] ss:$16 sps:$4 sm:$0xff]  }
 0xea4   : > { %16248 = vmatpush1.bf16.msra.mxu0 %v24010_v44  ;;  %16085 = vmatprep.subr.bf16.mxu1 %v24015_v51  ;;  %v24085_v44 = vld [vmem:[#allocation14 + $0x2260] ss:$16 sps:$4 sm:$0xff]   ;;  %v24088_v51 = vld [vmem:[#allocation14 + $0x2268] ss:$16 sps:$4 sm:$0xff]  }
 0xea5   : > { %16249 = vmatprep.subr.bf16.mxu0 %v24018_v22  ;;  %v24093_v22 = vld [vmem:[#allocation14 + $0x2284] ss:$16 sps:$4 sm:$0xff]  }
 0xea7   : > { %16086 = vmatpush1.bf16.msra.mxu1 %v24013_v14  ;;  %v24096_v14 = vld [vmem:[#allocation14 + $0x228c] ss:$16 sps:$4 sm:$0xff]  }
 0xea8   : > { %16250 = vmatpush1.bf16.msra.mxu0 %v24016_v60  ;;  %16087 = vmatprep.subr.bf16.mxu1 %v24021_v50  ;;  %v24091_v60 = vld [vmem:[#allocation14 + $0x2280] ss:$16 sps:$4 sm:$0xff]   ;;  %v24094_v50 = vld [vmem:[#allocation14 + $0x2288] ss:$16 sps:$4 sm:$0xff]  }
 0xea9   : > { %16251 = vmatprep.subr.bf16.mxu0 %v24024_v34  ;;  %v24099_v34 = vld [vmem:[#allocation14 + $0x22a4] ss:$16 sps:$4 sm:$0xff]  }
 0xeab   : > { %16088 = vmatpush1.bf16.msra.mxu1 %v24019_v28  ;;  %v24102_v28 = vld [vmem:[#allocation14 + $0x22ac] ss:$16 sps:$4 sm:$0xff]  }
 0xeac   : > { %16252 = vmatpush1.bf16.msra.mxu0 %v24022_v25  ;;  %16089 = vmatprep.subr.bf16.mxu1 %v24027_v45  ;;  %v24097_v25 = vld [vmem:[#allocation14 + $0x22a0] ss:$16 sps:$4 sm:$0xff]   ;;  %v24100_v45 = vld [vmem:[#allocation14 + $0x22a8] ss:$16 sps:$4 sm:$0xff]  }
 0xead   : > { %16253 = vmatprep.subr.bf16.mxu0 %v24030_v37  ;;  %v24105_v37 = vld [vmem:[#allocation14 + $0x22c4] ss:$16 sps:$4 sm:$0xff]  }
 0xeaf   : > { %16090 = vmatpush1.bf16.msra.mxu1 %v24025_v46  ;;  %v24108_v46 = vld [vmem:[#allocation14 + $0x22cc] ss:$16 sps:$4 sm:$0xff]  }
 0xeb0   : > { %16254 = vmatpush1.bf16.msra.mxu0 %v24028_v18  ;;  %16091 = vmatprep.subr.bf16.mxu1 %v24033_v26  ;;  %v24103_v18 = vld [vmem:[#allocation14 + $0x22c0] ss:$16 sps:$4 sm:$0xff]   ;;  %v24106_v26 = vld [vmem:[#allocation14 + $0x22c8] ss:$16 sps:$4 sm:$0xff]  }
 0xeb1   : > { %16255 = vmatprep.subr.bf16.mxu0 %v24036_v27  ;;  %v24111_v27 = vld [vmem:[#allocation14 + $0x22e4] ss:$16 sps:$4 sm:$0xff]  }
 0xeb3   : > { %16092 = vmatpush1.bf16.msra.mxu1 %v24031_v30  ;;  %v24114_v30 = vld [vmem:[#allocation14 + $0x22ec] ss:$16 sps:$4 sm:$0xff]  }
 0xeb4   : > { %16256 = vmatpush1.bf16.msra.mxu0 %v24034_v23  ;;  %16093 = vmatprep.subr.bf16.mxu1 %v24039_v40  ;;  %v24109_v23 = vld [vmem:[#allocation14 + $0x22e0] ss:$16 sps:$4 sm:$0xff]   ;;  %v24112_v40 = vld [vmem:[#allocation14 + $0x22e8] ss:$16 sps:$4 sm:$0xff]  }
 0xeb5   : > { %16257 = vmatprep.subr.bf16.mxu0 %v24042_v42  ;;  %v24117_v42 = vld [vmem:[#allocation14 + $0x2304] ss:$16 sps:$4 sm:$0xff]  }
 0xeb7   : > { %16094 = vmatpush1.bf16.msra.mxu1 %v24037_v43  ;;  %v24120_v43 = vld [vmem:[#allocation14 + $0x230c] ss:$16 sps:$4 sm:$0xff]  }
 0xeb8   : > { %16258 = vmatpush1.bf16.msra.mxu0 %v24040_v0  ;;  %16095 = vmatprep.subr.bf16.mxu1 %v24045_v7  ;;  %v24115_v0 = vld [vmem:[#allocation14 + $0x2300] ss:$16 sps:$4 sm:$0xff]   ;;  %v24118_v7 = vld [vmem:[#allocation14 + $0x2308] ss:$16 sps:$4 sm:$0xff]  }
 0xeb9   : > { %16259 = vmatprep.subr.bf16.mxu0 %v24048_v47  ;;  %v24123_v47 = vld [vmem:[#allocation14 + $0x2324] ss:$16 sps:$4 sm:$0xff]  }
 0xebb   : > { %16096 = vmatpush1.bf16.msra.mxu1 %v24043_v24  ;;  %v24126_v24 = vld [vmem:[#allocation14 + $0x232c] ss:$16 sps:$4 sm:$0xff]  }
 0xebc   : > { %16260 = vmatpush1.bf16.msra.mxu0 %v24046_v19  ;;  %16097 = vmatprep.subr.bf16.mxu1 %v24051_v29  ;;  %v24121_v19 = vld [vmem:[#allocation14 + $0x2320] ss:$16 sps:$4 sm:$0xff]   ;;  %v24124_v29 = vld [vmem:[#allocation14 + $0x2328] ss:$16 sps:$4 sm:$0xff]  }
 0xebd   : > { %16261 = vmatprep.subr.bf16.mxu0 %v24054_v58  ;;  %v24129_v58 = vld [vmem:[#allocation14 + $0x2344] ss:$16 sps:$4 sm:$0xff]  }
 0xebf   : > { %16098 = vmatpush1.bf16.msra.mxu1 %v24049_v54  ;;  %v24132_v54 = vld [vmem:[#allocation14 + $0x234c] ss:$16 sps:$4 sm:$0xff]  }
 0xec0   : > { %16262 = vmatpush1.bf16.msra.mxu0 %v24052_v6  ;;  %16099 = vmatprep.subr.bf16.mxu1 %v24057_v31  ;;  %v24127_v6 = vld [vmem:[#allocation14 + $0x2340] ss:$16 sps:$4 sm:$0xff]   ;;  %v24130_v31 = vld [vmem:[#allocation14 + $0x2348] ss:$16 sps:$4 sm:$0xff]  }
 0xec1   : > { %16263 = vmatprep.subr.bf16.mxu0 %v24060_v55  ;;  %v24135_v55 = vld [vmem:[#allocation14 + $0x2364] ss:$16 sps:$4 sm:$0xff]  }
 0xec3   : > { %16100 = vmatpush1.bf16.msra.mxu1 %v24055_v56  ;;  %v24138_v56 = vld [vmem:[#allocation14 + $0x236c] ss:$16 sps:$4 sm:$0xff]  }
 0xec4   : > { %16264 = vmatpush1.bf16.msra.mxu0 %v24058_v57  ;;  %16101 = vmatprep.subr.bf16.mxu1 %v24063_v59  ;;  %v24133_v57 = vld [vmem:[#allocation14 + $0x2360] ss:$16 sps:$4 sm:$0xff]   ;;  %v24136_v59 = vld [vmem:[#allocation14 + $0x2368] ss:$16 sps:$4 sm:$0xff]  }
 0xec5   : > { %16265 = vmatprep.subr.bf16.mxu0 %v24066_v21  ;;  %v24141_v21 = vld [vmem:[#allocation14 + $0x2384] ss:$16 sps:$4 sm:$0xff]  }
 0xec7   : > { %16102 = vmatpush1.bf16.msra.mxu1 %v24061_v48  ;;  %v24144_v48 = vld [vmem:[#allocation14 + $0x238c] ss:$16 sps:$4 sm:$0xff]  }
 0xec8   : > { %16266 = vmatpush1.bf16.msra.mxu0 %v24064_v52  ;;  %16112 = vmatprep.subr.bf16.mxu1 %v24069_v16  ;;  %v24139_v52 = vld [vmem:[#allocation14 + $0x2380] ss:$16 sps:$4 sm:$0xff]   ;;  %v24142_v16 = vld [vmem:[#allocation14 + $0x2388] ss:$16 sps:$4 sm:$0xff]  }
 0xec9   : > { %16276 = vmatprep.subr.bf16.mxu0 %v24072_v61  ;;  %v24147_v61 = vld [vmem:[#allocation14 + $0x23a4] ss:$16 sps:$4 sm:$0xff]  }
 0xeca   : > { %16104 = vmatmul.mubr.bf16.vlgmr.msra.gmra.mrb[20].mxu1 %v14775_v63 }
 0xecb   : > { %16268 = vmatmul.mubr.bf16.vlgmr.msra.gmra.mrb[24].mxu0 %v14775_v63  ;;  %16113 = vmatpush1.bf16.msra.mxu1 %v24067_v62  ;;  %v24150_v62 = vld [vmem:[#allocation14 + $0x23ac] ss:$16 sps:$4 sm:$0xff]   ;;  %v24145_v63 = vld [vmem:[#allocation14 + $0x23a0] ss:$16 sps:$4 sm:$0xff]  }
 0xecc   : > { %16144 = vmatprep.mubr.bf16.mxu1 %v14778_v4  ;;  %16277 = vmatpush1.bf16.msra.mxu0 %v24070_v1  ;;  %v24148_v1 = vld [vmem:[#allocation14 + $0x23a8] ss:$16 sps:$4 sm:$0xff]  }
 0xecd   : > { %16308 = vmatprep.mubr.bf16.mxu0 %v14778_v4  ;;  %16114 = vmatprep.subr.bf16.mxu1 %v24075_v2  ;;  %v24153_v2 = vld [vmem:[#allocation14 + $0x23c4] ss:$16 sps:$4 sm:$0xff]   ;;  %v24156_v4 = vld [vmem:[#allocation14 + $0x23cc] ss:$16 sps:$4 sm:$0xff]  }
 0xece   : > { %16278 = vmatprep.subr.bf16.mxu0 %v24078_v3  ;;  %v24151_v3 = vld [vmem:[#allocation14 + $0x23c0] ss:$16 sps:$4 sm:$0xff]  }
 0xecf   : > { %16115 = vmatpush1.bf16.msra.mxu1 %v24073_v8  ;;  %v24154_v8 = vld [vmem:[#allocation14 + $0x23c8] ss:$16 sps:$4 sm:$0xff]  }
 0xed0   : > { %16279 = vmatpush1.bf16.msra.mxu0 %v24076_v12  ;;  %16116 = vmatprep.subr.bf16.mxu1 %v24081_v10  ;;  %v24159_v12 = vld [vmem:[#allocation14 + $0x23e4] ss:$16 sps:$4 sm:$0xff]   ;;  %v24162_v10 = vld [vmem:[#allocation14 + $0x23ec] ss:$16 sps:$4 sm:$0xff]  }
 0xed1   : > { %16280 = vmatprep.subr.bf16.mxu0 %v24084_v15  ;;  %v24157_v15 = vld [vmem:[#allocation14 + $0x23e0] ss:$16 sps:$4 sm:$0xff]  }
 0xed3   : > { %16117 = vmatpush1.bf16.msra.mxu1 %v24079_v17  ;;  %v24160_v17 = vld [vmem:[#allocation14 + $0x23e8] ss:$16 sps:$4 sm:$0xff]  }
 0xed4   : > { %16281 = vmatpush1.bf16.msra.mxu0 %v24082_v49  ;;  %16118 = vmatprep.subr.bf16.mxu1 %v24087_v13  ;;  %v24165_v49 = vld [vmem:[#allocation14 + $0x2404] ss:$16 sps:$4 sm:$0xff]   ;;  %v24168_v13 = vld [vmem:[#allocation14 + $0x240c] ss:$16 sps:$4 sm:$0xff]  }
 0xed5   : > { %16282 = vmatprep.subr.bf16.mxu0 %v24090_v20  ;;  %v24163_v20 = vld [vmem:[#allocation14 + $0x2400] ss:$16 sps:$4 sm:$0xff]  }
 0xed7   : > { %16119 = vmatpush1.bf16.msra.mxu1 %v24085_v44  ;;  %v14777_v44 = vrot.slane %v27060_v11, 2  ;;  %v24175_v11 = vld [vmem:[#allocation14 + $0x2440] ss:$16 sps:$4 sm:$0xff]  }
 0xed8   : > { %16283 = vmatpush1.bf16.msra.mxu0 %v24088_v51  ;;  %16120 = vmatprep.subr.bf16.mxu1 %v24093_v22  ;;  %v24166_v51 = vld [vmem:[#allocation14 + $0x2408] ss:$16 sps:$4 sm:$0xff]   ;;  %v24171_v22 = vld [vmem:[#allocation14 + $0x2424] ss:$16 sps:$4 sm:$0xff]  }
 0xed9   : > { %16284 = vmatprep.subr.bf16.mxu0 %v24096_v14  ;;  %v14780_v14 = vrot.slane %v27064_v53, 2  ;;  %v24186_v53 = vld [vmem:[#allocation14 + $0x246c] ss:$16 sps:$4 sm:$0xff]  }
 0xedb   : > { %16121 = vmatpush1.bf16.msra.mxu1 %v24091_v60  ;;  %v24174_v60 = vld [vmem:[#allocation14 + $0x242c] ss:$16 sps:$4 sm:$0xff]  }
 0xedc   : > { %16285 = vmatpush1.bf16.msra.mxu0 %v24094_v50  ;;  %16122 = vmatprep.subr.bf16.mxu1 %v24099_v34  ;;  %v24169_v50 = vld [vmem:[#allocation14 + $0x2420] ss:$16 sps:$4 sm:$0xff]   ;;  %v24172_v34 = vld [vmem:[#allocation14 + $0x2428] ss:$16 sps:$4 sm:$0xff]  }
 0xedd   : > { %16286 = vmatprep.subr.bf16.mxu0 %v24102_v28  ;;  %v24177_v28 = vld [vmem:[#allocation14 + $0x2444] ss:$16 sps:$4 sm:$0xff]  }
 0xedf   : > { %16123 = vmatpush1.bf16.msra.mxu1 %v24097_v25  ;;  %v24180_v25 = vld [vmem:[#allocation14 + $0x244c] ss:$16 sps:$4 sm:$0xff]  }
 0xee0   : > { %16287 = vmatpush1.bf16.msra.mxu0 %v24100_v45  ;;  %16124 = vmatprep.subr.bf16.mxu1 %v24105_v37  ;;  %v24178_v45 = vld [vmem:[#allocation14 + $0x2448] ss:$16 sps:$4 sm:$0xff]   ;;  %v24183_v37 = vld [vmem:[#allocation14 + $0x2464] ss:$16 sps:$4 sm:$0xff]  }
 0xee1   : > { %16288 = vmatprep.subr.bf16.mxu0 %v24108_v46  ;;  %v24181_v46 = vld [vmem:[#allocation14 + $0x2460] ss:$16 sps:$4 sm:$0xff]  }
 0xee3   : > { %16125 = vmatpush1.bf16.msra.mxu1 %v24103_v18  ;;  %v24184_v18 = vld [vmem:[#allocation14 + $0x2468] ss:$16 sps:$4 sm:$0xff]  }
 0xee4   : > { %16289 = vmatpush1.bf16.msra.mxu0 %v24106_v26  ;;  %16126 = vmatprep.subr.bf16.mxu1 %v24111_v27  ;;  %v24189_v26 = vld [vmem:[#allocation14 + $0x2484] ss:$16 sps:$4 sm:$0xff]   ;;  %v24192_v27 = vld [vmem:[#allocation14 + $0x248c] ss:$16 sps:$4 sm:$0xff]  }
 0xee5   : > { %16290 = vmatprep.subr.bf16.mxu0 %v24114_v30  ;;  %v24187_v30 = vld [vmem:[#allocation14 + $0x2480] ss:$16 sps:$4 sm:$0xff]  }
 0xee7   : > { %16127 = vmatpush1.bf16.msra.mxu1 %v24109_v23  ;;  %v24190_v23 = vld [vmem:[#allocation14 + $0x2488] ss:$16 sps:$4 sm:$0xff]  }
 0xee8   : > { %16291 = vmatpush1.bf16.msra.mxu0 %v24112_v40  ;;  %16128 = vmatprep.subr.bf16.mxu1 %v24117_v42  ;;  %v24195_v40 = vld [vmem:[#allocation14 + $0x24a4] ss:$16 sps:$4 sm:$0xff]   ;;  %v24198_v42 = vld [vmem:[#allocation14 + $0x24ac] ss:$16 sps:$4 sm:$0xff]  }
 0xee9   : > { %16292 = vmatprep.subr.bf16.mxu0 %v24120_v43  ;;  %v24193_v43 = vld [vmem:[#allocation14 + $0x24a0] ss:$16 sps:$4 sm:$0xff]  }
 0xeeb   : > { %16129 = vmatpush1.bf16.msra.mxu1 %v24115_v0  ;;  %v24196_v0 = vld [vmem:[#allocation14 + $0x24a8] ss:$16 sps:$4 sm:$0xff]  }
 0xeec   : > { %16293 = vmatpush1.bf16.msra.mxu0 %v24118_v7  ;;  %16130 = vmatprep.subr.bf16.mxu1 %v24123_v47  ;;  %v24201_v7 = vld [vmem:[#allocation14 + $0x24c4] ss:$16 sps:$4 sm:$0xff]   ;;  %v24204_v47 = vld [vmem:[#allocation14 + $0x24cc] ss:$16 sps:$4 sm:$0xff]  }
 0xeed   : > { %16294 = vmatprep.subr.bf16.mxu0 %v24126_v24  ;;  %v24199_v24 = vld [vmem:[#allocation14 + $0x24c0] ss:$16 sps:$4 sm:$0xff]  }
 0xeef   : > { %16131 = vmatpush1.bf16.msra.mxu1 %v24121_v19  ;;  %v24202_v19 = vld [vmem:[#allocation14 + $0x24c8] ss:$16 sps:$4 sm:$0xff]  }
 0xef0   : > { %16295 = vmatpush1.bf16.msra.mxu0 %v24124_v29  ;;  %16132 = vmatprep.subr.bf16.mxu1 %v24129_v58  ;;  %v24207_v29 = vld [vmem:[#allocation14 + $0x24e4] ss:$16 sps:$4 sm:$0xff]   ;;  %v24210_v58 = vld [vmem:[#allocation14 + $0x24ec] ss:$16 sps:$4 sm:$0xff]  }
 0xef1   : > { %16296 = vmatprep.subr.bf16.mxu0 %v24132_v54  ;;  %v24205_v54 = vld [vmem:[#allocation14 + $0x24e0] ss:$16 sps:$4 sm:$0xff]  }
 0xef3   : > { %16133 = vmatpush1.bf16.msra.mxu1 %v24127_v6  ;;  %v24208_v6 = vld [vmem:[#allocation14 + $0x24e8] ss:$16 sps:$4 sm:$0xff]  }
 0xef4   : > { %16297 = vmatpush1.bf16.msra.mxu0 %v24130_v31  ;;  %16134 = vmatprep.subr.bf16.mxu1 %v24135_v55  ;;  %v24213_v31 = vld [vmem:[#allocation14 + $0x2504] ss:$16 sps:$4 sm:$0xff]   ;;  %v24216_v55 = vld [vmem:[#allocation14 + $0x250c] ss:$16 sps:$4 sm:$0xff]  }
 0xef5   : > { %16298 = vmatprep.subr.bf16.mxu0 %v24138_v56  ;;  %v24211_v56 = vld [vmem:[#allocation14 + $0x2500] ss:$16 sps:$4 sm:$0xff]  }
 0xef7   : > { %16135 = vmatpush1.bf16.msra.mxu1 %v24133_v57  ;;  %v24214_v57 = vld [vmem:[#allocation14 + $0x2508] ss:$16 sps:$4 sm:$0xff]  }
 0xef8   : > { %16299 = vmatpush1.bf16.msra.mxu0 %v24136_v59  ;;  %16136 = vmatprep.subr.bf16.mxu1 %v24141_v21  ;;  %v24219_v59 = vld [vmem:[#allocation14 + $0x2524] ss:$16 sps:$4 sm:$0xff]   ;;  %v24222_v21 = vld [vmem:[#allocation14 + $0x252c] ss:$16 sps:$4 sm:$0xff]  }
 0xef9   : > { %16300 = vmatprep.subr.bf16.mxu0 %v24144_v48  ;;  %v24217_v48 = vld [vmem:[#allocation14 + $0x2520] ss:$16 sps:$4 sm:$0xff]  }
 0xefb   : > { %16137 = vmatpush1.bf16.msra.mxu1 %v24139_v52  ;;  %v24220_v52 = vld [vmem:[#allocation14 + $0x2528] ss:$16 sps:$4 sm:$0xff]  }
 0xefc   : > { %16301 = vmatpush1.bf16.msra.mxu0 %v24142_v16  ;;  %16138 = vmatprep.subr.bf16.mxu1 %v24147_v61  ;;  %v24225_v16 = vld [vmem:[#allocation14 + $0x2544] ss:$16 sps:$4 sm:$0xff]   ;;  %v24228_v61 = vld [vmem:[#allocation14 + $0x254c] ss:$16 sps:$4 sm:$0xff]  }
 0xefd   : > { %16302 = vmatprep.subr.bf16.mxu0 %v24150_v62  ;;  %v24223_v62 = vld [vmem:[#allocation14 + $0x2540] ss:$16 sps:$4 sm:$0xff]  }
 0xeff   : > { %16139 = vmatpush1.bf16.msra.mxu1 %v24145_v63  ;;  %v24226_v63 = vld [vmem:[#allocation14 + $0x2548] ss:$16 sps:$4 sm:$0xff]  }
 0xf00   : > { %16303 = vmatpush1.bf16.msra.mxu0 %v24148_v1  ;;  %16140 = vmatprep.subr.bf16.mxu1 %v24153_v2  ;;  %v24231_v1 = vld [vmem:[#allocation14 + $0x2564] ss:$16 sps:$4 sm:$0xff]   ;;  %v24234_v2 = vld [vmem:[#allocation14 + $0x256c] ss:$16 sps:$4 sm:$0xff]  }
 0xf01   : > { %16304 = vmatprep.subr.bf16.mxu0 %v24156_v4  ;;  %v24229_v4 = vld [vmem:[#allocation14 + $0x2560] ss:$16 sps:$4 sm:$0xff]  }
 0xf03   : > { %16141 = vmatpush1.bf16.msra.mxu1 %v24151_v3  ;;  %v24232_v3 = vld [vmem:[#allocation14 + $0x2568] ss:$16 sps:$4 sm:$0xff]  }
 0xf04   : > { %16305 = vmatpush1.bf16.msra.mxu0 %v24154_v8  ;;  %16142 = vmatprep.subr.bf16.mxu1 %v24159_v12  ;;  %v24237_v8 = vld [vmem:[#allocation14 + $0x2584] ss:$16 sps:$4 sm:$0xff]   ;;  %v24240_v12 = vld [vmem:[#allocation14 + $0x258c] ss:$16 sps:$4 sm:$0xff]  }
 0xf05   : > { %16306 = vmatprep.subr.bf16.mxu0 %v24162_v10  ;;  %v24235_v10 = vld [vmem:[#allocation14 + $0x2580] ss:$16 sps:$4 sm:$0xff]  }
 0xf07   : > { %16143 = vmatpush1.bf16.msra.mxu1 %v24157_v15  ;;  %v24238_v15 = vld [vmem:[#allocation14 + $0x2588] ss:$16 sps:$4 sm:$0xff]  }
 0xf08   : > { %16307 = vmatpush1.bf16.msra.mxu0 %v24160_v17  ;;  %16153 = vmatprep.subr.bf16.mxu1 %v24165_v49  ;;  %v24243_v17 = vld [vmem:[#allocation14 + $0x25a4] ss:$16 sps:$4 sm:$0xff]   ;;  %v24246_v49 = vld [vmem:[#allocation14 + $0x25ac] ss:$16 sps:$4 sm:$0xff]  }
 0xf09   : > { %16317 = vmatprep.subr.bf16.mxu0 %v24168_v13  ;;  %v24241_v13 = vld [vmem:[#allocation14 + $0x25a0] ss:$16 sps:$4 sm:$0xff]  }
 0xf0a   : > { %16145 = vmatmul.mubr.bf16.vlgmr.msra.gmra.mrb[20].mxu1 %v14777_v44 }
 0xf0b   : > { %16309 = vmatmul.mubr.bf16.vlgmr.msra.gmra.mrb[24].mxu0 %v14777_v44  ;;  %16154 = vmatpush1.bf16.msra.mxu1 %v24163_v20  ;;  %v24244_v20 = vld [vmem:[#allocation14 + $0x25a8] ss:$16 sps:$4 sm:$0xff]   ;;  %v24249_v44 = vld [vmem:[#allocation14 + $0x25c4] ss:$16 sps:$4 sm:$0xff]  }
 0xf0c   : > { %16185 = vmatprep.mubr.bf16.mxu1 %v14780_v14  ;;  %16318 = vmatpush1.bf16.msra.mxu0 %v24166_v51  ;;  %v24252_v51 = vld [vmem:[#allocation14 + $0x25cc] ss:$16 sps:$4 sm:$0xff]  }
 0xf0d   : > { %16349 = vmatprep.mubr.bf16.mxu0 %v14780_v14  ;;  %16155 = vmatprep.subr.bf16.mxu1 %v24171_v22  ;;  %v24247_v22 = vld [vmem:[#allocation14 + $0x25c0] ss:$16 sps:$4 sm:$0xff]   ;;  %v24250_v14 = vld [vmem:[#allocation14 + $0x25c8] ss:$16 sps:$4 sm:$0xff]  }
 0xf0e   : > { %16319 = vmatprep.subr.bf16.mxu0 %v24174_v60  ;;  %v24255_v60 = vld [vmem:[#allocation14 + $0x25e4] ss:$16 sps:$4 sm:$0xff]  }
 0xf0f   : > { %16156 = vmatpush1.bf16.msra.mxu1 %v24169_v50  ;;  %v24258_v50 = vld [vmem:[#allocation14 + $0x25ec] ss:$16 sps:$4 sm:$0xff]  }
 0xf10   : > { %16320 = vmatpush1.bf16.msra.mxu0 %v24172_v34  ;;  %16157 = vmatprep.subr.bf16.mxu1 %v24177_v28  ;;  %v24253_v34 = vld [vmem:[#allocation14 + $0x25e0] ss:$16 sps:$4 sm:$0xff]   ;;  %v24256_v28 = vld [vmem:[#allocation14 + $0x25e8] ss:$16 sps:$4 sm:$0xff]  }
 0xf11   : > { %16321 = vmatprep.subr.bf16.mxu0 %v24180_v25  ;;  %v24261_v25 = vld [vmem:[#allocation14 + $0x2604] ss:$16 sps:$4 sm:$0xff]  }
 0xf13   : > { %16158 = vmatpush1.bf16.msra.mxu1 %v24175_v11  ;;  %v24264_v11 = vld [vmem:[#allocation14 + $0x260c] ss:$16 sps:$4 sm:$0xff]  }
 0xf14   : > { %16322 = vmatpush1.bf16.msra.mxu0 %v24178_v45  ;;  %16159 = vmatprep.subr.bf16.mxu1 %v24183_v37  ;;  %v24259_v45 = vld [vmem:[#allocation14 + $0x2600] ss:$16 sps:$4 sm:$0xff]   ;;  %v14779_v37 = vrot.slane %v27078_v5, 2 }
 0xf15   : > { %16323 = vmatprep.subr.bf16.mxu0 %v24186_v53  ;;  %v24262_v53 = vld [vmem:[#allocation14 + $0x2608] ss:$16 sps:$4 sm:$0xff]   ;;  %v24271_v5 = vld [vmem:[#allocation14 + $0x2640] ss:$16 sps:$4 sm:$0xff]  }
 0xf17   : > { %16160 = vmatpush1.bf16.msra.mxu1 %v24181_v46  ;;  %v24267_v46 = vld [vmem:[#allocation14 + $0x2624] ss:$16 sps:$4 sm:$0xff]  }
 0xf18   : > { %16324 = vmatpush1.bf16.msra.mxu0 %v24184_v18  ;;  %16161 = vmatprep.subr.bf16.mxu1 %v24189_v26  ;;  %v14782_v18 = vrot.slane %v27082_v9, 2  ;;  %v24270_v26 = vld [vmem:[#allocation14 + $0x262c] ss:$16 sps:$4 sm:$0xff]  }
 0xf19   : > { %16325 = vmatprep.subr.bf16.mxu0 %v24192_v27  ;;  %v24265_v27 = vld [vmem:[#allocation14 + $0x2620] ss:$16 sps:$4 sm:$0xff]   ;;  %v24282_v9 = vld [vmem:[#allocation14 + $0x266c] ss:$16 sps:$4 sm:$0xff]  }
 0xf1b   : > { %16162 = vmatpush1.bf16.msra.mxu1 %v24187_v30  ;;  %v24268_v30 = vld [vmem:[#allocation14 + $0x2628] ss:$16 sps:$4 sm:$0xff]  }
 0xf1c   : > { %16326 = vmatpush1.bf16.msra.mxu0 %v24190_v23  ;;  %16163 = vmatprep.subr.bf16.mxu1 %v24195_v40  ;;  %v24273_v23 = vld [vmem:[#allocation14 + $0x2644] ss:$16 sps:$4 sm:$0xff]   ;;  %v24276_v40 = vld [vmem:[#allocation14 + $0x264c] ss:$16 sps:$4 sm:$0xff]  }
 0xf1d   : > { %16327 = vmatprep.subr.bf16.mxu0 %v24198_v42  ;;  %v24274_v42 = vld [vmem:[#allocation14 + $0x2648] ss:$16 sps:$4 sm:$0xff]  }
 0xf1f   : > { %16164 = vmatpush1.bf16.msra.mxu1 %v24193_v43  ;;  %v24279_v43 = vld [vmem:[#allocation14 + $0x2664] ss:$16 sps:$4 sm:$0xff]  }
 0xf20   : > { %16328 = vmatpush1.bf16.msra.mxu0 %v24196_v0  ;;  %16165 = vmatprep.subr.bf16.mxu1 %v24201_v7  ;;  %v24277_v0 = vld [vmem:[#allocation14 + $0x2660] ss:$16 sps:$4 sm:$0xff]   ;;  %v24280_v7 = vld [vmem:[#allocation14 + $0x2668] ss:$16 sps:$4 sm:$0xff]  }
 0xf21   : > { %16329 = vmatprep.subr.bf16.mxu0 %v24204_v47  ;;  %v24285_v47 = vld [vmem:[#allocation14 + $0x2684] ss:$16 sps:$4 sm:$0xff]  }
 0xf23   : > { %16166 = vmatpush1.bf16.msra.mxu1 %v24199_v24  ;;  %v24288_v24 = vld [vmem:[#allocation14 + $0x268c] ss:$16 sps:$4 sm:$0xff]  }
 0xf24   : > { %16330 = vmatpush1.bf16.msra.mxu0 %v24202_v19  ;;  %16167 = vmatprep.subr.bf16.mxu1 %v24207_v29  ;;  %v24283_v19 = vld [vmem:[#allocation14 + $0x2680] ss:$16 sps:$4 sm:$0xff]   ;;  %v24286_v29 = vld [vmem:[#allocation14 + $0x2688] ss:$16 sps:$4 sm:$0xff]  }
 0xf25   : > { %16331 = vmatprep.subr.bf16.mxu0 %v24210_v58  ;;  %v24291_v58 = vld [vmem:[#allocation14 + $0x26a4] ss:$16 sps:$4 sm:$0xff]  }
 0xf27   : > { %16168 = vmatpush1.bf16.msra.mxu1 %v24205_v54  ;;  %v24294_v54 = vld [vmem:[#allocation14 + $0x26ac] ss:$16 sps:$4 sm:$0xff]  }
 0xf28   : > { %16332 = vmatpush1.bf16.msra.mxu0 %v24208_v6  ;;  %16169 = vmatprep.subr.bf16.mxu1 %v24213_v31  ;;  %v24289_v6 = vld [vmem:[#allocation14 + $0x26a0] ss:$16 sps:$4 sm:$0xff]   ;;  %v24292_v31 = vld [vmem:[#allocation14 + $0x26a8] ss:$16 sps:$4 sm:$0xff]  }
 0xf29   : > { %16333 = vmatprep.subr.bf16.mxu0 %v24216_v55  ;;  %v24297_v55 = vld [vmem:[#allocation14 + $0x26c4] ss:$16 sps:$4 sm:$0xff]  }
 0xf2b   : > { %16170 = vmatpush1.bf16.msra.mxu1 %v24211_v56  ;;  %v24300_v56 = vld [vmem:[#allocation14 + $0x26cc] ss:$16 sps:$4 sm:$0xff]  }
 0xf2c   : > { %16334 = vmatpush1.bf16.msra.mxu0 %v24214_v57  ;;  %16171 = vmatprep.subr.bf16.mxu1 %v24219_v59  ;;  %v24295_v57 = vld [vmem:[#allocation14 + $0x26c0] ss:$16 sps:$4 sm:$0xff]   ;;  %v24298_v59 = vld [vmem:[#allocation14 + $0x26c8] ss:$16 sps:$4 sm:$0xff]  }
 0xf2d   : > { %16335 = vmatprep.subr.bf16.mxu0 %v24222_v21  ;;  %v24303_v21 = vld [vmem:[#allocation14 + $0x26e4] ss:$16 sps:$4 sm:$0xff]  }
 0xf2f   : > { %16172 = vmatpush1.bf16.msra.mxu1 %v24217_v48  ;;  %v24306_v48 = vld [vmem:[#allocation14 + $0x26ec] ss:$16 sps:$4 sm:$0xff]  }
 0xf30   : > { %16336 = vmatpush1.bf16.msra.mxu0 %v24220_v52  ;;  %16173 = vmatprep.subr.bf16.mxu1 %v24225_v16  ;;  %v24301_v52 = vld [vmem:[#allocation14 + $0x26e0] ss:$16 sps:$4 sm:$0xff]   ;;  %v24304_v16 = vld [vmem:[#allocation14 + $0x26e8] ss:$16 sps:$4 sm:$0xff]  }
 0xf31   : > { %16337 = vmatprep.subr.bf16.mxu0 %v24228_v61  ;;  %v24309_v61 = vld [vmem:[#allocation14 + $0x2704] ss:$16 sps:$4 sm:$0xff]  }
 0xf33   : > { %16174 = vmatpush1.bf16.msra.mxu1 %v24223_v62  ;;  %v24312_v62 = vld [vmem:[#allocation14 + $0x270c] ss:$16 sps:$4 sm:$0xff]  }
 0xf34   : > { %16338 = vmatpush1.bf16.msra.mxu0 %v24226_v63  ;;  %16175 = vmatprep.subr.bf16.mxu1 %v24231_v1  ;;  %v24307_v63 = vld [vmem:[#allocation14 + $0x2700] ss:$16 sps:$4 sm:$0xff]   ;;  %v24310_v1 = vld [vmem:[#allocation14 + $0x2708] ss:$16 sps:$4 sm:$0xff]  }
 0xf35   : > { %16339 = vmatprep.subr.bf16.mxu0 %v24234_v2  ;;  %v24315_v2 = vld [vmem:[#allocation14 + $0x2724] ss:$16 sps:$4 sm:$0xff]  }
 0xf37   : > { %16176 = vmatpush1.bf16.msra.mxu1 %v24229_v4  ;;  %v24318_v4 = vld [vmem:[#allocation14 + $0x272c] ss:$16 sps:$4 sm:$0xff]  }
 0xf38   : > { %16340 = vmatpush1.bf16.msra.mxu0 %v24232_v3  ;;  %16177 = vmatprep.subr.bf16.mxu1 %v24237_v8  ;;  %v24313_v3 = vld [vmem:[#allocation14 + $0x2720] ss:$16 sps:$4 sm:$0xff]   ;;  %v24316_v8 = vld [vmem:[#allocation14 + $0x2728] ss:$16 sps:$4 sm:$0xff]  }
 0xf39   : > { %16341 = vmatprep.subr.bf16.mxu0 %v24240_v12  ;;  %v24321_v12 = vld [vmem:[#allocation14 + $0x2744] ss:$16 sps:$4 sm:$0xff]  }
 0xf3b   : > { %16178 = vmatpush1.bf16.msra.mxu1 %v24235_v10  ;;  %v24324_v10 = vld [vmem:[#allocation14 + $0x274c] ss:$16 sps:$4 sm:$0xff]  }
 0xf3c   : > { %16342 = vmatpush1.bf16.msra.mxu0 %v24238_v15  ;;  %16179 = vmatprep.subr.bf16.mxu1 %v24243_v17  ;;  %v24319_v15 = vld [vmem:[#allocation14 + $0x2740] ss:$16 sps:$4 sm:$0xff]   ;;  %v24322_v17 = vld [vmem:[#allocation14 + $0x2748] ss:$16 sps:$4 sm:$0xff]  }
 0xf3d   : > { %16343 = vmatprep.subr.bf16.mxu0 %v24246_v49  ;;  %v24327_v49 = vld [vmem:[#allocation14 + $0x2764] ss:$16 sps:$4 sm:$0xff]  }
 0xf3f   : > { %16180 = vmatpush1.bf16.msra.mxu1 %v24241_v13  ;;  %v24330_v13 = vld [vmem:[#allocation14 + $0x276c] ss:$16 sps:$4 sm:$0xff]  }
 0xf40   : > { %16344 = vmatpush1.bf16.msra.mxu0 %v24244_v20  ;;  %16181 = vmatprep.subr.bf16.mxu1 %v24249_v44  ;;  %v24325_v20 = vld [vmem:[#allocation14 + $0x2760] ss:$16 sps:$4 sm:$0xff]   ;;  %v24328_v44 = vld [vmem:[#allocation14 + $0x2768] ss:$16 sps:$4 sm:$0xff]  }
 0xf41   : > { %16345 = vmatprep.subr.bf16.mxu0 %v24252_v51  ;;  %v24333_v51 = vld [vmem:[#allocation14 + $0x2784] ss:$16 sps:$4 sm:$0xff]  }
 0xf43   : > { %16182 = vmatpush1.bf16.msra.mxu1 %v24247_v22  ;;  %v24336_v22 = vld [vmem:[#allocation14 + $0x278c] ss:$16 sps:$4 sm:$0xff]  }
 0xf44   : > { %16346 = vmatpush1.bf16.msra.mxu0 %v24250_v14  ;;  %16183 = vmatprep.subr.bf16.mxu1 %v24255_v60  ;;  %v24331_v14 = vld [vmem:[#allocation14 + $0x2780] ss:$16 sps:$4 sm:$0xff]   ;;  %v24334_v60 = vld [vmem:[#allocation14 + $0x2788] ss:$16 sps:$4 sm:$0xff]  }
 0xf45   : > { %16347 = vmatprep.subr.bf16.mxu0 %v24258_v50  ;;  %v24339_v50 = vld [vmem:[#allocation14 + $0x27a4] ss:$16 sps:$4 sm:$0xff]  }
 0xf47   : > { %16184 = vmatpush1.bf16.msra.mxu1 %v24253_v34  ;;  %v24342_v34 = vld [vmem:[#allocation14 + $0x27ac] ss:$16 sps:$4 sm:$0xff]  }
 0xf48   : > { %16348 = vmatpush1.bf16.msra.mxu0 %v24256_v28  ;;  %16194 = vmatprep.subr.bf16.mxu1 %v24261_v25  ;;  %v24337_v28 = vld [vmem:[#allocation14 + $0x27a0] ss:$16 sps:$4 sm:$0xff]   ;;  %v24340_v25 = vld [vmem:[#allocation14 + $0x27a8] ss:$16 sps:$4 sm:$0xff]  }
 0xf49   : > { %16358 = vmatprep.subr.bf16.mxu0 %v24264_v11  ;;  %v24345_v11 = vld [vmem:[#allocation14 + $0x27c4] ss:$16 sps:$4 sm:$0xff]  }
 0xf4a   : > { %16186 = vmatmul.mubr.bf16.vlgmr.msra.gmra.mrb[20].mxu1 %v14779_v37 }
 0xf4b   : > { %16350 = vmatmul.mubr.bf16.vlgmr.msra.gmra.mrb[24].mxu0 %v14779_v37  ;;  %16195 = vmatpush1.bf16.msra.mxu1 %v24259_v45  ;;  %v24348_v45 = vld [vmem:[#allocation14 + $0x27cc] ss:$16 sps:$4 sm:$0xff]   ;;  %v24343_v37 = vld [vmem:[#allocation14 + $0x27c0] ss:$16 sps:$4 sm:$0xff]  }
 0xf4c   : > { %16226 = vmatprep.mubr.bf16.mxu1 %v14782_v18  ;;  %16359 = vmatpush1.bf16.msra.mxu0 %v24262_v53  ;;  %v24346_v53 = vld [vmem:[#allocation14 + $0x27c8] ss:$16 sps:$4 sm:$0xff]  }
 0xf4d   : > { %16390 = vmatprep.mubr.bf16.mxu0 %v14782_v18  ;;  %16196 = vmatprep.subr.bf16.mxu1 %v24267_v46  ;;  %v24351_v46 = vld [vmem:[#allocation14 + $0x27e4] ss:$16 sps:$4 sm:$0xff]   ;;  %v24354_v18 = vld [vmem:[#allocation14 + $0x27ec] ss:$16 sps:$4 sm:$0xff]  }
 0xf4e   : > { %16360 = vmatprep.subr.bf16.mxu0 %v24270_v26  ;;  %v24349_v26 = vld [vmem:[#allocation14 + $0x27e0] ss:$16 sps:$4 sm:$0xff]  }
 0xf4f   : > { %16197 = vmatpush1.bf16.msra.mxu1 %v24265_v27  ;;  %v24352_v27 = vld [vmem:[#allocation14 + $0x27e8] ss:$16 sps:$4 sm:$0xff]  }
 0xf50   : > { %16361 = vmatpush1.bf16.msra.mxu0 %v24268_v30  ;;  %16198 = vmatprep.subr.bf16.mxu1 %v24273_v23  ;;  %v14781_v30 = vrot.slane %v27096_v41, 2  ;;  %v25400_v23 = vmov 1966171168  }
 0xf51   : > { %16362 = vmatprep.subr.bf16.mxu0 %v24276_v40  ;;  %v16411_v40 = vunpack.c.l.s4 %v25400_v23  ;;  %v24417_v23 = vld [vmem:[#allocation17 + $0x144] ss:$16 sps:$4 sm:$0xff] (!%p19421_p1)  }
 0xf53   : > { %16199 = vmatpush1.bf16.msra.mxu1 %v24271_v5  ;;  %v16412_v5 = vunpack.c.0.s8 %v16411_v40  ;;  %v24419_v40 = vld [vmem:[#allocation17 + $0x14c] ss:$16 sps:$4 sm:$0xff] (!%p19421_p1)  }
 0xf54   : > { %16363 = vmatpush1.bf16.msra.mxu0 %v24274_v42  ;;  %16200 = vmatprep.subr.bf16.mxu1 %v24279_v43 }
 0xf55   : > { %16364 = vmatprep.subr.bf16.mxu0 %v24282_v9  ;;  %v16415_v43 = vsub.s32 %v16412_v5, %v26304_v33  ;;  %v24357_v33 = vld [vmem:[#allocation17 + $0x4] ss:$16 sps:$4 sm:$0xff] (!%p19421_p1)   ;;  %v24421_v5 = vld [vmem:[#allocation17 + $0x140] ss:$16 sps:$4 sm:$0xff] (!%p19421_p1)  }
 0xf57   : > { %16201 = vmatpush1.bf16.msra.mxu1 %v24277_v0 }
 0xf58   : > { %16365 = vmatpush1.bf16.msra.mxu0 %v24280_v7  ;;  %16202 = vmatprep.subr.bf16.mxu1 %v24285_v47 }
 0xf59   : > { %16366 = vmatprep.subr.bf16.mxu0 %v24288_v24 }
 0xf5b   : > { %16203 = vmatpush1.bf16.msra.mxu1 %v24283_v19 }
 0xf5c   : > { %16367 = vmatpush1.bf16.msra.mxu0 %v24286_v29  ;;  %16204 = vmatprep.subr.bf16.mxu1 %v24291_v58 }
 0xf5d   : > { %16368 = vmatprep.subr.bf16.mxu0 %v24294_v54 }
 0xf5f   : > { %16205 = vmatpush1.bf16.msra.mxu1 %v24289_v6 }
 0xf60   : > { %16369 = vmatpush1.bf16.msra.mxu0 %v24292_v31  ;;  %16206 = vmatprep.subr.bf16.mxu1 %v24297_v55  ;;  %v16403_v55 = vld [vmem:[#allocation2] sm:$0xf] }
 0xf61   : > { %16370 = vmatprep.subr.bf16.mxu0 %v24300_v56 }
 0xf63   : > { %16207 = vmatpush1.bf16.msra.mxu1 %v24295_v57 }
 0xf64   : > { %16371 = vmatpush1.bf16.msra.mxu0 %v24298_v59  ;;  %16208 = vmatprep.subr.bf16.mxu1 %v24303_v21  ;;  %v24359_v59 = vld [vmem:[#allocation17 + $0xc] ss:$16 sps:$4 sm:$0xff] (!%p19421_p1)   ;;  %v24361_v21 = vld [vmem:[#allocation17] ss:$16 sps:$4 sm:$0xff] (!%p19421_p1)  }
 0xf65   : > { %16372 = vmatprep.subr.bf16.mxu0 %v24306_v48  ;;  %v24362_v48 = vld [vmem:[#allocation17 + $0x8] ss:$16 sps:$4 sm:$0xff] (!%p19421_p1)  }
 0xf67   : > { %16209 = vmatpush1.bf16.msra.mxu1 %v24301_v52  ;;  %v24363_v52 = vld [vmem:[#allocation17 + $0x24] ss:$16 sps:$4 sm:$0xff] (!%p19421_p1)  }
 0xf68   : > { %16373 = vmatpush1.bf16.msra.mxu0 %v24304_v16  ;;  %16210 = vmatprep.subr.bf16.mxu1 %v24309_v61  ;;  %v24365_v16 = vld [vmem:[#allocation17 + $0x2c] ss:$16 sps:$4 sm:$0xff] (!%p19421_p1)   ;;  %v24367_v61 = vld [vmem:[#allocation17 + $0x20] ss:$16 sps:$4 sm:$0xff] (!%p19421_p1)  }
 0xf69   : > { %16374 = vmatprep.subr.bf16.mxu0 %v24312_v62  ;;  %v24368_v62 = vld [vmem:[#allocation17 + $0x28] ss:$16 sps:$4 sm:$0xff] (!%p19421_p1)  }
 0xf6b   : > { %16211 = vmatpush1.bf16.msra.mxu1 %v24307_v63  ;;  %v24371_v63 = vld [vmem:[#allocation17 + $0x4c] ss:$16 sps:$4 sm:$0xff] (!%p19421_p1)  }
 0xf6c   : > { %16375 = vmatpush1.bf16.msra.mxu0 %v24310_v1  ;;  %16212 = vmatprep.subr.bf16.mxu1 %v24315_v2  ;;  %v24373_v1 = vld [vmem:[#allocation17 + $0x40] ss:$16 sps:$4 sm:$0xff] (!%p19421_p1)   ;;  %v24374_v2 = vld [vmem:[#allocation17 + $0x48] ss:$16 sps:$4 sm:$0xff] (!%p19421_p1)  }
 0xf6d   : > { %16376 = vmatprep.subr.bf16.mxu0 %v24318_v4  ;;  %v24375_v4 = vld [vmem:[#allocation17 + $0x64] ss:$16 sps:$4 sm:$0xff] (!%p19421_p1)  }
 0xf6f   : > { %16213 = vmatpush1.bf16.msra.mxu1 %v24313_v3  ;;  %v24377_v3 = vld [vmem:[#allocation17 + $0x6c] ss:$16 sps:$4 sm:$0xff] (!%p19421_p1)  }
 0xf70   : > { %16377 = vmatpush1.bf16.msra.mxu0 %v24316_v8  ;;  %16214 = vmatprep.subr.bf16.mxu1 %v24321_v12  ;;  %v24379_v8 = vld [vmem:[#allocation17 + $0x60] ss:$16 sps:$4 sm:$0xff] (!%p19421_p1)   ;;  %v24380_v12 = vld [vmem:[#allocation17 + $0x68] ss:$16 sps:$4 sm:$0xff] (!%p19421_p1)  }
 0xf71   : > { %16378 = vmatprep.subr.bf16.mxu0 %v24324_v10  ;;  %v24381_v10 = vld [vmem:[#allocation17 + $0x84] ss:$16 sps:$4 sm:$0xff] (!%p19421_p1)  }
 0xf73   : > { %16215 = vmatpush1.bf16.msra.mxu1 %v24319_v15  ;;  %v24383_v15 = vld [vmem:[#allocation17 + $0x8c] ss:$16 sps:$4 sm:$0xff] (!%p19421_p1)  }
 0xf74   : > { %16379 = vmatpush1.bf16.msra.mxu0 %v24322_v17  ;;  %16216 = vmatprep.subr.bf16.mxu1 %v24327_v49  ;;  %v24385_v17 = vld [vmem:[#allocation17 + $0x80] ss:$16 sps:$4 sm:$0xff] (!%p19421_p1)   ;;  %v24386_v49 = vld [vmem:[#allocation17 + $0x88] ss:$16 sps:$4 sm:$0xff] (!%p19421_p1)  }
 0xf75   : > { %16380 = vmatprep.subr.bf16.mxu0 %v24330_v13  ;;  %v24387_v13 = vld [vmem:[#allocation17 + $0xa4] ss:$16 sps:$4 sm:$0xff] (!%p19421_p1)  }
 0xf77   : > { %16217 = vmatpush1.bf16.msra.mxu1 %v24325_v20  ;;  %v24389_v20 = vld [vmem:[#allocation17 + $0xac] ss:$16 sps:$4 sm:$0xff] (!%p19421_p1)  }
 0xf78   : > { %16381 = vmatpush1.bf16.msra.mxu0 %v24328_v44  ;;  %16218 = vmatprep.subr.bf16.mxu1 %v24333_v51  ;;  %v24391_v44 = vld [vmem:[#allocation17 + $0xa0] ss:$16 sps:$4 sm:$0xff] (!%p19421_p1)   ;;  %v24392_v51 = vld [vmem:[#allocation17 + $0xa8] ss:$16 sps:$4 sm:$0xff] (!%p19421_p1)  }
 0xf79   : > { %16382 = vmatprep.subr.bf16.mxu0 %v24336_v22  ;;  %v24393_v22 = vld [vmem:[#allocation17 + $0xc4] ss:$16 sps:$4 sm:$0xff] (!%p19421_p1)  }
 0xf7b   : > { %16219 = vmatpush1.bf16.msra.mxu1 %v24331_v14  ;;  %v24395_v14 = vld [vmem:[#allocation17 + $0xcc] ss:$16 sps:$4 sm:$0xff] (!%p19421_p1)  }
 0xf7c   : > { %16383 = vmatpush1.bf16.msra.mxu0 %v24334_v60  ;;  %16220 = vmatprep.subr.bf16.mxu1 %v24339_v50  ;;  %v24397_v60 = vld [vmem:[#allocation17 + $0xc0] ss:$16 sps:$4 sm:$0xff] (!%p19421_p1)   ;;  %v24398_v50 = vld [vmem:[#allocation17 + $0xc8] ss:$16 sps:$4 sm:$0xff] (!%p19421_p1)  }
 0xf7d   : > { %16384 = vmatprep.subr.bf16.mxu0 %v24342_v34  ;;  %v24399_v34 = vld [vmem:[#allocation17 + $0xe4] ss:$16 sps:$4 sm:$0xff] (!%p19421_p1)  }
 0xf7f   : > { %16221 = vmatpush1.bf16.msra.mxu1 %v24337_v28  ;;  %v24401_v28 = vld [vmem:[#allocation17 + $0xec] ss:$16 sps:$4 sm:$0xff] (!%p19421_p1)  }
 0xf80   : > { %16385 = vmatpush1.bf16.msra.mxu0 %v24340_v25  ;;  %16222 = vmatprep.subr.bf16.mxu1 %v24345_v11  ;;  %v24403_v25 = vld [vmem:[#allocation17 + $0xe0] ss:$16 sps:$4 sm:$0xff] (!%p19421_p1)   ;;  %v24404_v11 = vld [vmem:[#allocation17 + $0xe8] ss:$16 sps:$4 sm:$0xff] (!%p19421_p1)  }
 0xf81   : > { %16386 = vmatprep.subr.bf16.mxu0 %v24348_v45  ;;  %v24405_v45 = vld [vmem:[#allocation17 + $0x104] ss:$16 sps:$4 sm:$0xff] (!%p19421_p1)  }
 0xf83   : > { %16223 = vmatpush1.bf16.msra.mxu1 %v24343_v37  ;;  %v24407_v37 = vld [vmem:[#allocation17 + $0x10c] ss:$16 sps:$4 sm:$0xff] (!%p19421_p1)  }
 0xf84   : > { %16387 = vmatpush1.bf16.msra.mxu0 %v24346_v53  ;;  %16224 = vmatprep.subr.bf16.mxu1 %v24351_v46  ;;  %v24409_v53 = vld [vmem:[#allocation17 + $0x100] ss:$16 sps:$4 sm:$0xff] (!%p19421_p1)   ;;  %v24410_v46 = vld [vmem:[#allocation17 + $0x108] ss:$16 sps:$4 sm:$0xff] (!%p19421_p1)  }
 0xf85   : > { %16388 = vmatprep.subr.bf16.mxu0 %v24354_v18  ;;  %v24411_v18 = vld [vmem:[#allocation17 + $0x124] ss:$16 sps:$4 sm:$0xff] (!%p19421_p1)  }
 0xf87   : > { %16225 = vmatpush1.bf16.msra.mxu1 %v24349_v26  ;;  %v24413_v26 = vld [vmem:[#allocation17 + $0x12c] ss:$16 sps:$4 sm:$0xff] (!%p19421_p1)  }
 0xf88   : > { %16389 = vmatpush1.bf16.msra.mxu0 %v24352_v27  ;;  %17343 = vmatprep.subr.bf16.mxu1 (!%p19421_p1), %v24359_v59  ;;  %v24415_v27 = vld [vmem:[#allocation17 + $0x120] ss:$16 sps:$4 sm:$0xff] (!%p19421_p1)   ;;  %v24440_v59 = vld [vmem:[#allocation17 + $0x1a8] ss:$16 sps:$4 sm:$0xff] (!%p19421_p1)  }
 0xf89   : > { %17261 = vmatprep.subr.bf16.mxu0 (!%p19421_p1), %v24357_v33  ;;  %v24439_v33 = vld [vmem:[#allocation17 + $0x1a0] ss:$16 sps:$4 sm:$0xff] (!%p19421_p1)  }
 0xf8a   : > { %16227 = vmatmul.mubr.bf16.vlgmr.msra.gmra.mrb[20].mxu1 %v14781_v30 }
 0xf8b   : > { %16391 = vmatmul.mubr.bf16.vlgmr.msra.gmra.mrb[24].mxu0 %v14781_v30  ;;  %17344 = vmatpush1.bf16.msra.mxu1 (!%p19421_p1), %v24362_v48  ;;  %v24416_v30 = vld [vmem:[#allocation17 + $0x128] ss:$16 sps:$4 sm:$0xff] (!%p19421_p1)   ;;  %v24443_v48 = vld [vmem:[#allocation17 + $0x1cc] ss:$16 sps:$4 sm:$0xff] (!%p19421_p1)  }
 0xf8c   : > { %17262 = vmatpush1.bf16.msra.mxu0 (!%p19421_p1), %v24361_v21  ;;  %17345 = vmatprep.subr.bf16.mxu1 (!%p19421_p1), %v24365_v16  ;;  %v24441_v21 = vld [vmem:[#allocation17 + $0x1c4] ss:$16 sps:$4 sm:$0xff] (!%p19421_p1)   ;;  %v24446_v16 = vld [vmem:[#allocation17 + $0x1c8] ss:$16 sps:$4 sm:$0xff] (!%p19421_p1)  }
 0xf8d   : > { %17263 = vmatprep.subr.bf16.mxu0 (!%p19421_p1), %v24363_v52  ;;  %v24445_v52 = vld [vmem:[#allocation17 + $0x1c0] ss:$16 sps:$4 sm:$0xff] (!%p19421_p1)  }
 0xf8f   : > { %17346 = vmatpush1.bf16.msra.mxu1 (!%p19421_p1), %v24368_v62  ;;  %v24449_v62 = vld [vmem:[#allocation17 + $0x1ec] ss:$16 sps:$4 sm:$0xff] (!%p19421_p1)  }
 0xf90   : > { %17264 = vmatpush1.bf16.msra.mxu0 (!%p19421_p1), %v24367_v61  ;;  %17347 = vmatprep.subr.bf16.mxu1 (!%p19421_p1), %v24371_v63  ;;  %v24447_v61 = vld [vmem:[#allocation17 + $0x1e4] ss:$16 sps:$4 sm:$0xff] (!%p19421_p1)   ;;  %v24451_v63 = vld [vmem:[#allocation17 + $0x1e0] ss:$16 sps:$4 sm:$0xff] (!%p19421_p1)  }
 0xf91   : > { %17265 = vmatprep.subr.bf16.mxu0 (!%p19421_p1), %v24369_v32 }
 0xf93   : > { %17348 = vmatpush1.bf16.msra.mxu1 (!%p19421_p1), %v24374_v2  ;;  %v24455_v2 = vld [vmem:[#allocation17 + $0x204] ss:$16 sps:$4 sm:$0xff] (!%p19421_p1)  }
 0xf94   : > { %17266 = vmatpush1.bf16.msra.mxu0 (!%p19421_p1), %v24373_v1  ;;  %17349 = vmatprep.subr.bf16.mxu1 (!%p19421_p1), %v24377_v3  ;;  %v24452_v1 = vld [vmem:[#allocation17 + $0x1e8] ss:$16 sps:$4 sm:$0xff] (!%p19421_p1)  }
 0xf95   : > { %17267 = vmatprep.subr.bf16.mxu0 (!%p19421_p1), %v24375_v4  ;;  %v24458_v4 = vld [vmem:[#allocation17 + $0x20c] ss:$16 sps:$4 sm:$0xff] (!%p19421_p1)  }
 0xf97   : > { %17350 = vmatpush1.bf16.msra.mxu1 (!%p19421_p1), %v24380_v12  ;;  %v24453_v12 = vld [vmem:[#allocation17 + $0x200] ss:$16 sps:$4 sm:$0xff] (!%p19421_p1)  }
 0xf98   : > { %17268 = vmatpush1.bf16.msra.mxu0 (!%p19421_p1), %v24379_v8  ;;  %17351 = vmatprep.subr.bf16.mxu1 (!%p19421_p1), %v24383_v15  ;;  %v24461_v15 = vld [vmem:[#allocation17 + $0x224] ss:$16 sps:$4 sm:$0xff] (!%p19421_p1)  }
 0xf99   : > { %17269 = vmatprep.subr.bf16.mxu0 (!%p19421_p1), %v24381_v10  ;;  %v24456_v10 = vld [vmem:[#allocation17 + $0x208] ss:$16 sps:$4 sm:$0xff] (!%p19421_p1)  }
 0xf9b   : > { %17352 = vmatpush1.bf16.msra.mxu1 (!%p19421_p1), %v24386_v49 }
 0xf9c   : > { %17270 = vmatpush1.bf16.msra.mxu0 (!%p19421_p1), %v24385_v17  ;;  %17353 = vmatprep.subr.bf16.mxu1 (!%p19421_p1), %v24389_v20  ;;  %v24464_v17 = vld [vmem:[#allocation17 + $0x22c] ss:$16 sps:$4 sm:$0xff] (!%p19421_p1)   ;;  %v24462_v20 = vld [vmem:[#allocation17 + $0x228] ss:$16 sps:$4 sm:$0xff] (!%p19421_p1)  }
 0xf9d   : > { %17271 = vmatprep.subr.bf16.mxu0 (!%p19421_p1), %v24387_v13  ;;  %v24459_v13 = vld [vmem:[#allocation17 + $0x220] ss:$16 sps:$4 sm:$0xff] (!%p19421_p1)  }
 0xf9f   : > { %17354 = vmatpush1.bf16.msra.mxu1 (!%p19421_p1), %v24392_v51  ;;  %v24470_v51 = vld [vmem:[#allocation17 + $0x24c] ss:$16 sps:$4 sm:$0xff] (!%p19421_p1)  }
 0xfa0   : > { %17272 = vmatpush1.bf16.msra.mxu0 (!%p19421_p1), %v24391_v44  ;;  %17355 = vmatprep.subr.bf16.mxu1 (!%p19421_p1), %v24395_v14  ;;  %v24467_v44 = vld [vmem:[#allocation17 + $0x244] ss:$16 sps:$4 sm:$0xff] (!%p19421_p1)   ;;  %v24468_v14 = vld [vmem:[#allocation17 + $0x248] ss:$16 sps:$4 sm:$0xff] (!%p19421_p1)  }
 0xfa1   : > { %17273 = vmatprep.subr.bf16.mxu0 (!%p19421_p1), %v24393_v22  ;;  %v24465_v22 = vld [vmem:[#allocation17 + $0x240] ss:$16 sps:$4 sm:$0xff] (!%p19421_p1)  }
 0xfa3   : > { %17356 = vmatpush1.bf16.msra.mxu1 (!%p19421_p1), %v24398_v50  ;;  %v24476_v50 = vld [vmem:[#allocation17 + $0x26c] ss:$16 sps:$4 sm:$0xff] (!%p19421_p1)  }
 0xfa4   : > { %17274 = vmatpush1.bf16.msra.mxu0 (!%p19421_p1), %v24397_v60  ;;  %17357 = vmatprep.subr.bf16.mxu1 (!%p19421_p1), %v24401_v28  ;;  %v24473_v60 = vld [vmem:[#allocation17 + $0x264] ss:$16 sps:$4 sm:$0xff] (!%p19421_p1)   ;;  %v24474_v28 = vld [vmem:[#allocation17 + $0x268] ss:$16 sps:$4 sm:$0xff] (!%p19421_p1)  }
 0xfa5   : > { %17275 = vmatprep.subr.bf16.mxu0 (!%p19421_p1), %v24399_v34  ;;  %v24471_v34 = vld [vmem:[#allocation17 + $0x260] ss:$16 sps:$4 sm:$0xff] (!%p19421_p1)  }
 0xfa7   : > { %17358 = vmatpush1.bf16.msra.mxu1 (!%p19421_p1), %v24404_v11  ;;  %v24482_v11 = vld [vmem:[#allocation17 + $0x28c] ss:$16 sps:$4 sm:$0xff] (!%p19421_p1)  }
 0xfa8   : > { %17276 = vmatpush1.bf16.msra.mxu0 (!%p19421_p1), %v24403_v25  ;;  %17359 = vmatprep.subr.bf16.mxu1 (!%p19421_p1), %v24407_v37  ;;  %v24479_v25 = vld [vmem:[#allocation17 + $0x284] ss:$16 sps:$4 sm:$0xff] (!%p19421_p1)   ;;  %v24480_v37 = vld [vmem:[#allocation17 + $0x288] ss:$16 sps:$4 sm:$0xff] (!%p19421_p1)  }
 0xfa9   : > { %17277 = vmatprep.subr.bf16.mxu0 (!%p19421_p1), %v24405_v45  ;;  %v24477_v45 = vld [vmem:[#allocation17 + $0x280] ss:$16 sps:$4 sm:$0xff] (!%p19421_p1)  }
 0xfab   : > { %17360 = vmatpush1.bf16.msra.mxu1 (!%p19421_p1), %v24410_v46  ;;  %v24488_v46 = vld [vmem:[#allocation17 + $0x2ac] ss:$16 sps:$4 sm:$0xff] (!%p19421_p1)  }
 0xfac   : > { %17278 = vmatpush1.bf16.msra.mxu0 (!%p19421_p1), %v24409_v53  ;;  %17361 = vmatprep.subr.bf16.mxu1 (!%p19421_p1), %v24413_v26  ;;  %v24485_v53 = vld [vmem:[#allocation17 + $0x2a4] ss:$16 sps:$4 sm:$0xff] (!%p19421_p1)   ;;  %v24486_v26 = vld [vmem:[#allocation17 + $0x2a8] ss:$16 sps:$4 sm:$0xff] (!%p19421_p1)  }
 0xfad   : > { %17279 = vmatprep.subr.bf16.mxu0 (!%p19421_p1), %v24411_v18  ;;  %v24483_v18 = vld [vmem:[#allocation17 + $0x2a0] ss:$16 sps:$4 sm:$0xff] (!%p19421_p1)  }
 0xfaf   : > { %17362 = vmatpush1.bf16.msra.mxu1 (!%p19421_p1), %v24416_v30  ;;  %v24494_v30 = vld [vmem:[#allocation17 + $0x2cc] ss:$16 sps:$4 sm:$0xff] (!%p19421_p1)  }
 0xfb0   : > { %17280 = vmatpush1.bf16.msra.mxu0 (!%p19421_p1), %v24415_v27  ;;  %17363 = vmatprep.subr.bf16.mxu1 (!%p19421_p1), %v24419_v40  ;;  %v24491_v27 = vld [vmem:[#allocation17 + $0x2c4] ss:$16 sps:$4 sm:$0xff] (!%p19421_p1)   ;;  %v24492_v40 = vld [vmem:[#allocation17 + $0x2c8] ss:$16 sps:$4 sm:$0xff] (!%p19421_p1)  }
 0xfb1   : > { %17281 = vmatprep.subr.bf16.mxu0 (!%p19421_p1), %v24417_v23  ;;  %v24489_v23 = vld [vmem:[#allocation17 + $0x2c0] ss:$16 sps:$4 sm:$0xff] (!%p19421_p1)  }
 0xfb4   : > { %17282 = vmatpush1.bf16.msra.mxu0 (!%p19421_p1), %v24421_v5  ;;  %v24497_v5 = vld [vmem:[#allocation17 + $0x2e4] ss:$16 sps:$4 sm:$0xff] (!%p19421_p1)  }
0x105d   : > { %v16228_v42 = vpop.f32.mrb[20].mxu1 }
0x105e   : > { %v16392_v9 = vpop.f32.mrb[24].mxu0  ;;  %v16230_v0 = vpop.f32.mrb[21].mxu1 }
0x105f   : > { %v16408_v7 = vcombine.low %v16228_v42, %v16230_v0  ;;  %v16394_v47 = vpop.f32.mrb[25].mxu0  ;;  %v16232_v24 = vpop.f32.mrb[22].mxu1  ;;  %v24422_v42 = vld [vmem:[#allocation17 + $0x148] ss:$16 sps:$4 sm:$0xff] (!%p19421_p1)  }
0x1060   : > { %v16409_v19 = vcombine.low %v16392_v9, %v16394_v47  ;;  %v16396_v29 = vpop.f32.mrb[26].mxu0  ;;  %v16233_v58 = vpop.f32.mrb[23].mxu1  ;;  %v24425_v9 = vld [vmem:[#allocation17 + $0x16c] ss:$16 sps:$4 sm:$0xff] (!%p19421_p1)   ;;  %17364 = vmatpush1.bf16.msra.mxu1 (!%p19421_p1), %v24422_v42  ;;  %v24427_v47 = vld [vmem:[#allocation17 + $0x160] ss:$16 sps:$4 sm:$0xff] (!%p19421_p1)  }
0x1061   : > { %v16416_v54 = vrot.slane %v16408_v7, %v16415_v43  ;;  %v16397_v6 = vpop.f32.mrb[27].mxu0  ;;  %v16443_v7 = vld [vmem:[#allocation15] sm:$0xf] (!%p19421_p1)  ;;  %v24428_v24 = vld [vmem:[#allocation17 + $0x168] ss:$16 sps:$4 sm:$0xff] (!%p19421_p1)   ;;  %17365 = vmatprep.subr.bf16.mxu1 (!%p19421_p1), %v24425_v9 }
0x1062   : > { %v16423_v31 = vrot.slane %v16409_v19, %v16415_v43  ;;  %v24429_v29 = vld [vmem:[#allocation17 + $0x184] ss:$16 sps:$4 sm:$0xff] (!%p19421_p1)   ;;  %v24431_v58 = vld [vmem:[#allocation17 + $0x18c] ss:$16 sps:$4 sm:$0xff] (!%p19421_p1)   ;;  %v24433_v6 = vld [vmem:[#allocation17 + $0x180] ss:$16 sps:$4 sm:$0xff] (!%p19421_p1)  }
0x1063   : > { %v24500_v42 = vld [vmem:[#allocation17 + $0x2ec] ss:$16 sps:$4 sm:$0xff] (!%p19421_p1)   ;;  %v24498_v9 = vld [vmem:[#allocation17 + $0x2e8] ss:$16 sps:$4 sm:$0xff] (!%p19421_p1)  }
0x1064   : > { %v16424_v41 = vcombine.low %v16416_v54, %v16423_v31  ;;  %16441 = sbr.rel (%p19421_p1) target bundleno = 5253 (0x1485), region = 160  ;;  %17366 = vmatpush1.bf16.msra.mxu1 (!%p19421_p1), %v24428_v24  ;;  %v24434_v31 = vld [vmem:[#allocation17 + $0x188] ss:$16 sps:$4 sm:$0xff] (!%p19421_p1)  }
0x1065   : > { %17367 = vmatprep.subr.bf16.mxu1 (!%p19421_p1), %v24431_v58  ;;  %v24504_v24 = vld [vmem:[#allocation17 + $0x308] ss:$16 sps:$4 sm:$0xff] (!%p19421_p1)   ;;  %v24507_v58 = vld [vmem:[#allocation17 + $0x320] ss:$16 sps:$4 sm:$0xff] (!%p19421_p1)  }
0x1066   : > { %v16431_v56 = vrot.slane %v16424_v41, %v16415_v43  ;;  %v24423_v43 = vld [vmem:[#allocation17 + $0x164] ss:$16 sps:$4 sm:$0xff] (!%p19421_p1)  }
0x1067   : > { %17283 = vmatprep.subr.bf16.mxu0 (!%p19421_p1), %v24423_v43  ;;  %v24495_v43 = vld [vmem:[#allocation17 + $0x2e0] ss:$16 sps:$4 sm:$0xff] (!%p19421_p1)  }
0x1068   : > { %v16433_v57 = vadd.f32 %v16431_v56, %v16403_v55  ;;  %17284 = vmatpush1.bf16.msra.mxu0 (!%p19421_p1), %v24427_v47  ;;  %v24435_v55 = vld [vmem:[#allocation17 + $0x1a4] ss:$16 sps:$4 sm:$0xff] (!%p19421_p1)   ;;  %v24437_v56 = vld [vmem:[#allocation17 + $0x1ac] ss:$16 sps:$4 sm:$0xff] (!%p19421_p1)   ;;  %17368 = vmatpush1.bf16.msra.mxu1 (!%p19421_p1), %v24434_v31  ;;  %v24501_v47 = vld [vmem:[#allocation17 + $0x300] ss:$16 sps:$4 sm:$0xff] (!%p19421_p1)  }
0x1069   : > { %17285 = vmatprep.subr.bf16.mxu0 (!%p19421_p1), %v24429_v29  ;;  %17369 = vmatprep.subr.bf16.mxu1 (!%p19421_p1), %v24437_v56  ;;  %v24512_v29 = vld [vmem:[#allocation17 + $0x32c] ss:$16 sps:$4 sm:$0xff] (!%p19421_p1)   ;;  %v24515_v31 = vld [vmem:[#allocation17 + $0x344] ss:$16 sps:$4 sm:$0xff] (!%p19421_p1)   ;;  %v24516_v56 = vld [vmem:[#allocation17 + $0x348] ss:$16 sps:$4 sm:$0xff] (!%p19421_p1)  }
0x106a   : > { %16438 = vst.msk [vmem:[#allocation2] sm:$0xf] %vm16436_vm7, %v16433_v57 }
0x106c   : > { %17286 = vmatpush1.bf16.msra.mxu0 %v24433_v6  ;;  %17370 = vmatpush1.bf16.msra.mxu1 %v24440_v59  ;;  %v24510_v6 = vld [vmem:[#allocation17 + $0x328] ss:$16 sps:$4 sm:$0xff]   ;;  %v24519_v59 = vld [vmem:[#allocation17 + $0x360] ss:$16 sps:$4 sm:$0xff]  }
0x106d   : > { %17287 = vmatprep.subr.bf16.mxu0 %v24435_v55  ;;  %17371 = vmatprep.subr.bf16.mxu1 %v24443_v48  ;;  %v24513_v55 = vld [vmem:[#allocation17 + $0x340] ss:$16 sps:$4 sm:$0xff]   ;;  %v24527_v48 = vld [vmem:[#allocation17 + $0x384] ss:$16 sps:$4 sm:$0xff]  }
0x1070   : > { %17288 = vmatpush1.bf16.msra.mxu0 %v24439_v33  ;;  %17372 = vmatpush1.bf16.msra.mxu1 %v24446_v16  ;;  %v24524_v33 = vld [vmem:[#allocation17 + $0x36c] ss:$16 sps:$4 sm:$0xff]   ;;  %v24525_v16 = vld [vmem:[#allocation17 + $0x380] ss:$16 sps:$4 sm:$0xff]  }
0x1071   : > { %v16442_v0 = vld [vmem:[#allocation2] sm:$0xf]  ;;  %17289 = vmatprep.subr.bf16.mxu0 %v24441_v21  ;;  %17373 = vmatprep.subr.bf16.mxu1 %v24449_v62  ;;  %v24522_v21 = vld [vmem:[#allocation17 + $0x368] ss:$16 sps:$4 sm:$0xff]   ;;  %v24533_v62 = vld [vmem:[#allocation17 + $0x3a4] ss:$16 sps:$4 sm:$0xff]  }
0x1072   : > { %v16444_v19 = vadd.f32 %v16443_v7, %v16442_v0  ;;  %v24503_v0 = vld [vmem:[#allocation17 + $0x304] ss:$16 sps:$4 sm:$0xff]   ;;  %v24506_v7 = vld [vmem:[#allocation17 + $0x30c] ss:$16 sps:$4 sm:$0xff]  }
0x1074   : > { %v27147_v54 = vmax.f32 %v16444_v19, 0.0  ;;  %17290 = vmatpush1.bf16.msra.mxu0 %v24445_v52  ;;  %17374 = vmatpush1.bf16.msra.mxu1 %v24452_v1  ;;  %v24509_v19 = vld [vmem:[#allocation17 + $0x324] ss:$16 sps:$4 sm:$0xff]   ;;  %v24530_v52 = vld [vmem:[#allocation17 + $0x38c] ss:$16 sps:$4 sm:$0xff]  }
0x1075   : > { %17291 = vmatprep.subr.bf16.mxu0 %v24447_v61  ;;  %17384 = vmatprep.subr.bf16.mxu1 %v24458_v4  ;;  %v24528_v61 = vld [vmem:[#allocation17 + $0x388] ss:$16 sps:$4 sm:$0xff]   ;;  %v24542_v4 = vld [vmem:[#allocation17 + $0x3cc] ss:$16 sps:$4 sm:$0xff]  }
0x1076   : > { %v16454_v41 = vrot.slane %v27147_v54, %v26307_v35  ;;  %v16450_v32 = vrot.slane %v27147_v54, %v26317_v39  ;;  %v16462_v3 = vrot.slane %v27147_v54, %v26310_v36  ;;  %v24534_v1 = vld [vmem:[#allocation17 + $0x3a8] ss:$16 sps:$4 sm:$0xff]  }
0x1078   : > { %v16468_v57 = vpack.c.bf16 %v16454_v41, %v16454_v41  ;;  %v16467_v8 = vpack.c.bf16 %v16450_v32, %v16450_v32  ;;  %17292 = vmatpush1.bf16.msra.mxu0 %v24451_v63  ;;  %v16470_v49 = vpack.c.bf16 %v16462_v3, %v16462_v3  ;;  %v24518_v41 = vld [vmem:[#allocation17 + $0x34c] ss:$16 sps:$4 sm:$0xff]   ;;  %v24531_v63 = vld [vmem:[#allocation17 + $0x3a0] ss:$16 sps:$4 sm:$0xff]  }
0x1079   : > { %17302 = vmatprep.subr.bf16.mxu0 %v24455_v2  ;;  %v24536_v32 = vld [vmem:[#allocation17 + $0x3ac] ss:$16 sps:$4 sm:$0xff]   ;;  %v24539_v2 = vld [vmem:[#allocation17 + $0x3c4] ss:$16 sps:$4 sm:$0xff]   ;;  %v24537_v3 = vld [vmem:[#allocation17 + $0x3c0] ss:$16 sps:$4 sm:$0xff]  }
0x107a   : > { %17293 = vmatprep.mubr.bf16.mxu0 %v16468_v57  ;;  %17375 = vmatprep.mubr.bf16.mxu1 %v16468_v57  ;;  %v24521_v57 = vld [vmem:[#allocation17 + $0x364] ss:$16 sps:$4 sm:$0xff]  }
0x107b   : > { %17294 = vmatmul.mubr.bf16.vlgmr.msra.gmra.mrb[0].mxu0 %v16467_v8  ;;  %17376 = vmatmul.mubr.bf16.vlgmr.msra.gmra.mrb[0].mxu1 %v16467_v8  ;;  %v24540_v8 = vld [vmem:[#allocation17 + $0x3c8] ss:$16 sps:$4 sm:$0xff]  }
0x107c   : > { %17303 = vmatpush1.bf16.msra.mxu0 %v24453_v12  ;;  %17385 = vmatpush1.bf16.msra.mxu1 %v24456_v10  ;;  %v24545_v12 = vld [vmem:[#allocation17 + $0x3e4] ss:$16 sps:$4 sm:$0xff]   ;;  %v24548_v10 = vld [vmem:[#allocation17 + $0x3ec] ss:$16 sps:$4 sm:$0xff]  }
0x107d   : > { %17304 = vmatprep.subr.bf16.mxu0 %v24461_v15  ;;  %17386 = vmatprep.subr.bf16.mxu1 %v24464_v17  ;;  %v24543_v15 = vld [vmem:[#allocation17 + $0x3e0] ss:$16 sps:$4 sm:$0xff]   ;;  %v24546_v17 = vld [vmem:[#allocation17 + $0x3e8] ss:$16 sps:$4 sm:$0xff]  }
0x107e   : > { %17334 = vmatprep.mubr.bf16.mxu0 %v16470_v49  ;;  %17416 = vmatprep.mubr.bf16.mxu1 %v16470_v49  ;;  %v16458_v49 = vrot.slane %v27147_v54, %v26314_v38  ;;  %v24563_v54 = vld [vmem:[#allocation20 + $0x44] ss:$16 sps:$4 sm:$0xff]  }
0x1080   : > { %17305 = vmatpush1.bf16.msra.mxu0 %v24459_v13  ;;  %17387 = vmatpush1.bf16.msra.mxu1 %v24462_v20  ;;  %v24551_v13 = vld [vmem:[#allocation20 + $0x4] ss:$16 sps:$4 sm:$0xff]   ;;  %v24554_v20 = vld [vmem:[#allocation20 + $0xc] ss:$16 sps:$4 sm:$0xff]  }
0x1081   : > { %17306 = vmatprep.subr.bf16.mxu0 %v24467_v44  ;;  %17388 = vmatprep.subr.bf16.mxu1 %v24470_v51  ;;  %v24549_v44 = vld [vmem:[#allocation20] ss:$16 sps:$4 sm:$0xff]   ;;  %v24552_v51 = vld [vmem:[#allocation20 + $0x8] ss:$16 sps:$4 sm:$0xff]  }
0x1084   : > { %17307 = vmatpush1.bf16.msra.mxu0 %v24465_v22  ;;  %17389 = vmatpush1.bf16.msra.mxu1 %v24468_v14  ;;  %v16469_v22 = vpack.c.bf16 %v16458_v49, %v16458_v49  ;;  %v24557_v14 = vld [vmem:[#allocation20 + $0x24] ss:$16 sps:$4 sm:$0xff]   ;;  %v24633_v49 = vld [vmem:[#allocation20 + $0x1c0] ss:$16 sps:$4 sm:$0xff]  }
0x1085   : > { %17308 = vmatprep.subr.bf16.mxu0 %v24473_v60  ;;  %17390 = vmatprep.subr.bf16.mxu1 %v24476_v50  ;;  %v24560_v60 = vld [vmem:[#allocation20 + $0x2c] ss:$16 sps:$4 sm:$0xff]   ;;  %v24555_v50 = vld [vmem:[#allocation20 + $0x20] ss:$16 sps:$4 sm:$0xff]  }
0x1088   : > { %17309 = vmatpush1.bf16.msra.mxu0 %v24471_v34  ;;  %17391 = vmatpush1.bf16.msra.mxu1 %v24474_v28  ;;  %v24558_v34 = vld [vmem:[#allocation20 + $0x28] ss:$16 sps:$4 sm:$0xff]   ;;  %v24566_v28 = vld [vmem:[#allocation20 + $0x4c] ss:$16 sps:$4 sm:$0xff]  }
0x1089   : > { %17310 = vmatprep.subr.bf16.mxu0 %v24479_v25  ;;  %17392 = vmatprep.subr.bf16.mxu1 %v24482_v11  ;;  %v24561_v25 = vld [vmem:[#allocation20 + $0x40] ss:$16 sps:$4 sm:$0xff]   ;;  %v24564_v11 = vld [vmem:[#allocation20 + $0x48] ss:$16 sps:$4 sm:$0xff]  }
0x108c   : > { %17311 = vmatpush1.bf16.msra.mxu0 %v24477_v45  ;;  %17393 = vmatpush1.bf16.msra.mxu1 %v24480_v37  ;;  %v24569_v45 = vld [vmem:[#allocation20 + $0x64] ss:$16 sps:$4 sm:$0xff]   ;;  %v24572_v37 = vld [vmem:[#allocation20 + $0x6c] ss:$16 sps:$4 sm:$0xff]  }
0x108d   : > { %17312 = vmatprep.subr.bf16.mxu0 %v24485_v53  ;;  %17394 = vmatprep.subr.bf16.mxu1 %v24488_v46  ;;  %v24567_v53 = vld [vmem:[#allocation20 + $0x60] ss:$16 sps:$4 sm:$0xff]   ;;  %v24570_v46 = vld [vmem:[#allocation20 + $0x68] ss:$16 sps:$4 sm:$0xff]  }
0x1090   : > { %17313 = vmatpush1.bf16.msra.mxu0 %v24483_v18  ;;  %17395 = vmatpush1.bf16.msra.mxu1 %v24486_v26  ;;  %v24575_v18 = vld [vmem:[#allocation20 + $0x84] ss:$16 sps:$4 sm:$0xff]   ;;  %v24578_v26 = vld [vmem:[#allocation20 + $0x8c] ss:$16 sps:$4 sm:$0xff]  }
0x1091   : > { %17314 = vmatprep.subr.bf16.mxu0 %v24491_v27  ;;  %17396 = vmatprep.subr.bf16.mxu1 %v24494_v30  ;;  %v24573_v27 = vld [vmem:[#allocation20 + $0x80] ss:$16 sps:$4 sm:$0xff]   ;;  %v24576_v30 = vld [vmem:[#allocation20 + $0x88] ss:$16 sps:$4 sm:$0xff]  }
0x1094   : > { %17315 = vmatpush1.bf16.msra.mxu0 %v24489_v23  ;;  %17397 = vmatpush1.bf16.msra.mxu1 %v24492_v40  ;;  %v24581_v23 = vld [vmem:[#allocation20 + $0xa4] ss:$16 sps:$4 sm:$0xff]   ;;  %v24584_v40 = vld [vmem:[#allocation20 + $0xac] ss:$16 sps:$4 sm:$0xff]  }
0x1095   : > { %17316 = vmatprep.subr.bf16.mxu0 %v24497_v5  ;;  %17398 = vmatprep.subr.bf16.mxu1 %v24500_v42  ;;  %v24579_v5 = vld [vmem:[#allocation20 + $0xa0] ss:$16 sps:$4 sm:$0xff]   ;;  %v24582_v42 = vld [vmem:[#allocation20 + $0xa8] ss:$16 sps:$4 sm:$0xff]  }
0x1098   : > { %17317 = vmatpush1.bf16.msra.mxu0 %v24495_v43  ;;  %17399 = vmatpush1.bf16.msra.mxu1 %v24498_v9  ;;  %v24587_v43 = vld [vmem:[#allocation20 + $0xc4] ss:$16 sps:$4 sm:$0xff]   ;;  %v24590_v9 = vld [vmem:[#allocation20 + $0xcc] ss:$16 sps:$4 sm:$0xff]  }
0x1099   : > { %17318 = vmatprep.subr.bf16.mxu0 %v24503_v0  ;;  %17400 = vmatprep.subr.bf16.mxu1 %v24506_v7  ;;  %v24585_v0 = vld [vmem:[#allocation20 + $0xc0] ss:$16 sps:$4 sm:$0xff]   ;;  %v24588_v7 = vld [vmem:[#allocation20 + $0xc8] ss:$16 sps:$4 sm:$0xff]  }
0x109c   : > { %17319 = vmatpush1.bf16.msra.mxu0 %v24501_v47  ;;  %17401 = vmatpush1.bf16.msra.mxu1 %v24504_v24  ;;  %v24593_v47 = vld [vmem:[#allocation20 + $0xe4] ss:$16 sps:$4 sm:$0xff]   ;;  %v24596_v24 = vld [vmem:[#allocation20 + $0xec] ss:$16 sps:$4 sm:$0xff]  }
0x109d   : > { %17320 = vmatprep.subr.bf16.mxu0 %v24509_v19  ;;  %17402 = vmatprep.subr.bf16.mxu1 %v24512_v29  ;;  %v24591_v19 = vld [vmem:[#allocation20 + $0xe0] ss:$16 sps:$4 sm:$0xff]   ;;  %v24594_v29 = vld [vmem:[#allocation20 + $0xe8] ss:$16 sps:$4 sm:$0xff]  }
0x10a0   : > { %17321 = vmatpush1.bf16.msra.mxu0 %v24507_v58  ;;  %17403 = vmatpush1.bf16.msra.mxu1 %v24510_v6  ;;  %v24599_v58 = vld [vmem:[#allocation20 + $0x104] ss:$16 sps:$4 sm:$0xff]   ;;  %v24602_v6 = vld [vmem:[#allocation20 + $0x10c] ss:$16 sps:$4 sm:$0xff]  }
0x10a1   : > { %17322 = vmatprep.subr.bf16.mxu0 %v24515_v31  ;;  %17404 = vmatprep.subr.bf16.mxu1 %v24518_v41  ;;  %v24597_v31 = vld [vmem:[#allocation20 + $0x100] ss:$16 sps:$4 sm:$0xff]   ;;  %v24600_v41 = vld [vmem:[#allocation20 + $0x108] ss:$16 sps:$4 sm:$0xff]  }
0x10a4   : > { %17323 = vmatpush1.bf16.msra.mxu0 %v24513_v55  ;;  %17405 = vmatpush1.bf16.msra.mxu1 %v24516_v56  ;;  %v24605_v55 = vld [vmem:[#allocation20 + $0x124] ss:$16 sps:$4 sm:$0xff]   ;;  %v24608_v56 = vld [vmem:[#allocation20 + $0x12c] ss:$16 sps:$4 sm:$0xff]  }
0x10a5   : > { %17324 = vmatprep.subr.bf16.mxu0 %v24521_v57  ;;  %17406 = vmatprep.subr.bf16.mxu1 %v24524_v33  ;;  %v24603_v57 = vld [vmem:[#allocation20 + $0x120] ss:$16 sps:$4 sm:$0xff]   ;;  %v24606_v33 = vld [vmem:[#allocation20 + $0x128] ss:$16 sps:$4 sm:$0xff]  }
0x10a8   : > { %17325 = vmatpush1.bf16.msra.mxu0 %v24519_v59  ;;  %17407 = vmatpush1.bf16.msra.mxu1 %v24522_v21  ;;  %v24611_v59 = vld [vmem:[#allocation20 + $0x144] ss:$16 sps:$4 sm:$0xff]   ;;  %v24614_v21 = vld [vmem:[#allocation20 + $0x14c] ss:$16 sps:$4 sm:$0xff]  }
0x10a9   : > { %17326 = vmatprep.subr.bf16.mxu0 %v24527_v48  ;;  %17408 = vmatprep.subr.bf16.mxu1 %v24530_v52  ;;  %v24609_v48 = vld [vmem:[#allocation20 + $0x140] ss:$16 sps:$4 sm:$0xff]   ;;  %v24612_v52 = vld [vmem:[#allocation20 + $0x148] ss:$16 sps:$4 sm:$0xff]  }
0x10ac   : > { %17327 = vmatpush1.bf16.msra.mxu0 %v24525_v16  ;;  %17409 = vmatpush1.bf16.msra.mxu1 %v24528_v61  ;;  %v24617_v16 = vld [vmem:[#allocation20 + $0x164] ss:$16 sps:$4 sm:$0xff]   ;;  %v24620_v61 = vld [vmem:[#allocation20 + $0x16c] ss:$16 sps:$4 sm:$0xff]  }
0x10ad   : > { %17328 = vmatprep.subr.bf16.mxu0 %v24533_v62  ;;  %17410 = vmatprep.subr.bf16.mxu1 %v24536_v32  ;;  %v24615_v62 = vld [vmem:[#allocation20 + $0x160] ss:$16 sps:$4 sm:$0xff]   ;;  %v24618_v32 = vld [vmem:[#allocation20 + $0x168] ss:$16 sps:$4 sm:$0xff]  }
0x10b0   : > { %17329 = vmatpush1.bf16.msra.mxu0 %v24531_v63  ;;  %17411 = vmatpush1.bf16.msra.mxu1 %v24534_v1  ;;  %v24623_v63 = vld [vmem:[#allocation20 + $0x184] ss:$16 sps:$4 sm:$0xff]   ;;  %v24626_v1 = vld [vmem:[#allocation20 + $0x18c] ss:$16 sps:$4 sm:$0xff]  }
0x10b1   : > { %17330 = vmatprep.subr.bf16.mxu0 %v24539_v2  ;;  %17412 = vmatprep.subr.bf16.mxu1 %v24542_v4  ;;  %v24621_v2 = vld [vmem:[#allocation20 + $0x180] ss:$16 sps:$4 sm:$0xff]   ;;  %v24624_v4 = vld [vmem:[#allocation20 + $0x188] ss:$16 sps:$4 sm:$0xff]  }
0x10b4   : > { %17331 = vmatpush1.bf16.msra.mxu0 %v24537_v3  ;;  %17413 = vmatpush1.bf16.msra.mxu1 %v24540_v8  ;;  %v24629_v3 = vld [vmem:[#allocation20 + $0x1a4] ss:$16 sps:$4 sm:$0xff]   ;;  %v24632_v8 = vld [vmem:[#allocation20 + $0x1ac] ss:$16 sps:$4 sm:$0xff]  }
0x10b5   : > { %17332 = vmatprep.subr.bf16.mxu0 %v24545_v12  ;;  %17414 = vmatprep.subr.bf16.mxu1 %v24548_v10  ;;  %v24627_v12 = vld [vmem:[#allocation20 + $0x1a0] ss:$16 sps:$4 sm:$0xff]   ;;  %v24630_v10 = vld [vmem:[#allocation20 + $0x1a8] ss:$16 sps:$4 sm:$0xff]  }
0x10b8   : > { %17333 = vmatpush1.bf16.msra.mxu0 %v24543_v15  ;;  %17415 = vmatpush1.bf16.msra.mxu1 %v24546_v17  ;;  %v24635_v15 = vld [vmem:[#allocation20 + $0x1c4] ss:$16 sps:$4 sm:$0xff]   ;;  %v24638_v17 = vld [vmem:[#allocation20 + $0x1cc] ss:$16 sps:$4 sm:$0xff]  }
0x10b9   : > { %18223 = vmatprep.subr.bf16.mxu0 %v24551_v13  ;;  %18305 = vmatprep.subr.bf16.mxu1 %v24554_v20  ;;  %v24636_v13 = vld [vmem:[#allocation20 + $0x1c8] ss:$16 sps:$4 sm:$0xff]   ;;  %v24641_v20 = vld [vmem:[#allocation20 + $0x1e4] ss:$16 sps:$4 sm:$0xff]  }
0x10bb   : > { %17335 = vmatmul.mubr.bf16.vlgmr.msra.gmra.mrb[0].mxu0 %v16469_v22  ;;  %17417 = vmatmul.mubr.bf16.vlgmr.msra.gmra.mrb[0].mxu1 %v16469_v22  ;;  %v24642_v22 = vld [vmem:[#allocation20 + $0x1e8] ss:$16 sps:$4 sm:$0xff]  }
0x10bc   : > { %18224 = vmatpush1.bf16.msra.mxu0 %v24549_v44  ;;  %18306 = vmatpush1.bf16.msra.mxu1 %v24552_v51  ;;  %v24644_v44 = vld [vmem:[#allocation20 + $0x1ec] ss:$16 sps:$4 sm:$0xff]   ;;  %v24639_v51 = vld [vmem:[#allocation20 + $0x1e0] ss:$16 sps:$4 sm:$0xff]  }
0x10bd   : > { %18225 = vmatprep.subr.bf16.mxu0 %v24557_v14  ;;  %18307 = vmatprep.subr.bf16.mxu1 %v24560_v60  ;;  %v24647_v14 = vld [vmem:[#allocation20 + $0x204] ss:$16 sps:$4 sm:$0xff]   ;;  %v24650_v60 = vld [vmem:[#allocation20 + $0x20c] ss:$16 sps:$4 sm:$0xff]  }
0x10c0   : > { %18226 = vmatpush1.bf16.msra.mxu0 %v24555_v50  ;;  %18308 = vmatpush1.bf16.msra.mxu1 %v24558_v34  ;;  %v27157_v50 = vld [vmem:[#allocation18] sm:$0xf] }
0x10c1   : > { %18227 = vmatprep.subr.bf16.mxu0 %v24563_v54  ;;  %18309 = vmatprep.subr.bf16.mxu1 %v24566_v28  ;;  %v17244_v34 = vrot.slane %v27157_v50, %v26317_v39  ;;  %v17248_v54 = vrot.slane %v27157_v50, %v26307_v35  ;;  %v17256_v28 = vrot.slane %v27157_v50, %v26310_v36 }
0x10c4   : > { %18228 = vmatpush1.bf16.msra.mxu0 %v24561_v25  ;;  %18310 = vmatpush1.bf16.msra.mxu1 %v24564_v11 }
0x10c5   : > { %18229 = vmatprep.subr.bf16.mxu0 %v24569_v45  ;;  %18311 = vmatprep.subr.bf16.mxu1 %v24572_v37 }
0x10c8   : > { %18230 = vmatpush1.bf16.msra.mxu0 %v24567_v53  ;;  %18312 = vmatpush1.bf16.msra.mxu1 %v24570_v46 }
0x10c9   : > { %18231 = vmatprep.subr.bf16.mxu0 %v24575_v18  ;;  %18313 = vmatprep.subr.bf16.mxu1 %v24578_v26 }
0x10cc   : > { %18232 = vmatpush1.bf16.msra.mxu0 %v24573_v27  ;;  %18314 = vmatpush1.bf16.msra.mxu1 %v24576_v30 }
0x10cd   : > { %18233 = vmatprep.subr.bf16.mxu0 %v24581_v23  ;;  %18315 = vmatprep.subr.bf16.mxu1 %v24584_v40 }
0x10d0   : > { %18234 = vmatpush1.bf16.msra.mxu0 %v24579_v5  ;;  %18316 = vmatpush1.bf16.msra.mxu1 %v24582_v42 }
0x10d1   : > { %18235 = vmatprep.subr.bf16.mxu0 %v24587_v43  ;;  %18317 = vmatprep.subr.bf16.mxu1 %v24590_v9  ;;  %v24645_v9 = vld [vmem:[#allocation20 + $0x200] ss:$16 sps:$4 sm:$0xff]  }
0x10d4   : > { %18236 = vmatpush1.bf16.msra.mxu0 %v24585_v0  ;;  %18318 = vmatpush1.bf16.msra.mxu1 %v24588_v7  ;;  %v24648_v0 = vld [vmem:[#allocation20 + $0x208] ss:$16 sps:$4 sm:$0xff]  }
0x10d5   : > { %18237 = vmatprep.subr.bf16.mxu0 %v24593_v47  ;;  %18319 = vmatprep.subr.bf16.mxu1 %v24596_v24  ;;  %v24653_v47 = vld [vmem:[#allocation20 + $0x224] ss:$16 sps:$4 sm:$0xff]   ;;  %v24656_v24 = vld [vmem:[#allocation20 + $0x22c] ss:$16 sps:$4 sm:$0xff]  }
0x10d8   : > { %18238 = vmatpush1.bf16.msra.mxu0 %v24591_v19  ;;  %18320 = vmatpush1.bf16.msra.mxu1 %v24594_v29  ;;  %v24651_v29 = vld [vmem:[#allocation20 + $0x220] ss:$16 sps:$4 sm:$0xff]  }
0x10d9   : > { %18239 = vmatprep.subr.bf16.mxu0 %v24599_v58  ;;  %18321 = vmatprep.subr.bf16.mxu1 %v24602_v6  ;;  %v24654_v58 = vld [vmem:[#allocation20 + $0x228] ss:$16 sps:$4 sm:$0xff]   ;;  %v24659_v6 = vld [vmem:[#allocation20 + $0x244] ss:$16 sps:$4 sm:$0xff]  }
0x10dc   : > { %18240 = vmatpush1.bf16.msra.mxu0 %v24597_v31  ;;  %18322 = vmatpush1.bf16.msra.mxu1 %v24600_v41  ;;  %v24662_v31 = vld [vmem:[#allocation20 + $0x24c] ss:$16 sps:$4 sm:$0xff]   ;;  %v24657_v41 = vld [vmem:[#allocation20 + $0x240] ss:$16 sps:$4 sm:$0xff]  }
0x10dd   : > { %18241 = vmatprep.subr.bf16.mxu0 %v24605_v55  ;;  %18323 = vmatprep.subr.bf16.mxu1 %v24608_v56  ;;  %v24660_v55 = vld [vmem:[#allocation20 + $0x248] ss:$16 sps:$4 sm:$0xff]   ;;  %v24665_v56 = vld [vmem:[#allocation20 + $0x264] ss:$16 sps:$4 sm:$0xff]  }
0x10e0   : > { %18242 = vmatpush1.bf16.msra.mxu0 %v24603_v57  ;;  %18324 = vmatpush1.bf16.msra.mxu1 %v24606_v33  ;;  %v24668_v57 = vld [vmem:[#allocation20 + $0x26c] ss:$16 sps:$4 sm:$0xff]   ;;  %v24663_v33 = vld [vmem:[#allocation20 + $0x260] ss:$16 sps:$4 sm:$0xff]  }
0x10e1   : > { %18243 = vmatprep.subr.bf16.mxu0 %v24611_v59  ;;  %18325 = vmatprep.subr.bf16.mxu1 %v24614_v21  ;;  %v24666_v59 = vld [vmem:[#allocation20 + $0x268] ss:$16 sps:$4 sm:$0xff]   ;;  %v24671_v21 = vld [vmem:[#allocation20 + $0x284] ss:$16 sps:$4 sm:$0xff]  }
0x10e4   : > { %18244 = vmatpush1.bf16.msra.mxu0 %v24609_v48  ;;  %18326 = vmatpush1.bf16.msra.mxu1 %v24612_v52  ;;  %v24674_v48 = vld [vmem:[#allocation20 + $0x28c] ss:$16 sps:$4 sm:$0xff]   ;;  %v24669_v52 = vld [vmem:[#allocation20 + $0x280] ss:$16 sps:$4 sm:$0xff]  }
0x10e5   : > { %18245 = vmatprep.subr.bf16.mxu0 %v24617_v16  ;;  %18327 = vmatprep.subr.bf16.mxu1 %v24620_v61  ;;  %v24672_v16 = vld [vmem:[#allocation20 + $0x288] ss:$16 sps:$4 sm:$0xff]   ;;  %v24677_v61 = vld [vmem:[#allocation20 + $0x2a4] ss:$16 sps:$4 sm:$0xff]  }
0x10e8   : > { %18246 = vmatpush1.bf16.msra.mxu0 %v24615_v62  ;;  %18328 = vmatpush1.bf16.msra.mxu1 %v24618_v32  ;;  %v24680_v62 = vld [vmem:[#allocation20 + $0x2ac] ss:$16 sps:$4 sm:$0xff]   ;;  %v24675_v32 = vld [vmem:[#allocation20 + $0x2a0] ss:$16 sps:$4 sm:$0xff]  }
0x10e9   : > { %18247 = vmatprep.subr.bf16.mxu0 %v24623_v63  ;;  %18329 = vmatprep.subr.bf16.mxu1 %v24626_v1  ;;  %v24678_v63 = vld [vmem:[#allocation20 + $0x2a8] ss:$16 sps:$4 sm:$0xff]   ;;  %v24683_v1 = vld [vmem:[#allocation20 + $0x2c4] ss:$16 sps:$4 sm:$0xff]  }
0x10ec   : > { %18248 = vmatpush1.bf16.msra.mxu0 %v24621_v2  ;;  %18330 = vmatpush1.bf16.msra.mxu1 %v24624_v4  ;;  %v24686_v2 = vld [vmem:[#allocation20 + $0x2cc] ss:$16 sps:$4 sm:$0xff]   ;;  %v24681_v4 = vld [vmem:[#allocation20 + $0x2c0] ss:$16 sps:$4 sm:$0xff]  }
0x10ed   : > { %18249 = vmatprep.subr.bf16.mxu0 %v24629_v3  ;;  %18331 = vmatprep.subr.bf16.mxu1 %v24632_v8  ;;  %v24684_v3 = vld [vmem:[#allocation20 + $0x2c8] ss:$16 sps:$4 sm:$0xff]   ;;  %v24689_v8 = vld [vmem:[#allocation20 + $0x2e4] ss:$16 sps:$4 sm:$0xff]  }
0x10f0   : > { %18250 = vmatpush1.bf16.msra.mxu0 %v24627_v12  ;;  %18332 = vmatpush1.bf16.msra.mxu1 %v24630_v10  ;;  %v24692_v12 = vld [vmem:[#allocation20 + $0x2ec] ss:$16 sps:$4 sm:$0xff]   ;;  %v24687_v10 = vld [vmem:[#allocation20 + $0x2e0] ss:$16 sps:$4 sm:$0xff]  }
0x10f1   : > { %18251 = vmatprep.subr.bf16.mxu0 %v24635_v15  ;;  %18333 = vmatprep.subr.bf16.mxu1 %v24638_v17  ;;  %v24690_v15 = vld [vmem:[#allocation20 + $0x2e8] ss:$16 sps:$4 sm:$0xff]   ;;  %v24695_v17 = vld [vmem:[#allocation20 + $0x304] ss:$16 sps:$4 sm:$0xff]  }
0x10f4   : > { %18252 = vmatpush1.bf16.msra.mxu0 %v24633_v49  ;;  %18334 = vmatpush1.bf16.msra.mxu1 %v24636_v13  ;;  %v24698_v49 = vld [vmem:[#allocation20 + $0x30c] ss:$16 sps:$4 sm:$0xff]   ;;  %v24693_v13 = vld [vmem:[#allocation20 + $0x300] ss:$16 sps:$4 sm:$0xff]  }
0x10f5   : > { %18253 = vmatprep.subr.bf16.mxu0 %v24641_v20  ;;  %18335 = vmatprep.subr.bf16.mxu1 %v24644_v44  ;;  %v24696_v20 = vld [vmem:[#allocation20 + $0x308] ss:$16 sps:$4 sm:$0xff]   ;;  %v24701_v44 = vld [vmem:[#allocation20 + $0x324] ss:$16 sps:$4 sm:$0xff]  }
0x10f8   : > { %18254 = vmatpush1.bf16.msra.mxu0 %v24639_v51  ;;  %18336 = vmatpush1.bf16.msra.mxu1 %v24642_v22  ;;  %v24704_v51 = vld [vmem:[#allocation20 + $0x32c] ss:$16 sps:$4 sm:$0xff]   ;;  %v24699_v22 = vld [vmem:[#allocation20 + $0x320] ss:$16 sps:$4 sm:$0xff]  }
0x10f9   : > { %18264 = vmatprep.subr.bf16.mxu0 %v24647_v14  ;;  %18346 = vmatprep.subr.bf16.mxu1 %v24650_v60  ;;  %v24702_v14 = vld [vmem:[#allocation20 + $0x328] ss:$16 sps:$4 sm:$0xff]   ;;  %v24707_v60 = vld [vmem:[#allocation20 + $0x344] ss:$16 sps:$4 sm:$0xff]  }
0x118e   : > { %v17336_v25 = vpop.f32.mrb[0].mxu0  ;;  %v27165_v11 = vpop.f32.mrb[0].mxu1 }
0x118f   : > { %v21827_v45 = vadd.f32 %v17336_v25, %v17244_v34  ;;  %v17338_v37 = vpop.f32.mrb[1].mxu0  ;;  %v17420_v53 = vpop.f32.mrb[1].mxu1  ;;  %v24710_v34 = vld [vmem:[#allocation20 + $0x34c] ss:$16 sps:$4 sm:$0xff]   ;;  %v24713_v25 = vld [vmem:[#allocation20 + $0x364] ss:$16 sps:$4 sm:$0xff]  }
0x1190   : > { %v21828_v46 = vadd.f32 %v17338_v37, %v17248_v54  ;;  %v21830_v18 = vadd.f32 %v17420_v53, %v17256_v28  ;;  %v17340_v26 = vpop.f32.mrb[2].mxu0  ;;  %v17422_v27 = vpop.f32.mrb[2].mxu1  ;;  %v24705_v54 = vld [vmem:[#allocation20 + $0x340] ss:$16 sps:$4 sm:$0xff]   ;;  %v24708_v28 = vld [vmem:[#allocation20 + $0x348] ss:$16 sps:$4 sm:$0xff]  }
0x1191   : > { %v17425_v30 = vmax.f32 %v21827_v45, 0.0  ;;  %v17341_v23 = vpop.f32.mrb[3].mxu0  ;;  %v17423_v40 = vpop.f32.mrb[3].mxu1  ;;  %v24716_v45 = vld [vmem:[#allocation20 + $0x36c] ss:$16 sps:$4 sm:$0xff]  }
0x1192   : > { %v17426_v5 = vmax.f32 %v21828_v46, 0.0  ;;  %v17428_v42 = vmax.f32 %v21830_v18, 0.0  ;;  %v24711_v37 = vld [vmem:[#allocation20 + $0x360] ss:$16 sps:$4 sm:$0xff]   ;;  %v24714_v53 = vld [vmem:[#allocation20 + $0x368] ss:$16 sps:$4 sm:$0xff]  }
0x1193   : > { %v17429_v7 = vpack.c.bf16 %v17425_v30, %v17425_v30  ;;  %v24719_v46 = vld [vmem:[#allocation20 + $0x384] ss:$16 sps:$4 sm:$0xff]   ;;  %v24722_v18 = vld [vmem:[#allocation20 + $0x38c] ss:$16 sps:$4 sm:$0xff]   ;;  %v24717_v26 = vld [vmem:[#allocation20 + $0x380] ss:$16 sps:$4 sm:$0xff]  }
0x1194   : > { %v17430_v43 = vpack.c.bf16 %v17426_v5, %v17426_v5  ;;  %v17432_v19 = vpack.c.bf16 %v17428_v42, %v17428_v42  ;;  %v24720_v27 = vld [vmem:[#allocation20 + $0x388] ss:$16 sps:$4 sm:$0xff]   ;;  %v24725_v30 = vld [vmem:[#allocation20 + $0x3a4] ss:$16 sps:$4 sm:$0xff]   ;;  %v24728_v23 = vld [vmem:[#allocation20 + $0x3ac] ss:$16 sps:$4 sm:$0xff]   ;;  %v17252_v42 = vrot.slane %v27157_v50, %v26314_v38 }
0x1195   : > { %v24723_v40 = vld [vmem:[#allocation20 + $0x3a0] ss:$16 sps:$4 sm:$0xff]   ;;  %v24726_v5 = vld [vmem:[#allocation20 + $0x3a8] ss:$16 sps:$4 sm:$0xff]  }
0x1196   : > { %18255 = vmatprep.mubr.bf16.mxu0 %v17430_v43  ;;  %18337 = vmatprep.mubr.bf16.mxu1 %v17430_v43  ;;  %v24731_v43 = vld [vmem:[#allocation20 + $0x3c4] ss:$16 sps:$4 sm:$0xff]  }
0x1197   : > { %18256 = vmatmul.mubr.bf16.vlgmr.msra.gmra.mrb[4].mxu0 %v17429_v7  ;;  %18338 = vmatmul.mubr.bf16.vlgmr.msra.gmra.mrb[4].mxu1 %v17429_v7  ;;  %v24732_v7 = vld [vmem:[#allocation20 + $0x3c8] ss:$16 sps:$4 sm:$0xff]  }
0x1198   : > { %18265 = vmatpush1.bf16.msra.mxu0 %v24645_v9  ;;  %18347 = vmatpush1.bf16.msra.mxu1 %v24648_v0  ;;  %v24734_v9 = vld [vmem:[#allocation20 + $0x3cc] ss:$16 sps:$4 sm:$0xff]   ;;  %v24729_v0 = vld [vmem:[#allocation20 + $0x3c0] ss:$16 sps:$4 sm:$0xff]   ;;  %v24741_v50 = vld [vmem:[#allocation23 + $0x40] sm:$0xff]  }
0x1199   : > { %18296 = vmatprep.mubr.bf16.mxu0 %v17432_v19  ;;  %18378 = vmatprep.mubr.bf16.mxu1 %v17432_v19  ;;  %v24740_v19 = vld [vmem:[#allocation20 + $0x3ec] ss:$16 sps:$4 sm:$0xff]  }
0x119a   : > { %18266 = vmatprep.subr.bf16.mxu0 %v24653_v47  ;;  %18348 = vmatprep.subr.bf16.mxu1 %v24656_v24  ;;  %v21829_v47 = vadd.f32 %v27165_v11, %v17252_v42  ;;  %v24737_v24 = vld [vmem:[#allocation20 + $0x3e4] ss:$16 sps:$4 sm:$0xff]   ;;  %v24745_v11 = vld [vmem:[#allocation23 + $0x48] sm:$0xff]  }
0x119c   : > { %18267 = vmatpush1.bf16.msra.mxu0 %v24651_v29  ;;  %18349 = vmatpush1.bf16.msra.mxu1 %v24654_v58  ;;  %v24735_v29 = vld [vmem:[#allocation20 + $0x3e0] ss:$16 sps:$4 sm:$0xff]   ;;  %v24738_v58 = vld [vmem:[#allocation20 + $0x3e8] ss:$16 sps:$4 sm:$0xff]  }
0x119d   : > { %18268 = vmatprep.subr.bf16.mxu0 %v24659_v6  ;;  %18350 = vmatprep.subr.bf16.mxu1 %v24662_v31  ;;  %v17427_v6 = vmax.f32 %v21829_v47, 0.0  ;;  %v24742_v31 = vld [vmem:[#allocation23 + $0xc0] sm:$0xff]  }
0x119e   : > { %v24773_v47 = vld [vmem:[#allocation26] sm:$0xff]  }
0x11a0   : > { %18269 = vmatpush1.bf16.msra.mxu0 %v24657_v41  ;;  %18351 = vmatpush1.bf16.msra.mxu1 %v24660_v55  ;;  %v24743_v41 = vld [vmem:[#allocation23] sm:$0xff]  }
0x11a1   : > { %18270 = vmatprep.subr.bf16.mxu0 %v24665_v56  ;;  %18352 = vmatprep.subr.bf16.mxu1 %v24668_v57  ;;  %v24744_v55 = vld [vmem:[#allocation23 + $0x80] sm:$0xff]   ;;  %v17431_v56 = vpack.c.bf16 %v17427_v6, %v17427_v6  ;;  %v24746_v57 = vld [vmem:[#allocation23 + $0xc8] sm:$0xff]  }
0x11a2   : > { %v24777_v6 = vld [vmem:[#allocation26 + $0x20] sm:$0xff]  }
0x11a4   : > { %18271 = vmatpush1.bf16.msra.mxu0 %v24663_v33  ;;  %18353 = vmatpush1.bf16.msra.mxu1 %v24666_v59  ;;  %v24747_v33 = vld [vmem:[#allocation23 + $0x8] sm:$0xff]  }
0x11a5   : > { %18272 = vmatprep.subr.bf16.mxu0 %v24671_v21  ;;  %18354 = vmatprep.subr.bf16.mxu1 %v24674_v48  ;;  %v24748_v59 = vld [vmem:[#allocation23 + $0x88] sm:$0xff]   ;;  %v24749_v21 = vld [vmem:[#allocation23 + $0x50] sm:$0xff]  }
0x11a6   : > { %v24750_v48 = vld [vmem:[#allocation23 + $0xd0] sm:$0xff]  }
0x11a8   : > { %18273 = vmatpush1.bf16.msra.mxu0 %v24669_v52  ;;  %18355 = vmatpush1.bf16.msra.mxu1 %v24672_v16  ;;  %v24751_v52 = vld [vmem:[#allocation23 + $0x10] sm:$0xff]  }
0x11a9   : > { %18274 = vmatprep.subr.bf16.mxu0 %v24677_v61  ;;  %18356 = vmatprep.subr.bf16.mxu1 %v24680_v62  ;;  %v24752_v16 = vld [vmem:[#allocation23 + $0x90] sm:$0xff]   ;;  %v24753_v61 = vld [vmem:[#allocation23 + $0x58] sm:$0xff]  }
0x11aa   : > { %v24754_v62 = vld [vmem:[#allocation23 + $0xd8] sm:$0xff]  }
0x11ac   : > { %18275 = vmatpush1.bf16.msra.mxu0 %v24675_v32  ;;  %18357 = vmatpush1.bf16.msra.mxu1 %v24678_v63  ;;  %v24755_v32 = vld [vmem:[#allocation23 + $0x18] sm:$0xff]  }
0x11ad   : > { %18276 = vmatprep.subr.bf16.mxu0 %v24683_v1  ;;  %18358 = vmatprep.subr.bf16.mxu1 %v24686_v2  ;;  %v24756_v63 = vld [vmem:[#allocation23 + $0x98] sm:$0xff]   ;;  %v24757_v1 = vld [vmem:[#allocation23 + $0x60] sm:$0xff]  }
0x11ae   : > { %v24758_v2 = vld [vmem:[#allocation23 + $0xe0] sm:$0xff]  }
0x11b0   : > { %18277 = vmatpush1.bf16.msra.mxu0 %v24681_v4  ;;  %18359 = vmatpush1.bf16.msra.mxu1 %v24684_v3  ;;  %v24759_v4 = vld [vmem:[#allocation23 + $0x20] sm:$0xff]  }
0x11b1   : > { %18278 = vmatprep.subr.bf16.mxu0 %v24689_v8  ;;  %18360 = vmatprep.subr.bf16.mxu1 %v24692_v12  ;;  %v24760_v3 = vld [vmem:[#allocation23 + $0xa0] sm:$0xff]   ;;  %v24761_v8 = vld [vmem:[#allocation23 + $0x68] sm:$0xff]  }
0x11b2   : > { %v24762_v12 = vld [vmem:[#allocation23 + $0xe8] sm:$0xff]  }
0x11b4   : > { %18279 = vmatpush1.bf16.msra.mxu0 %v24687_v10  ;;  %18361 = vmatpush1.bf16.msra.mxu1 %v24690_v15  ;;  %v24763_v10 = vld [vmem:[#allocation23 + $0x28] sm:$0xff]  }
0x11b5   : > { %18280 = vmatprep.subr.bf16.mxu0 %v24695_v17  ;;  %18362 = vmatprep.subr.bf16.mxu1 %v24698_v49  ;;  %v24764_v15 = vld [vmem:[#allocation23 + $0xa8] sm:$0xff]   ;;  %v24765_v17 = vld [vmem:[#allocation23 + $0x70] sm:$0xff]  }
0x11b6   : > { %v24766_v49 = vld [vmem:[#allocation23 + $0xf0] sm:$0xff]  }
0x11b8   : > { %18281 = vmatpush1.bf16.msra.mxu0 %v24693_v13  ;;  %18363 = vmatpush1.bf16.msra.mxu1 %v24696_v20  ;;  %v24767_v13 = vld [vmem:[#allocation23 + $0x30] sm:$0xff]  }
0x11b9   : > { %18282 = vmatprep.subr.bf16.mxu0 %v24701_v44  ;;  %18364 = vmatprep.subr.bf16.mxu1 %v24704_v51  ;;  %v24768_v20 = vld [vmem:[#allocation23 + $0xb0] sm:$0xff]   ;;  %v24769_v44 = vld [vmem:[#allocation23 + $0x78] sm:$0xff]  }
0x11ba   : > { %v24770_v51 = vld [vmem:[#allocation23 + $0xf8] sm:$0xff]  }
0x11bc   : > { %18283 = vmatpush1.bf16.msra.mxu0 %v24699_v22  ;;  %18365 = vmatpush1.bf16.msra.mxu1 %v24702_v14  ;;  %v24771_v22 = vld [vmem:[#allocation23 + $0x38] sm:$0xff]  }
0x11bd   : > { %18284 = vmatprep.subr.bf16.mxu0 %v24707_v60  ;;  %18366 = vmatprep.subr.bf16.mxu1 %v24710_v34  ;;  %v24772_v14 = vld [vmem:[#allocation23 + $0xb8] sm:$0xff]   ;;  %v25401_v60 = vmov 0.0  }
0x11be   : > { %v17561_v34 = vld [vmem:[#allocation21] sm:$0xf] }
0x11c0   : > { %18285 = vmatpush1.bf16.msra.mxu0 %v24705_v54  ;;  %18367 = vmatpush1.bf16.msra.mxu1 %v24708_v28  ;;  %v18206_v54 = vrot.slane %v17561_v34, %v26317_v39  ;;  %v18214_v28 = vrot.slane %v17561_v34, %v26314_v38 }
0x11c1   : > { %18286 = vmatprep.subr.bf16.mxu0 %v24713_v25  ;;  %18368 = vmatprep.subr.bf16.mxu1 %v24716_v45  ;;  %v18210_v25 = vrot.slane %v17561_v34, %v26307_v35  ;;  %v18218_v45 = vrot.slane %v17561_v34, %v26310_v36 }
0x11c4   : > { %18287 = vmatpush1.bf16.msra.mxu0 %v24711_v37  ;;  %18369 = vmatpush1.bf16.msra.mxu1 %v24714_v53 }
0x11c5   : > { %18288 = vmatprep.subr.bf16.mxu0 %v24719_v46  ;;  %18370 = vmatprep.subr.bf16.mxu1 %v24722_v18 }
0x11c8   : > { %18289 = vmatpush1.bf16.msra.mxu0 %v24717_v26  ;;  %18371 = vmatpush1.bf16.msra.mxu1 %v24720_v27 }
0x11c9   : > { %18290 = vmatprep.subr.bf16.mxu0 %v24725_v30  ;;  %18372 = vmatprep.subr.bf16.mxu1 %v24728_v23 }
0x11cc   : > { %18291 = vmatpush1.bf16.msra.mxu0 %v24723_v40  ;;  %18373 = vmatpush1.bf16.msra.mxu1 %v24726_v5 }
0x11cd   : > { %18292 = vmatprep.subr.bf16.mxu0 %v24731_v43  ;;  %18374 = vmatprep.subr.bf16.mxu1 %v24734_v9 }
0x11d0   : > { %18293 = vmatpush1.bf16.msra.mxu0 %v24729_v0  ;;  %18375 = vmatpush1.bf16.msra.mxu1 %v24732_v7 }
0x11d1   : > { %18294 = vmatprep.subr.bf16.mxu0 %v24737_v24  ;;  %18376 = vmatprep.subr.bf16.mxu1 %v24740_v19  ;;  %v24774_v19 = vld [vmem:[#allocation26 + $0x8] sm:$0xff]  }
0x11d4   : > { %18295 = vmatpush1.bf16.msra.mxu0 %v24735_v29  ;;  %18377 = vmatpush1.bf16.msra.mxu1 %v24738_v58  ;;  %v24775_v29 = vld [vmem:[#allocation26 + $0x10] sm:$0xff]   ;;  %v24776_v58 = vld [vmem:[#allocation26 + $0x18] sm:$0xff]  }
0x11d5   : > { %21526 = vmatprep.subr.bf16.mxu0 %v24741_v50  ;;  %21548 = vmatprep.subr.bf16.mxu1 %v24742_v31  ;;  %v24778_v50 = vld [vmem:[#allocation26 + $0x28] sm:$0xff]   ;;  %v24779_v31 = vld [vmem:[#allocation26 + $0x30] sm:$0xff]  }
0x11d7   : > { %18297 = vmatmul.mubr.bf16.vlgmr.msra.gmra.mrb[4].mxu0 %v17431_v56  ;;  %18379 = vmatmul.mubr.bf16.vlgmr.msra.gmra.mrb[4].mxu1 %v17431_v56 }
0x11d8   : > { %21527 = vmatpush3.bf16.msra.mxu0 %v24743_v41  ;;  %21549 = vmatpush3.bf16.msra.mxu1 %v24744_v55  ;;  %v24780_v41 = vld [vmem:[#allocation26 + $0x38] sm:$0xff]  }
0x11d9   : > { %21528 = vmatprep.subr.bf16.mxu0 %v24745_v11  ;;  %21550 = vmatprep.subr.bf16.mxu1 %v24746_v57  ;;  %v18459_v11 = vld [vmem:[#allocation24] sm:$0x1] }
0x11dc   : > { %21529 = vmatpush3.bf16.msra.mxu0 %v24747_v33  ;;  %21551 = vmatpush3.bf16.msra.mxu1 %v24748_v59 }
0x11dd   : > { %21530 = vmatprep.subr.bf16.mxu0 %v24749_v21  ;;  %21552 = vmatprep.subr.bf16.mxu1 %v24750_v48 }
0x11e0   : > { %21531 = vmatpush3.bf16.msra.mxu0 %v24751_v52  ;;  %21553 = vmatpush3.bf16.msra.mxu1 %v24752_v16 }
0x11e1   : > { %21532 = vmatprep.subr.bf16.mxu0 %v24753_v61  ;;  %21554 = vmatprep.subr.bf16.mxu1 %v24754_v62 }
0x11e4   : > { %21533 = vmatpush3.bf16.msra.mxu0 %v24755_v32  ;;  %21555 = vmatpush3.bf16.msra.mxu1 %v24756_v63 }
0x11e5   : > { %21534 = vmatprep.subr.bf16.mxu0 %v24757_v1  ;;  %21556 = vmatprep.subr.bf16.mxu1 %v24758_v2  ;;  %v18750_v2 = vld [vmem:[#allocation27] sm:$0x1] }
0x11e8   : > { %21535 = vmatpush3.bf16.msra.mxu0 %v24759_v4  ;;  %21557 = vmatpush3.bf16.msra.mxu1 %v24760_v3 }
0x11e9   : > { %21536 = vmatprep.subr.bf16.mxu0 %v24761_v8  ;;  %21558 = vmatprep.subr.bf16.mxu1 %v24762_v12 }
0x11ec   : > { %21537 = vmatpush3.bf16.msra.mxu0 %v24763_v10  ;;  %21559 = vmatpush3.bf16.msra.mxu1 %v24764_v15 }
0x11ed   : > { %21538 = vmatprep.subr.bf16.mxu0 %v24765_v17  ;;  %21560 = vmatprep.subr.bf16.mxu1 %v24766_v49 }
0x11f0   : > { %21539 = vmatpush3.bf16.msra.mxu0 %v24767_v13  ;;  %21561 = vmatpush3.bf16.msra.mxu1 %v24768_v20 }
0x11f1   : > { %21540 = vmatprep.subr.bf16.mxu0 %v24769_v44  ;;  %21562 = vmatprep.subr.bf16.mxu1 %v24770_v51 }
0x11f4   : > { %21541 = vmatpush3.bf16.msra.mxu0 %v24771_v22  ;;  %21563 = vmatpush3.bf16.msra.mxu1 %v24772_v14 }
0x11f5   : > { %21579 = vmatprep.subr.bf16.mxu0 %v25401_v60 }
0x12aa   : > { %v18298_v37 = vpop.f32.mrb[4].mxu0  ;;  %v18380_v53 = vpop.f32.mrb[4].mxu1 }
0x12ab   : > { %v21831_v46 = vadd.f32 %v18298_v37, %v18206_v54  ;;  %v21833_v18 = vadd.f32 %v18380_v53, %v18214_v28  ;;  %v18300_v26 = vpop.f32.mrb[5].mxu0  ;;  %v18382_v27 = vpop.f32.mrb[5].mxu1 }
0x12ac   : > { %v21832_v30 = vadd.f32 %v18300_v26, %v18210_v25  ;;  %v21834_v23 = vadd.f32 %v18382_v27, %v18218_v45  ;;  %v18302_v40 = vpop.f32.mrb[6].mxu0  ;;  %v18384_v5 = vpop.f32.mrb[6].mxu1 }
0x12ad   : > { %v18387_v42 = vmax.f32 %v21831_v46, 0.0  ;;  %v18389_v43 = vmax.f32 %v21833_v18, 0.0  ;;  %v18303_v9 = vpop.f32.mrb[7].mxu0  ;;  %v18385_v39 = vpop.f32.mrb[7].mxu1 }
0x12ae   : > { %v18388_v0 = vmax.f32 %v21832_v30, 0.0  ;;  %v18390_v38 = vmax.f32 %v21834_v23, 0.0 }
0x12af   : > { %v18391_v36 = vpack.c.bf16 %v18387_v42, %v18387_v42  ;;  %v18393_v24 = vpack.c.bf16 %v18389_v43, %v18389_v43 }
0x12b0   : > { %v18392_v7 = vpack.c.bf16 %v18388_v0, %v18388_v0  ;;  %v18394_v35 = vpack.c.bf16 %v18390_v38, %v18390_v38 }
0x12b2   : > { %18684 = vmatprep.mubr.bf16.mxu0 %v18392_v7  ;;  %18724 = vmatprep.mubr.bf16.mxu1 %v18394_v35 }
0x12b3   : > { %18685 = vmatmul.mubr.bf16.vlgmr.msra.gmra.mrb[8].mxu0 %v18391_v36  ;;  %18725 = vmatmul.mubr.bf16.vlgmr.msra.gmra.mrb[8].mxu1 %v18393_v24 }
0x12b4   : > { %21580 = vmatpush3.bf16.msra.mxu0 %v24773_v47  ;;  %21595 = vmatprep.mubr.msk.bf16.mxu0 %vm25402_vm8, %v25401_v60 }
0x12b5   : > { %21581 = vmatprep.subr.bf16.mxu0 %v25401_v60 }
0x12b8   : > { %21582 = vmatpush3.bf16.msra.mxu0 %v24774_v19 }
0x12b9   : > { %21583 = vmatprep.subr.bf16.mxu0 %v25401_v60 }
0x12bc   : > { %21584 = vmatpush3.bf16.msra.mxu0 %v24775_v29 }
0x12bd   : > { %21585 = vmatprep.subr.bf16.mxu0 %v25401_v60 }
0x12c0   : > { %21586 = vmatpush3.bf16.msra.mxu0 %v24776_v58 }
0x12c1   : > { %21587 = vmatprep.subr.bf16.mxu0 %v25401_v60 }
0x12c4   : > { %21588 = vmatpush3.bf16.msra.mxu0 %v24777_v6 }
0x12c5   : > { %21589 = vmatprep.subr.bf16.mxu0 %v25401_v60 }
0x12c8   : > { %21590 = vmatpush3.bf16.msra.mxu0 %v24778_v50 }
0x12c9   : > { %21591 = vmatprep.subr.bf16.mxu0 %v25401_v60 }
0x12cc   : > { %21592 = vmatpush3.bf16.msra.mxu0 %v24779_v31 }
0x12cd   : > { %21593 = vmatprep.subr.bf16.mxu0 %v25401_v60 }
0x12d0   : > { %21594 = vmatpush3.bf16.msra.mxu0 %v24780_v41 }
0x1386   : > { %v21542_v55 = vpop.f32.mrb[8].mxu0  ;;  %v21564_v56 = vpop.f32.mrb[8].mxu1 }
0x1387   : > { %v21543_v57 = vpop.f32.mrb[9].mxu0  ;;  %v21565_v33 = vpop.f32.mrb[9].mxu1 }
0x1388   : > { %v21544_v59 = vadd.f32 %v21543_v57, %v21542_v55  ;;  %v21566_v21 = vadd.f32 %v21565_v33, %v21564_v56  ;;  %v21545_v48 = vpop.f32.mrb[10].mxu0  ;;  %v21567_v52 = vpop.f32.mrb[10].mxu1 }
0x1389   : > { %v21546_v16 = vpop.f32.mrb[11].mxu0  ;;  %v21568_v61 = vpop.f32.mrb[11].mxu1 }
0x138a   : > { %v18687_v62 = vadd.f32 %v21544_v59, %v18459_v11 }
0x138c   : > { %v18727_v32 = vadd.f32 %v21566_v21, %v18687_v62 }
0x138e   : > { %v18732_v63 = vmax.f32 %v18727_v32, 0.0 }
0x1390   : > { %v18733_v1 = vpack.c.bf16 %v18732_v63, %v18732_v63 }
0x1392   : > { %21596 = vmatmul.mubr.bf16.vlgmr.msra.gmra.mrb[12].mxu0 %v18733_v1 }
0x1465   : > { %v18833_v4 = vpop.f32.mrb[12].mxu0 }
0x1466   : > { %v18834_v3 = vadd.f32 %v18833_v4, %v18750_v2  ;;  %v21597_v8 = vpop.f32.mrb[13].mxu0 }
0x1467   : > { %v18836_v12 = vpop.f32.mrb[14].mxu0 }
0x1468   : > { %v18839_v10 = vsub.f32 0.0, %v18834_v3  ;;  %v21598_v15 = vpop.f32.mrb[15].mxu0 }
0x146a   : > { %v18840_v17 = vmul.f32 1.442695, %v18839_v10 }
0x146c   : > { %24781 = vpow2.f32 %v18840_v17 }
0x1476   : > { %v24782_v49 = vpop.eup %24781 }
0x1477   : > { %v18842_v13 = vadd.f32 1.0, %v24782_v49 }
0x1479   : > { %24783 = vrcp.f32 %v18842_v13 }
0x1483   : > { %v24784_v20 = vpop.eup %24783 }
0x1484   : > { %18845 = vst [vmem:[#allocation29] sm:$0x1] %v24784_v20 }
0x1485 PF: > { %p21986_p2 = scmp.eq.s32.totalorder %s25516_s0, 3  ;;  %s25403_s20 = smov [#allocation29]  }
0x1486   : > { %s18853_s22 = sshll.u32 %s25403_s20, 4  ;;  %s25404_s1 = smov [#allocation30]   ;;  %s18854_s22 = int_to_ptr.vmem [resolvable:$true] %s18853_s22 }
0x1487   : > { %s18864_s29 = sshll.u32 %s25404_s1, 4  ;;  %s25243_s4 = scalar_lea.vmem %s18854_s22, 16  ;;  %s18865_s29 = int_to_ptr.vmem [resolvable:$true] %s18864_s29 }
0x1488   : > { %p25244_p5 = scmp.ne.s32.totalorder %s18854_s22, %s25243_s4  ;;  %s25249_s19 = scalar_lea.vmem %s18854_s22, 32 }
0x1489   : > { %p25250_p3 = scmp.lt.s32.totalorder %s18854_s22, %s18854_s22  ;;  %p25251_p0 = scmp.lt.s32.totalorder %s25249_s19, %s25243_s4 }
0x148a   : > { %p25245_p7 = pnand %p25244_p5, %p21986_p2 }
0x148b   : > { %p25252_p10 = por %p25251_p0, %p25250_p3 }
0x148c   : > { %p25246_p9 = pneg %p25245_p7 }
0x148e   : > { %p25253_p12 = pnand %p25252_p10, %p25246_p9 }
0x1490   : > { %25256 = shalt.err (!%p25253_p12)
}
0x1491   : > { %s27352_s26 = sld [smem:[#allocation62_spill]] }
0x1497   : > { %s27353_s5 = smov %s27352_s26  ;;  %s25257_s25 = scalar_lea.hbm %s27352_s26, 16 }
0x1498   : > { %p25258_p8 = scmp.ne.s32.totalorder %s27353_s5, %s25257_s25  ;;  %p25263_p4 = scmp.lt.u32.totalorder %s25257_s25, %s27353_s5 }
0x149a   : > { %p25259_p13 = pnand %p25258_p8, %p21986_p2 }
0x149c   : > { %p25260_p6 = pneg %p25259_p13 }
0x149e   : > { %p25265_p11 = pnand %p25263_p4, %p25260_p6 }
0x14a0   : > { %25268 = shalt.err (!%p25265_p11)
}
0x14a1   : > { %21906 = dma.vmem_to_hbm [thread:$0]  (%p21986_p2), %s18854_s22, 16, %s27353_s5, [#allocation5]  }
0x14a2   : > { %s25269_s27 = scalar_lea.vmem %s18865_s29, 128  ;;  %p25276_p9 = scmp.lt.s32.totalorder %s18865_s29, %s18865_s29 }
0x14a3   : > { %p25270_p1 = scmp.ne.s32.totalorder %s18865_s29, %s25269_s27  ;;  %p25277_p3 = scmp.lt.s32.totalorder %s25269_s27, %s25269_s27 }
0x14a5   : > { %p25271_p5 = pnand %p25270_p1, %p21986_p2  ;;  %p25278_p0 = por %p25277_p3, %p25276_p9 }
0x14a7   : > { %p25272_p7 = pneg %p25271_p5 }
0x14a9   : > { %p25279_p10 = pnand %p25278_p0, %p25272_p7 }
0x14ab   : > { %25282 = shalt.err (!%p25279_p10)
}
0x14ac   : > { %s27354_s28 = sld [smem:[#allocation63_spill]] }
0x14b2   : > { %s25283_s20 = scalar_lea.hbm %s27354_s28, 128 }
0x14b3   : > { %p25284_p12 = scmp.ne.s32.totalorder %s27354_s28, %s25283_s20  ;;  %p25289_p6 = scmp.lt.u32.totalorder %s25283_s20, %s27354_s28 }
0x14b5   : > { %p25285_p8 = pnand %p25284_p12, %p21986_p2 }
0x14b7   : > { %p25286_p13 = pneg %p25285_p8 }
0x14b9   : > { %p25291_p4 = pnand %p25289_p6, %p25286_p13 }
0x14bb   : > { %25294 = shalt.err (!%p25291_p4)
}
0x14bc   : > { %21908 = dma.vmem_to_hbm [thread:$0]  (%p21986_p2), %s18865_s29, 128, %s27354_s28, [#allocation31]  }
0x14bd   : > { %25352 = dma.done.wait (%p21986_p2), [#allocation5], 16  }
0x14be   : > { %25354 = vsyncadd (%p21986_p2), [#allocation5], 4294967280 }
0x14bf   : > { %25356 = dma.done.wait (%p21986_p2), [#allocation31], 128  }
0x14c0   : > { %25358 = vsyncadd (%p21986_p2), [#allocation31], 4294967168 }
0x14c1 PF: > { %s27355_s27 = sld [smem:[#allocation47_spill]]  ;;  %s27356_s24 = sld [smem:[#allocation44_spill]] }
0x14c2   : > { %s27357_s25 = sld [smem:[#allocation45_spill]]  ;;  %s27358_s26 = sld [smem:[#allocation48_spill]] }
0x14c7   : > { %p42_p11 = scmp.ge.s32.totalorder %s27355_s27, 6  }
0x14c9   :  { %44 = sbr.rel (!%p42_p11) target bundleno = 30 (0x1e), region = 238 }
0x14d0   :  { %18881 = vsyncpa [#allocation4], 1 }
0x14d1   :  { %18883 = vsyncpa [#allocation4 + $0x1], 1 }
0x14d2   :  { %18884 = vsyncpa [#allocation7], 1 }
0x14d3   :  { %18886 = vsyncpa [#allocation7 + $0x1], 1 }
0x14d4   :  { %18887 = vsyncpa [#allocation10], 1 }
0x14d5   :  { %18889 = vsyncpa [#allocation10 + $0x1], 1 }
0x14d6   :  { %18890 = vsyncpa [#allocation13], 1 }
0x14d7   :  { %18892 = vsyncpa [#allocation13 + $0x1], 1 }
0x14d8   :  { %18893 = vsyncpa [#allocation16], 1 }
0x14d9   :  { %18894 = vsyncpa [#allocation19], 1 }
0x14da   :  { %18895 = vsyncpa [#allocation22], 1 }
0x14db   :  { %18896 = vsyncpa [#allocation25], 1 }
0x14dc   :  { %18897 = vsyncpa [#allocation28], 1 }
0x14dd   :  { %18898 = vsyncpa [#allocation5], 1 }
0x14de   :  { %18900 = vsyncpa [#allocation5 + $0x1], 1 }
0x14df   :  { %18901 = vsyncpa [#allocation31], 1 }

</bundles_post_ra>
